<compile_context>
chip_gen: v7x
topology: tpu7x:2x2x1
jax: 0.10.0
libtpu: 0.0.40
codegen_flags: <defaults>
</compile_context>

<pallas_src>
import functools

import jax
import jax.numpy as jnp
from jax.experimental import pallas as pl
from jax.experimental.pallas import tpu as pltpu

BN_EPS = 1e-5
_VMEM = pl.BlockSpec(memory_space=pltpu.MemorySpace.VMEM)


def _vmem_limit_bytes():
    # v5e default scoped limit is only 16 MiB; v7x has just 64 MiB physical.
    try:
        cap = int(pltpu.get_tpu_info().vmem_capacity_bytes)
    except Exception:
        cap = 128 * 1024 * 1024
    return int(min(max(cap - 16 * 1024 * 1024, 32 * 1024 * 1024),
                   96 * 1024 * 1024))


_CPARAMS = pltpu.CompilerParams(vmem_limit_bytes=_vmem_limit_bytes())


# ----------------------------- small math helpers -----------------------------
def _softplus(x):
    # torch.nn.Softplus(beta=1, threshold=20), numerically stable.
    safe = jnp.minimum(x, 20.0)
    sp = jnp.maximum(safe, 0.0) + jnp.log(1.0 + jnp.exp(-jnp.abs(safe)))
    return jnp.where(x > 20.0, x, sp)


def _sigmoid(x):
    # stable sigmoid; one EUP exp + one approx EUP reciprocal, no divides.
    e = jnp.exp(-jnp.abs(x))
    d = pl.reciprocal(1.0 + e, approx=True)
    return jnp.where(x >= 0.0, d, e * d)


def _bn_scale_shift(s1, s2, n_rows, gamma, beta):
    # One-pass BatchNorm1d (training mode, biased variance) folded into a
    # single per-feature scale/shift.  f32 accumulators, variance clamped >=0.
    inv_n = 1.0 / n_rows
    mean = s1 * inv_n
    var = jnp.maximum(s2 * inv_n - mean * mean, 0.0)
    scale = jax.lax.rsqrt(var + BN_EPS) * gamma
    shift = beta - mean * scale
    return scale, shift


def _bf16_dot(x, w_bf16):
    # bf16 operands, f32 MXU accumulation.
    return jnp.dot(x.astype(jnp.bfloat16), w_bf16,
                   preferred_element_type=jnp.float32)


# ------------------- embedding + layer-0 atom projections ---------------------
def _embed_proj_kernel(x_ref, we_ref, be_ref, wc_ref, bc_ref,
                       h_ref, zs_ref, pn_ref):
    # atom_h0 = atom_fea @ W_emb + b_emb                        (N, A)
    h = _bf16_dot(x_ref[...], we_ref[...]) + be_ref[...]
    h_ref[...] = h.astype(h_ref.dtype)
    # proj0 = atom_h0 @ [W_self | W_nbr] + [b | 0]              (N, 4A)
    a2 = zs_ref.shape[1]
    proj = _bf16_dot(h, wc_ref[...]) + bc_ref[...]
    zs_ref[...] = proj[:, :a2].astype(zs_ref.dtype)   # self-proj (+ bias)
    pn_ref[...] = proj[:, a2:].astype(pn_ref.dtype)   # neighbor-proj


# ----------------------------- ConvLayer hot path ------------------------------
def _conv_kernel(*refs, has_next):
    if has_next:
        (atom_ref, zs_ref, pn_ref, idx_ref, bond_ref, wb_ref,
         g1_ref, be1_ref, g2_ref, be2_ref, wnext_ref, bnext_ref,
         atom_out_ref, zs_next_ref, pn_next_ref) = refs
    else:
        (atom_ref, zs_ref, pn_ref, idx_ref, bond_ref, wb_ref,
         g1_ref, be1_ref, g2_ref, be2_ref, atom_out_ref) = refs
        wnext_ref = bnext_ref = zs_next_ref = pn_next_ref = None

    N, A = atom_ref.shape
    A2 = 2 * A
    MN = idx_ref.shape[0]
    M = MN // N

    # ---- in-kernel neighbor gather: one-hot(idx) @ proj_nbr, all in VMEM ----
    lane = jax.lax.broadcasted_iota(jnp.int32, (MN, N), 1)
    onehot = jnp.where(lane == idx_ref[...], 1.0, 0.0).astype(jnp.bfloat16)
    zn = jnp.dot(onehot, pn_ref[...], preferred_element_type=jnp.float32)

    # ---- bond projection on the pair rows (K zero-padded to 128 multiple) ----
    zb = jnp.dot(bond_ref[...], wb_ref[...], preferred_element_type=jnp.float32)

    # ---- z = self-proj (broadcast over m) + gathered nbr-proj + bond-proj ----
    zs = zs_ref[...].astype(jnp.float32)                         # (N, 2A)
    z = ((zn + zb).reshape(M, N, A2) + zs[None]).reshape(MN, A2)

    # ---- bn1 over all N*M pair rows: one-pass stats + fused scale/shift ----
    s1 = jnp.sum(z, axis=0, keepdims=True)
    s2 = jnp.sum(z * z, axis=0, keepdims=True)
    scale, shift = _bn_scale_shift(s1, s2, MN, g1_ref[...], be1_ref[...])
    z = z * scale + shift

    # ---- gate, split at the 128-lane boundary ----
    gated = _sigmoid(z[:, :A]) * _softplus(z[:, A:])             # (MN, A)

    # ---- neighbor reduction: m-major layout -> cross-slab VPU adds ----
    nbr_sumed = jnp.sum(gated.reshape(M, N, A), axis=0)          # (N, A)

    # ---- bn2 + residual + softplus ----
    s1 = jnp.sum(nbr_sumed, axis=0, keepdims=True)
    s2 = jnp.sum(nbr_sumed * nbr_sumed, axis=0, keepdims=True)
    scale, shift = _bn_scale_shift(s1, s2, N, g2_ref[...], be2_ref[...])
    atom_out = _softplus(atom_ref[...].astype(jnp.float32)
                         + nbr_sumed * scale + shift)
    atom_out_ref[...] = atom_out.astype(atom_out_ref.dtype)

    if has_next:
        # fuse the NEXT layer's atom-side projections while atom_out is live.
        proj = _bf16_dot(atom_out, wnext_ref[...]) + bnext_ref[...]
        zs_next_ref[...] = proj[:, :A2].astype(zs_next_ref.dtype)
        pn_next_ref[...] = proj[:, A2:].astype(pn_next_ref.dtype)


# ----------------------------- fused post-conv tail ----------------------------
def _tail_kernel(*refs, n_hidden):
    it = iter(refs)
    pool_ref = next(it)        # (N0, N) bf16 mean-pooling matrix
    atom_ref = next(it)        # (N, A)  bf16
    c2f_wt = next(it); c2f_b = next(it)
    fcs = [(next(it), next(it)) for _ in range(n_hidden)]
    head_wt = next(it); head_b = next(it)
    o_ref = next(it)

    # per-crystal mean pooling as a tiny bf16-operand / f32-accumulate matmul.
    crys = jnp.dot(pool_ref[...], atom_ref[...],
                   preferred_element_type=jnp.float32)           # (N0, A)
    x = _softplus(crys)                                          # conv_to_fc_softplus
    x = _softplus(_bf16_dot(x, c2f_wt[...]) + c2f_b[...])        # conv_to_fc + softplus
    for wt, b in fcs:                                            # hidden fcs
        x = _softplus(_bf16_dot(x, wt[...]) + b[...])
    # fc_final and fc_out folded into one (H, 1) head (no nonlinearity between).
    o = jnp.dot(x, head_wt[...], preferred_element_type=jnp.float32) + head_b[...]
    o_ref[...] = o.astype(o_ref.dtype)


# ----------------------------- model wrappers ----------------------------------
def conv_stack(params, atom_fea, nbr_fea, nbr_fea_idx):
    """Embedding + all graph-conv layers. Returns atom_h of shape (N, A) bf16."""
    N, M = nbr_fea_idx.shape
    convs = params["convs"]
    n_conv = len(convs)
    A = convs[0]["wb"].shape[1] // 2
    Bp = convs[0]["wb"].shape[0]

    # m-major pair layout (row = m*N + n): the M-reduction becomes plain adds.
    bond_mn = nbr_fea.transpose(1, 0, 2).reshape(M * N, -1)
    pad = Bp - bond_mn.shape[1]
    if pad:
        bond_mn = jnp.pad(bond_mn, ((0, 0), (0, pad)))
    bond_mn = bond_mn.astype(jnp.bfloat16)
    idx_mn = nbr_fea_idx.T.reshape(M * N, 1).astype(jnp.int32)

    bf = jnp.bfloat16
    # embedding fused with the layer-0 atom-side projections.
    atom_h, zs, pn = pl.pallas_call(
        _embed_proj_kernel,
        out_shape=(jax.ShapeDtypeStruct((N, A), bf),
                   jax.ShapeDtypeStruct((N, 2 * A), bf),
                   jax.ShapeDtypeStruct((N, 2 * A), bf)),
        in_specs=[_VMEM] * 5,
        out_specs=(_VMEM,) * 3,
        compiler_params=_CPARAMS,
    )(atom_fea, params["emb_wt"], params["emb_b"],
      convs[0]["wcat"], convs[0]["bcat"])

    for l, cp in enumerate(convs):
        has_next = l + 1 < n_conv
        kern = functools.partial(_conv_kernel, has_next=has_next)
        args = (atom_h, zs, pn, idx_mn, bond_mn, cp["wb"],
                cp["g1"], cp["be1"], cp["g2"], cp["be2"])
        if has_next:
            nxt = convs[l + 1]
            atom_h, zs, pn = pl.pallas_call(
                kern,
                out_shape=(jax.ShapeDtypeStruct((N, A), bf),
                           jax.ShapeDtypeStruct((N, 2 * A), bf),
                           jax.ShapeDtypeStruct((N, 2 * A), bf)),
                in_specs=[_VMEM] * 12,
                out_specs=(_VMEM,) * 3,
                compiler_params=_CPARAMS,
            )(*args, nxt["wcat"], nxt["bcat"])
        else:
            atom_h = pl.pallas_call(
                kern,
                out_shape=jax.ShapeDtypeStruct((N, A), bf),
                in_specs=[_VMEM] * 10,
                out_specs=_VMEM,
                compiler_params=_CPARAMS,
            )(*args)
    return atom_h


def tail(params, atom_h, pool_mat):
    n_hidden = len(params["fcs"])
    N0 = pool_mat.shape[0]
    args = [pool_mat.astype(jnp.bfloat16), atom_h,
            params["c2f_wt"], params["c2f_b"]]
    for wt, b in params["fcs"]:
        args += [wt, b]
    args += [params["head_wt"], params["head_b"]]
    kern = functools.partial(_tail_kernel, n_hidden=n_hidden)
    return pl.pallas_call(
        kern,
        out_shape=jax.ShapeDtypeStruct((N0, 1), jnp.float32),
        in_specs=[_VMEM] * len(args),
        out_specs=_VMEM,
        compiler_params=_CPARAMS,
    )(*args)


def crystal_graph_conv_net(params, atom_fea, nbr_fea, nbr_fea_idx, pool_mat):
    """Regression branch (classification=False); returns (N0, 1)."""
    atom_h = conv_stack(params, atom_fea, nbr_fea, nbr_fea_idx)
    return tail(params, atom_h, pool_mat)


# ----------------------------- parameter init ----------------------------------
def _linear_init(key, fan_in, fan_out):
    # deterministic stand-in for torch's default kaiming-uniform Linear init
    k1, k2 = jax.random.split(key)
    bound = 1.0 / jnp.sqrt(jnp.asarray(fan_in, jnp.float32))
    w = jax.random.uniform(k1, (fan_out, fan_in), jnp.float32, -bound, bound)
    b = jax.random.uniform(k2, (fan_out,), jnp.float32, -bound, bound)
    return w, b


def init_params(key, orig_atom_fea_len, nbr_fea_len, atom_fea_len, n_conv,
                h_fea_len, n_h):
    A, B, H = atom_fea_len, nbr_fea_len, h_fea_len
    Bp = ((B + 127) // 128) * 128     # MXU-friendly (128-multiple) bond depth
    keys = iter(jax.random.split(key, 4 + n_conv + max(n_h - 1, 0)))
    params = {}

    w, b = _linear_init(next(keys), orig_atom_fea_len, A)
    params["emb_wt"] = w.T.astype(jnp.bfloat16)
    params["emb_b"] = b.reshape(1, -1)

    convs = []
    for _ in range(n_conv):
        # torch fc_full: weight (2A, 2A+B) over input cat([self, nbr, bond]).
        w, bb = _linear_init(next(keys), 2 * A + B, 2 * A)
        w_self = w[:, :A].T                      # (A, 2A)
        w_nbr = w[:, A:2 * A].T                  # (A, 2A)
        w_bond = w[:, 2 * A:].T                  # (B, 2A)
        wcat = jnp.concatenate([w_self, w_nbr], axis=1)                  # (A, 4A)
        bcat = jnp.concatenate([bb, jnp.zeros((2 * A,), jnp.float32)])   # (4A,)
        wb_p = jnp.zeros((Bp, 2 * A), jnp.float32).at[:B].set(w_bond)    # zero-pad K
        convs.append(dict(
            wcat=wcat.astype(jnp.bfloat16),
            bcat=bcat.reshape(1, -1),
            wb=wb_p.astype(jnp.bfloat16),
            g1=jnp.ones((1, 2 * A), jnp.float32),
            be1=jnp.zeros((1, 2 * A), jnp.float32),
            g2=jnp.ones((1, A), jnp.float32),
            be2=jnp.zeros((1, A), jnp.float32),
        ))
    params["convs"] = convs

    w, b = _linear_init(next(keys), A, H)
    params["c2f_wt"] = w.T.astype(jnp.bfloat16)
    params["c2f_b"] = b.reshape(1, -1)

    fcs = []
    for _ in range(max(n_h - 1, 0)):
        w, b = _linear_init(next(keys), H, H)
        fcs.append((w.T.astype(jnp.bfloat16), b.reshape(1, -1)))
    params["fcs"] = fcs

    # fc_final (H->3) and fc_out (3->1) folded into one (H, 1) head: exact,
    # since no nonlinearity sits between them.  Tiny heads stay f32.
    wf, bf_ = _linear_init(next(keys), H, 3)     # (3, H), (3,)
    wo, bo = _linear_init(next(keys), 3, 1)      # (1, 3), (1,)
    params["head_wt"] = wf.T @ wo.T              # (H, 1)
    params["head_b"] = (bf_ @ wo.T + bo).reshape(1, 1)
    return params


# ----------------------------------- main ---------------------------------------
if __name__ == "__main__":
    # small but lane/sublane-friendly synthetic problem
    ORIG = 64           # orig_atom_fea_len
    NBR_FEA_LEN = 64    # bond feature length (B) -> padded to 128 for the MXU
    ATOM_FEA_LEN = 128  # hidden atom features (A) -> 2A = 256 lane-dense
    N_CONV = 2
    H_FEA_LEN = 128
    N_H = 3
    N, M = 32, 8                  # atoms, max neighbors (N*M = 256 pair rows)
    crystal_sizes = [12, 10, 10]  # N0 = 3 crystals, sums to N
    N0 = len(crystal_sizes)

    key = jax.random.PRNGKey(0)
    k_par, k_atom, k_nbr, k_idx = jax.random.split(key, 4)

    params = init_params(k_par, ORIG, NBR_FEA_LEN, ATOM_FEA_LEN, N_CONV,
                         H_FEA_LEN, N_H)

    atom_fea = jax.random.normal(k_atom, (N, ORIG), jnp.float32)
    nbr_fea = jax.random.normal(k_nbr, (N, M, NBR_FEA_LEN), jnp.float32)
    nbr_fea_idx = jax.random.randint(k_idx, (N, M), 0, N, jnp.int32)

    # mean-pooling matrix from crystal_atom_idx (contiguous atom ranges)
    pool_rows = []
    start = 0
    for sz in crystal_sizes:
        row = jnp.zeros((N,), jnp.float32).at[start:start + sz].set(1.0 / sz)
        pool_rows.append(row)
        start += sz
    pool_mat = jnp.stack(pool_rows, axis=0)                      # (N0, N)

    fwd = jax.jit(crystal_graph_conv_net)
    out = fwd(params, atom_fea, nbr_fea, nbr_fea_idx, pool_mat)
    out = jax.block_until_ready(out)

    assert out.shape == (N0, 1), out.shape
    assert bool(jnp.all(jnp.isfinite(out)))
    print("KERNEL_OK")
</pallas_src>

<mosaic_0001>
module attributes {stable_mosaic.version = 11 : i64} {
  func.func @_embed_proj_kernel(%arg0: memref<32x64xf32, #tpu.memory_space<vmem>>, %arg1: memref<64x128xbf16, #tpu.memory_space<vmem>>, %arg2: memref<1x128xf32, #tpu.memory_space<vmem>>, %arg3: memref<128x512xbf16, #tpu.memory_space<vmem>>, %arg4: memref<1x512xf32, #tpu.memory_space<vmem>>, %arg5: memref<32x128xbf16, #tpu.memory_space<vmem>>, %arg6: memref<32x256xbf16, #tpu.memory_space<vmem>>, %arg7: memref<32x256xbf16, #tpu.memory_space<vmem>>) attributes {dimension_semantics = [], scalar_prefetch = 0 : i64, scratch_operands = 0 : i64, tpu.core_type = #tpu.core_type<tc>} {
    %c0 = arith.constant 0 : index
    %c0_0 = arith.constant 0 : index
    %0 = vector.load %arg0[%c0, %c0_0] : memref<32x64xf32, #tpu.memory_space<vmem>>, vector<32x64xf32>
    %c0_1 = arith.constant 0 : index
    %c0_2 = arith.constant 0 : index
    %1 = vector.load %arg1[%c0_1, %c0_2] : memref<64x128xbf16, #tpu.memory_space<vmem>>, vector<64x128xbf16>
    %2 = arith.truncf %0 : vector<32x64xf32> to vector<32x64xbf16>
    %cst = arith.constant dense<0.000000e+00> : vector<32x128xf32>
    %3 = tpu.matmul %2, %1, %cst {dimension_numbers = #tpu.dot_dimension_numbers<[1], [0], [0], [1], [0, 0, 1, 1], [], []>} : vector<32x64xbf16>, vector<64x128xbf16>, vector<32x128xf32> -> vector<32x128xf32>
    %c0_3 = arith.constant 0 : index
    %c0_4 = arith.constant 0 : index
    %4 = vector.load %arg2[%c0_3, %c0_4] : memref<1x128xf32, #tpu.memory_space<vmem>>, vector<1x128xf32>
    %5 = vector.broadcast %4 : vector<1x128xf32> to vector<32x128xf32>
    %6 = arith.addf %3, %5 : vector<32x128xf32>
    %7 = arith.truncf %6 : vector<32x128xf32> to vector<32x128xbf16>
    %c0_5 = arith.constant 0 : index
    %c0_6 = arith.constant 0 : index
    %8 = vector.load %arg5[%c0_5, %c0_6] : memref<32x128xbf16, #tpu.memory_space<vmem>>, vector<32x128xbf16>
    tpu.vector_store %arg5[%c0_5, %c0_6], %7 {strides = array<i32>} : memref<32x128xbf16, #tpu.memory_space<vmem>>, vector<32x128xbf16>,
    %c0_7 = arith.constant 0 : index
    %c0_8 = arith.constant 0 : index
    %9 = vector.load %arg3[%c0_7, %c0_8] : memref<128x512xbf16, #tpu.memory_space<vmem>>, vector<128x512xbf16>
    %10 = arith.truncf %6 : vector<32x128xf32> to vector<32x128xbf16>
    %cst_9 = arith.constant dense<0.000000e+00> : vector<32x512xf32>
    %11 = tpu.matmul %10, %9, %cst_9 {dimension_numbers = #tpu.dot_dimension_numbers<[1], [0], [0], [1], [0, 0, 1, 1], [], []>} : vector<32x128xbf16>, vector<128x512xbf16>, vector<32x512xf32> -> vector<32x512xf32>
    %c0_10 = arith.constant 0 : index
    %c0_11 = arith.constant 0 : index
    %12 = vector.load %arg4[%c0_10, %c0_11] : memref<1x512xf32, #tpu.memory_space<vmem>>, vector<1x512xf32>
    %13 = vector.broadcast %12 : vector<1x512xf32> to vector<32x512xf32>
    %14 = arith.addf %11, %13 : vector<32x512xf32>
    %15 = vector.extract_strided_slice %14 {offsets = [0, 0], sizes = [32, 256], strides = [1, 1]} : vector<32x512xf32> to vector<32x256xf32>
    %16 = arith.truncf %15 : vector<32x256xf32> to vector<32x256xbf16>
    %c0_12 = arith.constant 0 : index
    %c0_13 = arith.constant 0 : index
    %17 = vector.load %arg6[%c0_12, %c0_13] : memref<32x256xbf16, #tpu.memory_space<vmem>>, vector<32x256xbf16>
    tpu.vector_store %arg6[%c0_12, %c0_13], %16 {strides = array<i32>} : memref<32x256xbf16, #tpu.memory_space<vmem>>, vector<32x256xbf16>,
    %18 = vector.extract_strided_slice %14 {offsets = [0, 256], sizes = [32, 256], strides = [1, 1]} : vector<32x512xf32> to vector<32x256xf32>
    %19 = arith.truncf %18 : vector<32x256xf32> to vector<32x256xbf16>
    %c0_14 = arith.constant 0 : index
    %c0_15 = arith.constant 0 : index
    %20 = vector.load %arg7[%c0_14, %c0_15] : memref<32x256xbf16, #tpu.memory_space<vmem>>, vector<32x256xbf16>
    tpu.vector_store %arg7[%c0_14, %c0_15], %19 {strides = array<i32>} : memref<32x256xbf16, #tpu.memory_space<vmem>>, vector<32x256xbf16>,
    return
  }
}

module attributes {stable_mosaic.version = 11 : i64} {
  func.func @_conv_kernel(%arg0: memref<32x128xbf16, #tpu.memory_space<vmem>>, %arg1: memref<32x256xbf16, #tpu.memory_space<vmem>>, %arg2: memref<32x256xbf16, #tpu.memory_space<vmem>>, %arg3: memref<256x1xi32, #tpu.memory_space<vmem>>, %arg4: memref<256x128xbf16, #tpu.memory_space<vmem>>, %arg5: memref<128x256xbf16, #tpu.memory_space<vmem>>, %arg6: memref<1x256xf32, #tpu.memory_space<vmem>>, %arg7: memref<1x256xf32, #tpu.memory_space<vmem>>, %arg8: memref<1x128xf32, #tpu.memory_space<vmem>>, %arg9: memref<1x128xf32, #tpu.memory_space<vmem>>, %arg10: memref<128x512xbf16, #tpu.memory_space<vmem>>, %arg11: memref<1x512xf32, #tpu.memory_space<vmem>>, %arg12: memref<32x128xbf16, #tpu.memory_space<vmem>>, %arg13: memref<32x256xbf16, #tpu.memory_space<vmem>>, %arg14: memref<32x256xbf16, #tpu.memory_space<vmem>>) attributes {dimension_semantics = [], scalar_prefetch = 0 : i64, scratch_operands = 0 : i64, tpu.core_type = #tpu.core_type<tc>} {
    %0 = tpu.iota {dimensions = array<i32: 1>} : vector<256x32xi32>
    %c0 = arith.constant 0 : index
    %c0_0 = arith.constant 0 : index
    %1 = vector.load %arg3[%c0, %c0_0] : memref<256x1xi32, #tpu.memory_space<vmem>>, vector<256x1xi32>
    %2 = vector.broadcast %1 : vector<256x1xi32> to vector<256x32xi32>
    %3 = arith.cmpi eq, %0, %2 : vector<256x32xi32>
    %cst = arith.constant 1.000000e+00 : f32
    %cst_1 = arith.constant 0.000000e+00 : f32
    %4 = vector.broadcast %cst : f32 to vector<256x32xf32>
    %5 = vector.broadcast %cst_1 : f32 to vector<256x32xf32>
    %6 = arith.select %3, %4, %5 : vector<256x32xi1>, vector<256x32xf32>
    %7 = arith.truncf %6 : vector<256x32xf32> to vector<256x32xbf16>
    %c0_2 = arith.constant 0 : index
    %c0_3 = arith.constant 0 : index
    %8 = vector.load %arg2[%c0_2, %c0_3] : memref<32x256xbf16, #tpu.memory_space<vmem>>, vector<32x256xbf16>
    %cst_4 = arith.constant dense<0.000000e+00> : vector<256x256xf32>
    %9 = tpu.matmul %7, %8, %cst_4 {dimension_numbers = #tpu.dot_dimension_numbers<[1], [0], [0], [1], [0, 0, 1, 1], [], []>} : vector<256x32xbf16>, vector<32x256xbf16>, vector<256x256xf32> -> vector<256x256xf32>
    %c0_5 = arith.constant 0 : index
    %c0_6 = arith.constant 0 : index
    %10 = vector.load %arg4[%c0_5, %c0_6] : memref<256x128xbf16, #tpu.memory_space<vmem>>, vector<256x128xbf16>
    %c0_7 = arith.constant 0 : index
    %c0_8 = arith.constant 0 : index
    %11 = vector.load %arg5[%c0_7, %c0_8] : memref<128x256xbf16, #tpu.memory_space<vmem>>, vector<128x256xbf16>
    %cst_9 = arith.constant dense<0.000000e+00> : vector<256x256xf32>
    %12 = tpu.matmul %10, %11, %cst_9 {dimension_numbers = #tpu.dot_dimension_numbers<[1], [0], [0], [1], [0, 0, 1, 1], [], []>} : vector<256x128xbf16>, vector<128x256xbf16>, vector<256x256xf32> -> vector<256x256xf32>
    %c0_10 = arith.constant 0 : index
    %c0_11 = arith.constant 0 : index
    %13 = vector.load %arg1[%c0_10, %c0_11] : memref<32x256xbf16, #tpu.memory_space<vmem>>, vector<32x256xbf16>
    %14 = arith.extf %13 : vector<32x256xbf16> to vector<32x256xf32>
    %15 = arith.addf %9, %12 : vector<256x256xf32>
    %16 = vector.shape_cast %15 : vector<256x256xf32> to vector<8x32x256xf32>
    %17 = vector.shape_cast %14 : vector<32x256xf32> to vector<1x32x256xf32>
    %18 = vector.broadcast %17 : vector<1x32x256xf32> to vector<8x32x256xf32>
    %19 = arith.addf %16, %18 : vector<8x32x256xf32>
    %20 = vector.shape_cast %19 : vector<8x32x256xf32> to vector<256x256xf32>
    %cst_12 = arith.constant dense<0.000000e+00> : vector<256xf32>
    %21 = vector.multi_reduction <add>, %20, %cst_12 [0] : vector<256x256xf32> to vector<256xf32>
    %22 = vector.shape_cast %21 : vector<256xf32> to vector<1x256xf32>
    %23 = arith.mulf %20, %20 : vector<256x256xf32>
    %cst_13 = arith.constant dense<0.000000e+00> : vector<256xf32>
    %24 = vector.multi_reduction <add>, %23, %cst_13 [0] : vector<256x256xf32> to vector<256xf32>
    %25 = vector.shape_cast %24 : vector<256xf32> to vector<1x256xf32>
    %c0_14 = arith.constant 0 : index
    %c0_15 = arith.constant 0 : index
    %26 = vector.load %arg6[%c0_14, %c0_15] : memref<1x256xf32, #tpu.memory_space<vmem>>, vector<1x256xf32>
    %c0_16 = arith.constant 0 : index
    %c0_17 = arith.constant 0 : index
    %27 = vector.load %arg7[%c0_16, %c0_17] : memref<1x256xf32, #tpu.memory_space<vmem>>, vector<1x256xf32>
    %cst_18 = arith.constant 3.906250e-03 : f32
    %28 = vector.broadcast %cst_18 : f32 to vector<1x256xf32>
    %29 = arith.mulf %22, %28 : vector<1x256xf32>
    %cst_19 = arith.constant 3.906250e-03 : f32
    %30 = vector.broadcast %cst_19 : f32 to vector<1x256xf32>
    %31 = arith.mulf %25, %30 : vector<1x256xf32>
    %32 = arith.mulf %29, %29 : vector<1x256xf32>
    %33 = arith.subf %31, %32 : vector<1x256xf32>
    %cst_20 = arith.constant 0.000000e+00 : f32
    %34 = vector.broadcast %cst_20 : f32 to vector<1x256xf32>
    %35 = arith.maximumf %33, %34 : vector<1x256xf32>
    %cst_21 = arith.constant 9.99999974E-6 : f32
    %36 = vector.broadcast %cst_21 : f32 to vector<1x256xf32>
    %37 = arith.addf %35, %36 : vector<1x256xf32>
    %38 = math.rsqrt %37 : vector<1x256xf32>
    %39 = arith.mulf %38, %26 : vector<1x256xf32>
    %40 = arith.mulf %29, %39 : vector<1x256xf32>
    %41 = arith.subf %27, %40 : vector<1x256xf32>
    %42 = vector.broadcast %39 : vector<1x256xf32> to vector<256x256xf32>
    %43 = arith.mulf %20, %42 : vector<256x256xf32>
    %44 = vector.broadcast %41 : vector<1x256xf32> to vector<256x256xf32>
    %45 = arith.addf %43, %44 : vector<256x256xf32>
    %46 = vector.extract_strided_slice %45 {offsets = [0, 0], sizes = [256, 128], strides = [1, 1]} : vector<256x256xf32> to vector<256x128xf32>
    %47 = math.absf %46 : vector<256x128xf32>
    %cst_22 = arith.constant 0.000000e+00 : f32
    %48 = vector.broadcast %cst_22 : f32 to vector<256x128xf32>
    %49 = arith.subf %48, %47 : vector<256x128xf32>
    %50 = math.exp %49 : vector<256x128xf32>
    %cst_23 = arith.constant 1.000000e+00 : f32
    %51 = vector.broadcast %cst_23 : f32 to vector<256x128xf32>
    %52 = arith.addf %51, %50 : vector<256x128xf32>
    %53 = tpu.reciprocal %52 {approx = true} : vector<256x128xf32> -> vector<256x128xf32>
    %cst_24 = arith.constant 0.000000e+00 : f32
    %54 = vector.broadcast %cst_24 : f32 to vector<256x128xf32>
    %55 = arith.cmpf oge, %46, %54 : vector<256x128xf32>
    %56 = arith.mulf %50, %53 : vector<256x128xf32>
    %57 = arith.select %55, %53, %56 : vector<256x128xi1>, vector<256x128xf32>
    %58 = vector.extract_strided_slice %45 {offsets = [0, 128], sizes = [256, 128], strides = [1, 1]} : vector<256x256xf32> to vector<256x128xf32>
    %cst_25 = arith.constant 2.000000e+01 : f32
    %59 = vector.broadcast %cst_25 : f32 to vector<256x128xf32>
    %60 = arith.minimumf %58, %59 : vector<256x128xf32>
    %cst_26 = arith.constant 0.000000e+00 : f32
    %61 = vector.broadcast %cst_26 : f32 to vector<256x128xf32>
    %62 = arith.maximumf %60, %61 : vector<256x128xf32>
    %63 = math.absf %60 : vector<256x128xf32>
    %cst_27 = arith.constant 0.000000e+00 : f32
    %64 = vector.broadcast %cst_27 : f32 to vector<256x128xf32>
    %65 = arith.subf %64, %63 : vector<256x128xf32>
    %66 = math.exp %65 : vector<256x128xf32>
    %cst_28 = arith.constant 1.000000e+00 : f32
    %67 = vector.broadcast %cst_28 : f32 to vector<256x128xf32>
    %68 = arith.addf %67, %66 : vector<256x128xf32>
    %69 = math.log %68 : vector<256x128xf32>
    %70 = arith.addf %62, %69 : vector<256x128xf32>
    %cst_29 = arith.constant 2.000000e+01 : f32
    %71 = vector.broadcast %cst_29 : f32 to vector<256x128xf32>
    %72 = arith.cmpf ogt, %58, %71 : vector<256x128xf32>
    %73 = arith.select %72, %58, %70 : vector<256x128xi1>, vector<256x128xf32>
    %74 = arith.mulf %57, %73 : vector<256x128xf32>
    %75 = vector.shape_cast %74 : vector<256x128xf32> to vector<8x32x128xf32>
    %cst_30 = arith.constant dense<0.000000e+00> : vector<32x128xf32>
    %76 = vector.multi_reduction <add>, %75, %cst_30 [0] : vector<8x32x128xf32> to vector<32x128xf32>
    %cst_31 = arith.constant dense<0.000000e+00> : vector<128xf32>
    %77 = vector.multi_reduction <add>, %76, %cst_31 [0] : vector<32x128xf32> to vector<128xf32>
    %78 = vector.shape_cast %77 : vector<128xf32> to vector<1x128xf32>
    %79 = arith.mulf %76, %76 : vector<32x128xf32>
    %cst_32 = arith.constant dense<0.000000e+00> : vector<128xf32>
    %80 = vector.multi_reduction <add>, %79, %cst_32 [0] : vector<32x128xf32> to vector<128xf32>
    %81 = vector.shape_cast %80 : vector<128xf32> to vector<1x128xf32>
    %c0_33 = arith.constant 0 : index
    %c0_34 = arith.constant 0 : index
    %82 = vector.load %arg8[%c0_33, %c0_34] : memref<1x128xf32, #tpu.memory_space<vmem>>, vector<1x128xf32>
    %c0_35 = arith.constant 0 : index
    %c0_36 = arith.constant 0 : index
    %83 = vector.load %arg9[%c0_35, %c0_36] : memref<1x128xf32, #tpu.memory_space<vmem>>, vector<1x128xf32>
    %cst_37 = arith.constant 3.125000e-02 : f32
    %84 = vector.broadcast %cst_37 : f32 to vector<1x128xf32>
    %85 = arith.mulf %78, %84 : vector<1x128xf32>
    %cst_38 = arith.constant 3.125000e-02 : f32
    %86 = vector.broadcast %cst_38 : f32 to vector<1x128xf32>
    %87 = arith.mulf %81, %86 : vector<1x128xf32>
    %88 = arith.mulf %85, %85 : vector<1x128xf32>
    %89 = arith.subf %87, %88 : vector<1x128xf32>
    %cst_39 = arith.constant 0.000000e+00 : f32
    %90 = vector.broadcast %cst_39 : f32 to vector<1x128xf32>
    %91 = arith.maximumf %89, %90 : vector<1x128xf32>
    %cst_40 = arith.constant 9.99999974E-6 : f32
    %92 = vector.broadcast %cst_40 : f32 to vector<1x128xf32>
    %93 = arith.addf %91, %92 : vector<1x128xf32>
    %94 = math.rsqrt %93 : vector<1x128xf32>
    %95 = arith.mulf %94, %82 : vector<1x128xf32>
    %96 = arith.mulf %85, %95 : vector<1x128xf32>
    %97 = arith.subf %83, %96 : vector<1x128xf32>
    %c0_41 = arith.constant 0 : index
    %c0_42 = arith.constant 0 : index
    %98 = vector.load %arg0[%c0_41, %c0_42] : memref<32x128xbf16, #tpu.memory_space<vmem>>, vector<32x128xbf16>
    %99 = arith.extf %98 : vector<32x128xbf16> to vector<32x128xf32>
    %100 = vector.broadcast %95 : vector<1x128xf32> to vector<32x128xf32>
    %101 = arith.mulf %76, %100 : vector<32x128xf32>
    %102 = arith.addf %99, %101 : vector<32x128xf32>
    %103 = vector.broadcast %97 : vector<1x128xf32> to vector<32x128xf32>
    %104 = arith.addf %102, %103 : vector<32x128xf32>
    %cst_43 = arith.constant 2.000000e+01 : f32
    %105 = vector.broadcast %cst_43 : f32 to vector<32x128xf32>
    %106 = arith.minimumf %104, %105 : vector<32x128xf32>
    %cst_44 = arith.constant 0.000000e+00 : f32
    %107 = vector.broadcast %cst_44 : f32 to vector<32x128xf32>
    %108 = arith.maximumf %106, %107 : vector<32x128xf32>
    %109 = math.absf %106 : vector<32x128xf32>
    %cst_45 = arith.constant 0.000000e+00 : f32
    %110 = vector.broadcast %cst_45 : f32 to vector<32x128xf32>
    %111 = arith.subf %110, %109 : vector<32x128xf32>
    %112 = math.exp %111 : vector<32x128xf32>
    %cst_46 = arith.constant 1.000000e+00 : f32
    %113 = vector.broadcast %cst_46 : f32 to vector<32x128xf32>
    %114 = arith.addf %113, %112 : vector<32x128xf32>
    %115 = math.log %114 : vector<32x128xf32>
    %116 = arith.addf %108, %115 : vector<32x128xf32>
    %cst_47 = arith.constant 2.000000e+01 : f32
    %117 = vector.broadcast %cst_47 : f32 to vector<32x128xf32>
    %118 = arith.cmpf ogt, %104, %117 : vector<32x128xf32>
    %119 = arith.select %118, %104, %116 : vector<32x128xi1>, vector<32x128xf32>
    %120 = arith.truncf %119 : vector<32x128xf32> to vector<32x128xbf16>
    %c0_48 = arith.constant 0 : index
    %c0_49 = arith.constant 0 : index
    %121 = vector.load %arg12[%c0_48, %c0_49] : memref<32x128xbf16, #tpu.memory_space<vmem>>, vector<32x128xbf16>
    tpu.vector_store %arg12[%c0_48, %c0_49], %120 {strides = array<i32>} : memref<32x128xbf16, #tpu.memory_space<vmem>>, vector<32x128xbf16>,
    %c0_50 = arith.constant 0 : index
    %c0_51 = arith.constant 0 : index
    %122 = vector.load %arg10[%c0_50, %c0_51] : memref<128x512xbf16, #tpu.memory_space<vmem>>, vector<128x512xbf16>
    %123 = arith.truncf %119 : vector<32x128xf32> to vector<32x128xbf16>
    %cst_52 = arith.constant dense<0.000000e+00> : vector<32x512xf32>
    %124 = tpu.matmul %123, %122, %cst_52 {dimension_numbers = #tpu.dot_dimension_numbers<[1], [0], [0], [1], [0, 0, 1, 1], [], []>} : vector<32x128xbf16>, vector<128x512xbf16>, vector<32x512xf32> -> vector<32x512xf32>
    %c0_53 = arith.constant 0 : index
    %c0_54 = arith.constant 0 : index
    %125 = vector.load %arg11[%c0_53, %c0_54] : memref<1x512xf32, #tpu.memory_space<vmem>>, vector<1x512xf32>
    %126 = vector.broadcast %125 : vector<1x512xf32> to vector<32x512xf32>
    %127 = arith.addf %124, %126 : vector<32x512xf32>
    %128 = vector.extract_strided_slice %127 {offsets = [0, 0], sizes = [32, 256], strides = [1, 1]} : vector<32x512xf32> to vector<32x256xf32>
    %129 = arith.truncf %128 : vector<32x256xf32> to vector<32x256xbf16>
    %c0_55 = arith.constant 0 : index
    %c0_56 = arith.constant 0 : index
    %130 = vector.load %arg13[%c0_55, %c0_56] : memref<32x256xbf16, #tpu.memory_space<vmem>>, vector<32x256xbf16>
    tpu.vector_store %arg13[%c0_55, %c0_56], %129 {strides = array<i32>} : memref<32x256xbf16, #tpu.memory_space<vmem>>, vector<32x256xbf16>,
    %131 = vector.extract_strided_slice %127 {offsets = [0, 256], sizes = [32, 256], strides = [1, 1]} : vector<32x512xf32> to vector<32x256xf32>
    %132 = arith.truncf %131 : vector<32x256xf32> to vector<32x256xbf16>
    %c0_57 = arith.constant 0 : index
    %c0_58 = arith.constant 0 : index
    %133 = vector.load %arg14[%c0_57, %c0_58] : memref<32x256xbf16, #tpu.memory_space<vmem>>, vector<32x256xbf16>
    tpu.vector_store %arg14[%c0_57, %c0_58], %132 {strides = array<i32>} : memref<32x256xbf16, #tpu.memory_space<vmem>>, vector<32x256xbf16>,
    return
  }
}

module attributes {stable_mosaic.version = 11 : i64} {
  func.func @_conv_kernel(%arg0: memref<32x128xbf16, #tpu.memory_space<vmem>>, %arg1: memref<32x256xbf16, #tpu.memory_space<vmem>>, %arg2: memref<32x256xbf16, #tpu.memory_space<vmem>>, %arg3: memref<256x1xi32, #tpu.memory_space<vmem>>, %arg4: memref<256x128xbf16, #tpu.memory_space<vmem>>, %arg5: memref<128x256xbf16, #tpu.memory_space<vmem>>, %arg6: memref<1x256xf32, #tpu.memory_space<vmem>>, %arg7: memref<1x256xf32, #tpu.memory_space<vmem>>, %arg8: memref<1x128xf32, #tpu.memory_space<vmem>>, %arg9: memref<1x128xf32, #tpu.memory_space<vmem>>, %arg10: memref<32x128xbf16, #tpu.memory_space<vmem>>) attributes {dimension_semantics = [], scalar_prefetch = 0 : i64, scratch_operands = 0 : i64, tpu.core_type = #tpu.core_type<tc>} {
    %0 = tpu.iota {dimensions = array<i32: 1>} : vector<256x32xi32>
    %c0 = arith.constant 0 : index
    %c0_0 = arith.constant 0 : index
    %1 = vector.load %arg3[%c0, %c0_0] : memref<256x1xi32, #tpu.memory_space<vmem>>, vector<256x1xi32>
    %2 = vector.broadcast %1 : vector<256x1xi32> to vector<256x32xi32>
    %3 = arith.cmpi eq, %0, %2 : vector<256x32xi32>
    %cst = arith.constant 1.000000e+00 : f32
    %cst_1 = arith.constant 0.000000e+00 : f32
    %4 = vector.broadcast %cst : f32 to vector<256x32xf32>
    %5 = vector.broadcast %cst_1 : f32 to vector<256x32xf32>
    %6 = arith.select %3, %4, %5 : vector<256x32xi1>, vector<256x32xf32>
    %7 = arith.truncf %6 : vector<256x32xf32> to vector<256x32xbf16>
    %c0_2 = arith.constant 0 : index
    %c0_3 = arith.constant 0 : index
    %8 = vector.load %arg2[%c0_2, %c0_3] : memref<32x256xbf16, #tpu.memory_space<vmem>>, vector<32x256xbf16>
    %cst_4 = arith.constant dense<0.000000e+00> : vector<256x256xf32>
    %9 = tpu.matmul %7, %8, %cst_4 {dimension_numbers = #tpu.dot_dimension_numbers<[1], [0], [0], [1], [0, 0, 1, 1], [], []>} : vector<256x32xbf16>, vector<32x256xbf16>, vector<256x256xf32> -> vector<256x256xf32>
    %c0_5 = arith.constant 0 : index
    %c0_6 = arith.constant 0 : index
    %10 = vector.load %arg4[%c0_5, %c0_6] : memref<256x128xbf16, #tpu.memory_space<vmem>>, vector<256x128xbf16>
    %c0_7 = arith.constant 0 : index
    %c0_8 = arith.constant 0 : index
    %11 = vector.load %arg5[%c0_7, %c0_8] : memref<128x256xbf16, #tpu.memory_space<vmem>>, vector<128x256xbf16>
    %cst_9 = arith.constant dense<0.000000e+00> : vector<256x256xf32>
    %12 = tpu.matmul %10, %11, %cst_9 {dimension_numbers = #tpu.dot_dimension_numbers<[1], [0], [0], [1], [0, 0, 1, 1], [], []>} : vector<256x128xbf16>, vector<128x256xbf16>, vector<256x256xf32> -> vector<256x256xf32>
    %c0_10 = arith.constant 0 : index
    %c0_11 = arith.constant 0 : index
    %13 = vector.load %arg1[%c0_10, %c0_11] : memref<32x256xbf16, #tpu.memory_space<vmem>>, vector<32x256xbf16>
    %14 = arith.extf %13 : vector<32x256xbf16> to vector<32x256xf32>
    %15 = arith.addf %9, %12 : vector<256x256xf32>
    %16 = vector.shape_cast %15 : vector<256x256xf32> to vector<8x32x256xf32>
    %17 = vector.shape_cast %14 : vector<32x256xf32> to vector<1x32x256xf32>
    %18 = vector.broadcast %17 : vector<1x32x256xf32> to vector<8x32x256xf32>
    %19 = arith.addf %16, %18 : vector<8x32x256xf32>
    %20 = vector.shape_cast %19 : vector<8x32x256xf32> to vector<256x256xf32>
    %cst_12 = arith.constant dense<0.000000e+00> : vector<256xf32>
    %21 = vector.multi_reduction <add>, %20, %cst_12 [0] : vector<256x256xf32> to vector<256xf32>
    %22 = vector.shape_cast %21 : vector<256xf32> to vector<1x256xf32>
    %23 = arith.mulf %20, %20 : vector<256x256xf32>
    %cst_13 = arith.constant dense<0.000000e+00> : vector<256xf32>
    %24 = vector.multi_reduction <add>, %23, %cst_13 [0] : vector<256x256xf32> to vector<256xf32>
    %25 = vector.shape_cast %24 : vector<256xf32> to vector<1x256xf32>
    %c0_14 = arith.constant 0 : index
    %c0_15 = arith.constant 0 : index
    %26 = vector.load %arg6[%c0_14, %c0_15] : memref<1x256xf32, #tpu.memory_space<vmem>>, vector<1x256xf32>
    %c0_16 = arith.constant 0 : index
    %c0_17 = arith.constant 0 : index
    %27 = vector.load %arg7[%c0_16, %c0_17] : memref<1x256xf32, #tpu.memory_space<vmem>>, vector<1x256xf32>
    %cst_18 = arith.constant 3.906250e-03 : f32
    %28 = vector.broadcast %cst_18 : f32 to vector<1x256xf32>
    %29 = arith.mulf %22, %28 : vector<1x256xf32>
    %cst_19 = arith.constant 3.906250e-03 : f32
    %30 = vector.broadcast %cst_19 : f32 to vector<1x256xf32>
    %31 = arith.mulf %25, %30 : vector<1x256xf32>
    %32 = arith.mulf %29, %29 : vector<1x256xf32>
    %33 = arith.subf %31, %32 : vector<1x256xf32>
    %cst_20 = arith.constant 0.000000e+00 : f32
    %34 = vector.broadcast %cst_20 : f32 to vector<1x256xf32>
    %35 = arith.maximumf %33, %34 : vector<1x256xf32>
    %cst_21 = arith.constant 9.99999974E-6 : f32
    %36 = vector.broadcast %cst_21 : f32 to vector<1x256xf32>
    %37 = arith.addf %35, %36 : vector<1x256xf32>
    %38 = math.rsqrt %37 : vector<1x256xf32>
    %39 = arith.mulf %38, %26 : vector<1x256xf32>
    %40 = arith.mulf %29, %39 : vector<1x256xf32>
    %41 = arith.subf %27, %40 : vector<1x256xf32>
    %42 = vector.broadcast %39 : vector<1x256xf32> to vector<256x256xf32>
    %43 = arith.mulf %20, %42 : vector<256x256xf32>
    %44 = vector.broadcast %41 : vector<1x256xf32> to vector<256x256xf32>
    %45 = arith.addf %43, %44 : vector<256x256xf32>
    %46 = vector.extract_strided_slice %45 {offsets = [0, 0], sizes = [256, 128], strides = [1, 1]} : vector<256x256xf32> to vector<256x128xf32>
    %47 = math.absf %46 : vector<256x128xf32>
    %cst_22 = arith.constant 0.000000e+00 : f32
    %48 = vector.broadcast %cst_22 : f32 to vector<256x128xf32>
    %49 = arith.subf %48, %47 : vector<256x128xf32>
    %50 = math.exp %49 : vector<256x128xf32>
    %cst_23 = arith.constant 1.000000e+00 : f32
    %51 = vector.broadcast %cst_23 : f32 to vector<256x128xf32>
    %52 = arith.addf %51, %50 : vector<256x128xf32>
    %53 = tpu.reciprocal %52 {approx = true} : vector<256x128xf32> -> vector<256x128xf32>
    %cst_24 = arith.constant 0.000000e+00 : f32
    %54 = vector.broadcast %cst_24 : f32 to vector<256x128xf32>
    %55 = arith.cmpf oge, %46, %54 : vector<256x128xf32>
    %56 = arith.mulf %50, %53 : vector<256x128xf32>
    %57 = arith.select %55, %53, %56 : vector<256x128xi1>, vector<256x128xf32>
    %58 = vector.extract_strided_slice %45 {offsets = [0, 128], sizes = [256, 128], strides = [1, 1]} : vector<256x256xf32> to vector<256x128xf32>
    %cst_25 = arith.constant 2.000000e+01 : f32
    %59 = vector.broadcast %cst_25 : f32 to vector<256x128xf32>
    %60 = arith.minimumf %58, %59 : vector<256x128xf32>
    %cst_26 = arith.constant 0.000000e+00 : f32
    %61 = vector.broadcast %cst_26 : f32 to vector<256x128xf32>
    %62 = arith.maximumf %60, %61 : vector<256x128xf32>
    %63 = math.absf %60 : vector<256x128xf32>
    %cst_27 = arith.constant 0.000000e+00 : f32
    %64 = vector.broadcast %cst_27 : f32 to vector<256x128xf32>
    %65 = arith.subf %64, %63 : vector<256x128xf32>
    %66 = math.exp %65 : vector<256x128xf32>
    %cst_28 = arith.constant 1.000000e+00 : f32
    %67 = vector.broadcast %cst_28 : f32 to vector<256x128xf32>
    %68 = arith.addf %67, %66 : vector<256x128xf32>
    %69 = math.log %68 : vector<256x128xf32>
    %70 = arith.addf %62, %69 : vector<256x128xf32>
    %cst_29 = arith.constant 2.000000e+01 : f32
    %71 = vector.broadcast %cst_29 : f32 to vector<256x128xf32>
    %72 = arith.cmpf ogt, %58, %71 : vector<256x128xf32>
    %73 = arith.select %72, %58, %70 : vector<256x128xi1>, vector<256x128xf32>
    %74 = arith.mulf %57, %73 : vector<256x128xf32>
    %75 = vector.shape_cast %74 : vector<256x128xf32> to vector<8x32x128xf32>
    %cst_30 = arith.constant dense<0.000000e+00> : vector<32x128xf32>
    %76 = vector.multi_reduction <add>, %75, %cst_30 [0] : vector<8x32x128xf32> to vector<32x128xf32>
    %cst_31 = arith.constant dense<0.000000e+00> : vector<128xf32>
    %77 = vector.multi_reduction <add>, %76, %cst_31 [0] : vector<32x128xf32> to vector<128xf32>
    %78 = vector.shape_cast %77 : vector<128xf32> to vector<1x128xf32>
    %79 = arith.mulf %76, %76 : vector<32x128xf32>
    %cst_32 = arith.constant dense<0.000000e+00> : vector<128xf32>
    %80 = vector.multi_reduction <add>, %79, %cst_32 [0] : vector<32x128xf32> to vector<128xf32>
    %81 = vector.shape_cast %80 : vector<128xf32> to vector<1x128xf32>
    %c0_33 = arith.constant 0 : index
    %c0_34 = arith.constant 0 : index
    %82 = vector.load %arg8[%c0_33, %c0_34] : memref<1x128xf32, #tpu.memory_space<vmem>>, vector<1x128xf32>
    %c0_35 = arith.constant 0 : index
    %c0_36 = arith.constant 0 : index
    %83 = vector.load %arg9[%c0_35, %c0_36] : memref<1x128xf32, #tpu.memory_space<vmem>>, vector<1x128xf32>
    %cst_37 = arith.constant 3.125000e-02 : f32
    %84 = vector.broadcast %cst_37 : f32 to vector<1x128xf32>
    %85 = arith.mulf %78, %84 : vector<1x128xf32>
    %cst_38 = arith.constant 3.125000e-02 : f32
    %86 = vector.broadcast %cst_38 : f32 to vector<1x128xf32>
    %87 = arith.mulf %81, %86 : vector<1x128xf32>
    %88 = arith.mulf %85, %85 : vector<1x128xf32>
    %89 = arith.subf %87, %88 : vector<1x128xf32>
    %cst_39 = arith.constant 0.000000e+00 : f32
    %90 = vector.broadcast %cst_39 : f32 to vector<1x128xf32>
    %91 = arith.maximumf %89, %90 : vector<1x128xf32>
    %cst_40 = arith.constant 9.99999974E-6 : f32
    %92 = vector.broadcast %cst_40 : f32 to vector<1x128xf32>
    %93 = arith.addf %91, %92 : vector<1x128xf32>
    %94 = math.rsqrt %93 : vector<1x128xf32>
    %95 = arith.mulf %94, %82 : vector<1x128xf32>
    %96 = arith.mulf %85, %95 : vector<1x128xf32>
    %97 = arith.subf %83, %96 : vector<1x128xf32>
    %c0_41 = arith.constant 0 : index
    %c0_42 = arith.constant 0 : index
    %98 = vector.load %arg0[%c0_41, %c0_42] : memref<32x128xbf16, #tpu.memory_space<vmem>>, vector<32x128xbf16>
    %99 = arith.extf %98 : vector<32x128xbf16> to vector<32x128xf32>
    %100 = vector.broadcast %95 : vector<1x128xf32> to vector<32x128xf32>
    %101 = arith.mulf %76, %100 : vector<32x128xf32>
    %102 = arith.addf %99, %101 : vector<32x128xf32>
    %103 = vector.broadcast %97 : vector<1x128xf32> to vector<32x128xf32>
    %104 = arith.addf %102, %103 : vector<32x128xf32>
    %cst_43 = arith.constant 2.000000e+01 : f32
    %105 = vector.broadcast %cst_43 : f32 to vector<32x128xf32>
    %106 = arith.minimumf %104, %105 : vector<32x128xf32>
    %cst_44 = arith.constant 0.000000e+00 : f32
    %107 = vector.broadcast %cst_44 : f32 to vector<32x128xf32>
    %108 = arith.maximumf %106, %107 : vector<32x128xf32>
    %109 = math.absf %106 : vector<32x128xf32>
    %cst_45 = arith.constant 0.000000e+00 : f32
    %110 = vector.broadcast %cst_45 : f32 to vector<32x128xf32>
    %111 = arith.subf %110, %109 : vector<32x128xf32>
    %112 = math.exp %111 : vector<32x128xf32>
    %cst_46 = arith.constant 1.000000e+00 : f32
    %113 = vector.broadcast %cst_46 : f32 to vector<32x128xf32>
    %114 = arith.addf %113, %112 : vector<32x128xf32>
    %115 = math.log %114 : vector<32x128xf32>
    %116 = arith.addf %108, %115 : vector<32x128xf32>
    %cst_47 = arith.constant 2.000000e+01 : f32
    %117 = vector.broadcast %cst_47 : f32 to vector<32x128xf32>
    %118 = arith.cmpf ogt, %104, %117 : vector<32x128xf32>
    %119 = arith.select %118, %104, %116 : vector<32x128xi1>, vector<32x128xf32>
    %120 = arith.truncf %119 : vector<32x128xf32> to vector<32x128xbf16>
    %c0_48 = arith.constant 0 : index
    %c0_49 = arith.constant 0 : index
    %121 = vector.load %arg10[%c0_48, %c0_49] : memref<32x128xbf16, #tpu.memory_space<vmem>>, vector<32x128xbf16>
    tpu.vector_store %arg10[%c0_48, %c0_49], %120 {strides = array<i32>} : memref<32x128xbf16, #tpu.memory_space<vmem>>, vector<32x128xbf16>,
    return
  }
}

module attributes {stable_mosaic.version = 11 : i64} {
  func.func @_tail_kernel(%arg0: memref<3x32xbf16, #tpu.memory_space<vmem>>, %arg1: memref<32x128xbf16, #tpu.memory_space<vmem>>, %arg2: memref<128x128xbf16, #tpu.memory_space<vmem>>, %arg3: memref<1x128xf32, #tpu.memory_space<vmem>>, %arg4: memref<128x128xbf16, #tpu.memory_space<vmem>>, %arg5: memref<1x128xf32, #tpu.memory_space<vmem>>, %arg6: memref<128x128xbf16, #tpu.memory_space<vmem>>, %arg7: memref<1x128xf32, #tpu.memory_space<vmem>>, %arg8: memref<128x1xf32, #tpu.memory_space<vmem>>, %arg9: memref<1x1xf32, #tpu.memory_space<vmem>>, %arg10: memref<3x1xf32, #tpu.memory_space<vmem>>) attributes {dimension_semantics = [], scalar_prefetch = 0 : i64, scratch_operands = 0 : i64, tpu.core_type = #tpu.core_type<tc>} {
    %c0 = arith.constant 0 : index
    %c0_0 = arith.constant 0 : index
    %0 = vector.load %arg0[%c0, %c0_0] : memref<3x32xbf16, #tpu.memory_space<vmem>>, vector<3x32xbf16>
    %c0_1 = arith.constant 0 : index
    %c0_2 = arith.constant 0 : index
    %1 = vector.load %arg1[%c0_1, %c0_2] : memref<32x128xbf16, #tpu.memory_space<vmem>>, vector<32x128xbf16>
    %cst = arith.constant dense<0.000000e+00> : vector<3x128xf32>
    %2 = tpu.matmul %0, %1, %cst {dimension_numbers = #tpu.dot_dimension_numbers<[1], [0], [0], [1], [0, 0, 1, 1], [], []>} : vector<3x32xbf16>, vector<32x128xbf16>, vector<3x128xf32> -> vector<3x128xf32>
    %cst_3 = arith.constant 2.000000e+01 : f32
    %3 = vector.broadcast %cst_3 : f32 to vector<3x128xf32>
    %4 = arith.minimumf %2, %3 : vector<3x128xf32>
    %cst_4 = arith.constant 0.000000e+00 : f32
    %5 = vector.broadcast %cst_4 : f32 to vector<3x128xf32>
    %6 = arith.maximumf %4, %5 : vector<3x128xf32>
    %7 = math.absf %4 : vector<3x128xf32>
    %cst_5 = arith.constant 0.000000e+00 : f32
    %8 = vector.broadcast %cst_5 : f32 to vector<3x128xf32>
    %9 = arith.subf %8, %7 : vector<3x128xf32>
    %10 = math.exp %9 : vector<3x128xf32>
    %cst_6 = arith.constant 1.000000e+00 : f32
    %11 = vector.broadcast %cst_6 : f32 to vector<3x128xf32>
    %12 = arith.addf %11, %10 : vector<3x128xf32>
    %13 = math.log %12 : vector<3x128xf32>
    %14 = arith.addf %6, %13 : vector<3x128xf32>
    %cst_7 = arith.constant 2.000000e+01 : f32
    %15 = vector.broadcast %cst_7 : f32 to vector<3x128xf32>
    %16 = arith.cmpf ogt, %2, %15 : vector<3x128xf32>
    %17 = arith.select %16, %2, %14 : vector<3x128xi1>, vector<3x128xf32>
    %c0_8 = arith.constant 0 : index
    %c0_9 = arith.constant 0 : index
    %18 = vector.load %arg2[%c0_8, %c0_9] : memref<128x128xbf16, #tpu.memory_space<vmem>>, vector<128x128xbf16>
    %19 = arith.truncf %17 : vector<3x128xf32> to vector<3x128xbf16>
    %cst_10 = arith.constant dense<0.000000e+00> : vector<3x128xf32>
    %20 = tpu.matmul %19, %18, %cst_10 {dimension_numbers = #tpu.dot_dimension_numbers<[1], [0], [0], [1], [0, 0, 1, 1], [], []>} : vector<3x128xbf16>, vector<128x128xbf16>, vector<3x128xf32> -> vector<3x128xf32>
    %c0_11 = arith.constant 0 : index
    %c0_12 = arith.constant 0 : index
    %21 = vector.load %arg3[%c0_11, %c0_12] : memref<1x128xf32, #tpu.memory_space<vmem>>, vector<1x128xf32>
    %22 = vector.broadcast %21 : vector<1x128xf32> to vector<3x128xf32>
    %23 = arith.addf %20, %22 : vector<3x128xf32>
    %cst_13 = arith.constant 2.000000e+01 : f32
    %24 = vector.broadcast %cst_13 : f32 to vector<3x128xf32>
    %25 = arith.minimumf %23, %24 : vector<3x128xf32>
    %cst_14 = arith.constant 0.000000e+00 : f32
    %26 = vector.broadcast %cst_14 : f32 to vector<3x128xf32>
    %27 = arith.maximumf %25, %26 : vector<3x128xf32>
    %28 = math.absf %25 : vector<3x128xf32>
    %cst_15 = arith.constant 0.000000e+00 : f32
    %29 = vector.broadcast %cst_15 : f32 to vector<3x128xf32>
    %30 = arith.subf %29, %28 : vector<3x128xf32>
    %31 = math.exp %30 : vector<3x128xf32>
    %cst_16 = arith.constant 1.000000e+00 : f32
    %32 = vector.broadcast %cst_16 : f32 to vector<3x128xf32>
    %33 = arith.addf %32, %31 : vector<3x128xf32>
    %34 = math.log %33 : vector<3x128xf32>
    %35 = arith.addf %27, %34 : vector<3x128xf32>
    %cst_17 = arith.constant 2.000000e+01 : f32
    %36 = vector.broadcast %cst_17 : f32 to vector<3x128xf32>
    %37 = arith.cmpf ogt, %23, %36 : vector<3x128xf32>
    %38 = arith.select %37, %23, %35 : vector<3x128xi1>, vector<3x128xf32>
    %c0_18 = arith.constant 0 : index
    %c0_19 = arith.constant 0 : index
    %39 = vector.load %arg4[%c0_18, %c0_19] : memref<128x128xbf16, #tpu.memory_space<vmem>>, vector<128x128xbf16>
    %40 = arith.truncf %38 : vector<3x128xf32> to vector<3x128xbf16>
    %cst_20 = arith.constant dense<0.000000e+00> : vector<3x128xf32>
    %41 = tpu.matmul %40, %39, %cst_20 {dimension_numbers = #tpu.dot_dimension_numbers<[1], [0], [0], [1], [0, 0, 1, 1], [], []>} : vector<3x128xbf16>, vector<128x128xbf16>, vector<3x128xf32> -> vector<3x128xf32>
    %c0_21 = arith.constant 0 : index
    %c0_22 = arith.constant 0 : index
    %42 = vector.load %arg5[%c0_21, %c0_22] : memref<1x128xf32, #tpu.memory_space<vmem>>, vector<1x128xf32>
    %43 = vector.broadcast %42 : vector<1x128xf32> to vector<3x128xf32>
    %44 = arith.addf %41, %43 : vector<3x128xf32>
    %cst_23 = arith.constant 2.000000e+01 : f32
    %45 = vector.broadcast %cst_23 : f32 to vector<3x128xf32>
    %46 = arith.minimumf %44, %45 : vector<3x128xf32>
    %cst_24 = arith.constant 0.000000e+00 : f32
    %47 = vector.broadcast %cst_24 : f32 to vector<3x128xf32>
    %48 = arith.maximumf %46, %47 : vector<3x128xf32>
    %49 = math.absf %46 : vector<3x128xf32>
    %cst_25 = arith.constant 0.000000e+00 : f32
    %50 = vector.broadcast %cst_25 : f32 to vector<3x128xf32>
    %51 = arith.subf %50, %49 : vector<3x128xf32>
    %52 = math.exp %51 : vector<3x128xf32>
    %cst_26 = arith.constant 1.000000e+00 : f32
    %53 = vector.broadcast %cst_26 : f32 to vector<3x128xf32>
    %54 = arith.addf %53, %52 : vector<3x128xf32>
    %55 = math.log %54 : vector<3x128xf32>
    %56 = arith.addf %48, %55 : vector<3x128xf32>
    %cst_27 = arith.constant 2.000000e+01 : f32
    %57 = vector.broadcast %cst_27 : f32 to vector<3x128xf32>
    %58 = arith.cmpf ogt, %44, %57 : vector<3x128xf32>
    %59 = arith.select %58, %44, %56 : vector<3x128xi1>, vector<3x128xf32>
    %c0_28 = arith.constant 0 : index
    %c0_29 = arith.constant 0 : index
    %60 = vector.load %arg6[%c0_28, %c0_29] : memref<128x128xbf16, #tpu.memory_space<vmem>>, vector<128x128xbf16>
    %61 = arith.truncf %59 : vector<3x128xf32> to vector<3x128xbf16>
    %cst_30 = arith.constant dense<0.000000e+00> : vector<3x128xf32>
    %62 = tpu.matmul %61, %60, %cst_30 {dimension_numbers = #tpu.dot_dimension_numbers<[1], [0], [0], [1], [0, 0, 1, 1], [], []>} : vector<3x128xbf16>, vector<128x128xbf16>, vector<3x128xf32> -> vector<3x128xf32>
    %c0_31 = arith.constant 0 : index
    %c0_32 = arith.constant 0 : index
    %63 = vector.load %arg7[%c0_31, %c0_32] : memref<1x128xf32, #tpu.memory_space<vmem>>, vector<1x128xf32>
    %64 = vector.broadcast %63 : vector<1x128xf32> to vector<3x128xf32>
    %65 = arith.addf %62, %64 : vector<3x128xf32>
    %cst_33 = arith.constant 2.000000e+01 : f32
    %66 = vector.broadcast %cst_33 : f32 to vector<3x128xf32>
    %67 = arith.minimumf %65, %66 : vector<3x128xf32>
    %cst_34 = arith.constant 0.000000e+00 : f32
    %68 = vector.broadcast %cst_34 : f32 to vector<3x128xf32>
    %69 = arith.maximumf %67, %68 : vector<3x128xf32>
    %70 = math.absf %67 : vector<3x128xf32>
    %cst_35 = arith.constant 0.000000e+00 : f32
    %71 = vector.broadcast %cst_35 : f32 to vector<3x128xf32>
    %72 = arith.subf %71, %70 : vector<3x128xf32>
    %73 = math.exp %72 : vector<3x128xf32>
    %cst_36 = arith.constant 1.000000e+00 : f32
    %74 = vector.broadcast %cst_36 : f32 to vector<3x128xf32>
    %75 = arith.addf %74, %73 : vector<3x128xf32>
    %76 = math.log %75 : vector<3x128xf32>
    %77 = arith.addf %69, %76 : vector<3x128xf32>
    %cst_37 = arith.constant 2.000000e+01 : f32
    %78 = vector.broadcast %cst_37 : f32 to vector<3x128xf32>
    %79 = arith.cmpf ogt, %65, %78 : vector<3x128xf32>
    %80 = arith.select %79, %65, %77 : vector<3x128xi1>, vector<3x128xf32>
    %c0_38 = arith.constant 0 : index
    %c0_39 = arith.constant 0 : index
    %81 = vector.load %arg8[%c0_38, %c0_39] : memref<128x1xf32, #tpu.memory_space<vmem>>, vector<128x1xf32>
    %cst_40 = arith.constant dense<0.000000e+00> : vector<3x1xf32>
    %82 = tpu.matmul %80, %81, %cst_40 {dimension_numbers = #tpu.dot_dimension_numbers<[1], [0], [0], [1], [0, 0, 1, 1], [], []>} : vector<3x128xf32>, vector<128x1xf32>, vector<3x1xf32> -> vector<3x1xf32>
    %c0_41 = arith.constant 0 : index
    %c0_42 = arith.constant 0 : index
    %83 = vector.load %arg9[%c0_41, %c0_42] : memref<1x1xf32, #tpu.memory_space<vmem>>, vector<1x1xf32>
    %84 = vector.broadcast %83 : vector<1x1xf32> to vector<3x1xf32>
    %85 = arith.addf %82, %84 : vector<3x1xf32>
    %c0_43 = arith.constant 0 : index
    %c0_44 = arith.constant 0 : index
    %86 = vector.load %arg10[%c0_43, %c0_44] : memref<3x1xf32, #tpu.memory_space<vmem>>, vector<3x1xf32>
    tpu.vector_store %arg10[%c0_43, %c0_44], %85 {strides = array<i32>} : memref<3x1xf32, #tpu.memory_space<vmem>>, vector<3x1xf32>,
    return
  }
}

</mosaic_0001>

<bundles_post_ra>
// kernel: crystal_graph_conv_net.4
= control target key start
LH: loop header
LB: loop body
LE: loop exit
PB: predicated region body
PF: predicated region fallthrough
CT: control target
= control target key end

     0   :  { %13 = vsyncpa [#allocation3], 0  ;;  %s1157_s0 = inlined_call_operand.hbm [shape: f32[32,64], index: 0, kind: input, shape index: {}]   ;;  %s1158_s1 = inlined_call_operand.hbm [shape: bf16[64,128], index: 1, kind: input, shape index: {}]   ;;  %s1159_s2 = inlined_call_operand.hbm [shape: f32[1,128], index: 2, kind: input, shape index: {}]   ;;  %s1160_s3 = inlined_call_operand.hbm [shape: bf16[128,512], index: 3, kind: input, shape index: {}]   ;;  %s1161_s4 = inlined_call_operand.hbm [shape: f32[1,512], index: 4, kind: input, shape index: {}]   ;;  %s1162_s5 = inlined_call_operand.hbm [shape: bf16[32,128], index: 5, kind: output, shape index: {0}]   ;;  %s1163_s6 = inlined_call_operand.hbm [shape: bf16[32,256], index: 6, kind: output, shape index: {1}]   ;;  %s1164_s7 = inlined_call_operand.hbm [shape: bf16[32,256], index: 7, kind: output, shape index: {2}]  }
   0x1   :  { %14 = vsyncpa [#allocation6], 0 }
   0x2   :  { %15 = vsyncpa [#allocation9], 0 }
   0x3   :  { %16 = vsyncpa [#allocation4], 0 }
   0x4   :  { %17 = vsyncpa [#allocation13], 0  ;;  %s982_s24 = smov [#allocation5]   ;;  %s796_s28 = scalar_lea.hbm %s1158_s1, 512 }
   0x5   :  { %s35_s25 = sshll.u32 %s982_s24, 4  ;;  %p797_p0 = scmp.ne.s32.totalorder %s1158_s1, %s796_s28  ;;  %s36_s25 = int_to_ptr.vmem [resolvable:$true] %s35_s25 }
   0x6   :  { %p800_p1 = scmp.lt.u32.totalorder %s796_s28, %s1158_s1 }
   0x8   :  { %p802_p2 = pnand %p800_p1, %p797_p0 }
   0xa   :  { %805 = shalt.err (!%p802_p2)
}
   0xb   :  { %s806_s10 = scalar_lea.vmem %s36_s25, 512  ;;  %p811_p4 = scmp.lt.s32.totalorder %s36_s25, %s36_s25 }
   0xc   :  { %p807_p3 = scmp.ne.s32.totalorder %s36_s25, %s806_s10  ;;  %p812_p5 = scmp.lt.s32.totalorder %s806_s10, %s806_s10 }
   0xe   :  { %p813_p6 = por %p812_p5, %p811_p4 }
  0x10   :  { %p814_p7 = pnand %p813_p6, %p807_p3 }
  0x12   :  { %817 = shalt.err (!%p814_p7)
}
  0x13   :  { %s983_s11 = smov 64   ;;  %s984_s12 = smov 4  }
  0x14   :  { %41 = dma.hbm_to_vmem [thread:$0]  %s1158_s1, 512, %s36_s25, [#allocation6], %s983_s11, %s983_s11, %s984_s12  }
  0x15   :  { %s985_s15 = smov [#allocation8]   ;;  %s818_s19 = scalar_lea.hbm %s1160_s3, 4096 }
  0x16   :  { %s57_s16 = sshll.u32 %s985_s15, 4  ;;  %p819_p8 = scmp.ne.s32.totalorder %s1160_s3, %s818_s19  ;;  %s58_s16 = int_to_ptr.vmem [resolvable:$true] %s57_s16 }
  0x17   :  { %p822_p9 = scmp.lt.u32.totalorder %s818_s19, %s1160_s3 }
  0x19   :  { %p824_p10 = pnand %p822_p9, %p819_p8 }
  0x1b   :  { %827 = shalt.err (!%p824_p10)
}
  0x1c   :  { %s828_s24 = scalar_lea.vmem %s58_s16, 4096  ;;  %p833_p12 = scmp.lt.s32.totalorder %s58_s16, %s58_s16 }
  0x1d   :  { %p829_p11 = scmp.ne.s32.totalorder %s58_s16, %s828_s24  ;;  %p834_p13 = scmp.lt.s32.totalorder %s828_s24, %s828_s24 }
  0x1f   :  { %p835_p0 = por %p834_p13, %p833_p12 }
  0x21   :  { %p836_p1 = pnand %p835_p0, %p829_p11 }
  0x23   :  { %839 = shalt.err (!%p836_p1)
}
  0x24   :  { %s986_s1 = smov 256   ;;  %s987_s25 = smov 16  }
  0x25   :  { %63 = dma.hbm_to_vmem [thread:$0]  %s1160_s3, 4096, %s58_s16, [#allocation9], %s986_s1, %s986_s1, %s987_s25  }
  0x26   :  { %s988_s28 = smov [#allocation2]   ;;  %s840_s9 = scalar_lea.hbm %s1157_s0, 512 }
  0x27   :  { %s23_s29 = sshll.u32 %s988_s28, 4  ;;  %p841_p2 = scmp.ne.s32.totalorder %s1157_s0, %s840_s9  ;;  %s24_s29 = int_to_ptr.vmem [resolvable:$true] %s23_s29 }
  0x28   :  { %p844_p3 = scmp.lt.u32.totalorder %s840_s9, %s1157_s0 }
  0x2a   :  { %p846_p4 = pnand %p844_p3, %p841_p2 }
  0x2c   :  { %849 = shalt.err (!%p846_p4)
}
  0x2d   :  { %s850_s17 = scalar_lea.vmem %s24_s29, 512  ;;  %p855_p6 = scmp.lt.s32.totalorder %s24_s29, %s24_s29 }
  0x2e   :  { %p851_p5 = scmp.ne.s32.totalorder %s24_s29, %s850_s17  ;;  %p856_p7 = scmp.lt.s32.totalorder %s850_s17, %s850_s17 }
  0x30   :  { %p857_p8 = por %p856_p7, %p855_p6 }
  0x32   :  { %p858_p9 = pnand %p857_p8, %p851_p5 }
  0x34   :  { %861 = shalt.err (!%p858_p9)
}
  0x35   :  { %s989_s3 = smov 128   ;;  %s990_s16 = smov 8  }
  0x36   :  { %29 = dma.hbm_to_vmem [thread:$0]  %s1157_s0, 512, %s24_s29, [#allocation3], %s989_s3, %s989_s3, %s990_s16  }
  0x37   :  { %s991_s20 = smov [#allocation7]   ;;  %s992_s22 = smov [#allocation10]  }
  0x38   :  { %s48_s21 = sshll.u32 %s991_s20, 4  ;;  %s70_s23 = sshll.u32 %s992_s22, 4  ;;  %s49_s21 = int_to_ptr.vmem [resolvable:$true] %s48_s21  ;;  %s71_s23 = int_to_ptr.vmem [resolvable:$true] %s70_s23 }
  0x39   :  { %s862_s25 = scalar_lea.hbm %s1159_s2, 16 }
  0x3a   :  { %p863_p10 = scmp.ne.s32.totalorder %s1159_s2, %s862_s25  ;;  %p866_p11 = scmp.lt.u32.totalorder %s862_s25, %s1159_s2 }
  0x3c   :  { %p868_p12 = pnand %p866_p11, %p863_p10 }
  0x3e   :  { %871 = shalt.err (!%p868_p12)
}
  0x3f   :  { %s872_s0 = scalar_lea.vmem %s49_s21, 16  ;;  %s876_s29 = scalar_lea.vmem %s49_s21, 32 }
  0x40   :  { %p873_p13 = scmp.ne.s32.totalorder %s49_s21, %s872_s0  ;;  %p877_p0 = scmp.lt.s32.totalorder %s49_s21, %s49_s21 }
  0x41   :  { %p878_p1 = scmp.lt.s32.totalorder %s876_s29, %s872_s0 }
  0x43   :  { %p879_p2 = por %p878_p1, %p877_p0 }
  0x45   :  { %p880_p3 = pnand %p879_p2, %p873_p13 }
  0x47   :  { %883 = shalt.err (!%p880_p3)
}
  0x48   :  { %51 = dma.hbm_to_vmem [thread:$0]  %s1159_s2, 16, %s49_s21, [#allocation6]  }
  0x49   :  { %s884_s14 = scalar_lea.hbm %s1161_s4, 64 }
  0x4a   :  { %p885_p4 = scmp.ne.s32.totalorder %s1161_s4, %s884_s14  ;;  %p888_p5 = scmp.lt.u32.totalorder %s884_s14, %s1161_s4 }
  0x4c   :  { %p890_p6 = pnand %p888_p5, %p885_p4 }
  0x4e   :  { %893 = shalt.err (!%p890_p6)
}
  0x4f   :  { %s894_s20 = scalar_lea.vmem %s71_s23, 64  ;;  %p899_p8 = scmp.lt.s32.totalorder %s71_s23, %s71_s23 }
  0x50   :  { %p895_p7 = scmp.ne.s32.totalorder %s71_s23, %s894_s20  ;;  %p900_p9 = scmp.lt.s32.totalorder %s894_s20, %s894_s20 }
  0x52   :  { %p901_p10 = por %p900_p9, %p899_p8 }
  0x54   :  { %p902_p11 = pnand %p901_p10, %p895_p7 }
  0x56   :  { %905 = shalt.err (!%p902_p11)
}
  0x57   :  { %73 = dma.hbm_to_vmem [thread:$0]  %s1161_s4, 64, %s71_s23, [#allocation9]  }
  0x58   :  { %972 = dma.done.wait [#allocation3], 512  }
  0x59   :  { %973 = vsyncadd [#allocation3], 4294966784 }
  0x5a   :  { %974 = dma.done.wait [#allocation6], 528  }
  0x5b   :  { %975 = vsyncadd [#allocation6], 4294966768 }
  0x5c   :  { %976 = dma.done.wait [#allocation9], 4160  }
  0x5d   :  { %977 = vsyncadd [#allocation9], 4294963136  ;;  %v744_v0 = vld [vmem:[#allocation5] sm:$0xff]   ;;  %v745_v1 = vld [vmem:[#allocation5 + $0x8] sm:$0xff]   ;;  %vm135_vm0 = vcmask 523264   ;;  %v993_v42 = vmov 0  }
  0x5e   :  { %717 = vmatprep.subr.bf16.mxu0 %v744_v0  ;;  %v746_v2 = vld [vmem:[#allocation5 + $0x10] sm:$0xff]   ;;  %v90_v3 = vld [vmem:[#allocation2] sm:$0xff]  ;;  %v91_v4 = vld [vmem:[#allocation2 + $0x8] sm:$0xff]  ;;  %457 = vmatprep.mubr.bf16.mxu1 %v993_v42  ;;  %s994_s4 = smov [#allocation11]  }
  0x5f   :  { %718 = vmatpush3.bf16.msra.mxu0 %v744_v0  ;;  %v102_v5 = vpack.c.bf16 %v91_v4, %v90_v3  ;;  %v748_v6 = vld [vmem:[#allocation8 + $0x4] ss:$16 sps:$4 sm:$0xff]   ;;  %v753_v8 = vld [vmem:[#allocation8] ss:$16 sps:$4 sm:$0xff]   ;;  %v752_v14 = vld [vmem:[#allocation8 + $0xc] ss:$16 sps:$4 sm:$0xff]  }
  0x60   :  { %719 = vmatprep.subr.bf16.mxu0 %v745_v1  ;;  %v747_v7 = vld [vmem:[#allocation5 + $0x18] sm:$0xff]   ;;  %425 = vmatprep.subr.bf16.mxu1 %v748_v6  ;;  %v92_v10 = vld [vmem:[#allocation2 + $0x10] sm:$0xff]  ;;  %v637_v44 = vld [vmem:[#allocation7] ss:$0 sm:$0xff]  ;;  %s592_s22 = sshll.u32 %s994_s4, 4  ;;  %s593_s22 = int_to_ptr.vmem [resolvable:$true] %s592_s22 }
  0x61   :  { %725 = vmatprep.mubr.msk.bf16.mxu0 %vm135_vm0, %v102_v5  ;;  %v754_v9 = vld [vmem:[#allocation8 + $0x24] ss:$16 sps:$4 sm:$0xff]   ;;  %426 = vmatpush1.bf16.msra.mxu1 %v753_v8  ;;  %v759_v12 = vld [vmem:[#allocation8 + $0x20] ss:$16 sps:$4 sm:$0xff]   ;;  %v750_v18 = vld [vmem:[#allocation8 + $0x8] ss:$16 sps:$4 sm:$0xff]   ;;  %p911_p13 = scmp.lt.s32.totalorder %s593_s22, %s593_s22 }
  0x62   :  { %v93_v11 = vld [vmem:[#allocation2 + $0x18] sm:$0xff]  ;;  %427 = vmatprep.subr.bf16.mxu1 %v754_v9  ;;  %v765_v15 = vld [vmem:[#allocation8 + $0x40] ss:$16 sps:$4 sm:$0xff]   ;;  %s906_s23 = scalar_lea.vmem %s593_s22, 256 }
  0x63   :  { %720 = vmatpush3.bf16.msra.mxu0 %v745_v1  ;;  %v760_v13 = vld [vmem:[#allocation8 + $0x44] ss:$16 sps:$4 sm:$0xff]   ;;  %v103_v16 = vpack.c.bf16 %v93_v11, %v92_v10  ;;  %v758_v19 = vld [vmem:[#allocation8 + $0x2c] ss:$16 sps:$4 sm:$0xff]   ;;  %v771_v20 = vld [vmem:[#allocation8 + $0x60] ss:$16 sps:$4 sm:$0xff]   ;;  %p907_p12 = scmp.ne.s32.totalorder %s593_s22, %s906_s23  ;;  %p912_p0 = scmp.lt.s32.totalorder %s906_s23, %s906_s23 }
  0x64   :  { %721 = vmatprep.subr.bf16.mxu0 %v746_v2  ;;  %v766_v17 = vld [vmem:[#allocation8 + $0x64] ss:$16 sps:$4 sm:$0xff]   ;;  %v756_v22 = vld [vmem:[#allocation8 + $0x28] ss:$16 sps:$4 sm:$0xff]   ;;  %v764_v23 = vld [vmem:[#allocation8 + $0x4c] ss:$16 sps:$4 sm:$0xff]  }
  0x65   :  { %428 = vmatpush1.bf16.msra.mxu1 %v759_v12  ;;  %v772_v21 = vld [vmem:[#allocation8 + $0x84] ss:$16 sps:$4 sm:$0xff]   ;;  %v777_v24 = vld [vmem:[#allocation8 + $0x80] ss:$16 sps:$4 sm:$0xff]   ;;  %v762_v25 = vld [vmem:[#allocation8 + $0x48] ss:$16 sps:$4 sm:$0xff]   ;;  %p913_p1 = por %p912_p0, %p911_p13 }
  0x66   :  { %429 = vmatprep.subr.bf16.mxu1 %v760_v13  ;;  %v778_v26 = vld [vmem:[#allocation8 + $0xa4] ss:$16 sps:$4 sm:$0xff]   ;;  %v770_v27 = vld [vmem:[#allocation8 + $0x6c] ss:$16 sps:$4 sm:$0xff]   ;;  %v783_v28 = vld [vmem:[#allocation8 + $0xa0] ss:$16 sps:$4 sm:$0xff]  }
  0x67   :  { %722 = vmatpush3.bf16.msra.mxu0 %v746_v2  ;;  %v768_v29 = vld [vmem:[#allocation8 + $0x68] ss:$16 sps:$4 sm:$0xff]   ;;  %v776_v30 = vld [vmem:[#allocation8 + $0x8c] ss:$16 sps:$4 sm:$0xff]   ;;  %v784_v34 = vld [vmem:[#allocation8 + $0xc4] ss:$16 sps:$4 sm:$0xff]   ;;  %p914_p2 = pnand %p913_p1, %p907_p12 }
  0x68   :  { %723 = vmatprep.subr.bf16.mxu0 %v747_v7  ;;  %v774_v31 = vld [vmem:[#allocation8 + $0x88] ss:$16 sps:$4 sm:$0xff]   ;;  %v782_v32 = vld [vmem:[#allocation8 + $0xac] ss:$16 sps:$4 sm:$0xff]   ;;  %v789_v37 = vld [vmem:[#allocation8 + $0xc0] ss:$16 sps:$4 sm:$0xff]  }
  0x69   :  { %430 = vmatpush1.bf16.msra.mxu1 %v765_v15  ;;  %v780_v33 = vld [vmem:[#allocation8 + $0xa8] ss:$16 sps:$4 sm:$0xff]   ;;  %v788_v35 = vld [vmem:[#allocation8 + $0xcc] ss:$16 sps:$4 sm:$0xff]   ;;  %v790_v38 = vld [vmem:[#allocation8 + $0xe4] ss:$16 sps:$4 sm:$0xff]  }
  0x6a   :  { %431 = vmatprep.subr.bf16.mxu1 %v766_v17  ;;  %v786_v36 = vld [vmem:[#allocation8 + $0xc8] ss:$16 sps:$4 sm:$0xff]   ;;  %v794_v39 = vld [vmem:[#allocation8 + $0xec] ss:$16 sps:$4 sm:$0xff]   ;;  %v795_v41 = vld [vmem:[#allocation8 + $0xe0] ss:$16 sps:$4 sm:$0xff]  }
  0x6b   :  { %724 = vmatpush3.bf16.msra.mxu0 %v747_v7  ;;  %v792_v40 = vld [vmem:[#allocation8 + $0xe8] ss:$16 sps:$4 sm:$0xff]  }
  0x6c   :  { %478 = vmatprep.subr.bf16.mxu0 %v752_v14 }
  0x6d   :  { %432 = vmatpush1.bf16.msra.mxu1 %v771_v20 }
  0x6e   :  { %726 = vmatmul.mubr.msk.bf16.vlgmr.msra.gmra.mrb[0].mxu0 %vm135_vm0, %v103_v16  ;;  %433 = vmatprep.subr.bf16.mxu1 %v772_v21 }
  0x6f   :  { %479 = vmatpush1.bf16.msra.mxu0 %v750_v18  ;;  %510 = vmatprep.mubr.bf16.mxu0 %v993_v42 }
  0x70   :  { %480 = vmatprep.subr.bf16.mxu0 %v758_v19 }
  0x71   :  { %434 = vmatpush1.bf16.msra.mxu1 %v777_v24 }
  0x72   :  { %435 = vmatprep.subr.bf16.mxu1 %v778_v26 }
  0x73   :  { %481 = vmatpush1.bf16.msra.mxu0 %v756_v22 }
  0x74   :  { %482 = vmatprep.subr.bf16.mxu0 %v764_v23 }
  0x75   :  { %436 = vmatpush1.bf16.msra.mxu1 %v783_v28 }
  0x76   :  { %437 = vmatprep.subr.bf16.mxu1 %v784_v34 }
  0x77   :  { %483 = vmatpush1.bf16.msra.mxu0 %v762_v25 }
  0x78   :  { %484 = vmatprep.subr.bf16.mxu0 %v770_v27 }
  0x79   :  { %438 = vmatpush1.bf16.msra.mxu1 %v789_v37 }
  0x7a   :  { %439 = vmatprep.subr.bf16.mxu1 %v790_v38 }
  0x7b   :  { %485 = vmatpush1.bf16.msra.mxu0 %v768_v29 }
  0x7c   :  { %486 = vmatprep.subr.bf16.mxu0 %v776_v30 }
  0x7d   :  { %440 = vmatpush1.bf16.msra.mxu1 %v795_v41 }
  0x7f   :  { %487 = vmatpush1.bf16.msra.mxu0 %v774_v31 }
  0x80   :  { %488 = vmatprep.subr.bf16.mxu0 %v782_v32 }
  0x83   :  { %489 = vmatpush1.bf16.msra.mxu0 %v780_v33 }
  0x84   :  { %490 = vmatprep.subr.bf16.mxu0 %v788_v35 }
  0x87   :  { %491 = vmatpush1.bf16.msra.mxu0 %v786_v36 }
  0x88   :  { %492 = vmatprep.subr.bf16.mxu0 %v794_v39 }
  0x8b   :  { %493 = vmatpush1.bf16.msra.mxu0 %v792_v40 }
 0x141   :  { %v727_v43 = vpop.f32.mrb[0].mxu0 }
 0x142   :  { %v176_v45 = vpop.f32.mrb[1].mxu0  ;;  %v185_v47 = vadd.f32 %v727_v43, %v637_v44 }
 0x143   :  { %v728_v46 = vpop.f32.mrb[2].mxu0  ;;  %v177_v50 = vadd.f32 %v637_v44, %v176_v45 }
 0x144   :  { %v188_v48 = vadd.f32 %v728_v46, %v637_v44  ;;  %v179_v49 = vpop.f32.mrb[3].mxu0 }
 0x145   :  { %v180_v51 = vadd.f32 %v637_v44, %v179_v49 }
 0x146   :  { %v192_v52 = vpack.c.bf16 %v188_v48, %v185_v47 }
 0x147   :  { %v191_v53 = vpack.c.bf16 %v180_v51, %v177_v50 }
 0x148   :  { %710 = vst [vmem:[#allocation11 + $0x8] sm:$0xff] %v192_v52  }
 0x149   :  { %704 = vst [vmem:[#allocation11] sm:$0xff] %v191_v53   ;;  %458 = vmatmul.mubr.bf16.vlgmr.msra.gmra.mrb[0].mxu1 %v191_v53  ;;  %511 = vmatmul.mubr.bf16.vlgmr.msra.gmra.mrb[4].mxu0 %v191_v53 }
 0x14a   :  { %467 = vmatprep.mubr.bf16.mxu1 %v993_v42  ;;  %520 = vmatprep.mubr.bf16.mxu0 %v993_v42 }
 0x151   :  { %468 = vmatmul.mubr.bf16.gmra.mrb[4].mxu1 %v192_v52  ;;  %521 = vmatmul.mubr.bf16.gmra.mrb[8].mxu0 %v192_v52 }
 0x152   :  { %917 = shalt.err (!%p914_p2)
}
 0x153   :  { %s918_s25 = scalar_lea.hbm %s1162_s5, 256 }
 0x154   :  { %p919_p3 = scmp.ne.s32.totalorder %s1162_s5, %s918_s25  ;;  %p922_p4 = scmp.lt.u32.totalorder %s918_s25, %s1162_s5 }
 0x156   :  { %p924_p5 = pnand %p922_p4, %p919_p3 }
 0x158   :  { %927 = shalt.err (!%p924_p5)
}
 0x159   :  { %598 = dma.vmem_to_hbm [thread:$0]  %s593_s22, 256, %s1162_s5, [#allocation4], %s983_s11, %s983_s11, %s984_s12   ;;  %v245_v54 = vlaneseq  ;;  %v243_v58 = vld [vmem:[#allocation10] sm:$0xf] }
 0x15a   :  { %s995_s5 = smov [#allocation12]   ;;  %s996_s12 = smov [#allocation14]  }
 0x15b   :  { %v246_v55 = vshrl.u32 %v245_v54, 7  ;;  %s604_s11 = sshll.u32 %s995_s5, 4  ;;  %s616_s8 = sshll.u32 %s996_s12, 4  ;;  %s605_s11 = int_to_ptr.vmem [resolvable:$true] %s604_s11  ;;  %s1120_s8 = int_to_ptr.vmem [resolvable:$true] %s616_s8 }
 0x15c   :  { %s928_s9 = scalar_lea.vmem %s605_s11, 512  ;;  %p933_p7 = scmp.lt.s32.totalorder %s605_s11, %s605_s11 }
 0x15d   :  { %v247_v56 = vsub.s32 0, %v246_v55  ;;  %v255_v57 = vsub.s32 2, %v246_v55  ;;  %v251_v59 = vsub.s32 1, %v246_v55  ;;  %v259_v60 = vsub.s32 3, %v246_v55  ;;  %p929_p6 = scmp.ne.s32.totalorder %s605_s11, %s928_s9  ;;  %p934_p8 = scmp.lt.s32.totalorder %s928_s9, %s928_s9 }
 0x15f   :  { %v248_v61 = vrot.slane %v243_v58, %v247_v56  ;;  %v256_v62 = vrot.slane %v243_v58, %v255_v57  ;;  %v252_v63 = vrot.slane %v243_v58, %v251_v59  ;;  %v260_v0 = vrot.slane %v243_v58, %v259_v60  ;;  %p935_p9 = por %p934_p8, %p933_p7 }
 0x161   :  { %p936_p10 = pnand %p935_p9, %p929_p6 }
 0x21c   :  { %v459_v1 = vpop.f32.mrb[0].mxu1  ;;  %v512_v2 = vpop.f32.mrb[4].mxu0 }
 0x21d   :  { %v460_v3 = vadd.f32 %v459_v1, %v248_v61  ;;  %v513_v4 = vadd.f32 %v512_v2, %v256_v62  ;;  %v461_v5 = vpop.f32.mrb[1].mxu1  ;;  %v514_v6 = vpop.f32.mrb[5].mxu0 }
 0x21e   :  { %v462_v7 = vadd.f32 %v461_v5, %v252_v63  ;;  %v515_v8 = vadd.f32 %v514_v6, %v260_v0  ;;  %v463_v9 = vpop.f32.mrb[2].mxu1  ;;  %v516_v10 = vpop.f32.mrb[6].mxu0 }
 0x21f   :  { %v464_v11 = vadd.f32 %v463_v9, %v248_v61  ;;  %v517_v12 = vadd.f32 %v516_v10, %v256_v62  ;;  %v465_v13 = vpop.f32.mrb[3].mxu1  ;;  %v518_v14 = vpop.f32.mrb[7].mxu0 }
 0x220   :  { %v692_v15 = vpack.c.bf16 %v462_v7, %v460_v3  ;;  %v696_v16 = vpack.c.bf16 %v515_v8, %v513_v4  ;;  %v466_v17 = vadd.f32 %v465_v13, %v252_v63  ;;  %v519_v18 = vadd.f32 %v518_v14, %v260_v0 }
 0x222   :  { %555 = vst [vmem:[#allocation12] sm:$0xff] %v692_v15  ;;  %583 = vst [vmem:[#allocation14] sm:$0xff] %v696_v16  ;;  %v693_v19 = vpack.c.bf16 %v466_v17, %v464_v11  ;;  %v697_v20 = vpack.c.bf16 %v519_v18, %v517_v12 }
 0x224   :  { %556 = vst [vmem:[#allocation12 + $0x8] sm:$0xff] %v693_v19  ;;  %584 = vst [vmem:[#allocation14 + $0x8] sm:$0xff] %v697_v20  ;;  %v469_v21 = vpop.f32.mrb[4].mxu1  ;;  %v522_v22 = vpop.f32.mrb[8].mxu0 }
 0x225   :  { %v470_v23 = vadd.f32 %v469_v21, %v248_v61  ;;  %v523_v24 = vadd.f32 %v522_v22, %v256_v62  ;;  %v471_v25 = vpop.f32.mrb[5].mxu1  ;;  %v524_v26 = vpop.f32.mrb[9].mxu0 }
 0x226   :  { %v472_v27 = vadd.f32 %v471_v25, %v252_v63  ;;  %v525_v28 = vadd.f32 %v524_v26, %v260_v0  ;;  %v473_v29 = vpop.f32.mrb[6].mxu1  ;;  %v526_v30 = vpop.f32.mrb[10].mxu0 }
 0x227   :  { %v474_v31 = vadd.f32 %v473_v29, %v248_v61  ;;  %v527_v32 = vadd.f32 %v526_v30, %v256_v62  ;;  %v475_v33 = vpop.f32.mrb[7].mxu1  ;;  %v528_v34 = vpop.f32.mrb[11].mxu0 }
 0x228   :  { %v694_v35 = vpack.c.bf16 %v472_v27, %v470_v23  ;;  %v698_v36 = vpack.c.bf16 %v525_v28, %v523_v24  ;;  %v476_v37 = vadd.f32 %v475_v33, %v252_v63  ;;  %v529_v38 = vadd.f32 %v528_v34, %v260_v0 }
 0x22a   :  { %557 = vst [vmem:[#allocation12 + $0x10] sm:$0xff] %v694_v35  ;;  %585 = vst [vmem:[#allocation14 + $0x10] sm:$0xff] %v698_v36  ;;  %v695_v39 = vpack.c.bf16 %v476_v37, %v474_v31  ;;  %v699_v40 = vpack.c.bf16 %v529_v38, %v527_v32 }
 0x22c   :  { %558 = vst [vmem:[#allocation12 + $0x18] sm:$0xff] %v695_v39  ;;  %586 = vst [vmem:[#allocation14 + $0x18] sm:$0xff] %v699_v40 }
 0x22d   :  { %939 = shalt.err (!%p936_p10)
}
 0x22e   :  { %s940_s14 = scalar_lea.hbm %s1163_s6, 512 }
 0x22f   :  { %p941_p11 = scmp.ne.s32.totalorder %s1163_s6, %s940_s14  ;;  %p944_p12 = scmp.lt.u32.totalorder %s940_s14, %s1163_s6 }
 0x231   :  { %p946_p13 = pnand %p944_p12, %p941_p11 }
 0x233   :  { %949 = shalt.err (!%p946_p13)
}
 0x234   :  { %610 = dma.vmem_to_hbm [thread:$0]  %s605_s11, 512, %s1163_s6, [#allocation13], %s989_s3, %s989_s3, %s990_s16  }
 0x235   :  { %s950_s21 = scalar_lea.vmem %s1120_s8, 512  ;;  %p955_p1 = scmp.lt.s32.totalorder %s1120_s8, %s1120_s8 }
 0x236   :  { %p951_p0 = scmp.ne.s32.totalorder %s1120_s8, %s950_s21  ;;  %p956_p2 = scmp.lt.s32.totalorder %s950_s21, %s950_s21 }
 0x238   :  { %p957_p3 = por %p956_p2, %p955_p1 }
 0x23a   :  { %p958_p4 = pnand %p957_p3, %p951_p0 }
 0x23c   :  { %961 = shalt.err (!%p958_p4)
}
 0x23d   :  { %s962_s23 = scalar_lea.hbm %s1164_s7, 512 }
 0x23e   :  { %p963_p5 = scmp.ne.s32.totalorder %s1164_s7, %s962_s23  ;;  %p966_p6 = scmp.lt.u32.totalorder %s962_s23, %s1164_s7 }
 0x240   :  { %p968_p7 = pnand %p966_p6, %p963_p5 }
 0x242   :  { %971 = shalt.err (!%p968_p7)
}
 0x243   :  { %622 = dma.vmem_to_hbm [thread:$0]  %s1120_s8, 512, %s1164_s7, [#allocation13], %s989_s3, %s989_s3, %s990_s16  }
 0x244   :  { %978 = dma.done.wait [#allocation4], 256  }
 0x245   :  { %979 = vsyncadd [#allocation4], 4294967040 }
 0x246   :  { %980 = dma.done.wait [#allocation13], 1024  }
 0x247   :  { %981 = vsyncadd [#allocation13], 4294966272 }
 0x248   :  { %632 = vsyncpa [#allocation3], 1 }
 0x249   :  { %633 = vsyncpa [#allocation6], 1 }
 0x24a   :  { %634 = vsyncpa [#allocation9], 1 }
 0x24b   :  { %635 = vsyncpa [#allocation4], 1 }
 0x24c   :  { %636 = vsyncpa [#allocation13], 1 }

// kernel: crystal_graph_conv_net.7
= control target key start
LH: loop header
LB: loop body
LE: loop exit
PB: predicated region body
PF: predicated region fallthrough
CT: control target
= control target key end

     0   :  { %s1451_s0 = inlined_call_operand.hbm [shape: bf16[3,32], index: 0, kind: input, shape index: {}]   ;;  %s1452_s1 = inlined_call_operand.hbm [shape: bf16[32,128], index: 1, kind: input, shape index: {}]   ;;  %s1453_s2 = inlined_call_operand.hbm [shape: bf16[128,128], index: 2, kind: input, shape index: {}]   ;;  %s1454_s3 = inlined_call_operand.hbm [shape: f32[1,128], index: 3, kind: input, shape index: {}]   ;;  %s1455_s4 = inlined_call_operand.hbm [shape: bf16[128,128], index: 4, kind: input, shape index: {}]   ;;  %s1456_s5 = inlined_call_operand.hbm [shape: f32[1,128], index: 5, kind: input, shape index: {}]   ;;  %s1457_s6 = inlined_call_operand.hbm [shape: bf16[128,128], index: 6, kind: input, shape index: {}]   ;;  %s1458_s7 = inlined_call_operand.hbm [shape: f32[1,128], index: 7, kind: input, shape index: {}]   ;;  %s1459_s8 = inlined_call_operand.hbm [shape: f32[128,1], index: 8, kind: input, shape index: {}]   ;;  %s1460_s9 = inlined_call_operand.<no memory space> [shape: f32[1,1], index: 9, kind: input, shape index: {}]   ;;  %s1461_s10 = inlined_call_operand.hbm [shape: f32[3,1], index: 10, kind: output, shape index: {}]  }
   0x1   :  { %v15_v0 = vstv %s1460_s9 }
   0x2   :  { %16 = vst [vmem:[#allocation2] sm:$0x1] %v15_v0 }
   0x3   :  { %17 = vsyncpa [#allocation4], 0 }
   0x4   :  { %18 = vsyncpa [#allocation7], 0 }
   0x5   :  { %19 = vsyncpa [#allocation10], 0 }
   0x6   :  { %20 = vsyncpa [#allocation13], 0 }
   0x7   :  { %21 = vsyncpa [#allocation16], 0 }
   0x8   :  { %22 = vsyncpa [#allocation5], 0  ;;  %s1208_s15 = smov [#allocation6]   ;;  %s976_s19 = scalar_lea.hbm %s1452_s1, 256 }
   0x9   :  { %s38_s16 = sshll.u32 %s1208_s15, 4  ;;  %p977_p0 = scmp.ne.s32.totalorder %s1452_s1, %s976_s19  ;;  %s39_s16 = int_to_ptr.vmem [resolvable:$true] %s38_s16 }
   0xa   :  { %p980_p1 = scmp.lt.u32.totalorder %s976_s19, %s1452_s1 }
   0xc   :  { %p982_p2 = pnand %p980_p1, %p977_p0 }
   0xe   :  { %985 = shalt.err (!%p982_p2)
}
   0xf   :  { %s986_s23 = scalar_lea.vmem %s39_s16, 256  ;;  %p991_p4 = scmp.lt.s32.totalorder %s39_s16, %s39_s16 }
  0x10   :  { %p987_p3 = scmp.ne.s32.totalorder %s39_s16, %s986_s23  ;;  %p992_p5 = scmp.lt.s32.totalorder %s986_s23, %s986_s23 }
  0x12   :  { %p993_p6 = por %p992_p5, %p991_p4 }
  0x14   :  { %p994_p7 = pnand %p993_p6, %p987_p3 }
  0x16   :  { %997 = shalt.err (!%p994_p7)
}
  0x17   :  { %s1209_s24 = smov 64   ;;  %s1210_s25 = smov 4  }
  0x18   :  { %44 = dma.hbm_to_vmem [thread:$0]  %s1452_s1, 256, %s39_s16, [#allocation7], %s1209_s24, %s1209_s24, %s1210_s25  }
  0x19   :  { %s1211_s28 = smov [#allocation9]   ;;  %s1212_s30 = smov [#allocation12]  }
  0x1a   :  { %s63_s29 = sshll.u32 %s1211_s28, 4  ;;  %s85_s11 = sshll.u32 %s1212_s30, 4  ;;  %s64_s29 = int_to_ptr.vmem [resolvable:$true] %s63_s29  ;;  %s86_s11 = int_to_ptr.vmem [resolvable:$true] %s85_s11 }
  0x1b   :  { %s998_s14 = scalar_lea.hbm %s1454_s3, 16 }
  0x1c   :  { %p999_p8 = scmp.ne.s32.totalorder %s1454_s3, %s998_s14  ;;  %p1002_p9 = scmp.lt.u32.totalorder %s998_s14, %s1454_s3 }
  0x1e   :  { %p1004_p10 = pnand %p1002_p9, %p999_p8 }
  0x20   :  { %1007 = shalt.err (!%p1004_p10)
}
  0x21   :  { %s1008_s1 = scalar_lea.vmem %s64_s29, 16  ;;  %s1012_s16 = scalar_lea.vmem %s64_s29, 32 }
  0x22   :  { %p1009_p11 = scmp.ne.s32.totalorder %s64_s29, %s1008_s1  ;;  %p1013_p12 = scmp.lt.s32.totalorder %s64_s29, %s64_s29 }
  0x23   :  { %p1014_p13 = scmp.lt.s32.totalorder %s1012_s16, %s1008_s1 }
  0x25   :  { %p1015_p0 = por %p1014_p13, %p1013_p12 }
  0x27   :  { %p1016_p1 = pnand %p1015_p0, %p1009_p11 }
  0x29   :  { %1019 = shalt.err (!%p1016_p1)
}
  0x2a   :  { %66 = dma.hbm_to_vmem [thread:$0]  %s1454_s3, 16, %s64_s29, [#allocation10]  }
  0x2b   :  { %s1020_s23 = scalar_lea.hbm %s1456_s5, 16 }
  0x2c   :  { %p1021_p2 = scmp.ne.s32.totalorder %s1456_s5, %s1020_s23  ;;  %p1024_p3 = scmp.lt.u32.totalorder %s1020_s23, %s1456_s5 }
  0x2e   :  { %p1026_p4 = pnand %p1024_p3, %p1021_p2 }
  0x30   :  { %1029 = shalt.err (!%p1026_p4)
}
  0x31   :  { %s1030_s12 = scalar_lea.vmem %s86_s11, 16  ;;  %s1034_s13 = scalar_lea.vmem %s86_s11, 32 }
  0x32   :  { %p1031_p5 = scmp.ne.s32.totalorder %s86_s11, %s1030_s12  ;;  %p1035_p6 = scmp.lt.s32.totalorder %s86_s11, %s86_s11 }
  0x33   :  { %p1036_p7 = scmp.lt.s32.totalorder %s1034_s13, %s1030_s12 }
  0x35   :  { %p1037_p8 = por %p1036_p7, %p1035_p6 }
  0x37   :  { %p1038_p9 = pnand %p1037_p8, %p1031_p5 }
  0x39   :  { %1041 = shalt.err (!%p1038_p9)
}
  0x3a   :  { %88 = dma.hbm_to_vmem [thread:$0]  %s1456_s5, 16, %s86_s11, [#allocation13]  }
  0x3b   :  { %s1213_s14 = smov [#allocation15]   ;;  %s1214_s17 = smov [#allocation3]  }
  0x3c   :  { %s107_s15 = sshll.u32 %s1213_s14, 4  ;;  %s29_s18 = sshll.u32 %s1214_s17, 4  ;;  %s108_s15 = int_to_ptr.vmem [resolvable:$true] %s107_s15  ;;  %s30_s18 = int_to_ptr.vmem [resolvable:$true] %s29_s18 }
  0x3d   :  { %s1042_s16 = scalar_lea.hbm %s1458_s7, 16 }
  0x3e   :  { %p1043_p10 = scmp.ne.s32.totalorder %s1458_s7, %s1042_s16  ;;  %p1046_p11 = scmp.lt.u32.totalorder %s1042_s16, %s1458_s7 }
  0x40   :  { %p1048_p12 = pnand %p1046_p11, %p1043_p10 }
  0x42   :  { %1051 = shalt.err (!%p1048_p12)
}
  0x43   :  { %s1052_s5 = scalar_lea.vmem %s108_s15, 16  ;;  %s1056_s11 = scalar_lea.vmem %s108_s15, 32 }
  0x44   :  { %p1053_p13 = scmp.ne.s32.totalorder %s108_s15, %s1052_s5  ;;  %p1057_p0 = scmp.lt.s32.totalorder %s108_s15, %s108_s15 }
  0x45   :  { %p1058_p1 = scmp.lt.s32.totalorder %s1056_s11, %s1052_s5 }
  0x47   :  { %p1059_p2 = por %p1058_p1, %p1057_p0 }
  0x49   :  { %p1060_p3 = pnand %p1059_p2, %p1053_p13 }
  0x4b   :  { %1063 = shalt.err (!%p1060_p3)
}
  0x4c   :  { %110 = dma.hbm_to_vmem [thread:$0]  %s1458_s7, 16, %s108_s15, [#allocation16]  }
  0x4d   :  { %s1064_s30 = scalar_lea.hbm %s1451_s0, 32 }
  0x4e   :  { %p1065_p4 = scmp.ne.s32.totalorder %s1451_s0, %s1064_s30  ;;  %p1068_p5 = scmp.lt.u32.totalorder %s1064_s30, %s1451_s0 }
  0x50   :  { %p1070_p6 = pnand %p1068_p5, %p1065_p4 }
  0x52   :  { %1073 = shalt.err (!%p1070_p6)
}
  0x53   :  { %s1074_s14 = scalar_lea.vmem %s30_s18, 32  ;;  %p1079_p8 = scmp.lt.s32.totalorder %s30_s18, %s30_s18 }
  0x54   :  { %p1075_p7 = scmp.ne.s32.totalorder %s30_s18, %s1074_s14  ;;  %p1080_p9 = scmp.lt.s32.totalorder %s1074_s14, %s1074_s14 }
  0x56   :  { %p1081_p10 = por %p1080_p9, %p1079_p8 }
  0x58   :  { %p1082_p11 = pnand %p1081_p10, %p1075_p7 }
  0x5a   :  { %1085 = shalt.err (!%p1082_p11)
}
  0x5b   :  { %32 = dma.hbm_to_vmem [thread:$0]  %s1451_s0, 32, %s30_s18, [#allocation4]  }
  0x5c   :  { %s1215_s17 = smov [#allocation8]   ;;  %s1216_s1 = smov [#allocation11]  }
  0x5d   :  { %s50_s19 = sshll.u32 %s1215_s17, 4  ;;  %s72_s16 = sshll.u32 %s1216_s1, 4  ;;  %s51_s19 = int_to_ptr.vmem [resolvable:$true] %s50_s19  ;;  %s73_s16 = int_to_ptr.vmem [resolvable:$true] %s72_s16 }
  0x5e   :  { %s1086_s22 = scalar_lea.hbm %s1453_s2, 1024 }
  0x5f   :  { %p1087_p12 = scmp.ne.s32.totalorder %s1453_s2, %s1086_s22  ;;  %p1090_p13 = scmp.lt.u32.totalorder %s1086_s22, %s1453_s2 }
  0x61   :  { %p1092_p0 = pnand %p1090_p13, %p1087_p12 }
  0x63   :  { %1095 = shalt.err (!%p1092_p0)
}
  0x64   :  { %s1096_s0 = scalar_lea.vmem %s51_s19, 1024  ;;  %p1101_p2 = scmp.lt.s32.totalorder %s51_s19, %s51_s19 }
  0x65   :  { %p1097_p1 = scmp.ne.s32.totalorder %s51_s19, %s1096_s0  ;;  %p1102_p3 = scmp.lt.s32.totalorder %s1096_s0, %s1096_s0 }
  0x67   :  { %p1103_p4 = por %p1102_p3, %p1101_p2 }
  0x69   :  { %p1104_p5 = pnand %p1103_p4, %p1097_p1 }
  0x6b   :  { %1107 = shalt.err (!%p1104_p5)
}
  0x6c   :  { %56 = dma.hbm_to_vmem [thread:$0]  %s1453_s2, 1024, %s51_s19, [#allocation7], %s1209_s24, %s1209_s24, %s1210_s25  }
  0x6d   :  { %s1108_s30 = scalar_lea.hbm %s1455_s4, 1024 }
  0x6e   :  { %p1109_p6 = scmp.ne.s32.totalorder %s1455_s4, %s1108_s30  ;;  %p1112_p7 = scmp.lt.u32.totalorder %s1108_s30, %s1455_s4 }
  0x70   :  { %p1114_p8 = pnand %p1112_p7, %p1109_p6 }
  0x72   :  { %1117 = shalt.err (!%p1114_p8)
}
  0x73   :  { %s1118_s14 = scalar_lea.vmem %s73_s16, 1024  ;;  %p1123_p10 = scmp.lt.s32.totalorder %s73_s16, %s73_s16 }
  0x74   :  { %p1119_p9 = scmp.ne.s32.totalorder %s73_s16, %s1118_s14  ;;  %p1124_p11 = scmp.lt.s32.totalorder %s1118_s14, %s1118_s14 }
  0x76   :  { %p1125_p12 = por %p1124_p11, %p1123_p10 }
  0x78   :  { %p1126_p13 = pnand %p1125_p12, %p1119_p9 }
  0x7a   :  { %1129 = shalt.err (!%p1126_p13)
}
  0x7b   :  { %78 = dma.hbm_to_vmem [thread:$0]  %s1455_s4, 1024, %s73_s16, [#allocation10], %s1209_s24, %s1209_s24, %s1210_s25  }
  0x7c   :  { %s1217_s15 = smov [#allocation14]   ;;  %s1218_s19 = smov [#allocation17]  }
  0x7d   :  { %s94_s17 = sshll.u32 %s1217_s15, 4  ;;  %s116_s1 = sshll.u32 %s1218_s19, 4  ;;  %s95_s17 = int_to_ptr.vmem [resolvable:$true] %s94_s17  ;;  %s117_s1 = int_to_ptr.vmem [resolvable:$true] %s116_s1 }
  0x7e   :  { %s1130_s22 = scalar_lea.hbm %s1457_s6, 1024 }
  0x7f   :  { %p1131_p0 = scmp.ne.s32.totalorder %s1457_s6, %s1130_s22  ;;  %p1134_p1 = scmp.lt.u32.totalorder %s1130_s22, %s1457_s6 }
  0x81   :  { %p1136_p2 = pnand %p1134_p1, %p1131_p0 }
  0x83   :  { %1139 = shalt.err (!%p1136_p2)
}
  0x84   :  { %s1140_s4 = scalar_lea.vmem %s95_s17, 1024  ;;  %p1145_p4 = scmp.lt.s32.totalorder %s95_s17, %s95_s17 }
  0x85   :  { %p1141_p3 = scmp.ne.s32.totalorder %s95_s17, %s1140_s4  ;;  %p1146_p5 = scmp.lt.s32.totalorder %s1140_s4, %s1140_s4 }
  0x87   :  { %p1147_p6 = por %p1146_p5, %p1145_p4 }
  0x89   :  { %p1148_p7 = pnand %p1147_p6, %p1141_p3 }
  0x8b   :  { %1151 = shalt.err (!%p1148_p7)
}
  0x8c   :  { %100 = dma.hbm_to_vmem [thread:$0]  %s1457_s6, 1024, %s95_s17, [#allocation13], %s1209_s24, %s1209_s24, %s1210_s25  }
  0x8d   :  { %s1152_s27 = scalar_lea.hbm %s1459_s8, 2048 }
  0x8e   :  { %p1153_p8 = scmp.ne.s32.totalorder %s1459_s8, %s1152_s27  ;;  %p1156_p9 = scmp.lt.u32.totalorder %s1152_s27, %s1459_s8 }
  0x90   :  { %p1158_p10 = pnand %p1156_p9, %p1153_p8 }
  0x92   :  { %1161 = shalt.err (!%p1158_p10)
}
  0x93   :  { %s1162_s3 = scalar_lea.vmem %s117_s1, 2048  ;;  %p1167_p12 = scmp.lt.s32.totalorder %s117_s1, %s117_s1 }
  0x94   :  { %p1163_p11 = scmp.ne.s32.totalorder %s117_s1, %s1162_s3  ;;  %p1168_p13 = scmp.lt.s32.totalorder %s1162_s3, %s1162_s3 }
  0x96   :  { %p1169_p0 = por %p1168_p13, %p1167_p12 }
  0x98   :  { %p1170_p1 = pnand %p1169_p0, %p1163_p11 }
  0x9a   :  { %1173 = shalt.err (!%p1170_p1)
}
  0x9b   :  { %s1219_s6 = smov 128   ;;  %s1220_s24 = smov 8  }
  0x9c   :  { %122 = dma.hbm_to_vmem [thread:$0]  %s1459_s8, 2048, %s117_s1, [#allocation16], %s1219_s6, %s1219_s6, %s1220_s24  }
  0x9d   :  { %1196 = dma.done.wait [#allocation4], 32  }
  0x9e   :  { %1197 = vsyncadd [#allocation4], 4294967264 }
  0x9f   :  { %1198 = dma.done.wait [#allocation7], 1280  }
  0xa0   :  { %1199 = vsyncadd [#allocation7], 4294966016 }
  0xa1   :  { %1200 = dma.done.wait [#allocation10], 1040  }
  0xa2   :  { %1201 = vsyncadd [#allocation10], 4294966256 }
  0xa3   :  { %1202 = dma.done.wait [#allocation13], 1040  }
  0xa4   :  { %1203 = vsyncadd [#allocation13], 4294966256 }
  0xa5   :  { %1204 = dma.done.wait [#allocation16], 2064  }
  0xa6   :  { %1205 = vsyncadd [#allocation16], 4294965232  ;;  %v1221_v1 = vmov 0.0   ;;  %vm1222_vm0 = vmmov 0   ;;  %v934_v2 = vld [vmem:[#allocation6] sm:$0xff]   ;;  %v935_v3 = vld [vmem:[#allocation6 + $0x8] sm:$0xff]  }
  0xa7   :  { %790 = vmatprep.subr.bf16.mxu0 %v1221_v1  ;;  %794 = vmatprep.mubr.msk.bf16.mxu0 %vm1222_vm0, %v1221_v1  ;;  %vm170_vm1 = vcmask 261120   ;;  %v153_v4 = vld [vmem:[#allocation3] sm:$0x3]  ;;  %v936_v5 = vld [vmem:[#allocation8] sm:$0xff]   ;;  %v938_v7 = vld [vmem:[#allocation8 + $0x10] sm:$0xff]   ;;  %s1224_s8 = smov [#allocation18]  }
  0xa8   :  { %798 = vmatprep.subr.bf16.mxu1 %v1221_v1  ;;  %814 = vmatprep.mubr.msk.bf16.mxu1 %vm1222_vm0, %v1221_v1  ;;  %v937_v6 = vld [vmem:[#allocation8 + $0x8] sm:$0xff]   ;;  %v939_v8 = vld [vmem:[#allocation8 + $0x18] sm:$0xff]   ;;  %v940_v9 = vld [vmem:[#allocation8 + $0x20] sm:$0xff]   ;;  %s699_s14 = sshll.u32 %s1224_s8, 4  ;;  %vm691_vm6 = vcmask 2048   ;;  %s700_s14 = int_to_ptr.vmem [resolvable:$true] %s699_s14 }
  0xa9   :  { %791 = vmatpush3.bf16.msra.mxu0 %v934_v2  ;;  %799 = vmatpush3.bf16.msra.mxu1 %v936_v5  ;;  %v941_v10 = vld [vmem:[#allocation8 + $0x28] sm:$0xff]   ;;  %v942_v11 = vld [vmem:[#allocation8 + $0x30] sm:$0xff]   ;;  %v943_v12 = vld [vmem:[#allocation8 + $0x38] sm:$0xff]   ;;  %s1174_s2 = scalar_lea.vmem %s700_s14, 64  ;;  %p1179_p3 = scmp.lt.s32.totalorder %s700_s14, %s700_s14 }
  0xaa   :  { %792 = vmatprep.subr.bf16.mxu0 %v1221_v1  ;;  %800 = vmatprep.subr.bf16.mxu1 %v1221_v1  ;;  %v944_v29 = vld [vmem:[#allocation11] sm:$0xff]   ;;  %v945_v30 = vld [vmem:[#allocation11 + $0x8] sm:$0xff]   ;;  %v946_v31 = vld [vmem:[#allocation11 + $0x10] sm:$0xff]   ;;  %p1175_p2 = scmp.ne.s32.totalorder %s700_s14, %s1174_s2  ;;  %p1180_p4 = scmp.lt.s32.totalorder %s1174_s2, %s1174_s2 }
  0xab   :  { %v947_v32 = vld [vmem:[#allocation11 + $0x18] sm:$0xff]   ;;  %v948_v33 = vld [vmem:[#allocation11 + $0x20] sm:$0xff]   ;;  %v949_v34 = vld [vmem:[#allocation11 + $0x28] sm:$0xff]  }
  0xac   :  { %v950_v35 = vld [vmem:[#allocation11 + $0x30] sm:$0xff]   ;;  %v951_v36 = vld [vmem:[#allocation11 + $0x38] sm:$0xff]   ;;  %v952_v55 = vld [vmem:[#allocation14] sm:$0xff]   ;;  %p1181_p5 = por %p1180_p4, %p1179_p3 }
  0xad   :  { %793 = vmatpush3.bf16.msra.mxu0 %v935_v3  ;;  %801 = vmatpush3.bf16.msra.mxu1 %v937_v6  ;;  %v715_v37 = vld [vmem:[#allocation9] ss:$0 sm:$0xff]  ;;  %v953_v56 = vld [vmem:[#allocation14 + $0x8] sm:$0xff]   ;;  %v954_v57 = vld [vmem:[#allocation14 + $0x10] sm:$0xff]  }
  0xae   :  { %818 = vmatprep.subr.bf16.mxu0 %v1221_v1  ;;  %802 = vmatprep.subr.bf16.mxu1 %v1221_v1  ;;  %v955_v58 = vld [vmem:[#allocation14 + $0x18] sm:$0xff]   ;;  %v956_v59 = vld [vmem:[#allocation14 + $0x20] sm:$0xff]   ;;  %v957_v60 = vld [vmem:[#allocation14 + $0x28] sm:$0xff]   ;;  %p1182_p6 = pnand %p1181_p5, %p1175_p2 }
  0xaf   :  { %v958_v61 = vld [vmem:[#allocation14 + $0x30] sm:$0xff]   ;;  %v959_v62 = vld [vmem:[#allocation14 + $0x38] sm:$0xff]  }
  0xb0   :  { %795 = vmatmul.mubr.msk.bf16.vlgmr.msra.gmra.mrb[0].mxu0 %vm170_vm1, %v153_v4  ;;  %v724_v63 = vld [vmem:[#allocation12] ss:$0 sm:$0xff] }
  0xb1   :  { %834 = vmatprep.mubr.msk.bf16.mxu0 %vm1222_vm0, %v1221_v1  ;;  %803 = vmatpush3.bf16.msra.mxu1 %v938_v7 }
  0xb2   :  { %804 = vmatprep.subr.bf16.mxu1 %v1221_v1  ;;  %819 = vmatpush3.bf16.msra.mxu0 %v944_v29 }
  0xb3   :  { %820 = vmatprep.subr.bf16.mxu0 %v1221_v1 }
  0xb5   :  { %805 = vmatpush3.bf16.msra.mxu1 %v939_v8 }
  0xb6   :  { %806 = vmatprep.subr.bf16.mxu1 %v1221_v1  ;;  %821 = vmatpush3.bf16.msra.mxu0 %v945_v30  ;;  %v606_v30 = vld [vmem:[#allocation17 + $0x40] sm:$0xff] }
  0xb7   :  { %822 = vmatprep.subr.bf16.mxu0 %v1221_v1 }
  0xb9   :  { %807 = vmatpush3.bf16.msra.mxu1 %v940_v9 }
  0xba   :  { %808 = vmatprep.subr.bf16.mxu1 %v1221_v1  ;;  %823 = vmatpush3.bf16.msra.mxu0 %v946_v31  ;;  %v607_v31 = vld [vmem:[#allocation17 + $0x48] sm:$0xff] }
  0xbb   :  { %824 = vmatprep.subr.bf16.mxu0 %v1221_v1 }
  0xbd   :  { %809 = vmatpush3.bf16.msra.mxu1 %v941_v10 }
  0xbe   :  { %810 = vmatprep.subr.bf16.mxu1 %v1221_v1  ;;  %825 = vmatpush3.bf16.msra.mxu0 %v947_v32  ;;  %v906_v32 = vpack.c.bf16 %v607_v31, %v606_v30 }
  0xbf   :  { %826 = vmatprep.subr.bf16.mxu0 %v1221_v1 }
  0xc1   :  { %811 = vmatpush3.bf16.msra.mxu1 %v942_v11 }
  0xc2   :  { %812 = vmatprep.subr.bf16.mxu1 %v1221_v1  ;;  %827 = vmatpush3.bf16.msra.mxu0 %v948_v33  ;;  %v608_v33 = vld [vmem:[#allocation17 + $0x50] sm:$0xff] }
  0xc3   :  { %828 = vmatprep.subr.bf16.mxu0 %v1221_v1 }
  0xc5   :  { %813 = vmatpush3.bf16.msra.mxu1 %v943_v12 }
  0xc6   :  { %838 = vmatprep.subr.bf16.mxu1 %v1221_v1  ;;  %829 = vmatpush3.bf16.msra.mxu0 %v949_v34  ;;  %v609_v34 = vld [vmem:[#allocation17 + $0x58] sm:$0xff] }
  0xc7   :  { %830 = vmatprep.subr.bf16.mxu0 %v1221_v1 }
  0xca   :  { %831 = vmatpush3.bf16.msra.mxu0 %v950_v35  ;;  %v909_v35 = vpack.c.bf16 %v609_v34, %v608_v33 }
  0xcb   :  { %832 = vmatprep.subr.bf16.mxu0 %v1221_v1 }
  0xce   :  { %833 = vmatpush3.bf16.msra.mxu0 %v951_v36  ;;  %v610_v36 = vld [vmem:[#allocation17 + $0x60] sm:$0xff] }
 0x183   :  { %v208_v13 = vpop.f32.mrb[0].mxu0 }
 0x184   :  { %v214_v14 = vmin.f32 %v208_v13, 20.0  ;;  %v796_v15 = vpop.f32.mrb[1].mxu0  ;;  %vm224_vm2 = vcmp.gt.f32.partialorder %v208_v13, 20.0 }
 0x185   :  { %v211_v16 = vpop.f32.mrb[2].mxu0 }
 0x186   :  { %v216_v17 = vand.u32 2147483647, %v214_v14  ;;  %v797_v18 = vpop.f32.mrb[3].mxu0  ;;  %v215_v24 = vmax.f32 %v214_v14, 0.0 }
 0x187   :  { %v599_v18 = vld [vmem:[#allocation17 + $0x8] sm:$0xff] }
 0x188   :  { %v217_v19 = vsub.f32 0.0, %v216_v17  ;;  %v598_v17 = vld [vmem:[#allocation17] sm:$0xff] }
 0x18a   :  { %v218_v20 = vmul.f32 1.442695, %v217_v19  ;;  %v894_v19 = vpack.c.bf16 %v599_v18, %v598_v17 }
 0x18c   :  { %960 = vpow2.f32 %v218_v20  ;;  %v1223_v20 = vmov 0.0|0.0  }
 0x18d   :  { %893 = vmatprep.subr.bf16.mxu0 %v1223_v20 }
 0x196   :  { %v961_v21 = vpop.eup %960 }
 0x197   :  { %v220_v22 = vadd.f32 1.0, %v961_v21  ;;  %v600_v21 = vld [vmem:[#allocation17 + $0x10] sm:$0xff] }
 0x199   :  { %962 = vlog2.f32 %v220_v22  ;;  %v601_v22 = vld [vmem:[#allocation17 + $0x18] sm:$0xff] }
 0x1a3   :  { %v963_v23 = vpop.eup %962 }
 0x1a4   :  { %v222_v25 = vmul.f32 0.6931472, %v963_v23  ;;  %v897_v23 = vpack.c.bf16 %v601_v22, %v600_v21 }
 0x1a6   :  { %v223_v26 = vadd.f32 %v222_v25, %v215_v24  ;;  %v602_v24 = vld [vmem:[#allocation17 + $0x20] sm:$0xff]  ;;  %v603_v25 = vld [vmem:[#allocation17 + $0x28] sm:$0xff] }
 0x1a8   :  { %v225_v27 = vsel %vm224_vm2, %v208_v13, %v223_v26  ;;  %v900_v26 = vpack.c.bf16 %v603_v25, %v602_v24 }
 0x1a9   :  { %v242_v28 = vpack.c.bf16 %v225_v27, %v225_v27  ;;  %v604_v27 = vld [vmem:[#allocation17 + $0x30] sm:$0xff] }
 0x1ab   :  { %815 = vmatmul.mubr.bf16.vlgmr.msra.gmra.mrb[0].mxu1 %v242_v28  ;;  %v605_v28 = vld [vmem:[#allocation17 + $0x38] sm:$0xff] }
 0x1ac   :  { %854 = vmatprep.mubr.msk.bf16.mxu1 %vm1222_vm0, %v1221_v1  ;;  %839 = vmatpush3.bf16.msra.mxu1 %v952_v55  ;;  %v903_v29 = vpack.c.bf16 %v605_v28, %v604_v27 }
 0x1ad   :  { %840 = vmatprep.subr.bf16.mxu1 %v1221_v1 }
 0x1b0   :  { %841 = vmatpush3.bf16.msra.mxu1 %v953_v56 }
 0x1b1   :  { %842 = vmatprep.subr.bf16.mxu1 %v1221_v1 }
 0x1b4   :  { %843 = vmatpush3.bf16.msra.mxu1 %v954_v57 }
 0x1b5   :  { %844 = vmatprep.subr.bf16.mxu1 %v1221_v1 }
 0x1b8   :  { %845 = vmatpush3.bf16.msra.mxu1 %v955_v58 }
 0x1b9   :  { %846 = vmatprep.subr.bf16.mxu1 %v1221_v1 }
 0x1bc   :  { %847 = vmatpush3.bf16.msra.mxu1 %v956_v59  ;;  %v742_v59 = vld [vmem:[#allocation2] ss:$0 sm:$0xff] }
 0x1bd   :  { %848 = vmatprep.subr.bf16.mxu1 %v1221_v1 }
 0x1c0   :  { %849 = vmatpush3.bf16.msra.mxu1 %v957_v60 }
 0x1c1   :  { %850 = vmatprep.subr.bf16.mxu1 %v1221_v1 }
 0x1c4   :  { %851 = vmatpush3.bf16.msra.mxu1 %v958_v61 }
 0x1c5   :  { %852 = vmatprep.subr.bf16.mxu1 %v1221_v1 }
 0x1c8   :  { %853 = vmatpush3.bf16.msra.mxu1 %v959_v62 }
 0x27e   :  { %v332_v38 = vpop.f32.mrb[0].mxu1 }
 0x27f   :  { %v333_v39 = vadd.f32 %v715_v37, %v332_v38  ;;  %v816_v40 = vpop.f32.mrb[1].mxu1  ;;  %v611_v37 = vld [vmem:[#allocation17 + $0x68] sm:$0xff] }
 0x280   :  { %v335_v41 = vpop.f32.mrb[2].mxu1  ;;  %v912_v38 = vpack.c.bf16 %v611_v37, %v610_v36  ;;  %v613_v40 = vld [vmem:[#allocation17 + $0x78] sm:$0xff] }
 0x281   :  { %v338_v42 = vmin.f32 %v333_v39, 20.0  ;;  %v817_v43 = vpop.f32.mrb[3].mxu1  ;;  %vm348_vm3 = vcmp.gt.f32.partialorder %v333_v39, 20.0 }
 0x283   :  { %v340_v44 = vand.u32 2147483647, %v338_v42  ;;  %v339_v50 = vmax.f32 %v338_v42, 0.0  ;;  %v733_v42 = vld [vmem:[#allocation15] ss:$0 sm:$0xff] }
 0x285   :  { %v341_v45 = vsub.f32 0.0, %v340_v44 }
 0x287   :  { %v342_v46 = vmul.f32 1.442695, %v341_v45 }
 0x289   :  { %964 = vpow2.f32 %v342_v46 }
 0x293   :  { %v965_v47 = vpop.eup %964 }
 0x294   :  { %v344_v48 = vadd.f32 1.0, %v965_v47 }
 0x296   :  { %966 = vlog2.f32 %v344_v48 }
 0x2a0   :  { %v967_v49 = vpop.eup %966 }
 0x2a1   :  { %v346_v51 = vmul.f32 0.6931472, %v967_v49 }
 0x2a3   :  { %v347_v52 = vadd.f32 %v346_v51, %v339_v50 }
 0x2a5   :  { %v349_v53 = vsel %vm348_vm3, %v333_v39, %v347_v52  ;;  %v612_v39 = vld [vmem:[#allocation17 + $0x70] sm:$0xff] }
 0x2a6   :  { %v366_v54 = vpack.c.bf16 %v349_v53, %v349_v53  ;;  %v915_v41 = vpack.c.bf16 %v613_v40, %v612_v39 }
 0x2a8   :  { %835 = vmatmul.mubr.bf16.vlgmr.msra.gmra.mrb[4].mxu0 %v366_v54 }
 0x2a9   :  { %890 = vmatprep.mubr.msk.f32.mxu0 %vm1222_vm0, %v1221_v1  ;;  %895 = vmatpush3.bf16.msra.mxu0 %v894_v19 }
 0x2aa   :  { %896 = vmatprep.subr.bf16.mxu0 %v1223_v20 }
 0x2ad   :  { %898 = vmatpush3.bf16.msra.mxu0 %v897_v23 }
 0x2ae   :  { %899 = vmatprep.subr.bf16.mxu0 %v1223_v20 }
 0x2b1   :  { %901 = vmatpush3.bf16.msra.mxu0 %v900_v26 }
 0x2b2   :  { %902 = vmatprep.subr.bf16.mxu0 %v1223_v20 }
 0x2b5   :  { %904 = vmatpush3.bf16.msra.mxu0 %v903_v29 }
 0x2b6   :  { %905 = vmatprep.subr.bf16.mxu0 %v1223_v20 }
 0x2b9   :  { %907 = vmatpush3.bf16.msra.mxu0 %v906_v32 }
 0x2ba   :  { %908 = vmatprep.subr.bf16.mxu0 %v1223_v20 }
 0x2bd   :  { %910 = vmatpush3.bf16.msra.mxu0 %v909_v35 }
 0x2be   :  { %911 = vmatprep.subr.bf16.mxu0 %v1223_v20 }
 0x2c1   :  { %913 = vmatpush3.bf16.msra.mxu0 %v912_v38 }
 0x2c2   :  { %914 = vmatprep.subr.bf16.mxu0 %v1223_v20 }
 0x2c5   :  { %916 = vmatpush3.bf16.msra.mxu0 %v915_v41 }
 0x37b   :  { %v456_v0 = vpop.f32.mrb[4].mxu0 }
 0x37c   :  { %v457_v2 = vadd.f32 %v724_v63, %v456_v0  ;;  %v836_v3 = vpop.f32.mrb[5].mxu0 }
 0x37d   :  { %v459_v4 = vpop.f32.mrb[6].mxu0 }
 0x37e   :  { %v462_v5 = vmin.f32 %v457_v2, 20.0  ;;  %v837_v6 = vpop.f32.mrb[7].mxu0  ;;  %vm472_vm4 = vcmp.gt.f32.partialorder %v457_v2, 20.0 }
 0x380   :  { %v464_v7 = vand.u32 2147483647, %v462_v5  ;;  %v463_v13 = vmax.f32 %v462_v5, 0.0 }
 0x382   :  { %v465_v8 = vsub.f32 0.0, %v464_v7 }
 0x384   :  { %v466_v9 = vmul.f32 1.442695, %v465_v8 }
 0x386   :  { %968 = vpow2.f32 %v466_v9 }
 0x390   :  { %v969_v10 = vpop.eup %968 }
 0x391   :  { %v468_v11 = vadd.f32 1.0, %v969_v10 }
 0x393   :  { %970 = vlog2.f32 %v468_v11 }
 0x39d   :  { %v971_v12 = vpop.eup %970 }
 0x39e   :  { %v470_v14 = vmul.f32 0.6931472, %v971_v12 }
 0x3a0   :  { %v471_v1 = vadd.f32 %v470_v14, %v463_v13 }
 0x3a2   :  { %v473_v15 = vsel %vm472_vm4, %v457_v2, %v471_v1 }
 0x3a3   :  { %v490_v16 = vpack.c.bf16 %v473_v15, %v473_v15 }
 0x3a5   :  { %855 = vmatmul.mubr.bf16.vlgmr.msra.gmra.mrb[4].mxu1 %v490_v16 }
 0x478   :  { %v580_v43 = vpop.f32.mrb[4].mxu1 }
 0x479   :  { %v581_v44 = vadd.f32 %v733_v42, %v580_v43  ;;  %v856_v45 = vpop.f32.mrb[5].mxu1 }
 0x47a   :  { %v583_v46 = vpop.f32.mrb[6].mxu1 }
 0x47b   :  { %v586_v47 = vmin.f32 %v581_v44, 20.0  ;;  %v857_v48 = vpop.f32.mrb[7].mxu1  ;;  %vm596_vm5 = vcmp.gt.f32.partialorder %v581_v44, 20.0 }
 0x47d   :  { %v588_v49 = vand.u32 2147483647, %v586_v47  ;;  %v587_v55 = vmax.f32 %v586_v47, 0.0 }
 0x47f   :  { %v589_v50 = vsub.f32 0.0, %v588_v49 }
 0x481   :  { %v590_v51 = vmul.f32 1.442695, %v589_v50 }
 0x483   :  { %972 = vpow2.f32 %v590_v51 }
 0x48d   :  { %v973_v52 = vpop.eup %972 }
 0x48e   :  { %v592_v53 = vadd.f32 1.0, %v973_v52 }
 0x490   :  { %974 = vlog2.f32 %v592_v53 }
 0x49a   :  { %v975_v54 = vpop.eup %974 }
 0x49b   :  { %v594_v56 = vmul.f32 0.6931472, %v975_v54 }
 0x49d   :  { %v595_v57 = vadd.f32 %v594_v56, %v587_v55 }
 0x49f   :  { %v597_v58 = vsel %vm596_vm5, %v581_v44, %v595_v57 }
 0x4a0   :  { %891 = vmatmul.mubr.f32.vlgmr.msra.gmra.mrb[8].mxu0 %v597_v58 }
 0x573   :  { %v687_v60 = vpop.f32.mrb[8].mxu0 }
 0x574   :  { %v688_v61 = vadd.f32 %v742_v59, %v687_v60  ;;  %v892_v62 = vpop.f32.mrb[9].mxu0 }
 0x576   :  { %692 = vst.msk [vmem:[#allocation18] sm:$0x7] %vm691_vm6, %v688_v61 }
 0x577   :  { %1185 = shalt.err (!%p1182_p6)
}
 0x578   :  { %s1186_s17 = scalar_lea.hbm %s1461_s10, 64 }
 0x579   :  { %p1187_p7 = scmp.ne.s32.totalorder %s1461_s10, %s1186_s17  ;;  %p1190_p8 = scmp.lt.u32.totalorder %s1186_s17, %s1461_s10 }
 0x57b   :  { %p1192_p9 = pnand %p1190_p8, %p1187_p7 }
 0x57d   :  { %1195 = shalt.err (!%p1192_p9)
}
 0x57e   :  { %702 = dma.vmem_to_hbm [thread:$0]  %s700_s14, 64, %s1461_s10, [#allocation5]  }
 0x57f   :  { %1206 = dma.done.wait [#allocation5], 64  }
 0x580   :  { %1207 = vsyncadd [#allocation5], 4294967232 }
 0x581   :  { %706 = vsyncpa [#allocation4], 1 }
 0x582   :  { %707 = vsyncpa [#allocation7], 1 }
 0x583   :  { %708 = vsyncpa [#allocation10], 1 }
 0x584   :  { %709 = vsyncpa [#allocation13], 1 }
 0x585   :  { %710 = vsyncpa [#allocation16], 1 }
 0x586   :  { %711 = vsyncpa [#allocation5], 1 }

// kernel: crystal_graph_conv_net.6
= control target key start
LH: loop header
LB: loop body
LE: loop exit
PB: predicated region body
PF: predicated region fallthrough
CT: control target
= control target key end

     0   :  { %15 = vsyncpa [#allocation3], 0  ;;  %s5608_s0 = inlined_call_operand.hbm [shape: bf16[32,128], index: 0, kind: input, shape index: {}]   ;;  %s5609_s1 = inlined_call_operand.hbm [shape: bf16[32,256], index: 1, kind: input, shape index: {}]   ;;  %s5610_s2 = inlined_call_operand.hbm [shape: bf16[32,256], index: 2, kind: input, shape index: {}]   ;;  %s5611_s3 = inlined_call_operand.hbm [shape: s32[256,1], index: 3, kind: input, shape index: {}]   ;;  %s5612_s4 = inlined_call_operand.hbm [shape: bf16[256,128], index: 4, kind: input, shape index: {}]   ;;  %s5613_s5 = inlined_call_operand.hbm [shape: bf16[128,256], index: 5, kind: input, shape index: {}]   ;;  %s5614_s6 = inlined_call_operand.hbm [shape: f32[1,256], index: 6, kind: input, shape index: {}]   ;;  %s5615_s7 = inlined_call_operand.hbm [shape: f32[1,256], index: 7, kind: input, shape index: {}]   ;;  %s5616_s8 = inlined_call_operand.hbm [shape: f32[1,128], index: 8, kind: input, shape index: {}]   ;;  %s5617_s9 = inlined_call_operand.hbm [shape: f32[1,128], index: 9, kind: input, shape index: {}]   ;;  %s5618_s10 = inlined_call_operand.hbm [shape: bf16[32,128], index: 10, kind: output, shape index: {}]  }
   0x1   :  { %16 = vsyncpa [#allocation6], 0 }
   0x2   :  { %17 = vsyncpa [#allocation9], 0 }
   0x3   :  { %18 = vsyncpa [#allocation12], 0 }
   0x4   :  { %19 = vsyncpa [#allocation15], 0 }
   0x5   :  { %20 = vsyncpa [#allocation18], 0 }
   0x6   :  { %21 = vsyncpa [#allocation4], 0  ;;  %s3173_s13 = smov [#allocation5]   ;;  %s2917_s17 = scalar_lea.hbm %s5609_s1, 512 }
   0x7   :  { %s39_s14 = sshll.u32 %s3173_s13, 4  ;;  %p2918_p0 = scmp.ne.s32.totalorder %s5609_s1, %s2917_s17  ;;  %s40_s14 = int_to_ptr.vmem [resolvable:$true] %s39_s14 }
   0x8   :  { %p2921_p1 = scmp.lt.u32.totalorder %s2917_s17, %s5609_s1 }
   0xa   :  { %p2923_p2 = pnand %p2921_p1, %p2918_p0 }
   0xc   :  { %2926 = shalt.err (!%p2923_p2)
}
   0xd   :  { %s2927_s22 = scalar_lea.vmem %s40_s14, 512  ;;  %p2932_p4 = scmp.lt.s32.totalorder %s40_s14, %s40_s14 }
   0xe   :  { %p2928_p3 = scmp.ne.s32.totalorder %s40_s14, %s2927_s22  ;;  %p2933_p5 = scmp.lt.s32.totalorder %s2927_s22, %s2927_s22 }
  0x10   :  { %p2934_p6 = por %p2933_p5, %p2932_p4 }
  0x12   :  { %p2935_p7 = pnand %p2934_p6, %p2928_p3 }
  0x14   :  { %2938 = shalt.err (!%p2935_p7)
}
  0x15   :  { %s3174_s23 = smov 128   ;;  %s3175_s24 = smov 8  }
  0x16   :  { %45 = dma.hbm_to_vmem [thread:$0]  %s5609_s1, 512, %s40_s14, [#allocation6], %s3174_s23, %s3174_s23, %s3175_s24  }
  0x17   :  { %s3176_s27 = smov [#allocation8]   ;;  %s3177_s29 = smov [#allocation11]  }
  0x18   :  { %s63_s28 = sshll.u32 %s3176_s27, 4  ;;  %s87_s30 = sshll.u32 %s3177_s29, 4  ;;  %s64_s28 = int_to_ptr.vmem [resolvable:$true] %s63_s28  ;;  %s88_s30 = int_to_ptr.vmem [resolvable:$true] %s87_s30 }
  0x19   :  { %s2939_s13 = scalar_lea.hbm %s5611_s3, 4096 }
  0x1a   :  { %p2940_p8 = scmp.ne.s32.totalorder %s5611_s3, %s2939_s13  ;;  %p2943_p9 = scmp.lt.u32.totalorder %s2939_s13, %s5611_s3 }
  0x1c   :  { %p2945_p10 = pnand %p2943_p9, %p2940_p8 }
  0x1e   :  { %2948 = shalt.err (!%p2945_p10)
}
  0x1f   :  { %s2949_s1 = scalar_lea.vmem %s64_s28, 4096  ;;  %p2954_p12 = scmp.lt.s32.totalorder %s64_s28, %s64_s28 }
  0x20   :  { %p2950_p11 = scmp.ne.s32.totalorder %s64_s28, %s2949_s1  ;;  %p2955_p13 = scmp.lt.s32.totalorder %s2949_s1, %s2949_s1 }
  0x22   :  { %p2956_p0 = por %p2955_p13, %p2954_p12 }
  0x24   :  { %p2957_p1 = pnand %p2956_p0, %p2950_p11 }
  0x26   :  { %2960 = shalt.err (!%p2957_p1)
}
  0x27   :  { %69 = dma.hbm_to_vmem [thread:$0]  %s5611_s3, 4096, %s64_s28, [#allocation9], %s3174_s23, %s3174_s23, %s3175_s24  }
  0x28   :  { %s2961_s22 = scalar_lea.hbm %s5613_s5, 2048 }
  0x29   :  { %p2962_p2 = scmp.ne.s32.totalorder %s5613_s5, %s2961_s22  ;;  %p2965_p3 = scmp.lt.u32.totalorder %s2961_s22, %s5613_s5 }
  0x2b   :  { %p2967_p4 = pnand %p2965_p3, %p2962_p2 }
  0x2d   :  { %2970 = shalt.err (!%p2967_p4)
}
  0x2e   :  { %s2971_s11 = scalar_lea.vmem %s88_s30, 2048  ;;  %p2976_p6 = scmp.lt.s32.totalorder %s88_s30, %s88_s30 }
  0x2f   :  { %p2972_p5 = scmp.ne.s32.totalorder %s88_s30, %s2971_s11  ;;  %p2977_p7 = scmp.lt.s32.totalorder %s2971_s11, %s2971_s11 }
  0x31   :  { %p2978_p8 = por %p2977_p7, %p2976_p6 }
  0x33   :  { %p2979_p9 = pnand %p2978_p8, %p2972_p5 }
  0x35   :  { %2982 = shalt.err (!%p2979_p9)
}
  0x36   :  { %93 = dma.hbm_to_vmem [thread:$0]  %s5613_s5, 2048, %s88_s30, [#allocation12], %s3174_s23, %s3174_s23, %s3175_s24  }
  0x37   :  { %s3178_s12 = smov [#allocation14]   ;;  %s3179_s15 = smov [#allocation2]  }
  0x38   :  { %s110_s13 = sshll.u32 %s3178_s12, 4  ;;  %s27_s16 = sshll.u32 %s3179_s15, 4  ;;  %s111_s13 = int_to_ptr.vmem [resolvable:$true] %s110_s13  ;;  %s28_s16 = int_to_ptr.vmem [resolvable:$true] %s27_s16 }
  0x39   :  { %s2983_s1 = scalar_lea.hbm %s5615_s7, 32 }
  0x3a   :  { %p2984_p10 = scmp.ne.s32.totalorder %s5615_s7, %s2983_s1  ;;  %p2987_p11 = scmp.lt.u32.totalorder %s2983_s1, %s5615_s7 }
  0x3c   :  { %p2989_p12 = pnand %p2987_p11, %p2984_p10 }
  0x3e   :  { %2992 = shalt.err (!%p2989_p12)
}
  0x3f   :  { %s2993_s5 = scalar_lea.vmem %s111_s13, 32  ;;  %p2998_p0 = scmp.lt.s32.totalorder %s111_s13, %s111_s13 }
  0x40   :  { %p2994_p13 = scmp.ne.s32.totalorder %s111_s13, %s2993_s5  ;;  %p2999_p1 = scmp.lt.s32.totalorder %s2993_s5, %s2993_s5 }
  0x42   :  { %p3000_p2 = por %p2999_p1, %p2998_p0 }
  0x44   :  { %p3001_p3 = pnand %p3000_p2, %p2994_p13 }
  0x46   :  { %3004 = shalt.err (!%p3001_p3)
}
  0x47   :  { %113 = dma.hbm_to_vmem [thread:$0]  %s5615_s7, 32, %s111_s13, [#allocation15]  }
  0x48   :  { %s3005_s27 = scalar_lea.hbm %s5608_s0, 256 }
  0x49   :  { %p3006_p4 = scmp.ne.s32.totalorder %s5608_s0, %s3005_s27  ;;  %p3009_p5 = scmp.lt.u32.totalorder %s3005_s27, %s5608_s0 }
  0x4b   :  { %p3011_p6 = pnand %p3009_p5, %p3006_p4 }
  0x4d   :  { %3014 = shalt.err (!%p3011_p6)
}
  0x4e   :  { %s3015_s12 = scalar_lea.vmem %s28_s16, 256  ;;  %p3020_p8 = scmp.lt.s32.totalorder %s28_s16, %s28_s16 }
  0x4f   :  { %p3016_p7 = scmp.ne.s32.totalorder %s28_s16, %s3015_s12  ;;  %p3021_p9 = scmp.lt.s32.totalorder %s3015_s12, %s3015_s12 }
  0x51   :  { %p3022_p10 = por %p3021_p9, %p3020_p8 }
  0x53   :  { %p3023_p11 = pnand %p3022_p10, %p3016_p7 }
  0x55   :  { %3026 = shalt.err (!%p3023_p11)
}
  0x56   :  { %s3180_s7 = smov 64   ;;  %s3181_s13 = smov 4  }
  0x57   :  { %33 = dma.hbm_to_vmem [thread:$0]  %s5608_s0, 256, %s28_s16, [#allocation3], %s3180_s7, %s3180_s7, %s3181_s13  }
  0x58   :  { %s3182_s18 = smov [#allocation7]   ;;  %s3183_s14 = smov [#allocation10]  }
  0x59   :  { %s51_s1 = sshll.u32 %s3182_s18, 4  ;;  %s75_s19 = sshll.u32 %s3183_s14, 4  ;;  %s52_s1 = int_to_ptr.vmem [resolvable:$true] %s51_s1  ;;  %s76_s19 = int_to_ptr.vmem [resolvable:$true] %s75_s19 }
  0x5a   :  { %s3027_s5 = scalar_lea.hbm %s5610_s2, 512 }
  0x5b   :  { %p3028_p12 = scmp.ne.s32.totalorder %s5610_s2, %s3027_s5  ;;  %p3031_p13 = scmp.lt.u32.totalorder %s3027_s5, %s5610_s2 }
  0x5d   :  { %p3033_p0 = pnand %p3031_p13, %p3028_p12 }
  0x5f   :  { %3036 = shalt.err (!%p3033_p0)
}
  0x60   :  { %s3037_s0 = scalar_lea.vmem %s52_s1, 512  ;;  %p3042_p2 = scmp.lt.s32.totalorder %s52_s1, %s52_s1 }
  0x61   :  { %p3038_p1 = scmp.ne.s32.totalorder %s52_s1, %s3037_s0  ;;  %p3043_p3 = scmp.lt.s32.totalorder %s3037_s0, %s3037_s0 }
  0x63   :  { %p3044_p4 = por %p3043_p3, %p3042_p2 }
  0x65   :  { %p3045_p5 = pnand %p3044_p4, %p3038_p1 }
  0x67   :  { %3048 = shalt.err (!%p3045_p5)
}
  0x68   :  { %57 = dma.hbm_to_vmem [thread:$0]  %s5610_s2, 512, %s52_s1, [#allocation6], %s3174_s23, %s3174_s23, %s3175_s24  }
  0x69   :  { %s3049_s3 = scalar_lea.hbm %s5612_s4, 2048 }
  0x6a   :  { %p3050_p6 = scmp.ne.s32.totalorder %s5612_s4, %s3049_s3  ;;  %p3053_p7 = scmp.lt.u32.totalorder %s3049_s3, %s5612_s4 }
  0x6c   :  { %p3055_p8 = pnand %p3053_p7, %p3050_p6 }
  0x6e   :  { %3058 = shalt.err (!%p3055_p8)
}
  0x6f   :  { %s3059_s18 = scalar_lea.vmem %s76_s19, 2048  ;;  %p3064_p10 = scmp.lt.s32.totalorder %s76_s19, %s76_s19 }
  0x70   :  { %p3060_p9 = scmp.ne.s32.totalorder %s76_s19, %s3059_s18  ;;  %p3065_p11 = scmp.lt.s32.totalorder %s3059_s18, %s3059_s18 }
  0x72   :  { %p3066_p12 = por %p3065_p11, %p3064_p10 }
  0x74   :  { %p3067_p13 = pnand %p3066_p12, %p3060_p9 }
  0x76   :  { %3070 = shalt.err (!%p3067_p13)
}
  0x77   :  { %81 = dma.hbm_to_vmem [thread:$0]  %s5612_s4, 2048, %s76_s19, [#allocation9], %s3180_s7, %s3180_s7, %s3181_s13  }
  0x78   :  { %s3184_s24 = smov [#allocation13]   ;;  %s3185_s14 = smov [#allocation16]  }
  0x79   :  { %s100_s1 = sshll.u32 %s3184_s24, 4  ;;  %s120_s20 = sshll.u32 %s3185_s14, 4  ;;  %s101_s1 = int_to_ptr.vmem [resolvable:$true] %s100_s1  ;;  %s121_s20 = int_to_ptr.vmem [resolvable:$true] %s120_s20 }
  0x7a   :  { %s3071_s30 = scalar_lea.hbm %s5614_s6, 32 }
  0x7b   :  { %p3072_p0 = scmp.ne.s32.totalorder %s5614_s6, %s3071_s30  ;;  %p3075_p1 = scmp.lt.u32.totalorder %s3071_s30, %s5614_s6 }
  0x7d   :  { %p3077_p2 = pnand %p3075_p1, %p3072_p0 }
  0x7f   :  { %3080 = shalt.err (!%p3077_p2)
}
  0x80   :  { %s3081_s4 = scalar_lea.vmem %s101_s1, 32  ;;  %p3086_p4 = scmp.lt.s32.totalorder %s101_s1, %s101_s1 }
  0x81   :  { %p3082_p3 = scmp.ne.s32.totalorder %s101_s1, %s3081_s4  ;;  %p3087_p5 = scmp.lt.s32.totalorder %s3081_s4, %s3081_s4 }
  0x83   :  { %p3088_p6 = por %p3087_p5, %p3086_p4 }
  0x85   :  { %p3089_p7 = pnand %p3088_p6, %p3082_p3 }
  0x87   :  { %3092 = shalt.err (!%p3089_p7)
}
  0x88   :  { %103 = dma.hbm_to_vmem [thread:$0]  %s5614_s6, 32, %s101_s1, [#allocation12]  }
  0x89   :  { %s3093_s11 = scalar_lea.hbm %s5616_s8, 16 }
  0x8a   :  { %p3094_p8 = scmp.ne.s32.totalorder %s5616_s8, %s3093_s11  ;;  %p3097_p9 = scmp.lt.u32.totalorder %s3093_s11, %s5616_s8 }
  0x8c   :  { %p3099_p10 = pnand %p3097_p9, %p3094_p8 }
  0x8e   :  { %3102 = shalt.err (!%p3099_p10)
}
  0x8f   :  { %s3103_s17 = scalar_lea.vmem %s121_s20, 16  ;;  %s3107_s18 = scalar_lea.vmem %s121_s20, 32 }
  0x90   :  { %p3104_p11 = scmp.ne.s32.totalorder %s121_s20, %s3103_s17  ;;  %p3108_p12 = scmp.lt.s32.totalorder %s121_s20, %s121_s20 }
  0x91   :  { %p3109_p13 = scmp.lt.s32.totalorder %s3107_s18, %s3103_s17 }
  0x93   :  { %p3110_p0 = por %p3109_p13, %p3108_p12 }
  0x95   :  { %p3111_p1 = pnand %p3110_p0, %p3104_p11 }
  0x97   :  { %3114 = shalt.err (!%p3111_p1)
}
  0x98   :  { %123 = dma.hbm_to_vmem [thread:$0]  %s5616_s8, 16, %s121_s20, [#allocation15]  }
  0x99   :  { %s3186_s23 = smov [#allocation17]   ;;  %s3115_s21 = scalar_lea.hbm %s5617_s9, 16 }
  0x9a   :  { %s130_s24 = sshll.u32 %s3186_s23, 4  ;;  %p3116_p2 = scmp.ne.s32.totalorder %s5617_s9, %s3115_s21  ;;  %s131_s24 = int_to_ptr.vmem [resolvable:$true] %s130_s24 }
  0x9b   :  { %p3119_p3 = scmp.lt.u32.totalorder %s3115_s21, %s5617_s9 }
  0x9d   :  { %p3121_p4 = pnand %p3119_p3, %p3116_p2 }
  0x9f   :  { %3124 = shalt.err (!%p3121_p4)
}
  0xa0   :  { %s3125_s26 = scalar_lea.vmem %s131_s24, 16  ;;  %s3129_s8 = scalar_lea.vmem %s131_s24, 32 }
  0xa1   :  { %p3126_p5 = scmp.ne.s32.totalorder %s131_s24, %s3125_s26  ;;  %p3130_p6 = scmp.lt.s32.totalorder %s131_s24, %s131_s24 }
  0xa2   :  { %p3131_p7 = scmp.lt.s32.totalorder %s3129_s8, %s3125_s26 }
  0xa4   :  { %p3132_p8 = por %p3131_p7, %p3130_p6 }
  0xa6   :  { %p3133_p9 = pnand %p3132_p8, %p3126_p5 }
  0xa8   :  { %3136 = shalt.err (!%p3133_p9)
}
  0xa9   :  { %133 = dma.hbm_to_vmem [thread:$0]  %s5617_s9, 16, %s131_s24, [#allocation18]  }
  0xaa   :  { %3159 = dma.done.wait [#allocation3], 256  }
  0xab   :  { %3160 = vsyncadd [#allocation3], 4294967040 }
  0xac   :  { %3161 = dma.done.wait [#allocation6], 1024  }
  0xad   :  { %3162 = vsyncadd [#allocation6], 4294966272 }
  0xae   :  { %3163 = dma.done.wait [#allocation9], 6144  }
  0xaf   :  { %3164 = vsyncadd [#allocation9], 4294961152 }
  0xb0   :  { %3165 = dma.done.wait [#allocation12], 2080  }
  0xb1   :  { %3166 = vsyncadd [#allocation12], 4294965216 }
  0xb2   :  { %3167 = dma.done.wait [#allocation15], 48  }
  0xb3   :  { %3168 = vsyncadd [#allocation15], 4294967248 }
  0xb4   :  { %3169 = dma.done.wait [#allocation18], 16  }
  0xb5   :  { %3170 = vsyncadd [#allocation18], 4294967280  ;;  %v3187_v0 = vmov 0   ;;  %v169_v1 = vld [vmem:[#allocation8 + $0x10] sm:$0xff]  ;;  %v167_v2 = vld [vmem:[#allocation8] sm:$0xff]  ;;  %vm828_vm2 = vcmask 261120  }
  0xb6   :  { %2592 = vset.pattern.permute.xlu1 %v3187_v0  ;;  %2591 = vset.pattern.permute.xlu0 %v3187_v0  ;;  %v170_v3 = vld [vmem:[#allocation8 + $0x18] sm:$0xff]  ;;  %v168_v4 = vld [vmem:[#allocation8 + $0x8] sm:$0xff]  ;;  %v171_v6 = vld [vmem:[#allocation8 + $0x20] sm:$0xff]  ;;  %s3190_s9 = smov [#allocation19]  }
  0xb7   :  { %635 = vmatprep.mubr.bf16.mxu1 %v3187_v0  ;;  %909 = vmatprep.mubr.bf16.mxu0 %v3187_v0  ;;  %v172_v5 = vld [vmem:[#allocation8 + $0x28] sm:$0xff]  ;;  %v174_v7 = vld [vmem:[#allocation8 + $0x38] sm:$0xff]  ;;  %v173_v8 = vld [vmem:[#allocation8 + $0x30] sm:$0xff]  ;;  %s2412_s4 = sshll.u32 %s3190_s9, 4  ;;  %s2413_s4 = int_to_ptr.vmem [resolvable:$true] %s2412_s4 }
  0xb8   :  { %206 = vperm.xlu1 %2592, %v169_v1   ;;  %200 = vperm.xlu0 %2591, %v167_v2   ;;  %v2593_v9 = vld [vmem:[#allocation11 + $0x4] ss:$8 sps:$4 sm:$0xff]   ;;  %v2595_v10 = vld [vmem:[#allocation11] ss:$8 sps:$4 sm:$0xff]   ;;  %v2596_v11 = vld [vmem:[#allocation11 + $0x14] ss:$8 sps:$4 sm:$0xff]   ;;  %v5619_v1 = vlaneseq  ;;  %p3142_p11 = scmp.lt.s32.totalorder %s2413_s4, %s2413_s4 }
  0xb9   :  { %v176_v12 = vld [vmem:[#allocation8 + $0x48] sm:$0xff]  ;;  %v175_v13 = vld [vmem:[#allocation8 + $0x40] sm:$0xff]  ;;  %603 = vmatprep.subr.bf16.mxu1 %v2593_v9  ;;  %v2598_v14 = vld [vmem:[#allocation11 + $0x10] ss:$8 sps:$4 sm:$0xff]   ;;  %s3137_s19 = scalar_lea.vmem %s2413_s4, 256 }
  0xba   :  { %604 = vmatpush1.bf16.msra.mxu1 %v2595_v10  ;;  %v2599_v15 = vld [vmem:[#allocation11 + $0x24] ss:$8 sps:$4 sm:$0xff]   ;;  %v178_v16 = vld [vmem:[#allocation8 + $0x58] sm:$0xff]  ;;  %v177_v17 = vld [vmem:[#allocation8 + $0x50] sm:$0xff]  ;;  %v3399_v2 = vand.u32 127, %v5619_v1  ;;  %p3138_p10 = scmp.ne.s32.totalorder %s2413_s4, %s3137_s19  ;;  %p3143_p12 = scmp.lt.s32.totalorder %s3137_s19, %s3137_s19 }
  0xbb   :  { %605 = vmatprep.subr.bf16.mxu1 %v2596_v11  ;;  %v2601_v18 = vld [vmem:[#allocation11 + $0x20] ss:$8 sps:$4 sm:$0xff]   ;;  %v2602_v19 = vld [vmem:[#allocation11 + $0x34] ss:$8 sps:$4 sm:$0xff]   ;;  %v2614_v21 = vld [vmem:[#allocation7 + $0x4] ss:$8 sps:$4 sm:$0xff]  }
  0xbc   :  { %209 = vperm.xlu1 %2592, %v170_v3   ;;  %203 = vperm.xlu0 %2591, %v168_v4   ;;  %v180_v20 = vld [vmem:[#allocation8 + $0x68] sm:$0xff]  ;;  %v179_v22 = vld [vmem:[#allocation8 + $0x60] sm:$0xff]  ;;  %v2604_v23 = vld [vmem:[#allocation11 + $0x30] ss:$8 sps:$4 sm:$0xff]   ;;  %p3144_p13 = por %p3143_p12, %p3142_p11 }
  0xbd   :  { %877 = vmatprep.subr.bf16.mxu0 %v2614_v21  ;;  %v2618_v24 = vld [vmem:[#allocation7] ss:$8 sps:$4 sm:$0xff]   ;;  %v2620_v25 = vld [vmem:[#allocation7 + $0x14] ss:$8 sps:$4 sm:$0xff]   ;;  %v2605_v27 = vld [vmem:[#allocation11 + $0x44] ss:$8 sps:$4 sm:$0xff]  }
  0xbe   :  { %606 = vmatpush1.bf16.msra.mxu1 %v2598_v14  ;;  %v182_v26 = vld [vmem:[#allocation8 + $0x78] sm:$0xff]  ;;  %878 = vmatpush1.bf16.msra.mxu0 %v2618_v24  ;;  %v181_v29 = vld [vmem:[#allocation8 + $0x70] sm:$0xff]  ;;  %v2607_v30 = vld [vmem:[#allocation11 + $0x40] ss:$8 sps:$4 sm:$0xff]   ;;  %p3145_p0 = pnand %p3144_p13, %p3138_p10 }
  0xbf   :  { %607 = vmatprep.subr.bf16.mxu1 %v2599_v15  ;;  %v2623_v28 = vld [vmem:[#allocation7 + $0x10] ss:$8 sps:$4 sm:$0xff]   ;;  %879 = vmatprep.subr.bf16.mxu0 %v2620_v25  ;;  %v184_v31 = vld [vmem:[#allocation8 + $0x88] sm:$0xff]  ;;  %v183_v32 = vld [vmem:[#allocation8 + $0x80] sm:$0xff] }
  0xc0   :  { %215 = vperm.xlu1 %2592, %v172_v5   ;;  %212 = vperm.xlu0 %2591, %v171_v6   ;;  %v2608_v33 = vld [vmem:[#allocation11 + $0x54] ss:$8 sps:$4 sm:$0xff]   ;;  %v2610_v34 = vld [vmem:[#allocation11 + $0x50] ss:$8 sps:$4 sm:$0xff]   ;;  %v2611_v35 = vld [vmem:[#allocation11 + $0x64] ss:$8 sps:$4 sm:$0xff]  }
  0xc1   :  { %v186_v36 = vld [vmem:[#allocation8 + $0x98] sm:$0xff]  ;;  %v185_v37 = vld [vmem:[#allocation8 + $0x90] sm:$0xff]  ;;  %v2613_v38 = vld [vmem:[#allocation11 + $0x60] ss:$8 sps:$4 sm:$0xff]  }
  0xc2   :  { %608 = vmatpush1.bf16.msra.mxu1 %v2601_v18  ;;  %880 = vmatpush1.bf16.msra.mxu0 %v2623_v28  ;;  %v2616_v39 = vld [vmem:[#allocation11 + $0x74] ss:$8 sps:$4 sm:$0xff]   ;;  %v188_v40 = vld [vmem:[#allocation8 + $0xa8] sm:$0xff]  ;;  %v187_v41 = vld [vmem:[#allocation8 + $0xa0] sm:$0xff] }
  0xc3   :  { %609 = vmatprep.subr.bf16.mxu1 %v2602_v19  ;;  %v2619_v42 = vld [vmem:[#allocation11 + $0x70] ss:$8 sps:$4 sm:$0xff]   ;;  %v2622_v45 = vld [vmem:[#allocation10] sm:$0xff]   ;;  %v192_v46 = vld [vmem:[#allocation8 + $0xc8] sm:$0xff] }
  0xc4   :  { %221 = vperm.xlu1 %2592, %v174_v7   ;;  %218 = vperm.xlu0 %2591, %v173_v8   ;;  %v190_v43 = vld [vmem:[#allocation8 + $0xb8] sm:$0xff]  ;;  %v189_v44 = vld [vmem:[#allocation8 + $0xb0] sm:$0xff]  ;;  %v191_v47 = vld [vmem:[#allocation8 + $0xc0] sm:$0xff]  ;;  %v3188_v8 = vmov 0.0  }
  0xc5   :  { %v194_v48 = vld [vmem:[#allocation8 + $0xd8] sm:$0xff]  ;;  %v193_v49 = vld [vmem:[#allocation8 + $0xd0] sm:$0xff]  ;;  %v2624_v50 = vld [vmem:[#allocation10 + $0x8] sm:$0xff]  }
  0xc6   :  { %610 = vmatpush1.bf16.msra.mxu1 %v2604_v23  ;;  %v196_v51 = vld [vmem:[#allocation8 + $0xe8] sm:$0xff]  ;;  %v195_v52 = vld [vmem:[#allocation8 + $0xe0] sm:$0xff]  ;;  %v198_v53 = vld [vmem:[#allocation8 + $0xf8] sm:$0xff] }
  0xc7   :  { %611 = vmatprep.subr.bf16.mxu1 %v2605_v27  ;;  %v197_v54 = vld [vmem:[#allocation8 + $0xf0] sm:$0xff]  ;;  %v2626_v56 = vld [vmem:[#allocation10 + $0x18] sm:$0xff]   ;;  %v2627_v57 = vld [vmem:[#allocation10 + $0x20] sm:$0xff]  }
  0xc8   :  { %227 = vperm.xlu1 %2592, %v176_v12   ;;  %224 = vperm.xlu0 %2591, %v175_v13   ;;  %v2625_v55 = vld [vmem:[#allocation10 + $0x10] sm:$0xff]   ;;  %v2628_v58 = vld [vmem:[#allocation10 + $0x28] sm:$0xff]   ;;  %v2630_v60 = vld [vmem:[#allocation10 + $0x38] sm:$0xff]  }
  0xc9   :  { %v2629_v59 = vld [vmem:[#allocation10 + $0x30] sm:$0xff]   ;;  %v2631_v61 = vld [vmem:[#allocation10 + $0x40] sm:$0xff]   ;;  %v2632_v62 = vld [vmem:[#allocation10 + $0x48] sm:$0xff]  }
  0xca   :  { %612 = vmatpush1.bf16.msra.mxu1 %v2607_v30  ;;  %v2633_v63 = vld [vmem:[#allocation10 + $0x50] sm:$0xff]   ;;  %v2634_v5 = vld [vmem:[#allocation10 + $0x58] sm:$0xff]   ;;  %v2635_v14 = vld [vmem:[#allocation10 + $0x60] sm:$0xff]  }
  0xcb   :  { %613 = vmatprep.subr.bf16.mxu1 %v2608_v33  ;;  %v2637_v30 = vld [vmem:[#allocation10 + $0x70] sm:$0xff]  }
  0xcc   :  { %233 = vperm.xlu1 %2592, %v178_v16   ;;  %230 = vperm.xlu0 %2591, %v177_v17  }
  0xce   :  { %614 = vmatpush1.bf16.msra.mxu1 %v2610_v34 }
  0xcf   :  { %615 = vmatprep.subr.bf16.mxu1 %v2611_v35 }
  0xd0   :  { %239 = vperm.xlu1 %2592, %v180_v20   ;;  %236 = vperm.xlu0 %2591, %v179_v22   ;;  %v2636_v22 = vld [vmem:[#allocation10 + $0x68] sm:$0xff]  }
  0xd2   :  { %616 = vmatpush1.bf16.msra.mxu1 %v2613_v38 }
  0xd3   :  { %617 = vmatprep.subr.bf16.mxu1 %v2616_v39 }
  0xd4   :  { %245 = vperm.xlu1 %2592, %v182_v26   ;;  %242 = vperm.xlu0 %2591, %v181_v29  }
  0xd6   :  { %618 = vmatpush1.bf16.msra.mxu1 %v2619_v42 }
  0xd8   :  { %251 = vperm.xlu1 %2592, %v184_v31   ;;  %248 = vperm.xlu0 %2591, %v183_v32  }
  0xd9   :  { %636 = vmatmul.mubr.bf16.vlgmr.msra.gmra.mrb[0].mxu1 %v2622_v45 }
  0xda   :  { %645 = vmatprep.mubr.bf16.mxu1 %v3187_v0 }
  0xdc   :  { %257 = vperm.xlu1 %2592, %v186_v36   ;;  %254 = vperm.xlu0 %2591, %v185_v37  }
  0xe0   :  { %263 = vperm.xlu1 %2592, %v188_v40   ;;  %260 = vperm.xlu0 %2591, %v187_v41   ;;  %v2638_v40 = vld [vmem:[#allocation10 + $0x78] sm:$0xff]  }
  0xe1   :  { %646 = vmatmul.mubr.bf16.gmra.mrb[4].mxu1 %v2624_v50 }
  0xe2   :  { %655 = vmatprep.mubr.bf16.mxu1 %v3187_v0 }
  0xe4   :  { %269 = vperm.xlu1 %2592, %v190_v43   ;;  %266 = vperm.xlu0 %2591, %v189_v44  }
  0xe8   :  { %275 = vperm.xlu1 %2592, %v192_v46   ;;  %272 = vperm.xlu0 %2591, %v191_v47  }
  0xe9   :  { %656 = vmatmul.mubr.bf16.gmra.mrb[8].mxu1 %v2625_v55 }
  0xea   :  { %665 = vmatprep.mubr.bf16.mxu1 %v3187_v0 }
  0xec   :  { %281 = vperm.xlu1 %2592, %v194_v48   ;;  %278 = vperm.xlu0 %2591, %v193_v49  }
  0xf0   :  { %287 = vperm.xlu1 %2592, %v196_v51   ;;  %284 = vperm.xlu0 %2591, %v195_v52  }
  0xf1   :  { %666 = vmatmul.mubr.bf16.gmra.mrb[12].mxu1 %v2626_v56 }
  0xf2   :  { %675 = vmatprep.mubr.bf16.mxu1 %v3187_v0 }
  0xf4   :  { %293 = vperm.xlu1 %2592, %v198_v53   ;;  %290 = vperm.xlu0 %2591, %v197_v54  }
  0xf9   :  { %676 = vmatmul.mubr.bf16.gmra.mrb[16].mxu1 %v2627_v57 }
  0xfa   :  { %685 = vmatprep.mubr.bf16.mxu1 %v3187_v0 }
 0x101   :  { %686 = vmatmul.mubr.bf16.gmra.mrb[20].mxu1 %v2628_v58 }
 0x102   :  { %695 = vmatprep.mubr.bf16.mxu1 %v3187_v0 }
 0x109   :  { %696 = vmatmul.mubr.bf16.gmra.mrb[24].mxu1 %v2629_v59 }
 0x10a   :  { %705 = vmatprep.mubr.bf16.mxu1 %v3187_v0 }
 0x111   :  { %706 = vmatmul.mubr.bf16.gmra.mrb[28].mxu1 %v2630_v60 }
 0x112   :  { %715 = vmatprep.mubr.bf16.mxu1 %v3187_v0 }
 0x119   :  { %716 = vmatmul.mubr.bf16.gmra.mrb[32].mxu1 %v2631_v61 }
 0x11a   :  { %725 = vmatprep.mubr.bf16.mxu1 %v3187_v0 }
 0x121   :  { %726 = vmatmul.mubr.bf16.gmra.mrb[36].mxu1 %v2632_v62 }
 0x122   :  { %735 = vmatprep.mubr.bf16.mxu1 %v3187_v0 }
 0x129   :  { %736 = vmatmul.mubr.bf16.gmra.mrb[40].mxu1 %v2633_v63 }
 0x12a   :  { %745 = vmatprep.mubr.bf16.mxu1 %v3187_v0 }
 0x131   :  { %746 = vmatmul.mubr.bf16.gmra.mrb[44].mxu1 %v2634_v5 }
 0x132   :  { %755 = vmatprep.mubr.bf16.mxu1 %v3187_v0 }
 0x137   :  { %v207_v3 = vpop.permute.xlu1 %206  ;;  %v201_v4 = vpop.permute.xlu0 %200 }
 0x138   :  { %vm295_vm0 = vcmp.eq.s32.totalorder %v3399_v2, %v201_v4  ;;  %vm297_vm3 = vcmp.eq.s32.totalorder %v3399_v2, %v207_v3 }
 0x139   :  { %v327_v9 = vsel %vm295_vm0, 1.0, %v3188_v8  ;;  %v329_v15 = vsel %vm297_vm3, 1.0, %v3188_v8  ;;  %756 = vmatmul.mubr.bf16.gmra.mrb[48].mxu1 %v2635_v14 }
 0x13a   :  { %765 = vmatprep.mubr.bf16.mxu1 %v3187_v0 }
 0x13b   :  { %v210_v6 = vpop.permute.xlu1 %209  ;;  %v204_v7 = vpop.permute.xlu0 %203 }
 0x13c   :  { %vm296_vm1 = vcmp.eq.s32.totalorder %v3399_v2, %v204_v7  ;;  %vm298_vm4 = vcmp.eq.s32.totalorder %v3399_v2, %v210_v6 }
 0x13d   :  { %v328_v10 = vsel %vm296_vm1, 1.0, %v3188_v8  ;;  %v330_v16 = vsel %vm298_vm4, 1.0, %v3188_v8 }
 0x13e   :  { %v359_v11 = vpack.c.bf16 %v328_v10, %v327_v9  ;;  %v360_v19 = vpack.c.bf16 %v330_v16, %v329_v15 }
 0x13f   :  { %v216_v12 = vpop.permute.xlu1 %215  ;;  %v213_v13 = vpop.permute.xlu0 %212 }
 0x140   :  { %2465 = vmatmul.mubr.msk.bf16.vlgmr.msra.gmra.mrb[0].mxu0 %vm828_vm2, %v359_v11  ;;  %vm300_vm5 = vcmp.eq.s32.totalorder %v3399_v2, %v216_v12  ;;  %vm299_vm6 = vcmp.eq.s32.totalorder %v3399_v2, %v213_v13 }
 0x141   :  { %919 = vmatprep.mubr.bf16.mxu0 %v3187_v0  ;;  %v332_v23 = vsel %vm300_vm5, 1.0, %v3188_v8  ;;  %v331_v24 = vsel %vm299_vm6, 1.0, %v3188_v8  ;;  %766 = vmatmul.mubr.bf16.gmra.mrb[52].mxu1 %v2636_v22 }
 0x142   :  { %v361_v27 = vpack.c.bf16 %v332_v23, %v331_v24  ;;  %775 = vmatprep.mubr.bf16.mxu1 %v3187_v0 }
 0x143   :  { %v222_v17 = vpop.permute.xlu1 %221  ;;  %v219_v18 = vpop.permute.xlu0 %218 }
 0x144   :  { %vm302_vm7 = vcmp.eq.s32.totalorder %v3399_v2, %v222_v17  ;;  %vm301_vm8 = vcmp.eq.s32.totalorder %v3399_v2, %v219_v18 }
 0x145   :  { %v334_v31 = vsel %vm302_vm7, 1.0, %v3188_v8  ;;  %v333_v32 = vsel %vm301_vm8, 1.0, %v3188_v8 }
 0x146   :  { %v362_v35 = vpack.c.bf16 %v334_v31, %v333_v32 }
 0x147   :  { %v228_v20 = vpop.permute.xlu1 %227  ;;  %v225_v21 = vpop.permute.xlu0 %224 }
 0x148   :  { %2466 = vmatmul.mubr.msk.bf16.gmra.mrb[4].mxu0 %vm828_vm2, %v360_v19  ;;  %vm304_vm9 = vcmp.eq.s32.totalorder %v3399_v2, %v228_v20  ;;  %vm303_vm10 = vcmp.eq.s32.totalorder %v3399_v2, %v225_v21 }
 0x149   :  { %929 = vmatprep.mubr.bf16.mxu0 %v3187_v0  ;;  %776 = vmatmul.mubr.bf16.gmra.mrb[56].mxu1 %v2637_v30  ;;  %v336_v42 = vsel %vm304_vm9, 1.0, %v3188_v8  ;;  %v335_v43 = vsel %vm303_vm10, 1.0, %v3188_v8 }
 0x14a   :  { %785 = vmatprep.mubr.bf16.mxu1 %v3187_v0  ;;  %v363_v48 = vpack.c.bf16 %v336_v42, %v335_v43 }
 0x14b   :  { %v234_v25 = vpop.permute.xlu1 %233  ;;  %v231_v26 = vpop.permute.xlu0 %230 }
 0x14c   :  { %vm306_vm15 = vcmp.eq.s32.totalorder %v3399_v2, %v234_v25  ;;  %vm305_vm0 = vcmp.eq.s32.totalorder %v3399_v2, %v231_v26 }
 0x14d   :  { %v338_v55 = vsel %vm306_vm15, 1.0, %v3188_v8  ;;  %v337_v56 = vsel %vm305_vm0, 1.0, %v3188_v8 }
 0x14e   :  { %v364_v61 = vpack.c.bf16 %v338_v55, %v337_v56 }
 0x14f   :  { %v3421_v28 = vpop.permute.xlu1 %239  ;;  %v3423_v29 = vpop.permute.xlu0 %236 }
 0x150   :  { %2467 = vmatmul.mubr.msk.bf16.gmra.mrb[8].mxu0 %vm828_vm2, %v361_v27  ;;  %vm308_vm6 = vcmp.eq.s32.totalorder %v3399_v2, %v3421_v28  ;;  %vm307_vm7 = vcmp.eq.s32.totalorder %v3399_v2, %v3423_v29 }
 0x151   :  { %939 = vmatprep.mubr.bf16.mxu0 %v3187_v0  ;;  %786 = vmatmul.mubr.bf16.gmra.mrb[60].mxu1 %v2638_v40  ;;  %v340_v7 = vsel %vm308_vm6, 1.0, %v3188_v8  ;;  %v339_v9 = vsel %vm307_vm7, 1.0, %v3188_v8 }
 0x152   :  { %v365_v14 = vpack.c.bf16 %v340_v7, %v339_v9 }
 0x153   :  { %v3431_v33 = vpop.permute.xlu1 %245  ;;  %v3433_v34 = vpop.permute.xlu0 %242 }
 0x157   :  { %v252_v36 = vpop.permute.xlu1 %251  ;;  %v249_v37 = vpop.permute.xlu0 %248 }
 0x158   :  { %vm312_vm11 = vcmp.eq.s32.totalorder %v3399_v2, %v252_v36  ;;  %vm311_vm12 = vcmp.eq.s32.totalorder %v3399_v2, %v249_v37  ;;  %2468 = vmatmul.mubr.msk.bf16.gmra.mrb[12].mxu0 %vm828_vm2, %v362_v35 }
 0x159   :  { %v3442_v38 = vsel %vm312_vm11, 1.0, %v3188_v8  ;;  %v3445_v39 = vsel %vm311_vm12, 1.0, %v3188_v8  ;;  %949 = vmatprep.mubr.bf16.mxu0 %v3187_v0  ;;  %vm310_vm12 = vcmp.eq.s32.totalorder %v3399_v2, %v3431_v33 }
 0x15a   :  { %v367_v41 = vpack.c.bf16 %v3442_v38, %v3445_v39  ;;  %v342_v21 = vsel %vm310_vm12, 1.0, %v3188_v8 }
 0x15b   :  { %v258_v44 = vpop.permute.xlu1 %257  ;;  %v255_v45 = vpop.permute.xlu0 %254 }
 0x15c   :  { %vm314_vm13 = vcmp.eq.s32.totalorder %v3399_v2, %v258_v44  ;;  %vm313_vm14 = vcmp.eq.s32.totalorder %v3399_v2, %v255_v45 }
 0x15d   :  { %v3455_v46 = vsel %vm314_vm13, 1.0, %v3188_v8  ;;  %v3458_v47 = vsel %vm313_vm14, 1.0, %v3188_v8  ;;  %vm309_vm13 = vcmp.eq.s32.totalorder %v3399_v2, %v3433_v34 }
 0x15e   :  { %v368_v49 = vpack.c.bf16 %v3455_v46, %v3458_v47  ;;  %v341_v22 = vsel %vm309_vm13, 1.0, %v3188_v8 }
 0x15f   :  { %v264_v50 = vpop.permute.xlu1 %263  ;;  %v261_v51 = vpop.permute.xlu0 %260  ;;  %v366_v27 = vpack.c.bf16 %v342_v21, %v341_v22 }
 0x160   :  { %vm316_vm1 = vcmp.eq.s32.totalorder %v3399_v2, %v264_v50  ;;  %vm315_vm3 = vcmp.eq.s32.totalorder %v3399_v2, %v261_v51  ;;  %2469 = vmatmul.mubr.msk.bf16.gmra.mrb[16].mxu0 %vm828_vm2, %v363_v48 }
 0x161   :  { %v3468_v52 = vsel %vm316_vm1, 1.0, %v3188_v8  ;;  %v347_v53 = vsel %vm315_vm3, 1.0, %v3188_v8  ;;  %959 = vmatprep.mubr.bf16.mxu0 %v3187_v0 }
 0x162   :  { %v369_v54 = vpack.c.bf16 %v3468_v52, %v347_v53 }
 0x163   :  { %v270_v57 = vpop.permute.xlu1 %269  ;;  %v267_v58 = vpop.permute.xlu0 %266 }
 0x164   :  { %vm318_vm4 = vcmp.eq.s32.totalorder %v3399_v2, %v270_v57  ;;  %vm317_vm5 = vcmp.eq.s32.totalorder %v3399_v2, %v267_v58 }
 0x165   :  { %v350_v59 = vsel %vm318_vm4, 1.0, %v3188_v8  ;;  %v349_v60 = vsel %vm317_vm5, 1.0, %v3188_v8 }
 0x166   :  { %v370_v62 = vpack.c.bf16 %v350_v59, %v349_v60 }
 0x167   :  { %v276_v63 = vpop.permute.xlu1 %275  ;;  %v273_v3 = vpop.permute.xlu0 %272 }
 0x168   :  { %vm320_vm8 = vcmp.eq.s32.totalorder %v3399_v2, %v276_v63  ;;  %vm319_vm9 = vcmp.eq.s32.totalorder %v3399_v2, %v273_v3  ;;  %2470 = vmatmul.mubr.msk.bf16.gmra.mrb[20].mxu0 %vm828_vm2, %v364_v61 }
 0x169   :  { %v352_v4 = vsel %vm320_vm8, 1.0, %v3188_v8  ;;  %v351_v5 = vsel %vm319_vm9, 1.0, %v3188_v8  ;;  %969 = vmatprep.mubr.bf16.mxu0 %v3187_v0 }
 0x16a   :  { %v371_v6 = vpack.c.bf16 %v352_v4, %v351_v5 }
 0x16b   :  { %v282_v10 = vpop.permute.xlu1 %281  ;;  %v279_v11 = vpop.permute.xlu0 %278 }
 0x16c   :  { %vm322_vm10 = vcmp.eq.s32.totalorder %v3399_v2, %v282_v10  ;;  %vm321_vm11 = vcmp.eq.s32.totalorder %v3399_v2, %v279_v11 }
 0x16d   :  { %v354_v12 = vsel %vm322_vm10, 1.0, %v3188_v8  ;;  %v353_v13 = vsel %vm321_vm11, 1.0, %v3188_v8 }
 0x16e   :  { %v372_v15 = vpack.c.bf16 %v354_v12, %v353_v13 }
 0x16f   :  { %v288_v16 = vpop.permute.xlu1 %287  ;;  %v285_v17 = vpop.permute.xlu0 %284 }
 0x170   :  { %vm324_vm14 = vcmp.eq.s32.totalorder %v3399_v2, %v288_v16  ;;  %vm323_vm15 = vcmp.eq.s32.totalorder %v3399_v2, %v285_v17  ;;  %2471 = vmatmul.mubr.msk.bf16.gmra.mrb[24].mxu0 %vm828_vm2, %v365_v14 }
 0x171   :  { %v356_v18 = vsel %vm324_vm14, 1.0, %v3188_v8  ;;  %v355_v19 = vsel %vm323_vm15, 1.0, %v3188_v8  ;;  %979 = vmatprep.mubr.bf16.mxu0 %v3187_v0 }
 0x172   :  { %v373_v20 = vpack.c.bf16 %v356_v18, %v355_v19 }
 0x173   :  { %v294_v23 = vpop.permute.xlu1 %293  ;;  %v291_v24 = vpop.permute.xlu0 %290 }
 0x174   :  { %vm326_vm0 = vcmp.eq.s32.totalorder %v3399_v2, %v294_v23  ;;  %vm325_vm1 = vcmp.eq.s32.totalorder %v3399_v2, %v291_v24 }
 0x175   :  { %v358_v25 = vsel %vm326_vm0, 1.0, %v3188_v8  ;;  %v357_v26 = vsel %vm325_vm1, 1.0, %v3188_v8 }
 0x176   :  { %v374_v28 = vpack.c.bf16 %v358_v25, %v357_v26 }
 0x178   :  { %2472 = vmatmul.mubr.msk.bf16.gmra.mrb[28].mxu0 %vm828_vm2, %v366_v27 }
 0x179   :  { %989 = vmatprep.mubr.bf16.mxu0 %v3187_v0 }
 0x180   :  { %2473 = vmatmul.mubr.msk.bf16.gmra.mrb[32].mxu0 %vm828_vm2, %v367_v41 }
 0x181   :  { %999 = vmatprep.mubr.bf16.mxu0 %v3187_v0 }
 0x188   :  { %2474 = vmatmul.mubr.msk.bf16.gmra.mrb[36].mxu0 %vm828_vm2, %v368_v49 }
 0x189   :  { %1009 = vmatprep.mubr.bf16.mxu0 %v3187_v0 }
 0x190   :  { %2475 = vmatmul.mubr.msk.bf16.gmra.mrb[40].mxu0 %vm828_vm2, %v369_v54 }
 0x191   :  { %1019 = vmatprep.mubr.bf16.mxu0 %v3187_v0 }
 0x198   :  { %2476 = vmatmul.mubr.msk.bf16.gmra.mrb[44].mxu0 %vm828_vm2, %v370_v62 }
 0x199   :  { %1029 = vmatprep.mubr.bf16.mxu0 %v3187_v0 }
 0x1a0   :  { %2477 = vmatmul.mubr.msk.bf16.gmra.mrb[48].mxu0 %vm828_vm2, %v371_v6 }
 0x1a1   :  { %1039 = vmatprep.mubr.bf16.mxu0 %v3187_v0 }
 0x1a8   :  { %2478 = vmatmul.mubr.msk.bf16.gmra.mrb[52].mxu0 %vm828_vm2, %v372_v15 }
 0x1a9   :  { %1049 = vmatprep.mubr.bf16.mxu0 %v3187_v0 }
 0x1ac   :  { %v637_v2 = vpop.f32.mrb[0].mxu1 }
 0x1ad   :  { %v639_v8 = vpop.f32.mrb[1].mxu1 }
 0x1ae   :  { %v641_v29 = vpop.f32.mrb[2].mxu1 }
 0x1af   :  { %v643_v30 = vpop.f32.mrb[3].mxu1 }
 0x1b0   :  { %2479 = vmatmul.mubr.msk.bf16.gmra.mrb[56].mxu0 %vm828_vm2, %v373_v20 }
 0x1b1   :  { %1059 = vmatprep.mubr.bf16.mxu0 %v3187_v0 }
 0x1b4   :  { %v647_v31 = vpop.f32.mrb[4].mxu1 }
 0x1b5   :  { %v649_v32 = vpop.f32.mrb[5].mxu1 }
 0x1b6   :  { %v651_v33 = vpop.f32.mrb[6].mxu1 }
 0x1b7   :  { %v653_v34 = vpop.f32.mrb[7].mxu1 }
 0x1b8   :  { %2480 = vmatmul.mubr.msk.bf16.gmra.mrb[60].mxu0 %vm828_vm2, %v374_v28 }
 0x1bc   :  { %v3534_v35 = vpop.f32.mrb[8].mxu1 }
 0x1bd   :  { %v3536_v36 = vpop.f32.mrb[9].mxu1 }
 0x1be   :  { %v3538_v37 = vpop.f32.mrb[10].mxu1 }
 0x1bf   :  { %v3540_v38 = vpop.f32.mrb[11].mxu1 }
 0x1c4   :  { %v3542_v39 = vpop.f32.mrb[12].mxu1 }
 0x1c5   :  { %v3544_v0 = vpop.f32.mrb[13].mxu1 }
 0x1c6   :  { %v3546_v40 = vpop.f32.mrb[14].mxu1 }
 0x1c7   :  { %v3548_v41 = vpop.f32.mrb[15].mxu1 }
 0x1cc   :  { %v3550_v42 = vpop.f32.mrb[16].mxu1 }
 0x1cd   :  { %v3552_v43 = vpop.f32.mrb[17].mxu1 }
 0x1ce   :  { %v3554_v44 = vpop.f32.mrb[18].mxu1 }
 0x1cf   :  { %v3556_v45 = vpop.f32.mrb[19].mxu1 }
 0x1d4   :  { %v3558_v46 = vpop.f32.mrb[20].mxu1 }
 0x1d5   :  { %v3560_v47 = vpop.f32.mrb[21].mxu1 }
 0x1d6   :  { %v3562_v48 = vpop.f32.mrb[22].mxu1 }
 0x1d7   :  { %v3564_v49 = vpop.f32.mrb[23].mxu1 }
 0x1dc   :  { %v3566_v50 = vpop.f32.mrb[24].mxu1 }
 0x1dd   :  { %v3568_v51 = vpop.f32.mrb[25].mxu1 }
 0x1de   :  { %v3570_v52 = vpop.f32.mrb[26].mxu1 }
 0x1df   :  { %v3572_v53 = vpop.f32.mrb[27].mxu1 }
 0x1e4   :  { %v3574_v54 = vpop.f32.mrb[28].mxu1 }
 0x1e5   :  { %v3576_v55 = vpop.f32.mrb[29].mxu1 }
 0x1e6   :  { %v3578_v56 = vpop.f32.mrb[30].mxu1 }
 0x1e7   :  { %v3580_v57 = vpop.f32.mrb[31].mxu1 }
 0x1ec   :  { %v3582_v58 = vpop.f32.mrb[32].mxu1 }
 0x1ed   :  { %v3584_v59 = vpop.f32.mrb[33].mxu1 }
 0x1ee   :  { %v3586_v60 = vpop.f32.mrb[34].mxu1 }
 0x1ef   :  { %v3588_v61 = vpop.f32.mrb[35].mxu1 }
 0x1f4   :  { %v3590_v62 = vpop.f32.mrb[36].mxu1 }
 0x1f5   :  { %v3592_v63 = vpop.f32.mrb[37].mxu1 }
 0x1f6   :  { %v3594_v3 = vpop.f32.mrb[38].mxu1 }
 0x1f7   :  { %v3596_v4 = vpop.f32.mrb[39].mxu1 }
 0x1fc   :  { %v3598_v5 = vpop.f32.mrb[40].mxu1 }
 0x1fd   :  { %v3600_v6 = vpop.f32.mrb[41].mxu1 }
 0x1fe   :  { %v3602_v7 = vpop.f32.mrb[42].mxu1 }
 0x1ff   :  { %v3604_v9 = vpop.f32.mrb[43].mxu1 }
 0x204   :  { %v3606_v10 = vpop.f32.mrb[44].mxu1 }
 0x205   :  { %5786 = vst [vmem:[#allocation27_spill] sm:$0xff] %v3606_v10  ;;  %v3608_v11 = vpop.f32.mrb[45].mxu1 }
 0x206   :  { %5787 = vst [vmem:[#allocation28_spill] sm:$0xff] %v3608_v11  ;;  %v3610_v12 = vpop.f32.mrb[46].mxu1 }
 0x207   :  { %5788 = vst [vmem:[#allocation29_spill] sm:$0xff] %v3610_v12  ;;  %v3612_v14 = vpop.f32.mrb[47].mxu1 }
 0x208   :  { %5789 = vst [vmem:[#allocation30_spill] sm:$0xff] %v3612_v14 }
 0x20c   :  { %v3616_v22 = vpop.f32.mrb[48].mxu1 }
 0x20d   :  { %5790 = vst [vmem:[#allocation31_spill] sm:$0xff] %v3616_v22  ;;  %v3618_v23 = vpop.f32.mrb[49].mxu1 }
 0x20e   :  { %5791 = vst [vmem:[#allocation32_spill] sm:$0xff] %v3618_v23  ;;  %v3620_v24 = vpop.f32.mrb[50].mxu1 }
 0x20f   :  { %5792 = vst [vmem:[#allocation33_spill] sm:$0xff] %v3620_v24  ;;  %v3622_v26 = vpop.f32.mrb[51].mxu1 }
 0x210   :  { %5793 = vst [vmem:[#allocation34_spill] sm:$0xff] %v3622_v26 }
 0x213   :  { %v911_v13 = vpop.f32.mrb[0].mxu0 }
 0x214   :  { %v912_v15 = vadd.f32 %v911_v13, %v637_v2  ;;  %v913_v16 = vpop.f32.mrb[1].mxu0 }
 0x215   :  { %v3614_v17 = vadd.f32 %v913_v16, %v639_v8  ;;  %v915_v18 = vpop.f32.mrb[2].mxu0 }
 0x216   :  { %v916_v19 = vadd.f32 %v915_v18, %v641_v29  ;;  %v917_v20 = vpop.f32.mrb[3].mxu0  ;;  %v3626_v29 = vpop.f32.mrb[52].mxu1 }
 0x217   :  { %v918_v21 = vadd.f32 %v917_v20, %v643_v30  ;;  %5794 = vst [vmem:[#allocation35_spill] sm:$0xff] %v3626_v29  ;;  %v3628_v30 = vpop.f32.mrb[53].mxu1 }
 0x218   :  { %5795 = vst [vmem:[#allocation36_spill] sm:$0xff] %v3628_v30  ;;  %v3630_v18 = vpop.f32.mrb[54].mxu1 }
 0x219   :  { %5796 = vst [vmem:[#allocation37_spill] sm:$0xff] %v3630_v18  ;;  %v3632_v23 = vpop.f32.mrb[55].mxu1 }
 0x21a   :  { %5797 = vst [vmem:[#allocation38_spill] sm:$0xff] %v3632_v23  ;;  %v796_v23 = vld [vmem:[#allocation5] sm:$0xff] }
 0x21b   :  { %v921_v25 = vpop.f32.mrb[4].mxu0 }
 0x21c   :  { %v922_v27 = vadd.f32 %v921_v25, %v647_v31  ;;  %v923_v28 = vpop.f32.mrb[5].mxu0 }
 0x21d   :  { %v924_v1 = vadd.f32 %v923_v28, %v649_v32  ;;  %v925_v2 = vpop.f32.mrb[6].mxu0  ;;  %v3644_v28 = vpop.f32.mrb[56].mxu1 }
 0x21e   :  { %v926_v13 = vadd.f32 %v925_v2, %v651_v33  ;;  %v927_v8 = vpop.f32.mrb[7].mxu0  ;;  %5798 = vst [vmem:[#allocation39_spill] sm:$0xff] %v3644_v28  ;;  %v797_v2 = vld [vmem:[#allocation5 + $0x8] sm:$0xff] }
 0x21f   :  { %v3624_v16 = vadd.f32 %v927_v8, %v653_v34  ;;  %v3646_v8 = vpop.f32.mrb[57].mxu1  ;;  %v3667_v29 = vunpack.c.h.bf16 %v797_v2 }
 0x220   :  { %5799 = vst [vmem:[#allocation40_spill] sm:$0xff] %v3646_v8  ;;  %v3648_v18 = vpop.f32.mrb[58].mxu1 }
 0x221   :  { %5800 = vst [vmem:[#allocation41_spill] sm:$0xff] %v3648_v18 }
 0x223   :  { %v931_v20 = vpop.f32.mrb[8].mxu0 }
 0x224   :  { %v932_v24 = vadd.f32 %v931_v20, %v3534_v35  ;;  %v933_v26 = vpop.f32.mrb[9].mxu0  ;;  %v798_v35 = vld [vmem:[#allocation5 + $0x10] sm:$0xff] }
 0x225   :  { %v3636_v31 = vadd.f32 %v933_v26, %v3536_v36  ;;  %v935_v32 = vpop.f32.mrb[10].mxu0  ;;  %v3650_v36 = vpop.f32.mrb[59].mxu1  ;;  %v3652_v26 = vunpack.c.l.bf16 %v797_v2  ;;  %v3662_v8 = vunpack.c.l.bf16 %v798_v35  ;;  %v3682_v14 = vunpack.c.h.bf16 %v798_v35 }
 0x226   :  { %v3639_v33 = vadd.f32 %v935_v32, %v3538_v37  ;;  %v937_v34 = vpop.f32.mrb[11].mxu0  ;;  %5801 = vst [vmem:[#allocation42_spill] sm:$0xff] %v3650_v36  ;;  %v799_v36 = vld [vmem:[#allocation5 + $0x18] sm:$0xff] }
 0x227   :  { %v3642_v25 = vadd.f32 %v937_v34, %v3540_v38  ;;  %v3657_v38 = vunpack.c.l.bf16 %v796_v23  ;;  %v3689_v2 = vunpack.c.l.bf16 %v799_v36 }
 0x22b   :  { %v941_v20 = vpop.f32.mrb[12].mxu0 }
 0x22c   :  { %v3655_v37 = vadd.f32 %v941_v20, %v3542_v39  ;;  %v943_v32 = vpop.f32.mrb[13].mxu0  ;;  %v3673_v39 = vadd.f32 %v916_v19, %v3652_v26  ;;  %v3675_v20 = vpop.f32.mrb[60].mxu1  ;;  %v3694_v19 = vadd.f32 %v918_v21, %v3667_v29  ;;  %v3710_v21 = vadd.f32 %v924_v1, %v3682_v14 }
 0x22d   :  { %v3660_v34 = vadd.f32 %v943_v32, %v3544_v0  ;;  %v945_v28 = vpop.f32.mrb[14].mxu0  ;;  %5803 = vst [vmem:[#allocation44_spill] sm:$0xff] %v3675_v20  ;;  %v3678_v0 = vadd.f32 %v912_v15, %v3657_v38  ;;  %v3680_v32 = vunpack.c.h.bf16 %v796_v23  ;;  %v3700_v23 = vunpack.c.h.bf16 %v799_v36 }
 0x22e   :  { %v3665_v18 = vadd.f32 %v945_v28, %v3546_v40  ;;  %v947_v30 = vpop.f32.mrb[15].mxu0  ;;  %5802 = vst [vmem:[#allocation43_spill] sm:$0xff] %v3673_v39  ;;  %v3684_v40 = vpop.f32.mrb[61].mxu1  ;;  %v3687_v28 = vadd.f32 %v922_v27, %v3662_v8  ;;  %5808 = vst [vmem:[#allocation49_spill] sm:$0xff] %v3694_v19  ;;  %v1210_v15 = vmul.f32 %v3673_v39, %v3673_v39 }
 0x22f   :  { %v3670_v22 = vadd.f32 %v947_v30, %v3548_v41  ;;  %5804 = vst [vmem:[#allocation45_spill] sm:$0xff] %v3678_v0  ;;  %5805 = vst [vmem:[#allocation46_spill] sm:$0xff] %v3684_v40  ;;  %v3691_v41 = vpop.f32.mrb[62].mxu1  ;;  %v1208_v27 = vmul.f32 %v3678_v0, %v3678_v0  ;;  %v1134_v36 = vadd.f32 %v3673_v39, %v3678_v0 }
 0x230   :  { %5806 = vst [vmem:[#allocation47_spill] sm:$0xff] %v3687_v28  ;;  %5807 = vst [vmem:[#allocation48_spill] sm:$0xff] %v3691_v41  ;;  %v3696_v20 = vpop.f32.mrb[63].mxu1  ;;  %v3707_v41 = vadd.f32 %v3614_v17, %v3680_v32  ;;  %v1211_v1 = vmul.f32 %v3694_v19, %v3694_v19  ;;  %v3732_v39 = vadd.f32 %v932_v24, %v3657_v38 }
 0x231   :  { %5809 = vst [vmem:[#allocation50_spill] sm:$0xff] %v3696_v20  ;;  %5811 = vst [vmem:[#allocation52_spill] sm:$0xff] %v3710_v21  ;;  %v1135_v10 = vadd.f32 %v1134_v36, %v3687_v28  ;;  %v3742_v0 = vadd.f32 %v3624_v16, %v3700_v23  ;;  %v3749_v36 = vadd.f32 %v3636_v31, %v3680_v32 }
 0x232   :  { %5810 = vst [vmem:[#allocation51_spill] sm:$0xff] %v3707_v41  ;;  %v3756_v16 = vadd.f32 %v3639_v33, %v3652_v26 }
 0x233   :  { %v951_v30 = vpop.f32.mrb[16].mxu0 }
 0x234   :  { %v952_v35 = vadd.f32 %v951_v30, %v3550_v42  ;;  %v953_v40 = vpop.f32.mrb[17].mxu0  ;;  %v1212_v42 = vmul.f32 %v3687_v28, %v3687_v28  ;;  %v3720_v30 = vadd.f32 %v926_v13, %v3689_v2  ;;  %v1209_v13 = vmul.f32 %v3707_v41, %v3707_v41 }
 0x235   :  { %v3713_v20 = vadd.f32 %v953_v40, %v3552_v43  ;;  %v955_v12 = vpop.f32.mrb[18].mxu0  ;;  %v1272_v40 = vadd.f32 %v1210_v15, %v1208_v27 }
 0x236   :  { %5812 = vst [vmem:[#allocation53_spill] sm:$0xff] %v3720_v30  ;;  %v3723_v11 = vadd.f32 %v955_v12, %v3554_v44  ;;  %v957_v17 = vpop.f32.mrb[19].mxu0  ;;  %v1171_v44 = vadd.f32 %v3694_v19, %v3707_v41  ;;  %v1213_v12 = vmul.f32 %v3710_v21, %v3710_v21  ;;  %v1214_v15 = vmul.f32 %v3720_v30, %v3720_v30 }
 0x237   :  { %v3728_v43 = vadd.f32 %v957_v17, %v3556_v45  ;;  %v1273_v45 = vadd.f32 %v1272_v40, %v1212_v42  ;;  %v1309_v27 = vadd.f32 %v1211_v1, %v1209_v13  ;;  %v1136_v19 = vadd.f32 %v1135_v10, %v3720_v30 }
 0x238   :  { %v1172_v24 = vadd.f32 %v1171_v44, %v3710_v21  ;;  %v1216_v41 = vmul.f32 %v3732_v39, %v3732_v39  ;;  %v1215_v13 = vmul.f32 %v3742_v0, %v3742_v0  ;;  %v3765_v30 = vadd.f32 %v3655_v37, %v3662_v8 }
 0x239   :  { %v1310_v1 = vadd.f32 %v1309_v27, %v1213_v12  ;;  %v1274_v21 = vadd.f32 %v1273_v45, %v1214_v15  ;;  %v1137_v10 = vadd.f32 %v1136_v19, %v3732_v39  ;;  %v1217_v12 = vmul.f32 %v3749_v36, %v3749_v36 }
 0x23a   :  { %v3773_v27 = vadd.f32 %v3642_v25, %v3667_v29  ;;  %v1218_v37 = vmul.f32 %v3756_v16, %v3756_v16  ;;  %v3783_v15 = vadd.f32 %v3660_v34, %v3682_v14  ;;  %v1220_v25 = vmul.f32 %v3765_v30, %v3765_v30 }
 0x23b   :  { %v961_v17 = vpop.f32.mrb[20].mxu0  ;;  %v1275_v19 = vadd.f32 %v1274_v21, %v1216_v41  ;;  %v1311_v45 = vadd.f32 %v1310_v1, %v1215_v13  ;;  %v3796_v34 = vadd.f32 %v952_v35, %v3657_v38 }
 0x23c   :  { %v962_v42 = vadd.f32 %v961_v17, %v3558_v46  ;;  %v963_v40 = vpop.f32.mrb[21].mxu0  ;;  %v1173_v46 = vadd.f32 %v1172_v24, %v3742_v0  ;;  %v1138_v24 = vadd.f32 %v1137_v10, %v3756_v16  ;;  %v1219_v41 = vmul.f32 %v3773_v27, %v3773_v27 }
 0x23d   :  { %v964_v31 = vadd.f32 %v963_v40, %v3560_v47  ;;  %v965_v44 = vpop.f32.mrb[22].mxu0  ;;  %v1276_v17 = vadd.f32 %v1275_v19, %v1218_v37  ;;  %v3804_v10 = vadd.f32 %v3670_v22, %v3700_v23 }
 0x23e   :  { %v966_v33 = vadd.f32 %v965_v44, %v3562_v48  ;;  %v967_v28 = vpop.f32.mrb[23].mxu0  ;;  %v1174_v48 = vadd.f32 %v1173_v46, %v3749_v36  ;;  %v1139_v40 = vadd.f32 %v1138_v24, %v3765_v30  ;;  %v3813_v24 = vadd.f32 %v3713_v20, %v3680_v32 }
 0x23f   :  { %v3776_v47 = vadd.f32 %v967_v28, %v3564_v49  ;;  %v3790_v49 = vadd.f32 %v3665_v18, %v3689_v2  ;;  %v1312_v28 = vadd.f32 %v1311_v45, %v1217_v12  ;;  %v1221_v18 = vmul.f32 %v3783_v15, %v3783_v15 }
 0x240   :  { %v1175_v44 = vadd.f32 %v1174_v48, %v3773_v27  ;;  %v1277_v19 = vadd.f32 %v1276_v17, %v1220_v25  ;;  %v3821_v25 = vadd.f32 %v3723_v11, %v3652_v26  ;;  %v3827_v20 = vadd.f32 %v962_v42, %v3662_v8 }
 0x241   :  { %v1222_v35 = vmul.f32 %v3790_v49, %v3790_v49  ;;  %v1313_v45 = vadd.f32 %v1312_v28, %v1219_v41  ;;  %v1223_v28 = vmul.f32 %v3804_v10, %v3804_v10 }
 0x242   :  { %v1176_v48 = vadd.f32 %v1175_v44, %v3783_v15 }
 0x243   :  { %v971_v21 = vpop.f32.mrb[24].mxu0  ;;  %v1278_v41 = vadd.f32 %v1277_v19, %v1222_v35 }
 0x244   :  { %v972_v1 = vadd.f32 %v971_v21, %v3566_v50  ;;  %v973_v13 = vpop.f32.mrb[25].mxu0  ;;  %v1140_v21 = vadd.f32 %v1139_v40, %v3790_v49  ;;  %v1225_v40 = vmul.f32 %v3813_v24, %v3813_v24 }
 0x245   :  { %v974_v46 = vadd.f32 %v973_v13, %v3568_v51  ;;  %v975_v12 = vpop.f32.mrb[26].mxu0  ;;  %v1224_v51 = vmul.f32 %v3796_v34, %v3796_v34  ;;  %v3834_v13 = vadd.f32 %v3728_v43, %v3667_v29 }
 0x246   :  { %v976_v37 = vadd.f32 %v975_v12, %v3570_v52  ;;  %v977_v50 = vpop.f32.mrb[27].mxu0  ;;  %v1314_v52 = vadd.f32 %v1313_v45, %v1221_v18  ;;  %v1141_v17 = vadd.f32 %v1140_v21, %v3796_v34  ;;  %v1226_v18 = vmul.f32 %v3821_v25, %v3821_v25 }
 0x247   :  { %v978_v22 = vadd.f32 %v977_v50, %v3572_v53  ;;  %v1177_v53 = vadd.f32 %v1176_v48, %v3804_v10  ;;  %v1279_v44 = vadd.f32 %v1278_v41, %v1224_v51  ;;  %v3841_v50 = vadd.f32 %v964_v31, %v3682_v14 }
 0x248   :  { %v1315_v35 = vadd.f32 %v1314_v52, %v1223_v28  ;;  %v1142_v43 = vadd.f32 %v1141_v17, %v3821_v25  ;;  %v1228_v21 = vmul.f32 %v3827_v20, %v3827_v20  ;;  %v3848_v51 = vadd.f32 %v966_v33, %v3689_v2 }
 0x249   :  { %v1178_v42 = vadd.f32 %v1177_v53, %v3813_v24  ;;  %5813 = vst [vmem:[#allocation54_spill] sm:$0xff] %v3841_v50  ;;  %v1227_v28 = vmul.f32 %v3834_v13, %v3834_v13  ;;  %v1280_v53 = vadd.f32 %v1279_v44, %v1226_v18  ;;  %v3856_v17 = vadd.f32 %v972_v1, %v3657_v38 }
 0x24a   :  { %v1316_v52 = vadd.f32 %v1315_v35, %v1225_v40  ;;  %v1229_v33 = vmul.f32 %v3841_v50, %v3841_v50  ;;  %v3869_v18 = vadd.f32 %v974_v46, %v3680_v32 }
 0x24b   :  { %v981_v11 = vpop.f32.mrb[28].mxu0  ;;  %v1281_v40 = vadd.f32 %v1280_v53, %v1228_v21 }
 0x24c   :  { %v982_v12 = vadd.f32 %v981_v11, %v3574_v54  ;;  %v983_v19 = vpop.f32.mrb[29].mxu0  ;;  %v1179_v11 = vadd.f32 %v1178_v42, %v3834_v13  ;;  %5814 = vst [vmem:[#allocation55_spill] sm:$0xff] %v3869_v18  ;;  %v1232_v42 = vmul.f32 %v3856_v17, %v3856_v17 }
 0x24d   :  { %v984_v45 = vadd.f32 %v983_v19, %v3576_v55  ;;  %v985_v48 = vpop.f32.mrb[30].mxu0  ;;  %v1143_v55 = vadd.f32 %v1142_v43, %v3827_v20  ;;  %v1230_v19 = vmul.f32 %v3848_v51, %v3848_v51 }
 0x24e   :  { %v986_v54 = vadd.f32 %v985_v48, %v3578_v56  ;;  %v987_v41 = vpop.f32.mrb[31].mxu0  ;;  %v3863_v56 = vadd.f32 %v3776_v47, %v3700_v23  ;;  %v1180_v44 = vadd.f32 %v1179_v11, %v3841_v50  ;;  %v3875_v48 = vadd.f32 %v976_v37, %v3652_v26 }
 0x24f   :  { %v988_v31 = vadd.f32 %v987_v41, %v3580_v57  ;;  %v1317_v57 = vadd.f32 %v1316_v52, %v1227_v28  ;;  %v1144_v35 = vadd.f32 %v1143_v55, %v3848_v51  ;;  %v1282_v28 = vadd.f32 %v1281_v40, %v1230_v19 }
 0x250   :  { %v1231_v41 = vmul.f32 %v3863_v56, %v3863_v56  ;;  %v3883_v55 = vadd.f32 %v982_v12, %v3662_v8  ;;  %v1181_v50 = vadd.f32 %v1180_v44, %v3863_v56  ;;  %v1234_v40 = vmul.f32 %v3875_v48, %v3875_v48 }
 0x251   :  { %v1318_v21 = vadd.f32 %v1317_v57, %v1229_v33  ;;  %v1145_v53 = vadd.f32 %v1144_v35, %v3856_v17  ;;  %v3890_v33 = vadd.f32 %v978_v22, %v3667_v29  ;;  %v1283_v57 = vadd.f32 %v1282_v28, %v1232_v42 }
 0x252   :  { %v1182_v12 = vadd.f32 %v1181_v50, %v3869_v18  ;;  %v3903_v22 = vadd.f32 %v986_v54, %v3689_v2  ;;  %v3916_v28 = vadd.f32 %v988_v31, %v3700_v23 }
 0x253   :  { %v991_v1 = vpop.f32.mrb[32].mxu0  ;;  %5815 = vst [vmem:[#allocation56_spill] sm:$0xff] %v3890_v33  ;;  %v1319_v19 = vadd.f32 %v1318_v21, %v1231_v41  ;;  %v1146_v44 = vadd.f32 %v1145_v53, %v3875_v48 }
 0x254   :  { %v992_v47 = vadd.f32 %v991_v1, %v3582_v58  ;;  %v993_v43 = vpop.f32.mrb[33].mxu0  ;;  %v1233_v58 = vmul.f32 %v3869_v18, %v3869_v18  ;;  %v1236_v1 = vmul.f32 %v3883_v55, %v3883_v55  ;;  %5817 = vst [vmem:[#allocation58_spill] sm:$0xff] %v3916_v28 }
 0x255   :  { %v994_v52 = vadd.f32 %v993_v43, %v3584_v59  ;;  %v995_v46 = vpop.f32.mrb[34].mxu0  ;;  %v1284_v43 = vadd.f32 %v1283_v57, %v1234_v40  ;;  %v1147_v21 = vadd.f32 %v1146_v44, %v3883_v55  ;;  %v1238_v57 = vmul.f32 %v3903_v22, %v3903_v22 }
 0x256   :  { %v996_v11 = vadd.f32 %v995_v46, %v3586_v60  ;;  %v997_v37 = vpop.f32.mrb[35].mxu0  ;;  %v3897_v60 = vadd.f32 %v984_v45, %v3682_v14  ;;  %v1320_v35 = vadd.f32 %v1319_v19, %v1233_v58  ;;  %v3909_v50 = vadd.f32 %v992_v47, %v3657_v38 }
 0x257   :  { %v998_v59 = vadd.f32 %v997_v37, %v3588_v61  ;;  %v1235_v61 = vmul.f32 %v3890_v33, %v3890_v33  ;;  %v1183_v46 = vadd.f32 %v1182_v12, %v3890_v33  ;;  %v1285_v58 = vadd.f32 %v1284_v43, %v1236_v1 }
 0x258   :  { %5816 = vst [vmem:[#allocation57_spill] sm:$0xff] %v3897_v60  ;;  %v1237_v54 = vmul.f32 %v3897_v60, %v3897_v60  ;;  %v3924_v12 = vadd.f32 %v994_v52, %v3680_v32  ;;  %v1148_v31 = vadd.f32 %v1147_v21, %v3903_v22  ;;  %v3931_v1 = vadd.f32 %v996_v11, %v3652_v26 }
 0x259   :  { %v1184_v19 = vadd.f32 %v1183_v46, %v3897_v60  ;;  %v3943_v21 = vadd.f32 %v998_v59, %v3667_v29 }
 0x25a   :  { %5818 = vst [vmem:[#allocation59_spill] sm:$0xff] %v3924_v12  ;;  %v1241_v43 = vmul.f32 %v3924_v12, %v3924_v12  ;;  %v1242_v46 = vmul.f32 %v3931_v1, %v3931_v1 }
 0x25b   :  { %v1001_v42 = vpop.f32.mrb[36].mxu0  ;;  %5819 = vst [vmem:[#allocation60_spill] sm:$0xff] %v3943_v21 }
 0x25c   :  { %v1002_v45 = vadd.f32 %v1001_v42, %v3590_v62  ;;  %v1003_v41 = vpop.f32.mrb[37].mxu0  ;;  %v1321_v62 = vadd.f32 %v1320_v35, %v1235_v61  ;;  %v1286_v35 = vadd.f32 %v1285_v58, %v1238_v57  ;;  %v1149_v61 = vadd.f32 %v1148_v31, %v3909_v50 }
 0x25d   :  { %v1004_v53 = vadd.f32 %v1003_v41, %v3592_v63  ;;  %v1005_v37 = vpop.f32.mrb[38].mxu0  ;;  %v1240_v63 = vmul.f32 %v3909_v50, %v3909_v50 }
 0x25e   :  { %v1006_v47 = vadd.f32 %v1005_v37, %v3594_v3  ;;  %v1007_v40 = vpop.f32.mrb[39].mxu0  ;;  %v1322_v42 = vadd.f32 %v1321_v62, %v1237_v54  ;;  %v1239_v3 = vmul.f32 %v3916_v28, %v3916_v28  ;;  %v3937_v52 = vadd.f32 %v1002_v45, %v3662_v8 }
 0x25f   :  { %v1008_v44 = vadd.f32 %v1007_v40, %v3596_v4  ;;  %v1185_v4 = vadd.f32 %v1184_v19, %v3916_v28  ;;  %v1287_v41 = vadd.f32 %v1286_v35, %v1240_v63  ;;  %v3950_v57 = vadd.f32 %v1004_v53, %v3682_v14 }
 0x260   :  { %v1323_v58 = vadd.f32 %v1322_v42, %v1239_v3  ;;  %v1150_v59 = vadd.f32 %v1149_v61, %v3931_v1  ;;  %v1244_v19 = vmul.f32 %v3937_v52, %v3937_v52  ;;  %v3957_v31 = vadd.f32 %v1006_v47, %v3689_v2 }
 0x261   :  { %v1186_v45 = vadd.f32 %v1185_v4, %v3924_v12  ;;  %5820 = vst [vmem:[#allocation61_spill] sm:$0xff] %v3950_v57  ;;  %v1243_v3 = vmul.f32 %v3943_v21, %v3943_v21  ;;  %v1288_v35 = vadd.f32 %v1287_v41, %v1242_v46  ;;  %v1245_v47 = vmul.f32 %v3950_v57, %v3950_v57 }
 0x262   :  { %v1324_v42 = vadd.f32 %v1323_v58, %v1241_v43 }
 0x263   :  { %v1011_v11 = vpop.f32.mrb[40].mxu0  ;;  %v1187_v4 = vadd.f32 %v1186_v45, %v3943_v21  ;;  %v1289_v43 = vadd.f32 %v1288_v35, %v1244_v19 }
 0x264   :  { %v1012_v54 = vadd.f32 %v1011_v11, %v3598_v5  ;;  %v1013_v37 = vpop.f32.mrb[41].mxu0  ;;  %v1246_v11 = vmul.f32 %v3957_v31, %v3957_v31 }
 0x265   :  { %v1014_v40 = vadd.f32 %v1013_v37, %v3600_v6  ;;  %v1015_v62 = vpop.f32.mrb[42].mxu0  ;;  %v1151_v6 = vadd.f32 %v1150_v59, %v3937_v52  ;;  %v1325_v37 = vadd.f32 %v1324_v42, %v1243_v3  ;;  %v5824_v42 = vld [vmem:[#allocation28_spill] sm:$0xff] }
 0x266   :  { %v1016_v5 = vadd.f32 %v1015_v62, %v3602_v7  ;;  %v1017_v63 = vpop.f32.mrb[43].mxu0  ;;  %v3965_v61 = vadd.f32 %v1012_v54, %v3657_v38  ;;  %v3971_v7 = vadd.f32 %v1008_v44, %v3700_v23  ;;  %v5823_v44 = vld [vmem:[#allocation27_spill] sm:$0xff]  ;;  %v1290_v35 = vadd.f32 %v1289_v43, %v1246_v11 }
 0x267   :  { %v1018_v53 = vadd.f32 %v1017_v63, %v3604_v9  ;;  %v1188_v9 = vadd.f32 %v1187_v4, %v3950_v57  ;;  %v3977_v41 = vadd.f32 %v1014_v40, %v3680_v32  ;;  %v1152_v54 = vadd.f32 %v1151_v6, %v3957_v31  ;;  %v5825_v57 = vld [vmem:[#allocation29_spill] sm:$0xff] }
 0x268   :  { %5821 = vst [vmem:[#allocation62_spill] sm:$0xff] %v3971_v7  ;;  %v1248_v58 = vmul.f32 %v3965_v61, %v3965_v61  ;;  %v3983_v45 = vadd.f32 %v1016_v5, %v3652_v26  ;;  %v1326_v19 = vadd.f32 %v1325_v37, %v1245_v47  ;;  %v1247_v63 = vmul.f32 %v3971_v7, %v3971_v7 }
 0x269   :  { %5822 = vst [vmem:[#allocation63_spill] sm:$0xff] %v3977_v41  ;;  %v1153_v4 = vadd.f32 %v1152_v54, %v3965_v61  ;;  %v1189_v12 = vadd.f32 %v1188_v9, %v3971_v7  ;;  %v1249_v47 = vmul.f32 %v3977_v41, %v3977_v41  ;;  %v3998_v37 = vadd.f32 %v1018_v53, %v3667_v29 }
 0x26a   :  { %v1250_v43 = vmul.f32 %v3983_v45, %v3983_v45  ;;  %v1327_v11 = vadd.f32 %v1326_v19, %v1247_v63 }
 0x26b   :  { %v1021_v46 = vpop.f32.mrb[44].mxu0  ;;  %5826 = vst [vmem:[#allocation27_spill] sm:$0xff] %v3998_v37  ;;  %v1190_v54 = vadd.f32 %v1189_v12, %v3977_v41  ;;  %v1154_v9 = vadd.f32 %v1153_v4, %v3983_v45  ;;  %v5829_v12 = vld [vmem:[#allocation31_spill] sm:$0xff] }
 0x26c   :  { %v1022_v62 = vadd.f32 %v1021_v46, %v5823_v44  ;;  %v1023_v59 = vpop.f32.mrb[45].mxu0  ;;  %v5827_v46 = vld [vmem:[#allocation30_spill] sm:$0xff] }
 0x26d   :  { %v1024_v3 = vadd.f32 %v1023_v59, %v5824_v42  ;;  %v1025_v40 = vpop.f32.mrb[46].mxu0  ;;  %v1291_v59 = vadd.f32 %v1290_v35, %v1248_v58  ;;  %v1328_v42 = vadd.f32 %v1327_v11, %v1249_v47  ;;  %v1251_v58 = vmul.f32 %v3998_v37, %v3998_v37 }
 0x26e   :  { %v3991_v6 = vadd.f32 %v1022_v62, %v3662_v8  ;;  %v1026_v21 = vadd.f32 %v1025_v40, %v5825_v57  ;;  %v1027_v5 = vpop.f32.mrb[47].mxu0 }
 0x26f   :  { %v1028_v44 = vadd.f32 %v1027_v5, %v5827_v46  ;;  %v4005_v57 = vadd.f32 %v1024_v3, %v3682_v14  ;;  %v1292_v35 = vadd.f32 %v1291_v59, %v1250_v43  ;;  %v1191_v5 = vadd.f32 %v1190_v54, %v3998_v37 }
 0x270   :  { %v1252_v62 = vmul.f32 %v3991_v6, %v3991_v6  ;;  %v4011_v53 = vadd.f32 %v1026_v21, %v3689_v2  ;;  %v1155_v19 = vadd.f32 %v1154_v9, %v3991_v6  ;;  %v5831_v21 = vld [vmem:[#allocation32_spill] sm:$0xff]  ;;  %v5832_v9 = vld [vmem:[#allocation33_spill] sm:$0xff]  ;;  %v1329_v54 = vadd.f32 %v1328_v42, %v1251_v58 }
 0x271   :  { %5828 = vst [vmem:[#allocation28_spill] sm:$0xff] %v4005_v57  ;;  %v1253_v4 = vmul.f32 %v4005_v57, %v4005_v57  ;;  %v4021_v46 = vadd.f32 %v1028_v44, %v3700_v23  ;;  %v1192_v37 = vadd.f32 %v1191_v5, %v4005_v57  ;;  %v5834_v44 = vld [vmem:[#allocation34_spill] sm:$0xff] }
 0x272   :  { %v1293_v41 = vadd.f32 %v1292_v35, %v1252_v62  ;;  %v1254_v59 = vmul.f32 %v4011_v53, %v4011_v53 }
 0x273   :  { %v1031_v40 = vpop.f32.mrb[48].mxu0  ;;  %5830 = vst [vmem:[#allocation29_spill] sm:$0xff] %v4021_v46  ;;  %v1193_v5 = vadd.f32 %v1192_v37, %v4021_v46 }
 0x274   :  { %v1032_v63 = vadd.f32 %v1031_v40, %v5829_v12  ;;  %v1033_v3 = vpop.f32.mrb[49].mxu0  ;;  %v1294_v42 = vadd.f32 %v1293_v41, %v1254_v59  ;;  %v5837_v59 = vld [vmem:[#allocation36_spill] sm:$0xff] }
 0x275   :  { %v1034_v47 = vadd.f32 %v1033_v3, %v5831_v21  ;;  %v1035_v11 = vpop.f32.mrb[50].mxu0  ;;  %v1156_v3 = vadd.f32 %v1155_v19, %v4011_v53  ;;  %v1255_v21 = vmul.f32 %v4021_v46, %v4021_v46 }
 0x276   :  { %v4027_v43 = vadd.f32 %v1032_v63, %v3657_v38  ;;  %v1036_v40 = vadd.f32 %v1035_v11, %v5832_v9  ;;  %v1037_v12 = vpop.f32.mrb[51].mxu0  ;;  %v1330_v63 = vadd.f32 %v1329_v54, %v1253_v4  ;;  %v5836_v4 = vld [vmem:[#allocation35_spill] sm:$0xff] }
 0x277   :  { %v4032_v7 = vadd.f32 %v1034_v47, %v3680_v32  ;;  %v1038_v28 = vadd.f32 %v1037_v12, %v5834_v44 }
 0x278   :  { %v1256_v62 = vmul.f32 %v4027_v43, %v4027_v43  ;;  %v4039_v35 = vadd.f32 %v1036_v40, %v3652_v26  ;;  %v1157_v58 = vadd.f32 %v1156_v3, %v4027_v43  ;;  %v1331_v44 = vadd.f32 %v1330_v63, %v1255_v21  ;;  %v5840_v63 = vld [vmem:[#allocation38_spill] sm:$0xff] }
 0x279   :  { %5833 = vst [vmem:[#allocation30_spill] sm:$0xff] %v4032_v7  ;;  %v1257_v47 = vmul.f32 %v4032_v7, %v4032_v7  ;;  %v4048_v19 = vadd.f32 %v1038_v28, %v3667_v29  ;;  %v1194_v41 = vadd.f32 %v1193_v5, %v4032_v7  ;;  %v5838_v28 = vld [vmem:[#allocation37_spill] sm:$0xff] }
 0x27a   :  { %v1295_v9 = vadd.f32 %v1294_v42, %v1256_v62  ;;  %v1258_v40 = vmul.f32 %v4039_v35, %v4039_v35  ;;  %v1158_v46 = vadd.f32 %v1157_v58, %v4039_v35 }
 0x27b   :  { %5835 = vst [vmem:[#allocation31_spill] sm:$0xff] %v4048_v19  ;;  %v1041_v11 = vpop.f32.mrb[52].mxu0  ;;  %v1332_v42 = vadd.f32 %v1331_v44, %v1257_v47  ;;  %v1259_v33 = vmul.f32 %v4048_v19, %v4048_v19 }
 0x27c   :  { %v1042_v12 = vadd.f32 %v1041_v11, %v5836_v4  ;;  %v1043_v54 = vpop.f32.mrb[53].mxu0  ;;  %v1296_v5 = vadd.f32 %v1295_v9, %v1258_v40 }
 0x27d   :  { %v1044_v3 = vadd.f32 %v1043_v54, %v5837_v59  ;;  %v1045_v37 = vpop.f32.mrb[54].mxu0  ;;  %v1195_v54 = vadd.f32 %v1194_v41, %v4048_v19  ;;  %v1333_v9 = vadd.f32 %v1332_v42, %v1259_v33 }
 0x27e   :  { %v4057_v57 = vadd.f32 %v1042_v12, %v3662_v8  ;;  %v1046_v60 = vadd.f32 %v1045_v37, %v5838_v28  ;;  %v1047_v62 = vpop.f32.mrb[55].mxu0  ;;  %v5842_v28 = vld [vmem:[#allocation39_spill] sm:$0xff] }
 0x27f   :  { %v4063_v11 = vadd.f32 %v1044_v3, %v3682_v14  ;;  %v1048_v21 = vadd.f32 %v1047_v62, %v5840_v63 }
 0x280   :  { %v1159_v4 = vadd.f32 %v1158_v46, %v4057_v57  ;;  %v1260_v58 = vmul.f32 %v4057_v57, %v4057_v57  ;;  %v4070_v12 = vadd.f32 %v1046_v60, %v3689_v2 }
 0x281   :  { %5839 = vst [vmem:[#allocation32_spill] sm:$0xff] %v4063_v11  ;;  %v1261_v47 = vmul.f32 %v4063_v11, %v4063_v11  ;;  %v4076_v44 = vadd.f32 %v1048_v21, %v3700_v23  ;;  %v1196_v40 = vadd.f32 %v1195_v54, %v4063_v11  ;;  %v5843_v21 = vld [vmem:[#allocation40_spill] sm:$0xff] }
 0x282   :  { %v1297_v59 = vadd.f32 %v1296_v5, %v1260_v58  ;;  %v1160_v3 = vadd.f32 %v1159_v4, %v4070_v12  ;;  %v1262_v46 = vmul.f32 %v4070_v12, %v4070_v12  ;;  %v5844_v58 = vld [vmem:[#allocation41_spill] sm:$0xff] }
 0x283   :  { %5841 = vst [vmem:[#allocation33_spill] sm:$0xff] %v4076_v44  ;;  %v1051_v37 = vpop.f32.mrb[56].mxu0  ;;  %v1334_v63 = vadd.f32 %v1333_v9, %v1261_v47  ;;  %v1263_v19 = vmul.f32 %v4076_v44, %v4076_v44  ;;  %v1197_v42 = vadd.f32 %v1196_v40, %v4076_v44 }
 0x284   :  { %v1298_v60 = vadd.f32 %v1297_v59, %v1262_v46  ;;  %v1052_v62 = vadd.f32 %v1051_v37, %v5842_v28  ;;  %v1053_v41 = vpop.f32.mrb[57].mxu0  ;;  %v5845_v59 = vld [vmem:[#allocation42_spill] sm:$0xff] }
 0x285   :  { %v1054_v7 = vadd.f32 %v1053_v41, %v5843_v21  ;;  %v1055_v5 = vpop.f32.mrb[58].mxu0 }
 0x286   :  { %v4087_v4 = vadd.f32 %v1052_v62, %v3657_v38  ;;  %v1056_v18 = vadd.f32 %v1055_v5, %v5844_v58  ;;  %v1057_v33 = vpop.f32.mrb[59].mxu0  ;;  %v1335_v38 = vadd.f32 %v1334_v63, %v1263_v19  ;;  %v5847_v63 = vld [vmem:[#allocation44_spill] sm:$0xff] }
 0x287   :  { %v4092_v54 = vadd.f32 %v1054_v7, %v3680_v32  ;;  %v1058_v46 = vadd.f32 %v1057_v33, %v5845_v59 }
 0x288   :  { %v1161_v47 = vadd.f32 %v1160_v3, %v4087_v4  ;;  %v1264_v9 = vmul.f32 %v4087_v4, %v4087_v4  ;;  %v4099_v37 = vadd.f32 %v1056_v18, %v3652_v26 }
 0x289   :  { %v1198_v28 = vadd.f32 %v1197_v42, %v4092_v54  ;;  %v1265_v62 = vmul.f32 %v4092_v54, %v4092_v54  ;;  %v4105_v40 = vadd.f32 %v1058_v46, %v3667_v29  ;;  %v5848_v29 = vld [vmem:[#allocation46_spill] sm:$0xff]  ;;  %v5849_v46 = vld [vmem:[#allocation48_spill] sm:$0xff] }
 0x28a   :  { %v1299_v32 = vadd.f32 %v1298_v60, %v1264_v9  ;;  %v1162_v7 = vadd.f32 %v1161_v47, %v4099_v37  ;;  %v1266_v3 = vmul.f32 %v4099_v37, %v4099_v37 }
 0x28b   :  { %5846 = vst [vmem:[#allocation34_spill] sm:$0xff] %v4105_v40  ;;  %v1336_v41 = vadd.f32 %v1335_v38, %v1265_v62  ;;  %v1199_v21 = vadd.f32 %v1198_v28, %v4105_v40  ;;  %v1267_v26 = vmul.f32 %v4105_v40, %v4105_v40  ;;  %v1061_v18 = vpop.f32.mrb[60].mxu0  ;;  %v5851_v28 = vld [vmem:[#allocation50_spill] sm:$0xff] }
 0x28c   :  { %v1300_v19 = vadd.f32 %v1299_v32, %v1266_v3  ;;  %v1062_v5 = vadd.f32 %v1061_v18, %v5847_v63  ;;  %v1063_v58 = vpop.f32.mrb[61].mxu0 }
 0x28d   :  { %v1337_v33 = vadd.f32 %v1336_v41, %v1267_v26  ;;  %v1064_v42 = vadd.f32 %v1063_v58, %v5848_v29  ;;  %v1065_v60 = vpop.f32.mrb[62].mxu0 }
 0x28e   :  { %v4116_v59 = vadd.f32 %v1062_v5, %v3662_v8  ;;  %v1066_v47 = vadd.f32 %v1065_v60, %v5849_v46  ;;  %v1067_v9 = vpop.f32.mrb[63].mxu0 }
 0x28f   :  { %v4120_v38 = vadd.f32 %v1064_v42, %v3682_v14  ;;  %v1068_v62 = vadd.f32 %v1067_v9, %v5851_v28 }
 0x290   :  { %v1163_v32 = vadd.f32 %v1162_v7, %v4116_v59  ;;  %v1268_v3 = vmul.f32 %v4116_v59, %v4116_v59  ;;  %v4127_v41 = vadd.f32 %v1066_v47, %v3689_v2 }
 0x291   :  { %5850 = vst [vmem:[#allocation35_spill] sm:$0xff] %v4120_v38  ;;  %v1200_v26 = vadd.f32 %v1199_v21, %v4120_v38  ;;  %v1269_v8 = vmul.f32 %v4120_v38, %v4120_v38  ;;  %v4133_v18 = vadd.f32 %v1068_v62, %v3700_v23 }
 0x292   :  { %v1301_v14 = vadd.f32 %v1300_v19, %v1268_v3  ;;  %v1164_v63 = vadd.f32 %v1163_v32, %v4127_v41  ;;  %v1270_v7 = vmul.f32 %v4127_v41, %v4127_v41 }
 0x293   :  { %5852 = vst [vmem:[#allocation36_spill] sm:$0xff] %v4133_v18  ;;  %v1338_v5 = vadd.f32 %v1337_v33, %v1269_v8  ;;  %v1201_v58 = vadd.f32 %v1200_v26, %v4133_v18  ;;  %v1271_v2 = vmul.f32 %v4133_v18, %v4133_v18 }
 0x294   :  { %v1165_v29 = vrot.slane %v1164_v63, 4  ;;  %v1302_v21 = vadd.f32 %v1301_v14, %v1270_v7 }
 0x295   :  { %v1202_v42 = vrot.slane %v1201_v58, 4  ;;  %v1339_v60 = vadd.f32 %v1338_v5, %v1271_v2 }
 0x296   :  { %v1166_v46 = vadd.f32 %v1165_v29, %v1164_v63  ;;  %v1303_v47 = vrot.slane %v1302_v21, 4 }
 0x297   :  { %v1203_v23 = vadd.f32 %v1202_v42, %v1201_v58  ;;  %v1340_v9 = vrot.slane %v1339_v60, 4 }
 0x298   :  { %v1167_v19 = vrot.slane %v1166_v46, 2  ;;  %v1304_v28 = vadd.f32 %v1303_v47, %v1302_v21 }
 0x299   :  { %v1204_v62 = vrot.slane %v1203_v23, 2  ;;  %v1341_v32 = vadd.f32 %v1340_v9, %v1339_v60 }
 0x29a   :  { %v1168_v3 = vadd.f32 %v1167_v19, %v1166_v46  ;;  %v1305_v44 = vrot.slane %v1304_v28, 2 }
 0x29b   :  { %v1205_v33 = vadd.f32 %v1204_v62, %v1203_v23  ;;  %v1342_v8 = vrot.slane %v1341_v32, 2 }
 0x29c   :  { %v1169_v26 = vrot.slane %v1168_v3, 1  ;;  %v1306_v11 = vadd.f32 %v1305_v44, %v1304_v28  ;;  %v5853_v44 = vlaneseq }
 0x29d   :  { %v1206_v38 = vrot.slane %v1205_v33, 1  ;;  %v1343_v18 = vadd.f32 %v1342_v8, %v1341_v32 }
 0x29e   :  { %v1170_v40 = vadd.f32 %v1169_v26, %v1168_v3  ;;  %v1307_v14 = vrot.slane %v1306_v11, 1  ;;  %v4142_v28 = vshrl.u32 %v5853_v44, 7  ;;  %v5858_v44 = vld [vmem:[#allocation47_spill] sm:$0xff] }
 0x29f   :  { %v1207_v7 = vadd.f32 %v1206_v38, %v1205_v33  ;;  %v1344_v5 = vrot.slane %v1343_v18, 1  ;;  %v3189_v33 = vmov 1966171168  }
 0x2a0   :  { %v1308_v63 = vadd.f32 %v1307_v14, %v1306_v11  ;;  %v1348_v2 = vmul.f32 0.00390625, %v1170_v40  ;;  %v4145_v11 = vsub.s32 0, %v4142_v28  ;;  %v1346_v40 = vld [vmem:[#allocation13] sm:$0x3]  ;;  %v5647_v38 = vsub.s32 1, %v4142_v28 }
 0x2a1   :  { %v1345_v58 = vadd.f32 %v1344_v5, %v1343_v18  ;;  %v1349_v29 = vmul.f32 0.00390625, %v1207_v7  ;;  %v1381_v8 = vunpack.c.l.s4 %v3189_v33 }
 0x2a2   :  { %v1350_v42 = vmul.f32 0.00390625, %v1308_v63  ;;  %v1352_v21 = vmul.f32 %v1348_v2, %v1348_v2  ;;  %5854 = vst [vmem:[#allocation37_spill] sm:$0xff] %v4145_v11  ;;  %v1366_v18 = vrot.slane %v1346_v40, %v4145_v11  ;;  %v1370_v3 = vrot.slane %v1346_v40, %v5647_v38 }
 0x2a3   :  { %v1351_v47 = vmul.f32 0.00390625, %v1345_v58  ;;  %v1353_v60 = vmul.f32 %v1349_v29, %v1349_v29  ;;  %v1382_v63 = vunpack.c.0.s8 %v1381_v8 }
 0x2a4   :  { %v1354_v46 = vsub.f32 %v1350_v42, %v1352_v21 }
 0x2a5   :  { %v1355_v9 = vsub.f32 %v1351_v47, %v1353_v60  ;;  %v5856_v60 = vld [vmem:[#allocation45_spill] sm:$0xff] }
 0x2a6   :  { %v1356_v23 = vmax.f32 %v1354_v46, 0.0 }
 0x2a7   :  { %v1357_v19 = vmax.f32 %v1355_v9, 0.0  ;;  %v1385_v9 = vsub.s32 %v1382_v63, %v4142_v28  ;;  %v5869_v63 = vld [vmem:[#allocation52_spill] sm:$0xff] }
 0x2a8   :  { %v1358_v62 = vadd.f32 1e-05, %v1356_v23 }
 0x2a9   :  { %v1359_v32 = vadd.f32 1e-05, %v1357_v19  ;;  %v5857_v19 = vld [vmem:[#allocation43_spill] sm:$0xff] }
 0x2aa   :  { %2639 = vrsqrt.f32 %v1358_v62 }
 0x2ab   :  { %2641 = vrsqrt.f32 %v1359_v32 }
 0x2b4   :  { %v2640_v26 = vpop.eup %2639 }
 0x2b5   :  { %v2642_v14 = vpop.eup %2641  ;;  %v1373_v7 = vmul.f32 %v2640_v26, %v1366_v18 }
 0x2b6   :  { %v1374_v5 = vmul.f32 %v2642_v14, %v1370_v3 }
 0x2b7   :  { %v1375_v58 = vmul.f32 %v1373_v7, %v1348_v2  ;;  %v1399_v42 = vrot.slane %v1373_v7, %v4145_v11  ;;  %v5859_v2 = vld [vmem:[#allocation53_spill] sm:$0xff] }
 0x2b8   :  { %v1376_v21 = vmul.f32 %v1374_v5, %v1349_v29  ;;  %v4160_v23 = vrot.slane %v1374_v5, %v4145_v11  ;;  %v5868_v5 = vld [vmem:[#allocation49_spill] sm:$0xff] }
 0x2b9   :  { %v4153_v47 = vmul.f32 %v1399_v42, %v4127_v41  ;;  %v4156_v46 = vmul.f32 %v1399_v42, %v5856_v60  ;;  %v4163_v62 = vmul.f32 %v1399_v42, %v5857_v19  ;;  %v4166_v32 = vmul.f32 %v1399_v42, %v5858_v44  ;;  %v5870_v44 = vld [vmem:[#allocation54_spill] sm:$0xff] }
 0x2ba   :  { %v4169_v40 = vmul.f32 %v1399_v42, %v5859_v2  ;;  %v4172_v41 = vmul.f32 %v1399_v42, %v3732_v39  ;;  %v4175_v29 = vmul.f32 %v1399_v42, %v3756_v16  ;;  %v4178_v18 = vmul.f32 %v1399_v42, %v3765_v30 }
 0x2bb   :  { %5855 = vst [vmem:[#allocation38_spill] sm:$0xff] %v4153_v47  ;;  %v4181_v3 = vmul.f32 %v1399_v42, %v3790_v49  ;;  %v4184_v33 = vmul.f32 %v1399_v42, %v3796_v34  ;;  %v4187_v8 = vmul.f32 %v1399_v42, %v3821_v25  ;;  %v4190_v26 = vmul.f32 %v1399_v42, %v3827_v20 }
 0x2bc   :  { %v4193_v39 = vmul.f32 %v1399_v42, %v3848_v51  ;;  %v4196_v16 = vmul.f32 %v1399_v42, %v3856_v17  ;;  %v4199_v30 = vmul.f32 %v1399_v42, %v3875_v48  ;;  %v4202_v49 = vmul.f32 %v1399_v42, %v3883_v55 }
 0x2bd   :  { %v4205_v34 = vmul.f32 %v1399_v42, %v3903_v22  ;;  %v4208_v25 = vmul.f32 %v1399_v42, %v3909_v50  ;;  %v4211_v20 = vmul.f32 %v1399_v42, %v3931_v1  ;;  %v4214_v51 = vmul.f32 %v1399_v42, %v3937_v52 }
 0x2be   :  { %v4217_v17 = vmul.f32 %v1399_v42, %v3957_v31  ;;  %v4220_v48 = vmul.f32 %v1399_v42, %v4057_v57  ;;  %v4223_v55 = vmul.f32 %v1399_v42, %v4070_v12  ;;  %v4226_v22 = vmul.f32 %v1399_v42, %v4087_v4 }
 0x2bf   :  { %v4229_v50 = vmul.f32 %v1399_v42, %v4099_v37  ;;  %v4232_v1 = vmul.f32 %v1399_v42, %v4116_v59  ;;  %v4235_v52 = vmul.f32 %v1399_v42, %v3965_v61  ;;  %v4238_v31 = vmul.f32 %v1399_v42, %v3983_v45  ;;  %v5867_v59 = vld [vmem:[#allocation51_spill] sm:$0xff] }
 0x2c0   :  { %5860 = vst [vmem:[#allocation39_spill] sm:$0xff] %v4220_v48  ;;  %5861 = vst [vmem:[#allocation40_spill] sm:$0xff] %v4223_v55  ;;  %v4241_v57 = vmul.f32 %v1399_v42, %v3991_v6  ;;  %v1379_v12 = vcombine.low %v1375_v58, %v1376_v21  ;;  %v4244_v14 = vmul.f32 %v1399_v42, %v4011_v53  ;;  %v1347_v58 = vld [vmem:[#allocation14] sm:$0x3] }
 0x2c1   :  { %5862 = vst [vmem:[#allocation41_spill] sm:$0xff] %v4226_v22  ;;  %5863 = vst [vmem:[#allocation42_spill] sm:$0xff] %v4229_v50  ;;  %v4247_v4 = vmul.f32 %v1399_v42, %v4027_v43  ;;  %v4250_v37 = vmul.f32 %v1399_v42, %v4039_v35  ;;  %v1405_v61 = vmul.f32 %v4160_v23, %v5867_v59  ;;  %v5886_v22 = vld [vmem:[#allocation36_spill] sm:$0xff] }
 0x2c2   :  { %5864 = vst [vmem:[#allocation44_spill] sm:$0xff] %v4232_v1  ;;  %v1386_v7 = vrot.slane %v1379_v12, %v1385_v9  ;;  %v1407_v45 = vmul.f32 %v4160_v23, %v5868_v5  ;;  %v1409_v6 = vmul.f32 %v4160_v23, %v5869_v63  ;;  %v1411_v53 = vmul.f32 %v4160_v23, %v3742_v0 }
 0x2c3   :  { %5865 = vst [vmem:[#allocation46_spill] sm:$0xff] %v4247_v4  ;;  %5866 = vst [vmem:[#allocation48_spill] sm:$0xff] %v4250_v37  ;;  %v1413_v43 = vmul.f32 %v4160_v23, %v3749_v36  ;;  %v1415_v35 = vmul.f32 %v4160_v23, %v3773_v27  ;;  %v1417_v42 = vmul.f32 %v4160_v23, %v3783_v15  ;;  %v5871_v27 = vld [vmem:[#allocation55_spill] sm:$0xff]  ;;  %v5872_v15 = vld [vmem:[#allocation56_spill] sm:$0xff] }
 0x2c4   :  { %v1419_v21 = vmul.f32 %v4160_v23, %v3804_v10  ;;  %v1393_v60 = vrot.slane %v1386_v7, %v1385_v9  ;;  %v1421_v19 = vmul.f32 %v4160_v23, %v3813_v24  ;;  %v1423_v0 = vmul.f32 %v4160_v23, %v3834_v13  ;;  %v5873_v10 = vld [vmem:[#allocation57_spill] sm:$0xff]  ;;  %v5874_v24 = vld [vmem:[#allocation58_spill] sm:$0xff]  ;;  %v5875_v13 = vld [vmem:[#allocation59_spill] sm:$0xff] }
 0x2c5   :  { %v1425_v2 = vmul.f32 %v4160_v23, %v5870_v44  ;;  %v1427_v36 = vmul.f32 %v4160_v23, %v3863_v56  ;;  %v1429_v12 = vmul.f32 %v4160_v23, %v5871_v27  ;;  %v1431_v59 = vmul.f32 %v4160_v23, %v5872_v15  ;;  %v5876_v44 = vld [vmem:[#allocation60_spill] sm:$0xff]  ;;  %v5877_v56 = vld [vmem:[#allocation61_spill] sm:$0xff]  ;;  %v5878_v27 = vld [vmem:[#allocation62_spill] sm:$0xff] }
 0x2c6   :  { %v1433_v9 = vmul.f32 %v4160_v23, %v5873_v10  ;;  %v1395_v7 = vsub.f32 %v1347_v58, %v1393_v60  ;;  %v1435_v5 = vmul.f32 %v4160_v23, %v5874_v24  ;;  %v1437_v63 = vmul.f32 %v4160_v23, %v5875_v13  ;;  %v5879_v15 = vld [vmem:[#allocation63_spill] sm:$0xff]  ;;  %v5882_v24 = vld [vmem:[#allocation34_spill] sm:$0xff] }
 0x2c7   :  { %v1439_v38 = vmul.f32 %v4160_v23, %v5876_v44  ;;  %v1441_v47 = vmul.f32 %v4160_v23, %v5877_v56  ;;  %v1443_v1 = vmul.f32 %v4160_v23, %v5878_v27  ;;  %v1445_v50 = vmul.f32 %v4160_v23, %v5879_v15  ;;  %v5880_v10 = vld [vmem:[#allocation27_spill] sm:$0xff]  ;;  %v5888_v15 = vld [vmem:[#allocation28_spill] sm:$0xff] }
 0x2c8   :  { %v1447_v58 = vmul.f32 %v4160_v23, %v5880_v10  ;;  %v4298_v60 = vmul.f32 %v4160_v23, %v4092_v54  ;;  %v4302_v13 = vmul.f32 %v4160_v23, %v5882_v24  ;;  %v5884_v44 = vld [vmem:[#allocation35_spill] sm:$0xff]  ;;  %v4310_v27 = vmul.f32 %v4160_v23, %v5886_v22  ;;  %v5889_v10 = vld [vmem:[#allocation29_spill] sm:$0xff] }
 0x2c9   :  { %v4306_v56 = vmul.f32 %v4160_v23, %v5884_v44  ;;  %v1449_v55 = vmul.f32 %v4160_v23, %v5888_v15  ;;  %v1451_v48 = vmul.f32 %v4160_v23, %v5889_v10  ;;  %v4317_v54 = vrot.slane %v1395_v7, %v4145_v11  ;;  %v5894_v15 = vld [vmem:[#allocation33_spill] sm:$0xff]  ;;  %v5946_v11 = vld [vmem:[#allocation40_spill] sm:$0xff] }
 0x2ca   :  { %5881 = vst [vmem:[#allocation50_spill] sm:$0xff] %v4298_v60  ;;  %5883 = vst [vmem:[#allocation45_spill] sm:$0xff] %v4302_v13  ;;  %v5890_v24 = vsub.s32 1, %v4142_v28  ;;  %v5891_v60 = vld [vmem:[#allocation30_spill] sm:$0xff]  ;;  %v1459_v4 = vmul.f32 %v4160_v23, %v5894_v15  ;;  %v5943_v15 = vld [vmem:[#allocation39_spill] sm:$0xff] }
 0x2cb   :  { %5885 = vst [vmem:[#allocation43_spill] sm:$0xff] %v4306_v56  ;;  %5887 = vst [vmem:[#allocation47_spill] sm:$0xff] %v4310_v27  ;;  %v1453_v44 = vmul.f32 %v4160_v23, %v5891_v60  ;;  %v5892_v56 = vld [vmem:[#allocation31_spill] sm:$0xff]  ;;  %v5893_v27 = vld [vmem:[#allocation32_spill] sm:$0xff]  ;;  %v4333_v10 = vadd.f32 %v4317_v54, %v4156_v46  ;;  %v4354_v46 = vadd.f32 %v4317_v54, %v4169_v40 }
 0x2cc   :  { %v4321_v13 = vrot.slane %v1395_v7, %v5890_v24  ;;  %v1455_v22 = vmul.f32 %v4160_v23, %v5892_v56  ;;  %v1457_v37 = vmul.f32 %v4160_v23, %v5893_v27  ;;  %v4340_v7 = vadd.f32 %v4317_v54, %v4163_v62  ;;  %v5937_v27 = vld [vmem:[#allocation46_spill] sm:$0xff]  ;;  %v5940_v24 = vld [vmem:[#allocation48_spill] sm:$0xff] }
 0x2cd   :  { %5895 = vst [vmem:[#allocation53_spill] sm:$0xff] %v4333_v10  ;;  %v4347_v56 = vadd.f32 %v4317_v54, %v4166_v32  ;;  %5898 = vst [vmem:[#allocation52_spill] sm:$0xff] %v4354_v46  ;;  %v4361_v62 = vadd.f32 %v4317_v54, %v4172_v41  ;;  %v4368_v32 = vadd.f32 %v4317_v54, %v4175_v29 }
 0x2ce   :  { %v4336_v28 = vadd.f32 %v4321_v13, %v1405_v61  ;;  %5896 = vst [vmem:[#allocation51_spill] sm:$0xff] %v4340_v7  ;;  %v4343_v60 = vadd.f32 %v4321_v13, %v1407_v45  ;;  %v4350_v23 = vadd.f32 %v4321_v13, %v1409_v6  ;;  %v4357_v61 = vadd.f32 %v4321_v13, %v1411_v53 }
 0x2cf   :  { %5897 = vst [vmem:[#allocation49_spill] sm:$0xff] %v4347_v56  ;;  %5900 = vst [vmem:[#allocation55_spill] sm:$0xff] %v4361_v62  ;;  %v4364_v45 = vadd.f32 %v4321_v13, %v1413_v43  ;;  %v4371_v6 = vadd.f32 %v4321_v13, %v1415_v35  ;;  %v4375_v40 = vadd.f32 %v4317_v54, %v4178_v18 }
 0x2d0   :  { %5899 = vst [vmem:[#allocation54_spill] sm:$0xff] %v4357_v61  ;;  %5902 = vst [vmem:[#allocation57_spill] sm:$0xff] %v4368_v32  ;;  %v4378_v53 = vadd.f32 %v4321_v13, %v1417_v42  ;;  %v4382_v41 = vadd.f32 %v4317_v54, %v4181_v3  ;;  %v4385_v43 = vadd.f32 %v4321_v13, %v1419_v21 }
 0x2d1   :  { %5901 = vst [vmem:[#allocation56_spill] sm:$0xff] %v4364_v45  ;;  %5903 = vst [vmem:[#allocation58_spill] sm:$0xff] %v4371_v6  ;;  %v4389_v29 = vadd.f32 %v4317_v54, %v4184_v33  ;;  %v4392_v35 = vadd.f32 %v4321_v13, %v1421_v19  ;;  %v4396_v18 = vadd.f32 %v4317_v54, %v4187_v8 }
 0x2d2   :  { %5904 = vst [vmem:[#allocation59_spill] sm:$0xff] %v4375_v40  ;;  %5905 = vst [vmem:[#allocation60_spill] sm:$0xff] %v4378_v53  ;;  %v4399_v42 = vadd.f32 %v4321_v13, %v1423_v0  ;;  %v4403_v3 = vadd.f32 %v4317_v54, %v4190_v26  ;;  %v4406_v21 = vadd.f32 %v4321_v13, %v1425_v2 }
 0x2d3   :  { %5906 = vst [vmem:[#allocation61_spill] sm:$0xff] %v4382_v41  ;;  %5907 = vst [vmem:[#allocation62_spill] sm:$0xff] %v4385_v43  ;;  %v4410_v33 = vadd.f32 %v4317_v54, %v4193_v39  ;;  %v4413_v19 = vadd.f32 %v4321_v13, %v1427_v36  ;;  %v4417_v8 = vadd.f32 %v4317_v54, %v4196_v16 }
 0x2d4   :  { %5908 = vst [vmem:[#allocation63_spill] sm:$0xff] %v4389_v29  ;;  %5909 = vst [vmem:[#allocation27_spill] sm:$0xff] %v4392_v35  ;;  %v4420_v0 = vadd.f32 %v4321_v13, %v1429_v12  ;;  %v4424_v26 = vadd.f32 %v4317_v54, %v4199_v30  ;;  %v4427_v2 = vadd.f32 %v4321_v13, %v1431_v59 }
 0x2d5   :  { %5910 = vst [vmem:[#allocation34_spill] sm:$0xff] %v4396_v18  ;;  %5911 = vst [vmem:[#allocation35_spill] sm:$0xff] %v4399_v42  ;;  %v4431_v39 = vadd.f32 %v4317_v54, %v4202_v49  ;;  %v4434_v36 = vadd.f32 %v4321_v13, %v1433_v9  ;;  %v4438_v16 = vadd.f32 %v4317_v54, %v4205_v34  ;;  %vm1746_vm13 = vcmp.ge.f32.partialorder %v4410_v33, 0.0 }
 0x2d6   :  { %5912 = vst [vmem:[#allocation36_spill] sm:$0xff] %v4403_v3  ;;  %5913 = vst [vmem:[#allocation28_spill] sm:$0xff] %v4406_v21  ;;  %v4441_v12 = vadd.f32 %v4321_v13, %v1435_v5  ;;  %v4445_v30 = vadd.f32 %v4317_v54, %v4208_v25  ;;  %v4448_v59 = vadd.f32 %v4321_v13, %v1437_v63  ;;  %vm1748_vm15 = vcmp.ge.f32.partialorder %v4424_v26, 0.0 }
 0x2d7   :  { %5914 = vst [vmem:[#allocation29_spill] sm:$0xff] %v4413_v19  ;;  %5915 = vst [vmem:[#allocation30_spill] sm:$0xff] %v4417_v8  ;;  %v4452_v49 = vadd.f32 %v4317_v54, %v4211_v20  ;;  %v4455_v9 = vadd.f32 %v4321_v13, %v1439_v38  ;;  %v4459_v34 = vadd.f32 %v4317_v54, %v4214_v51  ;;  %vm1750_vm1 = vcmp.ge.f32.partialorder %v4438_v16, 0.0 }
 0x2d8   :  { %5916 = vst [vmem:[#allocation31_spill] sm:$0xff] %v4420_v0  ;;  %5917 = vst [vmem:[#allocation32_spill] sm:$0xff] %v4427_v2  ;;  %v4462_v5 = vadd.f32 %v4321_v13, %v1441_v47  ;;  %v4466_v25 = vadd.f32 %v4317_v54, %v4217_v17  ;;  %v4469_v63 = vadd.f32 %v4321_v13, %v1443_v1 }
 0x2d9   :  { %5918 = vst [vmem:[#allocation33_spill] sm:$0xff] %v4431_v39  ;;  %5919 = vst [vmem:[#allocation64_spill] sm:$0xff] %v4434_v36  ;;  %v4473_v20 = vadd.f32 %v4317_v54, %v4235_v52  ;;  %v4476_v38 = vadd.f32 %v4321_v13, %v1445_v50  ;;  %v4480_v51 = vadd.f32 %v4317_v54, %v4238_v31 }
 0x2da   :  { %5920 = vst [vmem:[#allocation65_spill] sm:$0xff] %v4441_v12  ;;  %5921 = vst [vmem:[#allocation66_spill] sm:$0xff] %v4445_v30  ;;  %v4483_v47 = vadd.f32 %v4321_v13, %v1447_v58  ;;  %v4487_v17 = vadd.f32 %v4317_v54, %v4241_v57  ;;  %v4490_v1 = vadd.f32 %v4321_v13, %v1449_v55 }
 0x2db   :  { %5922 = vst [vmem:[#allocation67_spill] sm:$0xff] %v4448_v59  ;;  %5923 = vst [vmem:[#allocation68_spill] sm:$0xff] %v4452_v49  ;;  %v4494_v52 = vadd.f32 %v4317_v54, %v4244_v14  ;;  %v4497_v50 = vadd.f32 %v4321_v13, %v1451_v48  ;;  %v4501_v31 = vadd.f32 %v4317_v54, %v5937_v27 }
 0x2dc   :  { %5924 = vst [vmem:[#allocation69_spill] sm:$0xff] %v4455_v9  ;;  %5925 = vst [vmem:[#allocation70_spill] sm:$0xff] %v4459_v34  ;;  %v4504_v58 = vadd.f32 %v4321_v13, %v1453_v44  ;;  %v4508_v57 = vadd.f32 %v4317_v54, %v5940_v24  ;;  %v4511_v55 = vadd.f32 %v4321_v13, %v1455_v22  ;;  %v5951_v22 = vld [vmem:[#allocation50_spill] sm:$0xff] }
 0x2dd   :  { %5926 = vst [vmem:[#allocation71_spill] sm:$0xff] %v4462_v5  ;;  %5927 = vst [vmem:[#allocation72_spill] sm:$0xff] %v4466_v25  ;;  %v4515_v14 = vadd.f32 %v4317_v54, %v5943_v15  ;;  %v4518_v48 = vadd.f32 %v4321_v13, %v1457_v37  ;;  %v4522_v27 = vadd.f32 %v4317_v54, %v5946_v11  ;;  %v5953_v15 = vld [vmem:[#allocation42_spill] sm:$0xff]  ;;  %v5955_v37 = vld [vmem:[#allocation45_spill] sm:$0xff] }
 0x2de   :  { %5928 = vst [vmem:[#allocation73_spill] sm:$0xff] %v4469_v63  ;;  %5929 = vst [vmem:[#allocation74_spill] sm:$0xff] %v4473_v20  ;;  %v4525_v44 = vadd.f32 %v4321_v13, %v1459_v4  ;;  %v5957_v11 = vld [vmem:[#allocation44_spill] sm:$0xff]  ;;  %v1550_v63 = vand.u32 2147483647, %v4382_v41 }
 0x2df   :  { %5930 = vst [vmem:[#allocation75_spill] sm:$0xff] %v4476_v38  ;;  %5931 = vst [vmem:[#allocation76_spill] sm:$0xff] %v4480_v51  ;;  %v4545_v4 = vadd.f32 %v4317_v54, %v5957_v11  ;;  %v1546_v11 = vand.u32 2147483647, %v4354_v46  ;;  %v1547_v38 = vand.u32 2147483647, %v4361_v62 }
 0x2e0   :  { %5932 = vst [vmem:[#allocation77_spill] sm:$0xff] %v4483_v47  ;;  %5933 = vst [vmem:[#allocation78_spill] sm:$0xff] %v4487_v17  ;;  %v1543_v47 = vand.u32 2147483647, %v4333_v10  ;;  %v1554_v46 = vand.u32 2147483647, %v4410_v33 }
 0x2e1   :  { %5934 = vst [vmem:[#allocation79_spill] sm:$0xff] %v4490_v1  ;;  %5935 = vst [vmem:[#allocation80_spill] sm:$0xff] %v4494_v52  ;;  %v5961_v1 = vld [vmem:[#allocation38_spill] sm:$0xff]  ;;  %v1579_v10 = vsub.f32 0.0, %v1547_v38  ;;  %v1559_v38 = vand.u32 2147483647, %v4445_v30 }
 0x2e2   :  { %5936 = vst [vmem:[#allocation81_spill] sm:$0xff] %v4497_v50  ;;  %5938 = vst [vmem:[#allocation46_spill] sm:$0xff] %v4501_v31  ;;  %v4537_v50 = vadd.f32 %v4317_v54, %v5953_v15 }
 0x2e3   :  { %5939 = vst [vmem:[#allocation82_spill] sm:$0xff] %v4504_v58  ;;  %5941 = vst [vmem:[#allocation48_spill] sm:$0xff] %v4508_v57  ;;  %v5949_v58 = vld [vmem:[#allocation41_spill] sm:$0xff] }
 0x2e4   :  { %5942 = vst [vmem:[#allocation83_spill] sm:$0xff] %v4511_v55  ;;  %5944 = vst [vmem:[#allocation39_spill] sm:$0xff] %v4515_v14  ;;  %v4529_v24 = vadd.f32 %v4317_v54, %v5949_v58  ;;  %v4533_v55 = vadd.f32 %v4321_v13, %v5951_v22  ;;  %v4553_v22 = vadd.f32 %v4317_v54, %v5961_v1  ;;  %v1549_v54 = vand.u32 2147483647, %v4375_v40 }
 0x2e5   :  { %5945 = vst [vmem:[#allocation84_spill] sm:$0xff] %v4518_v48  ;;  %5947 = vst [vmem:[#allocation40_spill] sm:$0xff] %v4522_v27  ;;  %v4541_v48 = vadd.f32 %v4321_v13, %v5955_v37  ;;  %v1544_v37 = vand.u32 2147483647, %v4340_v7  ;;  %v1553_v7 = vand.u32 2147483647, %v4403_v3 }
 0x2e6   :  { %5948 = vst [vmem:[#allocation85_spill] sm:$0xff] %v4525_v44  ;;  %5950 = vst [vmem:[#allocation41_spill] sm:$0xff] %v4529_v24  ;;  %v5959_v44 = vld [vmem:[#allocation43_spill] sm:$0xff]  ;;  %v1581_v40 = vsub.f32 0.0, %v1549_v54 }
 0x2e7   :  { %5952 = vst [vmem:[#allocation50_spill] sm:$0xff] %v4533_v55  ;;  %5954 = vst [vmem:[#allocation42_spill] sm:$0xff] %v4537_v50  ;;  %v4549_v58 = vadd.f32 %v4321_v13, %v5959_v44  ;;  %v5963_v55 = vld [vmem:[#allocation47_spill] sm:$0xff]  ;;  %v1575_v44 = vsub.f32 0.0, %v1543_v47  ;;  %v1576_v1 = vsub.f32 0.0, %v1544_v37 }
 0x2e8   :  { %5956 = vst [vmem:[#allocation45_spill] sm:$0xff] %v4541_v48  ;;  %5958 = vst [vmem:[#allocation44_spill] sm:$0xff] %v4545_v4  ;;  %v4557_v15 = vadd.f32 %v4321_v13, %v5963_v55  ;;  %v1545_v48 = vand.u32 2147483647, %v4347_v56  ;;  %v1551_v13 = vand.u32 2147483647, %v4389_v29 }
 0x2e9   :  { %5960 = vst [vmem:[#allocation43_spill] sm:$0xff] %v4549_v58  ;;  %5962 = vst [vmem:[#allocation38_spill] sm:$0xff] %v4553_v22  ;;  %v1548_v58 = vand.u32 2147483647, %v4368_v32  ;;  %v1578_v56 = vsub.f32 0.0, %v1546_v11 }
 0x2ea   :  { %5964 = vst [vmem:[#allocation47_spill] sm:$0xff] %v4557_v15  ;;  %v1577_v55 = vsub.f32 0.0, %v1545_v48  ;;  %v1552_v15 = vand.u32 2147483647, %v4396_v18  ;;  %v1607_v62 = vmul.f32 1.442695, %v1575_v44 }
 0x2eb   :  { %v1555_v47 = vand.u32 2147483647, %v4417_v8  ;;  %v1580_v32 = vsub.f32 0.0, %v1548_v58  ;;  %v1609_v5 = vmul.f32 1.442695, %v1576_v1  ;;  %v1582_v48 = vsub.f32 0.0, %v1550_v63 }
 0x2ec   :  { %v1556_v37 = vand.u32 2147483647, %v4424_v26  ;;  %v1611_v41 = vmul.f32 1.442695, %v1577_v55  ;;  %v1557_v29 = vand.u32 2147483647, %v4431_v39  ;;  %2643 = vpow2.f32 %v1607_v62 }
 0x2ed   :  { %v1613_v9 = vmul.f32 1.442695, %v1578_v56  ;;  %v1558_v18 = vand.u32 2147483647, %v4438_v16  ;;  %v1583_v3 = vsub.f32 0.0, %v1551_v13  ;;  %v1584_v44 = vsub.f32 0.0, %v1552_v15 }
 0x2ee   :  { %v1615_v11 = vmul.f32 1.442695, %v1579_v10  ;;  %2645 = vpow2.f32 %v1609_v5  ;;  %v1617_v8 = vmul.f32 1.442695, %v1580_v32  ;;  %v1560_v58 = vand.u32 2147483647, %v4452_v49 }
 0x2ef   :  { %v1585_v1 = vsub.f32 0.0, %v1553_v7  ;;  %2647 = vpow2.f32 %v1611_v41  ;;  %v1619_v54 = vmul.f32 1.442695, %v1581_v40  ;;  %v1561_v55 = vand.u32 2147483647, %v4459_v34  ;;  %v5999_v34 = vld [vmem:[#allocation51_spill] sm:$0xff] }
 0x2f0   :  { %v1586_v39 = vsub.f32 0.0, %v1554_v46  ;;  %2649 = vpow2.f32 %v1613_v9  ;;  %v1621_v56 = vmul.f32 1.442695, %v1582_v48  ;;  %v1562_v63 = vand.u32 2147483647, %v4466_v25 }
 0x2f1   :  { %v1587_v13 = vsub.f32 0.0, %v1555_v47  ;;  %2651 = vpow2.f32 %v1615_v11  ;;  %v1623_v10 = vmul.f32 1.442695, %v1583_v3  ;;  %v1563_v62 = vand.u32 2147483647, %v4473_v20 }
 0x2f2   :  { %v1588_v15 = vsub.f32 0.0, %v1556_v37  ;;  %2653 = vpow2.f32 %v1617_v8  ;;  %v1625_v32 = vmul.f32 1.442695, %v1584_v44  ;;  %v1564_v5 = vand.u32 2147483647, %v4480_v51 }
 0x2f3   :  { %v1589_v7 = vsub.f32 0.0, %v1557_v29  ;;  %2655 = vpow2.f32 %v1619_v54  ;;  %v1627_v40 = vmul.f32 1.442695, %v1585_v1  ;;  %v1565_v41 = vand.u32 2147483647, %v4487_v17 }
 0x2f4   :  { %v1590_v46 = vsub.f32 0.0, %v1558_v18  ;;  %2657 = vpow2.f32 %v1621_v56  ;;  %v1629_v9 = vmul.f32 1.442695, %v1586_v39  ;;  %v1566_v48 = vand.u32 2147483647, %v4494_v52 }
 0x2f5   :  { %v1591_v47 = vsub.f32 0.0, %v1559_v38  ;;  %2659 = vpow2.f32 %v1623_v10  ;;  %v1631_v3 = vmul.f32 1.442695, %v1587_v13  ;;  %v1567_v11 = vand.u32 2147483647, %v4501_v31 }
 0x2f6   :  { %v1592_v37 = vsub.f32 0.0, %v1560_v58  ;;  %2661 = vpow2.f32 %v1625_v32  ;;  %v1633_v8 = vmul.f32 1.442695, %v1588_v15  ;;  %v4584_v44 = vpop.eup %2643  ;;  %v1568_v29 = vand.u32 2147483647, %v4508_v57 }
 0x2f7   :  { %v1593_v1 = vsub.f32 0.0, %v1561_v55  ;;  %2663 = vpow2.f32 %v1627_v40  ;;  %v1635_v54 = vmul.f32 1.442695, %v1589_v7  ;;  %v1569_v39 = vand.u32 2147483647, %v4515_v14 }
 0x2f8   :  { %v4587_v18 = vpop.eup %2645  ;;  %v1594_v56 = vsub.f32 0.0, %v1562_v63  ;;  %2665 = vpow2.f32 %v1629_v9  ;;  %v1637_v38 = vmul.f32 1.442695, %v1590_v46  ;;  %v1570_v58 = vand.u32 2147483647, %v4522_v27 }
 0x2f9   :  { %v4590_v13 = vpop.eup %2647  ;;  %v1595_v10 = vsub.f32 0.0, %v1563_v62  ;;  %2667 = vpow2.f32 %v1631_v3  ;;  %v1639_v15 = vmul.f32 1.442695, %v1591_v47  ;;  %v1571_v55 = vand.u32 2147483647, %v4529_v24 }
 0x2fa   :  { %v4593_v32 = vpop.eup %2649  ;;  %v1596_v40 = vsub.f32 0.0, %v1564_v5  ;;  %2669 = vpow2.f32 %v1633_v8  ;;  %v1641_v7 = vmul.f32 1.442695, %v1592_v37  ;;  %v1572_v63 = vand.u32 2147483647, %v4537_v50 }
 0x2fb   :  { %v4596_v57 = vpop.eup %2651  ;;  %v1597_v9 = vsub.f32 0.0, %v1565_v41  ;;  %2671 = vpow2.f32 %v1635_v54  ;;  %v1643_v46 = vmul.f32 1.442695, %v1593_v1  ;;  %v1573_v62 = vand.u32 2147483647, %v4545_v4 }
 0x2fc   :  { %v4599_v14 = vpop.eup %2653  ;;  %v1598_v3 = vsub.f32 0.0, %v1566_v48  ;;  %2673 = vpow2.f32 %v1637_v38  ;;  %v1645_v47 = vmul.f32 1.442695, %v1594_v56  ;;  %v1574_v5 = vand.u32 2147483647, %v4553_v22 }
 0x2fd   :  { %v4602_v27 = vpop.eup %2655  ;;  %v1599_v8 = vsub.f32 0.0, %v1567_v11  ;;  %2675 = vpow2.f32 %v1639_v15  ;;  %v1647_v37 = vmul.f32 1.442695, %v1595_v10  ;;  %v1600_v50 = vsub.f32 0.0, %v1568_v29 }
 0x2fe   :  { %v4605_v24 = vpop.eup %2657  ;;  %2677 = vpow2.f32 %v1641_v7  ;;  %v1649_v41 = vmul.f32 1.442695, %v1596_v40  ;;  %v1601_v54 = vsub.f32 0.0, %v1569_v39  ;;  %v1602_v31 = vsub.f32 0.0, %v1570_v58 }
 0x2ff   :  { %v4607_v1 = vpop.eup %2659  ;;  %2679 = vpow2.f32 %v1643_v46  ;;  %v1651_v48 = vmul.f32 1.442695, %v1597_v9  ;;  %v1603_v56 = vsub.f32 0.0, %v1571_v55  ;;  %v1604_v4 = vsub.f32 0.0, %v1572_v63 }
 0x300   :  { %v4609_v38 = vpop.eup %2661  ;;  %2681 = vpow2.f32 %v1645_v47  ;;  %v1653_v22 = vmul.f32 1.442695, %v1598_v3  ;;  %v1605_v10 = vsub.f32 0.0, %v1573_v62  ;;  %v1606_v15 = vsub.f32 0.0, %v1574_v5 }
 0x301   :  { %v4611_v11 = vpop.eup %2663  ;;  %2683 = vpow2.f32 %v1647_v37  ;;  %v1655_v29 = vmul.f32 1.442695, %v1599_v8  ;;  %v1657_v40 = vmul.f32 1.442695, %v1600_v50  ;;  %v1659_v58 = vmul.f32 1.442695, %v1601_v54 }
 0x302   :  { %v4613_v7 = vpop.eup %2665  ;;  %2685 = vpow2.f32 %v1649_v41  ;;  %v1661_v55 = vmul.f32 1.442695, %v1602_v31  ;;  %v1663_v63 = vmul.f32 1.442695, %v1603_v56  ;;  %v1665_v62 = vmul.f32 1.442695, %v1604_v4 }
 0x303   :  { %5965 = vst [vmem:[#allocation86_spill] sm:$0xff] %v4613_v7  ;;  %v4615_v39 = vpop.eup %2667  ;;  %2687 = vpow2.f32 %v1651_v48  ;;  %v1667_v3 = vmul.f32 1.442695, %v1605_v10  ;;  %v1669_v47 = vmul.f32 1.442695, %v1606_v15  ;;  %v1671_v50 = vadd.f32 1.0, %v4584_v44 }
 0x304   :  { %5966 = vst [vmem:[#allocation87_spill] sm:$0xff] %v4615_v39  ;;  %v4617_v9 = vpop.eup %2669  ;;  %2689 = vpow2.f32 %v1653_v22  ;;  %v1672_v8 = vadd.f32 1.0, %v4587_v18  ;;  %v1673_v37 = vadd.f32 1.0, %v4590_v13  ;;  %v1674_v31 = vadd.f32 1.0, %v4593_v32 }
 0x305   :  { %5967 = vst [vmem:[#allocation88_spill] sm:$0xff] %v4617_v9  ;;  %v4619_v46 = vpop.eup %2671  ;;  %2691 = vpow2.f32 %v1655_v29  ;;  %v1675_v22 = vadd.f32 1.0, %v4596_v57  ;;  %v1676_v4 = vadd.f32 1.0, %v4599_v14  ;;  %v1677_v48 = vadd.f32 1.0, %v4602_v27 }
 0x306   :  { %5968 = vst [vmem:[#allocation89_spill] sm:$0xff] %v4619_v46  ;;  %v4621_v5 = vpop.eup %2673  ;;  %2693 = vpow2.f32 %v1657_v40  ;;  %v1678_v56 = vadd.f32 1.0, %v4605_v24  ;;  %v1679_v10 = vadd.f32 1.0, %v4607_v1  ;;  %v4639_v29 = vadd.f32 1.0, %v4609_v38 }
 0x307   :  { %5969 = vst [vmem:[#allocation90_spill] sm:$0xff] %v4621_v5  ;;  %v4626_v41 = vpop.eup %2675  ;;  %2695 = vpow2.f32 %v1659_v58  ;;  %v4642_v40 = vadd.f32 1.0, %v4611_v11  ;;  %v4645_v58 = vadd.f32 1.0, %v4613_v7  ;;  %v4653_v17 = vadd.f32 1.0, %v4617_v9 }
 0x308   :  { %5970 = vst [vmem:[#allocation91_spill] sm:$0xff] %v4626_v41  ;;  %v4631_v54 = vpop.eup %2677  ;;  %2697 = vpow2.f32 %v1661_v55  ;;  %v4650_v55 = vadd.f32 1.0, %v4615_v39  ;;  %v4659_v20 = vadd.f32 1.0, %v4619_v46  ;;  %vm1736_vm3 = vcmp.ge.f32.partialorder %v5999_v34, 0.0 }
 0x309   :  { %5971 = vst [vmem:[#allocation92_spill] sm:$0xff] %v4631_v54  ;;  %v4636_v15 = vpop.eup %2679  ;;  %2699 = vpow2.f32 %v1663_v63  ;;  %v6106_v26 = vmin.f32 %v4343_v60, 20.0 }
 0x30a   :  { %5972 = vst [vmem:[#allocation93_spill] sm:$0xff] %v4636_v15  ;;  %v4647_v52 = vpop.eup %2681  ;;  %2701 = vpow2.f32 %v1665_v62  ;;  %v4666_v62 = vadd.f32 1.0, %v4621_v5 }
 0x30b   :  { %5973 = vst [vmem:[#allocation94_spill] sm:$0xff] %v4647_v52  ;;  %v4656_v51 = vpop.eup %2683  ;;  %2703 = vpow2.f32 %v1667_v3  ;;  %v4673_v3 = vadd.f32 1.0, %v4626_v41  ;;  %v4687_v41 = vadd.f32 1.0, %v4636_v15 }
 0x30c   :  { %5974 = vst [vmem:[#allocation95_spill] sm:$0xff] %v4656_v51  ;;  %v4663_v49 = vpop.eup %2685  ;;  %2705 = vpow2.f32 %v1669_v47  ;;  %v4680_v47 = vadd.f32 1.0, %v4631_v54  ;;  %v4694_v54 = vadd.f32 1.0, %v4647_v52  ;;  %v4701_v15 = vadd.f32 1.0, %v4656_v51 }
 0x30d   :  { %5975 = vst [vmem:[#allocation96_spill] sm:$0xff] %v4663_v49  ;;  %v4670_v30 = vpop.eup %2687  ;;  %2707 = vrcp.f32 %v1671_v50  ;;  %v4708_v52 = vadd.f32 1.0, %v4663_v49 }
 0x30e   :  { %5976 = vst [vmem:[#allocation97_spill] sm:$0xff] %v4670_v30  ;;  %v4677_v46 = vpop.eup %2689  ;;  %2709 = vrcp.f32 %v1672_v8  ;;  %v4715_v51 = vadd.f32 1.0, %v4670_v30 }
 0x30f   :  { %5977 = vst [vmem:[#allocation98_spill] sm:$0xff] %v4677_v46  ;;  %v4684_v5 = vpop.eup %2691  ;;  %2711 = vrcp.f32 %v1673_v37  ;;  %5982 = vst [vmem:[#allocation103_spill] sm:$0xff] %v4708_v52  ;;  %v4722_v49 = vadd.f32 1.0, %v4677_v46  ;;  %v6003_v52 = vld [vmem:[#allocation49_spill] sm:$0xff]  ;;  %v6017_v37 = vmin.f32 %v4343_v60, 20.0 }
 0x310   :  { %5978 = vst [vmem:[#allocation99_spill] sm:$0xff] %v4684_v5  ;;  %v4691_v25 = vpop.eup %2693  ;;  %2713 = vrcp.f32 %v1674_v31  ;;  %5984 = vst [vmem:[#allocation105_spill] sm:$0xff] %v4715_v51  ;;  %v4729_v30 = vadd.f32 1.0, %v4684_v5  ;;  %vm1737_vm4 = vcmp.ge.f32.partialorder %v6003_v52, 0.0  ;;  %v6007_v51 = vld [vmem:[#allocation52_spill] sm:$0xff] }
 0x311   :  { %5979 = vst [vmem:[#allocation100_spill] sm:$0xff] %v4691_v25  ;;  %v4698_v9 = vpop.eup %2695  ;;  %2715 = vrcp.f32 %v1675_v22  ;;  %v5985_v22 = vld [vmem:[#allocation69_spill] sm:$0xff]  ;;  %v4736_v46 = vadd.f32 1.0, %v4691_v25  ;;  %vm1738_vm5 = vcmp.ge.f32.partialorder %v6007_v51, 0.0 }
 0x312   :  { %5980 = vst [vmem:[#allocation101_spill] sm:$0xff] %v4698_v9  ;;  %v4705_v50 = vpop.eup %2697  ;;  %2717 = vrcp.f32 %v1676_v4  ;;  %v4742_v5 = vadd.f32 1.0, %v4698_v9  ;;  %v6011_v9 = vld [vmem:[#allocation55_spill] sm:$0xff] }
 0x313   :  { %5981 = vst [vmem:[#allocation102_spill] sm:$0xff] %v4705_v50  ;;  %v4712_v8 = vpop.eup %2699  ;;  %2719 = vrcp.f32 %v1677_v48  ;;  %5994 = vst [vmem:[#allocation109_spill] sm:$0xff] %v4736_v46  ;;  %vm1739_vm6 = vcmp.ge.f32.partialorder %v6011_v9, 0.0  ;;  %v6021_v48 = vmin.f32 %v4357_v61, 20.0  ;;  %v6059_v9 = vmin.f32 %v4441_v12, 20.0 }
 0x314   :  { %5983 = vst [vmem:[#allocation104_spill] sm:$0xff] %v4712_v8  ;;  %v4719_v7 = vpop.eup %2701  ;;  %2721 = vrcp.f32 %v1678_v56  ;;  %5997 = vst [vmem:[#allocation110_spill] sm:$0xff] %v4742_v5  ;;  %v4757_v5 = vadd.f32 1.0, %v4712_v8 }
 0x315   :  { %5987 = vst [vmem:[#allocation106_spill] sm:$0xff] %v4719_v7  ;;  %v4726_v59 = vpop.eup %2703  ;;  %2723 = vrcp.f32 %v1679_v10  ;;  %v5998_v10 = vld [vmem:[#allocation53_spill] sm:$0xff] }
 0x316   :  { %5990 = vst [vmem:[#allocation107_spill] sm:$0xff] %v4726_v59  ;;  %v4733_v39 = vpop.eup %2705  ;;  %2725 = vrcp.f32 %v4639_v29  ;;  %vm1735_vm2 = vcmp.ge.f32.partialorder %v5998_v10, 0.0  ;;  %v4750_v29 = vadd.f32 1.0, %v4705_v50  ;;  %6006 = vst [vmem:[#allocation51_spill] sm:$0xff] %v4757_v5  ;;  %v4775_v25 = vadd.f32 1.0, %v4726_v59 }
 0x317   :  { %5993 = vst [vmem:[#allocation108_spill] sm:$0xff] %v4733_v39  ;;  %v2708_v4 = vpop.eup %2707  ;;  %2727 = vrcp.f32 %v4642_v40  ;;  %v6012_v40 = vld [vmem:[#allocation57_spill] sm:$0xff] }
 0x318   :  { %v2710_v46 = vpop.eup %2709  ;;  %6002 = vst [vmem:[#allocation53_spill] sm:$0xff] %v4750_v29  ;;  %2729 = vrcp.f32 %v4645_v58  ;;  %v4764_v58 = vadd.f32 1.0, %v4719_v7  ;;  %vm1740_vm7 = vcmp.ge.f32.partialorder %v6012_v40, 0.0  ;;  %6016 = vst [vmem:[#allocation55_spill] sm:$0xff] %v4775_v25  ;;  %v4779_v7 = vmax.f32 %v6017_v37, 0.0 }
 0x319   :  { %v2712_v56 = vpop.eup %2711  ;;  %2731 = vrcp.f32 %v4650_v55  ;;  %v6014_v55 = vmin.f32 %v4336_v28, 20.0  ;;  %v1767_v59 = vmul.f32 %v2708_v4, %v4584_v44  ;;  %v1768_v37 = vmul.f32 %v2710_v46, %v4587_v18 }
 0x31a   :  { %v2714_v29 = vpop.eup %2713  ;;  %6010 = vst [vmem:[#allocation49_spill] sm:$0xff] %v4764_v58  ;;  %2733 = vrcp.f32 %v4653_v17  ;;  %6018 = vst [vmem:[#allocation57_spill] sm:$0xff] %v4779_v7  ;;  %v6019_v17 = vmin.f32 %v4350_v23, 20.0  ;;  %v4787_v58 = vmax.f32 %v6021_v48, 0.0  ;;  %v1769_v48 = vmul.f32 %v2712_v56, %v4590_v13 }
 0x31b   :  { %v4772_v31 = vmax.f32 %v6014_v55, 0.0  ;;  %v2716_v5 = vpop.eup %2715  ;;  %v4790_v55 = vadd.f32 1.0, %v4733_v39  ;;  %2735 = vrcp.f32 %v4659_v20  ;;  %v6028_v39 = vmin.f32 %v4371_v6, 20.0  ;;  %v6094_v33 = vld [vmem:[#allocation110_spill] sm:$0xff] }
 0x31c   :  { %v4783_v50 = vmax.f32 %v6019_v17, 0.0  ;;  %6022 = vst [vmem:[#allocation112_spill] sm:$0xff] %v4787_v58  ;;  %v2718_v63 = vpop.eup %2717  ;;  %2737 = vrcp.f32 %v4666_v62  ;;  %v6025_v17 = vld [vmem:[#allocation61_spill] sm:$0xff]  ;;  %v6026_v58 = vmin.f32 %v4364_v45, 20.0  ;;  %v1770_v44 = vmul.f32 %v2714_v29, %v4593_v32 }
 0x31d   :  { %6015 = vst [vmem:[#allocation52_spill] sm:$0xff] %v4772_v31  ;;  %6023 = vst [vmem:[#allocation113_spill] sm:$0xff] %v4790_v55  ;;  %v6024_v31 = vld [vmem:[#allocation59_spill] sm:$0xff]  ;;  %v2720_v7 = vpop.eup %2719  ;;  %vm1742_vm9 = vcmp.ge.f32.partialorder %v6025_v17, 0.0  ;;  %v4805_v20 = vmax.f32 %v6028_v39, 0.0  ;;  %v6031_v18 = vmin.f32 %v4378_v53, 20.0  ;;  %2739 = vrcp.f32 %v4673_v3 }
 0x31e   :  { %6020 = vst [vmem:[#allocation111_spill] sm:$0xff] %v4783_v50  ;;  %vm1741_vm8 = vcmp.ge.f32.partialorder %v6024_v31, 0.0  ;;  %v4801_v50 = vmax.f32 %v6026_v58, 0.0  ;;  %v2722_v8 = vpop.eup %2721  ;;  %v6030_v55 = vld [vmem:[#allocation63_spill] sm:$0xff]  ;;  %v6033_v25 = vmin.f32 %v4385_v43, 20.0  ;;  %v6035_v58 = vmin.f32 %v4392_v35, 20.0 }
 0x31f   :  { %6029 = vst [vmem:[#allocation61_spill] sm:$0xff] %v4805_v20  ;;  %vm1743_vm10 = vcmp.ge.f32.partialorder %v6030_v55, 0.0  ;;  %v4811_v62 = vmax.f32 %v6031_v18, 0.0  ;;  %v2724_v6 = vpop.eup %2723  ;;  %v6037_v39 = vld [vmem:[#allocation34_spill] sm:$0xff]  ;;  %v6038_v20 = vld [vmem:[#allocation36_spill] sm:$0xff]  ;;  %v1771_v32 = vmul.f32 %v2716_v5, %v4596_v57  ;;  %v1772_v18 = vmul.f32 %v2718_v63, %v4599_v14  ;;  %v6083_v55 = vld [vmem:[#allocation89_spill] sm:$0xff] }
 0x320   :  { %6027 = vst [vmem:[#allocation59_spill] sm:$0xff] %v4801_v50  ;;  %v4815_v13 = vmax.f32 %v6033_v25, 0.0  ;;  %v4819_v50 = vmax.f32 %v6035_v58, 0.0  ;;  %vm1744_vm11 = vcmp.ge.f32.partialorder %v6037_v39, 0.0  ;;  %vm1745_vm12 = vcmp.ge.f32.partialorder %v6038_v20, 0.0  ;;  %v2726_v25 = vpop.eup %2725  ;;  %v6085_v39 = vld [vmem:[#allocation75_spill] sm:$0xff] }
 0x321   :  { %6032 = vst [vmem:[#allocation63_spill] sm:$0xff] %v4811_v62  ;;  %v6039_v62 = vmin.f32 %v4399_v42, 20.0  ;;  %v4833_v58 = vsel %vm1735_vm2, %v2708_v4, %v1767_v59  ;;  %v4837_v3 = vsel %vm1736_vm3, %v2710_v46, %v1768_v37  ;;  %v6045_v14 = vmin.f32 %v4413_v19, 20.0  ;;  %v6088_v20 = vld [vmem:[#allocation109_spill] sm:$0xff] }
 0x322   :  { %6034 = vst [vmem:[#allocation114_spill] sm:$0xff] %v4815_v13  ;;  %6036 = vst [vmem:[#allocation115_spill] sm:$0xff] %v4819_v50  ;;  %v6043_v50 = vmin.f32 %v4406_v21, 20.0  ;;  %2741 = vrcp.f32 %v4680_v47  ;;  %v1773_v59 = vmul.f32 %v2720_v7, %v4602_v27  ;;  %v4852_v34 = vsel %vm1737_vm4, %v2712_v56, %v1769_v48 }
 0x323   :  { %v4828_v43 = vmax.f32 %v6039_v62, 0.0  ;;  %6041 = vst [vmem:[#allocation36_spill] sm:$0xff] %v4833_v58  ;;  %6042 = vst [vmem:[#allocation116_spill] sm:$0xff] %v4837_v3  ;;  %v4845_v13 = vmax.f32 %v6045_v14, 0.0  ;;  %v2728_v62 = vpop.eup %2727  ;;  %v6049_v46 = vmin.f32 %v4420_v0, 20.0  ;;  %2743 = vrcp.f32 %v4687_v41  ;;  %v6126_v3 = vld [vmem:[#allocation84_spill] sm:$0xff] }
 0x324   :  { %v4841_v57 = vmax.f32 %v6043_v50, 0.0  ;;  %v2730_v50 = vpop.eup %2729  ;;  %v1774_v10 = vmul.f32 %v2722_v8, %v4605_v24  ;;  %v4863_v47 = vsel %vm1738_vm5, %v2714_v29, %v1770_v44  ;;  %v6052_v27 = vmin.f32 %v4427_v2, 20.0  ;;  %v6058_v44 = vld [vmem:[#allocation33_spill] sm:$0xff] }
 0x325   :  { %6040 = vst [vmem:[#allocation34_spill] sm:$0xff] %v4828_v43  ;;  %6046 = vst [vmem:[#allocation118_spill] sm:$0xff] %v4845_v13  ;;  %v6047_v43 = vld [vmem:[#allocation30_spill] sm:$0xff]  ;;  %v4856_v4 = vmax.f32 %v6049_v46, 0.0  ;;  %v2732_v56 = vpop.eup %2731  ;;  %v1775_v37 = vmul.f32 %v2724_v6, %v4607_v1  ;;  %v4872_v48 = vsel %vm1739_vm6, %v2716_v5, %v1771_v32  ;;  %v4876_v41 = vsel %vm1740_vm7, %v2718_v63, %v1772_v18 }
 0x326   :  { %6044 = vst [vmem:[#allocation117_spill] sm:$0xff] %v4841_v57  ;;  %vm1747_vm14 = vcmp.ge.f32.partialorder %v6047_v43, 0.0  ;;  %6048 = vst [vmem:[#allocation30_spill] sm:$0xff] %v4852_v34  ;;  %v4867_v52 = vmax.f32 %v6052_v27, 0.0  ;;  %v6056_v24 = vmin.f32 %v4434_v36, 20.0  ;;  %v2734_v29 = vpop.eup %2733  ;;  %2745 = vrcp.f32 %v4694_v54  ;;  %v6061_v63 = vld [vmem:[#allocation86_spill] sm:$0xff] }
 0x327   :  { %6050 = vst [vmem:[#allocation119_spill] sm:$0xff] %v4856_v4  ;;  %6051 = vst [vmem:[#allocation120_spill] sm:$0xff] %v4863_v47  ;;  %vm1749_vm0 = vcmp.ge.f32.partialorder %v6058_v44, 0.0  ;;  %v1776_v14 = vmul.f32 %v2726_v25, %v4609_v38  ;;  %v1777_v1 = vmul.f32 %v2728_v62, %v4611_v11  ;;  %v4888_v5 = vmax.f32 %v6059_v9, 0.0  ;;  %v6063_v54 = vld [vmem:[#allocation67_spill] sm:$0xff]  ;;  %v2736_v38 = vpop.eup %2735  ;;  %v6100_v43 = vld [vmem:[#allocation81_spill] sm:$0xff] }
 0x328   :  { %6053 = vst [vmem:[#allocation121_spill] sm:$0xff] %v4867_v52  ;;  %6054 = vst [vmem:[#allocation122_spill] sm:$0xff] %v4872_v48  ;;  %v4880_v51 = vmax.f32 %v6056_v24, 0.0  ;;  %2747 = vrcp.f32 %v4701_v15  ;;  %v1778_v40 = vmul.f32 %v2730_v50, %v6061_v63  ;;  %v4895_v32 = vsel %vm1741_vm8, %v2720_v7, %v1773_v59  ;;  %v6066_v11 = vld [vmem:[#allocation103_spill] sm:$0xff]  ;;  %v2738_v31 = vpop.eup %2737  ;;  %v6071_v7 = vld [vmem:[#allocation105_spill] sm:$0xff] }
 0x329   :  { %6055 = vst [vmem:[#allocation123_spill] sm:$0xff] %v4876_v41  ;;  %6060 = vst [vmem:[#allocation33_spill] sm:$0xff] %v4888_v5  ;;  %v6064_v18 = vmin.f32 %v6063_v54, 20.0  ;;  %2749 = vrcp.f32 %v6066_v11  ;;  %v6067_v27 = vld [vmem:[#allocation87_spill] sm:$0xff]  ;;  %v4905_v15 = vsel %vm1742_vm9, %v2722_v8, %v1774_v10  ;;  %v6069_v9 = vmin.f32 %v5985_v22, 20.0  ;;  %v6072_v59 = vld [vmem:[#allocation66_spill] sm:$0xff] }
 0x32a   :  { %6057 = vst [vmem:[#allocation124_spill] sm:$0xff] %v4880_v51  ;;  %6062 = vst [vmem:[#allocation86_spill] sm:$0xff] %v4895_v32  ;;  %v1779_v24 = vmul.f32 %v2732_v56, %v6067_v27  ;;  %2751 = vrcp.f32 %v6071_v7  ;;  %vm1751_vm2 = vcmp.ge.f32.partialorder %v6072_v59, 0.0  ;;  %v4916_v11 = vsel %vm1743_vm10, %v2724_v6, %v1775_v37  ;;  %v6075_v27 = vld [vmem:[#allocation71_spill] sm:$0xff]  ;;  %v2740_v6 = vpop.eup %2739  ;;  %v6114_v47 = vld [vmem:[#allocation92_spill] sm:$0xff] }
 0x32b   :  { %v4899_v46 = vmax.f32 %v6064_v18, 0.0  ;;  %6068 = vst [vmem:[#allocation103_spill] sm:$0xff] %v4905_v15  ;;  %v4909_v63 = vmax.f32 %v6069_v9, 0.0  ;;  %v6073_v18 = vld [vmem:[#allocation88_spill] sm:$0xff]  ;;  %6074 = vst [vmem:[#allocation105_spill] sm:$0xff] %v4916_v11  ;;  %v6076_v41 = vmin.f32 %v6075_v27, 20.0  ;;  %2753 = vrcp.f32 %v4722_v49 }
 0x32c   :  { %v1780_v32 = vmul.f32 %v2734_v29, %v6073_v18  ;;  %v4925_v8 = vsel %vm1744_vm11, %v2726_v25, %v1776_v14  ;;  %v4929_v10 = vsel %vm1745_vm12, %v2728_v62, %v1777_v1  ;;  %v6080_v9 = vld [vmem:[#allocation73_spill] sm:$0xff]  ;;  %2755 = vrcp.f32 %v4729_v30  ;;  %v6089_v62 = vld [vmem:[#allocation90_spill] sm:$0xff]  ;;  %v6131_v59 = vld [vmem:[#allocation55_spill] sm:$0xff] }
 0x32d   :  { %6065 = vst [vmem:[#allocation125_spill] sm:$0xff] %v4899_v46  ;;  %6070 = vst [vmem:[#allocation87_spill] sm:$0xff] %v4909_v63  ;;  %v4920_v17 = vmax.f32 %v6076_v41, 0.0  ;;  %v6081_v7 = vmin.f32 %v6080_v9, 20.0  ;;  %v1781_v37 = vmul.f32 %v2736_v38, %v6083_v55  ;;  %v4939_v49 = vsel %vm1746_vm13, %v2730_v50, %v1778_v40  ;;  %v2742_v55 = vpop.eup %2741  ;;  %v6095_v50 = vld [vmem:[#allocation68_spill] sm:$0xff] }
 0x32e   :  { %6078 = vst [vmem:[#allocation88_spill] sm:$0xff] %v4925_v8  ;;  %6079 = vst [vmem:[#allocation126_spill] sm:$0xff] %v4929_v10  ;;  %v6086_v25 = vmin.f32 %v6085_v39, 20.0  ;;  %2757 = vrcp.f32 %v6088_v20  ;;  %v1782_v14 = vmul.f32 %v2738_v31, %v6089_v62  ;;  %v4949_v1 = vsel %vm1747_vm14, %v2732_v56, %v1779_v24 }
 0x32f   :  { %6077 = vst [vmem:[#allocation66_spill] sm:$0xff] %v4920_v17  ;;  %v4933_v18 = vmax.f32 %v6081_v7, 0.0  ;;  %6084 = vst [vmem:[#allocation89_spill] sm:$0xff] %v4939_v49  ;;  %v6091_v7 = vld [vmem:[#allocation77_spill] sm:$0xff]  ;;  %2759 = vrcp.f32 %v6094_v33  ;;  %vm1752_vm3 = vcmp.ge.f32.partialorder %v6095_v50, 0.0  ;;  %v4959_v40 = vsel %vm1748_vm15, %v2734_v29, %v1780_v32  ;;  %v6104_v49 = vld [vmem:[#allocation91_spill] sm:$0xff] }
 0x330   :  { %v4943_v41 = vmax.f32 %v6086_v25, 0.0  ;;  %6090 = vst [vmem:[#allocation109_spill] sm:$0xff] %v4949_v1  ;;  %v6092_v30 = vmin.f32 %v6091_v7, 20.0  ;;  %6096 = vst [vmem:[#allocation110_spill] sm:$0xff] %v4959_v40  ;;  %v6097_v25 = vld [vmem:[#allocation79_spill] sm:$0xff]  ;;  %v6101_v56 = vmin.f32 %v6100_v43, 20.0  ;;  %v4969_v1 = vpop.eup %2743  ;;  %v1783_v33 = vmul.f32 %v2740_v6, %v6104_v49 }
 0x331   :  { %6082 = vst [vmem:[#allocation127_spill] sm:$0xff] %v4933_v18  ;;  %v6098_v20 = vmin.f32 %v6097_v25, 20.0  ;;  %v6105_v8 = vmin.f32 %v4336_v28, 20.0  ;;  %v1896_v29 = vand.u32 2147483647, %v6106_v26  ;;  %v4979_v32 = vsel %vm1749_vm0, %v2736_v38, %v1781_v37 }
 0x332   :  { %6087 = vst [vmem:[#allocation128_spill] sm:$0xff] %v4943_v41  ;;  %v4953_v10 = vmax.f32 %v6092_v30, 0.0  ;;  %v4967_v24 = vmax.f32 %v6101_v56, 0.0  ;;  %v6103_v30 = vld [vmem:[#allocation53_spill] sm:$0xff]  ;;  %v6111_v15 = vmin.f32 %v4350_v23, 20.0  ;;  %v1784_v26 = vmul.f32 %v2742_v55, %v6114_v47  ;;  %v6122_v47 = vld [vmem:[#allocation58_spill] sm:$0xff] }
 0x333   :  { %v4963_v62 = vmax.f32 %v6098_v20, 0.0  ;;  %2761 = vrcp.f32 %v6103_v30  ;;  %v1895_v11 = vand.u32 2147483647, %v6105_v8  ;;  %6107 = vst [vmem:[#allocation53_spill] sm:$0xff] %v4979_v32  ;;  %v6108_v20 = vld [vmem:[#allocation82_spill] sm:$0xff]  ;;  %v6112_v30 = vmin.f32 %v4357_v61, 20.0 }
 0x334   :  { %6093 = vst [vmem:[#allocation90_spill] sm:$0xff] %v4953_v10  ;;  %6102 = vst [vmem:[#allocation129_spill] sm:$0xff] %v4967_v24  ;;  %v6109_v40 = vmin.f32 %v6108_v20, 20.0  ;;  %v1897_v48 = vand.u32 2147483647, %v6111_v15  ;;  %v4989_v24 = vpop.eup %2745  ;;  %v6113_v8 = vld [vmem:[#allocation51_spill] sm:$0xff]  ;;  %v4995_v44 = vsel %vm1750_vm1, %v2738_v31, %v1782_v14  ;;  %v5016_v14 = vsel %vm1751_vm2, %v2740_v6, %v1783_v33 }
 0x335   :  { %6099 = vst [vmem:[#allocation68_spill] sm:$0xff] %v4963_v62  ;;  %v1898_v49 = vand.u32 2147483647, %v6112_v30  ;;  %2763 = vrcp.f32 %v6113_v8  ;;  %6115 = vst [vmem:[#allocation51_spill] sm:$0xff] %v4995_v44  ;;  %v6116_v38 = vmin.f32 %v4364_v45, 20.0  ;;  %v6117_v32 = vld [vmem:[#allocation49_spill] sm:$0xff] }
 0x336   :  { %v4983_v56 = vmax.f32 %v6109_v40, 0.0  ;;  %v4999_v40 = vpop.eup %2747  ;;  %2765 = vrcp.f32 %v6117_v32  ;;  %v6118_v15 = vld [vmem:[#allocation93_spill] sm:$0xff]  ;;  %v6123_v34 = vmin.f32 %v6122_v47, 20.0  ;;  %6124 = vst [vmem:[#allocation49_spill] sm:$0xff] %v5016_v14  ;;  %v1927_v44 = vsub.f32 0.0, %v1895_v11  ;;  %v6171_v47 = vld [vmem:[#allocation80_spill] sm:$0xff] }
 0x337   :  { %v1899_v37 = vand.u32 2147483647, %v6116_v38  ;;  %v5004_v30 = vmul.f32 %v4969_v1, %v6118_v15  ;;  %v5012_v31 = vpop.eup %2749  ;;  %v6125_v38 = vmin.f32 %v4378_v53, 20.0  ;;  %v1928_v10 = vsub.f32 0.0, %v1896_v29  ;;  %v6172_v45 = vld [vmem:[#allocation95_spill] sm:$0xff]  ;;  %v6177_v61 = vld [vmem:[#allocation96_spill] sm:$0xff] }
 0x338   :  { %6110 = vst [vmem:[#allocation91_spill] sm:$0xff] %v4983_v56  ;;  %v6119_v56 = vld [vmem:[#allocation83_spill] sm:$0xff]  ;;  %v1900_v16 = vand.u32 2147483647, %v6123_v34  ;;  %v5020_v15 = vpop.eup %2751  ;;  %v6127_v41 = vmin.f32 %v6126_v3, 20.0  ;;  %v1929_v18 = vsub.f32 0.0, %v1897_v48  ;;  %2767 = vrcp.f32 %v6131_v59 }
 0x339   :  { %v6120_v62 = vmin.f32 %v6119_v56, 20.0  ;;  %v1901_v32 = vand.u32 2147483647, %v6125_v38  ;;  %v1930_v17 = vsub.f32 0.0, %v1898_v49  ;;  %v5028_v63 = vpop.eup %2753  ;;  %v6132_v6 = vmin.f32 %v4392_v35, 20.0 }
 0x33a   :  { %v6133_v11 = vmin.f32 %v4399_v42, 20.0  ;;  %v1931_v38 = vsub.f32 0.0, %v1899_v37  ;;  %v5035_v14 = vpop.eup %2755  ;;  %v6136_v49 = vmin.f32 %v4413_v19, 20.0  ;;  %v1932_v59 = vsub.f32 0.0, %v1900_v16 }
 0x33b   :  { %v5008_v8 = vmax.f32 %v6120_v62, 0.0  ;;  %v5024_v62 = vmax.f32 %v6127_v41, 0.0  ;;  %v1903_v33 = vand.u32 2147483647, %v6132_v6  ;;  %v6134_v41 = vld [vmem:[#allocation94_spill] sm:$0xff]  ;;  %v5045_v5 = vpop.eup %2757  ;;  %v5049_v6 = vsel %vm1752_vm3, %v2742_v55, %v1784_v26 }
 0x33c   :  { %v1904_v29 = vand.u32 2147483647, %v6133_v11  ;;  %v1906_v46 = vand.u32 2147483647, %v6136_v49  ;;  %6137 = vst [vmem:[#allocation55_spill] sm:$0xff] %v5049_v6  ;;  %v1933_v37 = vsub.f32 0.0, %v1901_v32  ;;  %v5051_v52 = vpop.eup %2759 }
 0x33d   :  { %6121 = vst [vmem:[#allocation92_spill] sm:$0xff] %v5008_v8  ;;  %6128 = vst [vmem:[#allocation93_spill] sm:$0xff] %v5024_v62  ;;  %v6129_v8 = vld [vmem:[#allocation62_spill] sm:$0xff]  ;;  %v5039_v62 = vmul.f32 %v4989_v24, %v6134_v41  ;;  %v1959_v11 = vmul.f32 1.442695, %v1927_v44  ;;  %v6138_v41 = vld [vmem:[#allocation113_spill] sm:$0xff]  ;;  %v5054_v57 = vpop.eup %2761 }
 0x33e   :  { %v6130_v58 = vmin.f32 %v6129_v8, 20.0  ;;  %v1961_v51 = vmul.f32 1.442695, %v1928_v10  ;;  %2769 = vrcp.f32 %v6138_v41  ;;  %v1963_v13 = vmul.f32 1.442695, %v1929_v18  ;;  %v6168_v8 = vld [vmem:[#allocation78_spill] sm:$0xff] }
 0x33f   :  { %v6139_v16 = vmin.f32 %v4420_v0, 20.0  ;;  %v1935_v19 = vsub.f32 0.0, %v1903_v33  ;;  %2771 = vpow2.f32 %v1959_v11  ;;  %v1967_v50 = vmul.f32 1.442695, %v1931_v38  ;;  %v5060_v32 = vpop.eup %2763 }
 0x340   :  { %v1902_v34 = vand.u32 2147483647, %v6130_v58  ;;  %v6135_v58 = vmin.f32 %v4406_v21, 20.0  ;;  %v6140_v55 = vmin.f32 %v4427_v2, 20.0  ;;  %v1936_v44 = vsub.f32 0.0, %v1904_v29  ;;  %v5064_v6 = vpop.eup %2765 }
 0x341   :  { %v1907_v49 = vand.u32 2147483647, %v6139_v16  ;;  %2773 = vpow2.f32 %v1961_v51  ;;  %v1969_v10 = vmul.f32 1.442695, %v1932_v59  ;;  %v1971_v41 = vmul.f32 1.442695, %v1933_v37 }
 0x342   :  { %v1905_v48 = vand.u32 2147483647, %v6135_v58  ;;  %v1934_v4 = vsub.f32 0.0, %v1902_v34  ;;  %v1965_v58 = vmul.f32 1.442695, %v1930_v17  ;;  %v6141_v34 = vmin.f32 %v4434_v36, 20.0  ;;  %v5072_v37 = vpop.eup %2767 }
 0x343   :  { %v1908_v26 = vand.u32 2147483647, %v6140_v55  ;;  %2775 = vpow2.f32 %v1963_v13  ;;  %v6142_v33 = vmin.f32 %v4441_v12, 20.0  ;;  %v1938_v38 = vsub.f32 0.0, %v1906_v46 }
 0x344   :  { %v1909_v18 = vand.u32 2147483647, %v6141_v34  ;;  %v1937_v17 = vsub.f32 0.0, %v1905_v48  ;;  %2777 = vpow2.f32 %v1965_v58  ;;  %v1973_v16 = vmul.f32 1.442695, %v1934_v4 }
 0x345   :  { %v1910_v11 = vand.u32 2147483647, %v6142_v33  ;;  %v6143_v29 = vmin.f32 %v6063_v54, 20.0  ;;  %v1939_v59 = vsub.f32 0.0, %v1907_v49  ;;  %2779 = vpow2.f32 %v1967_v50 }
 0x346   :  { %v1975_v55 = vmul.f32 1.442695, %v1935_v19  ;;  %v6144_v36 = vmin.f32 %v5985_v22, 20.0  ;;  %v1940_v48 = vsub.f32 0.0, %v1908_v26  ;;  %2781 = vpow2.f32 %v1969_v10 }
 0x347   :  { %v1911_v51 = vand.u32 2147483647, %v6143_v29  ;;  %v1977_v13 = vmul.f32 1.442695, %v1936_v44  ;;  %v6145_v12 = vmin.f32 %v6075_v27, 20.0  ;;  %v1941_v46 = vsub.f32 0.0, %v1909_v18 }
 0x348   :  { %v1912_v34 = vand.u32 2147483647, %v6144_v36  ;;  %2783 = vpow2.f32 %v1971_v41  ;;  %v1979_v4 = vmul.f32 1.442695, %v1937_v17  ;;  %v6146_v58 = vmin.f32 %v6080_v9, 20.0  ;;  %v5080_v10 = vpop.eup %2769 }
 0x349   :  { %v1913_v33 = vand.u32 2147483647, %v6145_v12  ;;  %v1942_v49 = vsub.f32 0.0, %v1910_v11  ;;  %2785 = vpow2.f32 %v1973_v16  ;;  %v1981_v19 = vmul.f32 1.442695, %v1938_v38  ;;  %v5084_v41 = vpop.eup %2771 }
 0x34a   :  { %v1914_v29 = vand.u32 2147483647, %v6146_v58  ;;  %v6147_v50 = vmin.f32 %v6085_v39, 20.0  ;;  %v1943_v26 = vsub.f32 0.0, %v1911_v51  ;;  %2787 = vpow2.f32 %v1975_v55 }
 0x34b   :  { %v1983_v44 = vmul.f32 1.442695, %v1939_v59  ;;  %v6148_v27 = vmin.f32 %v6091_v7, 20.0  ;;  %v1944_v18 = vsub.f32 0.0, %v1912_v34  ;;  %2789 = vpow2.f32 %v1977_v13 }
 0x34c   :  { %v1915_v36 = vand.u32 2147483647, %v6147_v50  ;;  %v1985_v17 = vmul.f32 1.442695, %v1940_v48  ;;  %v6149_v11 = vmin.f32 %v6097_v25, 20.0  ;;  %v1945_v38 = vsub.f32 0.0, %v1913_v33  ;;  %v5088_v50 = vpop.eup %2773 }
 0x34d   :  { %v1916_v12 = vand.u32 2147483647, %v6148_v27  ;;  %2791 = vpow2.f32 %v1979_v4  ;;  %v1987_v58 = vmul.f32 1.442695, %v1941_v46  ;;  %v6150_v51 = vmin.f32 %v6100_v43, 20.0  ;;  %v5092_v27 = vpop.eup %2775  ;;  %v6152_v33 = vld [vmem:[#allocation70_spill] sm:$0xff] }
 0x34e   :  { %v1917_v16 = vand.u32 2147483647, %v6149_v11  ;;  %v1946_v55 = vsub.f32 0.0, %v1914_v29  ;;  %2793 = vpow2.f32 %v1981_v19  ;;  %v1989_v7 = vmul.f32 1.442695, %v1942_v49  ;;  %v5096_v11 = vpop.eup %2777 }
 0x34f   :  { %v1918_v59 = vand.u32 2147483647, %v6150_v51  ;;  %v6151_v34 = vmin.f32 %v6108_v20, 20.0  ;;  %v1947_v13 = vsub.f32 0.0, %v1915_v36  ;;  %2795 = vpow2.f32 %v1983_v44  ;;  %v5101_v19 = vpop.eup %2779 }
 0x350   :  { %v1991_v25 = vmul.f32 1.442695, %v1943_v26  ;;  %vm1753_vm4 = vcmp.ge.f32.partialorder %v6152_v33, 0.0  ;;  %v6153_v46 = vmin.f32 %v6119_v56, 20.0  ;;  %v1948_v43 = vsub.f32 0.0, %v1916_v12  ;;  %v5105_v44 = vpop.eup %2781  ;;  %v6155_v26 = vld [vmem:[#allocation72_spill] sm:$0xff] }
 0x351   :  { %v1919_v48 = vand.u32 2147483647, %v6151_v34  ;;  %2797 = vpow2.f32 %v1985_v17  ;;  %v1993_v29 = vmul.f32 1.442695, %v1944_v18  ;;  %v6154_v49 = vmin.f32 %v6126_v3, 20.0  ;;  %v6156_v34 = vld [vmem:[#allocation85_spill] sm:$0xff] }
 0x352   :  { %v1920_v4 = vand.u32 2147483647, %v6153_v46  ;;  %v1949_v20 = vsub.f32 0.0, %v1917_v16  ;;  %2799 = vpow2.f32 %v1987_v58  ;;  %v1995_v36 = vmul.f32 1.442695, %v1945_v38  ;;  %v5110_v17 = vpop.eup %2783  ;;  %v6158_v18 = vld [vmem:[#allocation50_spill] sm:$0xff] }
 0x353   :  { %v1921_v51 = vand.u32 2147483647, %v6154_v49  ;;  %vm1754_vm5 = vcmp.ge.f32.partialorder %v6155_v26, 0.0  ;;  %v6157_v39 = vmin.f32 %v6156_v34, 20.0  ;;  %v1950_v56 = vsub.f32 0.0, %v1918_v59  ;;  %v5114_v58 = vpop.eup %2785  ;;  %v6160_v38 = vld [vmem:[#allocation45_spill] sm:$0xff] }
 0x354   :  { %2801 = vpow2.f32 %v1989_v7  ;;  %v1997_v12 = vmul.f32 1.442695, %v1946_v55  ;;  %v6159_v46 = vmin.f32 %v6158_v18, 20.0  ;;  %v1951_v3 = vsub.f32 0.0, %v1919_v48  ;;  %v6162_v7 = vld [vmem:[#allocation74_spill] sm:$0xff]  ;;  %v6163_v59 = vld [vmem:[#allocation43_spill] sm:$0xff] }
 0x355   :  { %v1922_v9 = vand.u32 2147483647, %v6157_v39  ;;  %2803 = vpow2.f32 %v1991_v25  ;;  %v1999_v16 = vmul.f32 1.442695, %v1947_v13  ;;  %v6161_v49 = vmin.f32 %v6160_v38, 20.0  ;;  %v5118_v39 = vpop.eup %2787  ;;  %v6165_v13 = vld [vmem:[#allocation76_spill] sm:$0xff] }
 0x356   :  { %v1923_v22 = vand.u32 2147483647, %v6159_v46  ;;  %v1952_v2 = vsub.f32 0.0, %v1920_v4  ;;  %2805 = vpow2.f32 %v1993_v29  ;;  %v2001_v0 = vmul.f32 1.442695, %v1948_v43  ;;  %v5123_v25 = vpop.eup %2789  ;;  %v6166_v46 = vld [vmem:[#allocation47_spill] sm:$0xff] }
 0x357   :  { %v1924_v54 = vand.u32 2147483647, %v6161_v49  ;;  %vm1755_vm6 = vcmp.ge.f32.partialorder %v6162_v7, 0.0  ;;  %v6164_v55 = vmin.f32 %v6163_v59, 20.0  ;;  %v1953_v42 = vsub.f32 0.0, %v1921_v51  ;;  %v5128_v29 = vpop.eup %2791  ;;  %v6179_v33 = vld [vmem:[#allocation48_spill] sm:$0xff] }
 0x358   :  { %2807 = vpow2.f32 %v1995_v36  ;;  %v2003_v48 = vmul.f32 1.442695, %v1949_v20  ;;  %vm1756_vm7 = vcmp.ge.f32.partialorder %v6165_v13, 0.0  ;;  %v6167_v35 = vmin.f32 %v6166_v46, 20.0  ;;  %v5135_v36 = vpop.eup %2793 }
 0x359   :  { %v1925_v21 = vand.u32 2147483647, %v6164_v55  ;;  %v1954_v4 = vsub.f32 0.0, %v1922_v9  ;;  %2809 = vpow2.f32 %v1997_v12  ;;  %v2005_v43 = vmul.f32 1.442695, %v1950_v56  ;;  %v5140_v12 = vpop.eup %2795 }
 0x35a   :  { %v1926_v49 = vand.u32 2147483647, %v6167_v35  ;;  %vm1757_vm8 = vcmp.ge.f32.partialorder %v6168_v8, 0.0  ;;  %v6169_v53 = vmin.f32 %v6156_v34, 20.0  ;;  %v1955_v51 = vsub.f32 0.0, %v1923_v22 }
 0x35b   :  { %2811 = vpow2.f32 %v1999_v16  ;;  %v2007_v20 = vmul.f32 1.442695, %v1951_v3  ;;  %vm1758_vm9 = vcmp.ge.f32.partialorder %v6171_v47, 0.0  ;;  %v1787_v35 = vmul.f32 %v4999_v40, %v6172_v45  ;;  %v5148_v16 = vpop.eup %2797  ;;  %v6200_v47 = vld [vmem:[#allocation107_spill] sm:$0xff] }
 0x35c   :  { %v5133_v55 = vmax.f32 %v6169_v53, 0.0  ;;  %v1956_v9 = vsub.f32 0.0, %v1924_v54  ;;  %2813 = vpow2.f32 %v2001_v0  ;;  %v2009_v56 = vmul.f32 1.442695, %v1952_v2  ;;  %v5154_v2 = vpop.eup %2799  ;;  %v6176_v54 = vld [vmem:[#allocation46_spill] sm:$0xff] }
 0x35d   :  { %v5146_v53 = vsel %vm1753_vm4, %v4969_v1, %v5004_v30  ;;  %v1957_v22 = vsub.f32 0.0, %v1925_v21  ;;  %2815 = vpow2.f32 %v2003_v48  ;;  %v2011_v3 = vmul.f32 1.442695, %v1953_v42  ;;  %v6180_v48 = vld [vmem:[#allocation39_spill] sm:$0xff] }
 0x35e   :  { %6170 = vst [vmem:[#allocation94_spill] sm:$0xff] %v5133_v55  ;;  %6173 = vst [vmem:[#allocation113_spill] sm:$0xff] %v5146_v53  ;;  %v6174_v55 = vmin.f32 %v6158_v18, 20.0  ;;  %v1958_v45 = vsub.f32 0.0, %v1926_v49  ;;  %2817 = vpow2.f32 %v2005_v43  ;;  %v2013_v0 = vmul.f32 1.442695, %v1954_v4  ;;  %v5165_v30 = vpop.eup %2801 }
 0x35f   :  { %vm1759_vm10 = vcmp.ge.f32.partialorder %v6176_v54, 0.0  ;;  %v1788_v1 = vmul.f32 %v5012_v31, %v6177_v61  ;;  %v5163_v42 = vsel %vm1754_vm5, %v4989_v24, %v5039_v62  ;;  %2819 = vpow2.f32 %v2007_v20  ;;  %v6181_v49 = vld [vmem:[#allocation97_spill] sm:$0xff]  ;;  %v5175_v26 = vpop.eup %2803  ;;  %v6184_v24 = vld [vmem:[#allocation40_spill] sm:$0xff] }
 0x360   :  { %v5152_v34 = vmax.f32 %v6174_v55, 0.0  ;;  %6178 = vst [vmem:[#allocation72_spill] sm:$0xff] %v5163_v42  ;;  %v2015_v21 = vmul.f32 1.442695, %v1955_v51  ;;  %vm1760_vm11 = vcmp.ge.f32.partialorder %v6179_v33, 0.0  ;;  %vm1761_vm12 = vcmp.ge.f32.partialorder %v6180_v48, 0.0 }
 0x361   :  { %v1789_v4 = vmul.f32 %v5020_v15, %v6181_v49  ;;  %v6182_v43 = vmin.f32 %v6160_v38, 20.0  ;;  %2821 = vpow2.f32 %v2009_v56  ;;  %v2017_v55 = vmul.f32 1.442695, %v1956_v9  ;;  %v6185_v62 = vld [vmem:[#allocation41_spill] sm:$0xff]  ;;  %v6186_v51 = vld [vmem:[#allocation98_spill] sm:$0xff]  ;;  %v6190_v9 = vld [vmem:[#allocation44_spill] sm:$0xff] }
 0x362   :  { %6175 = vst [vmem:[#allocation70_spill] sm:$0xff] %v5152_v34  ;;  %vm1762_vm13 = vcmp.ge.f32.partialorder %v6184_v24, 0.0  ;;  %vm1763_vm14 = vcmp.ge.f32.partialorder %v6185_v62, 0.0  ;;  %v1790_v20 = vmul.f32 %v5028_v63, %v6186_v51  ;;  %v6187_v42 = vmin.f32 %v6163_v59, 20.0  ;;  %v5185_v34 = vpop.eup %2805 }
 0x363   :  { %v5173_v61 = vmax.f32 %v6182_v43, 0.0  ;;  %2823 = vpow2.f32 %v2011_v3  ;;  %v2019_v49 = vmul.f32 1.442695, %v1957_v22  ;;  %v6189_v43 = vld [vmem:[#allocation42_spill] sm:$0xff]  ;;  %vm1765_vm0 = vcmp.ge.f32.partialorder %v6190_v9, 0.0  ;;  %v6194_v3 = vld [vmem:[#allocation99_spill] sm:$0xff] }
 0x364   :  { %v5183_v53 = vmax.f32 %v6187_v42, 0.0  ;;  %vm1764_vm15 = vcmp.ge.f32.partialorder %v6189_v43, 0.0  ;;  %v5192_v56 = vsel %vm1755_vm6, %v4999_v40, %v1787_v35  ;;  %2825 = vpow2.f32 %v2013_v0  ;;  %v6193_v22 = vld [vmem:[#allocation38_spill] sm:$0xff]  ;;  %v6195_v35 = vld [vmem:[#allocation100_spill] sm:$0xff] }
 0x365   :  { %6183 = vst [vmem:[#allocation50_spill] sm:$0xff] %v5173_v61  ;;  %6191 = vst [vmem:[#allocation76_spill] sm:$0xff] %v5192_v56  ;;  %v6192_v61 = vmin.f32 %v6166_v46, 20.0  ;;  %v2021_v42 = vmul.f32 1.442695, %v1958_v45  ;;  %vm1766_vm1 = vcmp.ge.f32.partialorder %v6193_v22, 0.0  ;;  %v1791_v59 = vmul.f32 %v5035_v14, %v6194_v3 }
 0x366   :  { %6188 = vst [vmem:[#allocation74_spill] sm:$0xff] %v5183_v53  ;;  %v5198_v53 = vpop.eup %2807  ;;  %v5206_v38 = vsel %vm1756_vm7, %v5012_v31, %v1788_v1  ;;  %2827 = vpow2.f32 %v2015_v21  ;;  %v2023_v40 = vadd.f32 1.0, %v5084_v41  ;;  %v1792_v0 = vmul.f32 %v5045_v5, %v6195_v35  ;;  %v6196_v56 = vld [vmem:[#allocation101_spill] sm:$0xff]  ;;  %v6197_v21 = vld [vmem:[#allocation102_spill] sm:$0xff] }
 0x367   :  { %v5196_v51 = vmax.f32 %v6192_v61, 0.0  ;;  %v2810_v7 = vpop.eup %2809  ;;  %v5214_v45 = vsel %vm1757_vm8, %v5020_v15, %v1789_v4  ;;  %2829 = vpow2.f32 %v2017_v55  ;;  %v2024_v61 = vadd.f32 1.0, %v5088_v50  ;;  %v6198_v15 = vld [vmem:[#allocation104_spill] sm:$0xff] }
 0x368   :  { %v2812_v3 = vpop.eup %2811  ;;  %v1793_v31 = vmul.f32 %v5051_v52, %v6196_v56  ;;  %v5222_v41 = vsel %vm1758_vm9, %v5028_v63, %v1790_v20  ;;  %2831 = vpow2.f32 %v2019_v49  ;;  %v2025_v13 = vadd.f32 1.0, %v5092_v27  ;;  %v6199_v56 = vld [vmem:[#allocation106_spill] sm:$0xff]  ;;  %v6201_v49 = vld [vmem:[#allocation108_spill] sm:$0xff] }
 0x369   :  { %v2814_v1 = vpop.eup %2813  ;;  %v1794_v8 = vmul.f32 %v5054_v57, %v6197_v21  ;;  %v1795_v4 = vmul.f32 %v5060_v32, %v6198_v15  ;;  %2833 = vpow2.f32 %v2021_v42  ;;  %v2026_v50 = vadd.f32 1.0, %v5096_v11 }
 0x36a   :  { %v2816_v55 = vpop.eup %2815  ;;  %v1796_v35 = vmul.f32 %v5064_v6, %v6199_v56  ;;  %v1797_v63 = vmul.f32 %v5072_v37, %v6200_v47  ;;  %v2027_v20 = vadd.f32 1.0, %v5101_v19  ;;  %2835 = vlog2.f32 %v2023_v40  ;;  %v6205_v47 = vld [vmem:[#allocation60_spill] sm:$0xff] }
 0x36b   :  { %v2818_v27 = vpop.eup %2817  ;;  %v1798_v21 = vmul.f32 %v5080_v10, %v6201_v49  ;;  %v5240_v42 = vsel %vm1759_vm10, %v5035_v14, %v1791_v59  ;;  %v2028_v11 = vadd.f32 1.0, %v5105_v44  ;;  %2837 = vlog2.f32 %v2024_v61  ;;  %v6206_v49 = vld [vmem:[#allocation52_spill] sm:$0xff] }
 0x36c   :  { %v2820_v15 = vpop.eup %2819  ;;  %v5246_v56 = vsel %vm1760_vm11, %v5045_v5, %v1792_v0  ;;  %v5251_v19 = vsel %vm1761_vm12, %v5051_v52, %v1793_v31  ;;  %v2029_v40 = vadd.f32 1.0, %v5110_v17  ;;  %2839 = vlog2.f32 %v2025_v13 }
 0x36d   :  { %v2822_v54 = vpop.eup %2821  ;;  %v5257_v14 = vsel %vm1762_vm13, %v5054_v57, %v1794_v8  ;;  %v5262_v44 = vsel %vm1763_vm14, %v5060_v32, %v1795_v4  ;;  %v2030_v5 = vadd.f32 1.0, %v5114_v58  ;;  %2841 = vlog2.f32 %v2026_v50  ;;  %v6204_v8 = vld [vmem:[#allocation58_spill] sm:$0xff] }
 0x36e   :  { %v2824_v59 = vpop.eup %2823  ;;  %v5268_v52 = vsel %vm1764_vm15, %v5064_v6, %v1796_v35  ;;  %v5273_v17 = vsel %vm1765_vm0, %v5072_v37, %v1797_v63  ;;  %v2031_v57 = vadd.f32 1.0, %v5118_v39  ;;  %2843 = vlog2.f32 %v2027_v20 }
 0x36f   :  { %v2826_v33 = vpop.eup %2825  ;;  %v5279_v32 = vsel %vm1766_vm1, %v5080_v10, %v1798_v21  ;;  %v2032_v58 = vadd.f32 1.0, %v5123_v25  ;;  %v2033_v48 = vadd.f32 1.0, %v5128_v29  ;;  %2845 = vlog2.f32 %v2028_v11  ;;  %v6207_v11 = vld [vmem:[#allocation62_spill] sm:$0xff] }
 0x370   :  { %v2828_v6 = vpop.eup %2827  ;;  %v2034_v24 = vadd.f32 1.0, %v5135_v36  ;;  %v2035_v37 = vadd.f32 1.0, %v5140_v12  ;;  %v2036_v62 = vadd.f32 1.0, %v5148_v16  ;;  %2847 = vlog2.f32 %v2029_v40 }
 0x371   :  { %vm2151_vm2 = vcmp.gt.f32.partialorder %v4336_v28, 20.0  ;;  %v2830_v39 = vpop.eup %2829  ;;  %v2037_v43 = vadd.f32 1.0, %v5154_v2  ;;  %v2038_v10 = vadd.f32 1.0, %v5165_v30  ;;  %v2039_v25 = vadd.f32 1.0, %v5175_v26  ;;  %v6202_v26 = vld [vmem:[#allocation54_spill] sm:$0xff] }
 0x372   :  { %2849 = vlog2.f32 %v2030_v5  ;;  %vm2152_vm3 = vcmp.gt.f32.partialorder %v4343_v60, 20.0  ;;  %v2832_v29 = vpop.eup %2831  ;;  %v2040_v36 = vadd.f32 1.0, %v5185_v34  ;;  %v2041_v12 = vadd.f32 1.0, %v5198_v53  ;;  %v6208_v5 = vld [vmem:[#allocation57_spill] sm:$0xff] }
 0x373   :  { %v5293_v9 = vadd.f32 1.0, %v2810_v7  ;;  %2851 = vlog2.f32 %v2031_v57  ;;  %vm2153_vm4 = vcmp.gt.f32.partialorder %v4350_v23, 20.0  ;;  %v2834_v16 = vpop.eup %2833  ;;  %v5296_v22 = vadd.f32 1.0, %v2812_v3  ;;  %v6203_v7 = vld [vmem:[#allocation56_spill] sm:$0xff]  ;;  %v6209_v57 = vld [vmem:[#allocation27_spill] sm:$0xff] }
 0x374   :  { %v5298_v2 = vadd.f32 1.0, %v2814_v1  ;;  %v5300_v30 = vadd.f32 1.0, %v2816_v55  ;;  %2853 = vlog2.f32 %v2032_v58  ;;  %vm2154_vm5 = vcmp.gt.f32.partialorder %v6202_v26, 20.0  ;;  %v2836_v0 = vpop.eup %2835 }
 0x375   :  { %v5303_v61 = vadd.f32 1.0, %v2818_v27  ;;  %v5305_v34 = vadd.f32 1.0, %v2820_v15  ;;  %v5307_v53 = vadd.f32 1.0, %v2822_v54  ;;  %2855 = vlog2.f32 %v2033_v48  ;;  %v2838_v31 = vpop.eup %2837  ;;  %v6210_v48 = vld [vmem:[#allocation111_spill] sm:$0xff] }
 0x376   :  { %vm2155_vm6 = vcmp.gt.f32.partialorder %v6203_v7, 20.0  ;;  %v5310_v3 = vadd.f32 1.0, %v2824_v59  ;;  %v5312_v13 = vadd.f32 1.0, %v2826_v33  ;;  %v2056_v1 = vmul.f32 0.6931472, %v2836_v0  ;;  %v2840_v4 = vpop.eup %2839 }
 0x377   :  { %2857 = vlog2.f32 %v2034_v24  ;;  %vm2156_vm7 = vcmp.gt.f32.partialorder %v6204_v8, 20.0  ;;  %v5315_v50 = vadd.f32 1.0, %v2828_v6  ;;  %v5317_v55 = vadd.f32 1.0, %v2830_v39  ;;  %v2842_v63 = vpop.eup %2841  ;;  %v6211_v24 = vld [vmem:[#allocation35_spill] sm:$0xff] }
 0x378   :  { %v2058_v35 = vmul.f32 0.6931472, %v2838_v31  ;;  %2859 = vlog2.f32 %v2035_v37  ;;  %vm2157_vm8 = vcmp.gt.f32.partialorder %v6205_v47, 20.0  ;;  %v5320_v20 = vadd.f32 1.0, %v2832_v29  ;;  %v2844_v15 = vpop.eup %2843 }
 0x379   :  { %v2060_v27 = vmul.f32 0.6931472, %v2840_v4  ;;  %2861 = vlog2.f32 %v2036_v62  ;;  %v2119_v21 = vadd.f32 %v2056_v1, %v6206_v49  ;;  %vm2158_vm9 = vcmp.gt.f32.partialorder %v6207_v11, 20.0  ;;  %v2846_v33 = vpop.eup %2845  ;;  %v6214_v1 = vld [vmem:[#allocation59_spill] sm:$0xff] }
 0x37a   :  { %v5324_v40 = vadd.f32 1.0, %v2834_v16  ;;  %v2062_v54 = vmul.f32 0.6931472, %v2842_v63  ;;  %2863 = vlog2.f32 %v2037_v43  ;;  %v2120_v59 = vadd.f32 %v2058_v35, %v6208_v5  ;;  %v2848_v62 = vpop.eup %2847  ;;  %v6212_v43 = vld [vmem:[#allocation112_spill] sm:$0xff]  ;;  %v6215_v35 = vld [vmem:[#allocation29_spill] sm:$0xff] }
 0x37b   :  { %vm2159_vm10 = vcmp.gt.f32.partialorder %v6209_v57, 20.0  ;;  %v2064_v58 = vmul.f32 0.6931472, %v2844_v15  ;;  %2865 = vlog2.f32 %v2038_v10  ;;  %v2121_v6 = vadd.f32 %v2060_v27, %v6210_v48  ;;  %v6213_v16 = vld [vmem:[#allocation28_spill] sm:$0xff]  ;;  %v6216_v27 = vld [vmem:[#allocation61_spill] sm:$0xff] }
 0x37c   :  { %vm2160_vm11 = vcmp.gt.f32.partialorder %v6211_v24, 20.0  ;;  %v5333_v37 = vsel %vm2151_vm2, %v4336_v28, %v2119_v21  ;;  %v2066_v39 = vmul.f32 0.6931472, %v2846_v33  ;;  %2867 = vlog2.f32 %v2039_v25  ;;  %v2850_v0 = vpop.eup %2849  ;;  %v6217_v21 = vld [vmem:[#allocation31_spill] sm:$0xff]  ;;  %v6221_v48 = vld [vmem:[#allocation64_spill] sm:$0xff] }
 0x37d   :  { %v2122_v29 = vadd.f32 %v2062_v54, %v6212_v43  ;;  %vm2161_vm12 = vcmp.gt.f32.partialorder %v6213_v16, 20.0  ;;  %v5340_v10 = vsel %vm2152_vm3, %v4343_v60, %v2120_v59  ;;  %v2068_v31 = vmul.f32 0.6931472, %v2848_v62  ;;  %v2852_v25 = vpop.eup %2851  ;;  %v6218_v54 = vld [vmem:[#allocation63_spill] sm:$0xff]  ;;  %v6223_v43 = vld [vmem:[#allocation65_spill] sm:$0xff] }
 0x37e   :  { %2869 = vlog2.f32 %v2040_v36  ;;  %v2123_v4 = vadd.f32 %v2064_v58, %v6214_v1  ;;  %vm2162_vm13 = vcmp.gt.f32.partialorder %v6215_v35, 20.0  ;;  %v5347_v28 = vsel %vm2153_vm4, %v4350_v23, %v2121_v6  ;;  %v2854_v36 = vpop.eup %2853  ;;  %v6219_v23 = vld [vmem:[#allocation32_spill] sm:$0xff]  ;;  %v6220_v58 = vld [vmem:[#allocation114_spill] sm:$0xff]  ;;  %v6225_v1 = vld [vmem:[#allocation67_spill] sm:$0xff] }
 0x37f   :  { %v2070_v63 = vmul.f32 0.6931472, %v2850_v0  ;;  %2871 = vlog2.f32 %v2041_v12  ;;  %v2124_v49 = vadd.f32 %v2066_v39, %v6216_v27  ;;  %vm2163_vm14 = vcmp.gt.f32.partialorder %v6217_v21, 20.0  ;;  %v2856_v59 = vpop.eup %2855  ;;  %v6222_v39 = vld [vmem:[#allocation115_spill] sm:$0xff]  ;;  %v6227_v27 = vld [vmem:[#allocation69_spill] sm:$0xff] }
 0x380   :  { %v5354_v60 = vsel %vm2154_vm5, %v6202_v26, %v2122_v29  ;;  %v2072_v15 = vmul.f32 0.6931472, %v2852_v25  ;;  %2873 = vlog2.f32 %v5293_v9  ;;  %v2125_v5 = vadd.f32 %v2068_v31, %v6218_v54  ;;  %v6224_v31 = vld [vmem:[#allocation34_spill] sm:$0xff]  ;;  %v6229_v54 = vld [vmem:[#allocation71_spill] sm:$0xff] }
 0x381   :  { %vm2164_vm15 = vcmp.gt.f32.partialorder %v6219_v23, 20.0  ;;  %v5362_v12 = vsel %vm2155_vm6, %v6203_v7, %v2123_v4  ;;  %v2074_v33 = vmul.f32 0.6931472, %v2854_v36  ;;  %2875 = vlog2.f32 %v5296_v22  ;;  %v2858_v6 = vpop.eup %2857 }
 0x382   :  { %v2126_v26 = vadd.f32 %v2070_v63, %v6220_v58  ;;  %vm2165_vm0 = vcmp.gt.f32.partialorder %v6221_v48, 20.0  ;;  %v5370_v9 = vsel %vm2156_vm7, %v6204_v8, %v2124_v49  ;;  %v2076_v62 = vmul.f32 0.6931472, %v2856_v59  ;;  %v2860_v29 = vpop.eup %2859  ;;  %v6226_v63 = vld [vmem:[#allocation117_spill] sm:$0xff] }
 0x383   :  { %2877 = vlog2.f32 %v5298_v2  ;;  %v2127_v7 = vadd.f32 %v2072_v15, %v6222_v39  ;;  %vm2166_vm1 = vcmp.gt.f32.partialorder %v6223_v43, 20.0  ;;  %v5378_v22 = vsel %vm2157_vm8, %v6205_v47, %v2125_v5  ;;  %v2862_v4 = vpop.eup %2861  ;;  %v6228_v15 = vld [vmem:[#allocation118_spill] sm:$0xff]  ;;  %v6231_v58 = vld [vmem:[#allocation73_spill] sm:$0xff]  ;;  %v6233_v39 = vld [vmem:[#allocation75_spill] sm:$0xff] }
 0x384   :  { %v2078_v0 = vmul.f32 0.6931472, %v2858_v6  ;;  %2879 = vlog2.f32 %v5300_v30  ;;  %v2128_v8 = vadd.f32 %v2074_v33, %v6224_v31  ;;  %vm2167_vm2 = vcmp.gt.f32.partialorder %v6225_v1, 20.0  ;;  %v2864_v49 = vpop.eup %2863  ;;  %v6230_v33 = vld [vmem:[#allocation119_spill] sm:$0xff]  ;;  %v6235_v31 = vld [vmem:[#allocation77_spill] sm:$0xff] }
 0x385   :  { %v5386_v2 = vsel %vm2158_vm9, %v6207_v11, %v2126_v26  ;;  %v2080_v25 = vmul.f32 0.6931472, %v2860_v29  ;;  %2881 = vlog2.f32 %v5303_v61  ;;  %v2129_v47 = vadd.f32 %v2076_v62, %v6226_v63  ;;  %v2866_v5 = vpop.eup %2865  ;;  %v6232_v62 = vld [vmem:[#allocation121_spill] sm:$0xff]  ;;  %v6237_v63 = vld [vmem:[#allocation79_spill] sm:$0xff] }
 0x386   :  { %vm2168_vm3 = vcmp.gt.f32.partialorder %v6227_v27, 20.0  ;;  %v5394_v30 = vsel %vm2159_vm10, %v6209_v57, %v2127_v7  ;;  %v2082_v36 = vmul.f32 0.6931472, %v2862_v4  ;;  %2883 = vlog2.f32 %v5305_v34  ;;  %v2868_v26 = vpop.eup %2867 }
 0x387   :  { %v2130_v11 = vadd.f32 %v2078_v0, %v6228_v15  ;;  %vm2169_vm4 = vcmp.gt.f32.partialorder %v6229_v54, 20.0  ;;  %v5402_v61 = vsel %vm2160_vm11, %v6211_v24, %v2128_v8  ;;  %v2084_v59 = vmul.f32 0.6931472, %v2864_v49  ;;  %v6234_v0 = vld [vmem:[#allocation124_spill] sm:$0xff]  ;;  %v6239_v15 = vld [vmem:[#allocation81_spill] sm:$0xff] }
 0x388   :  { %2885 = vlog2.f32 %v5307_v53  ;;  %v2131_v57 = vadd.f32 %v2080_v25, %v6230_v33  ;;  %vm2170_vm5 = vcmp.gt.f32.partialorder %v6231_v58, 20.0  ;;  %v5410_v34 = vsel %vm2161_vm12, %v6213_v16, %v2129_v47  ;;  %v2870_v7 = vpop.eup %2869  ;;  %v6236_v25 = vld [vmem:[#allocation33_spill] sm:$0xff]  ;;  %v6241_v33 = vld [vmem:[#allocation82_spill] sm:$0xff] }
 0x389   :  { %v2086_v6 = vmul.f32 0.6931472, %v2866_v5  ;;  %2887 = vlog2.f32 %v5310_v3  ;;  %v2132_v24 = vadd.f32 %v2082_v36, %v6232_v62  ;;  %vm2171_vm6 = vcmp.gt.f32.partialorder %v6233_v39, 20.0  ;;  %v2872_v8 = vpop.eup %2871  ;;  %v6238_v36 = vld [vmem:[#allocation125_spill] sm:$0xff]  ;;  %v6243_v62 = vld [vmem:[#allocation83_spill] sm:$0xff] }
 0x38a   :  { %v5418_v53 = vsel %vm2162_vm13, %v6215_v35, %v2130_v11  ;;  %v2088_v29 = vmul.f32 0.6931472, %v2868_v26  ;;  %2889 = vlog2.f32 %v5312_v13  ;;  %v2133_v16 = vadd.f32 %v2084_v59, %v6234_v0  ;;  %v2874_v47 = vpop.eup %2873  ;;  %v6240_v59 = vld [vmem:[#allocation87_spill] sm:$0xff] }
 0x38b   :  { %vm2172_vm7 = vcmp.gt.f32.partialorder %v6235_v31, 20.0  ;;  %v5426_v3 = vsel %vm2163_vm14, %v6217_v21, %v2131_v57  ;;  %v2090_v4 = vmul.f32 0.6931472, %v2870_v7  ;;  %2891 = vlog2.f32 %v5315_v50  ;;  %v2876_v11 = vpop.eup %2875 }
 0x38c   :  { %v2134_v35 = vadd.f32 %v2086_v6, %v6236_v25  ;;  %vm2173_vm8 = vcmp.gt.f32.partialorder %v6237_v63, 20.0  ;;  %v5434_v13 = vsel %vm2164_vm15, %v6219_v23, %v2132_v24  ;;  %v2092_v49 = vmul.f32 0.6931472, %v2872_v8  ;;  %v6242_v6 = vld [vmem:[#allocation66_spill] sm:$0xff] }
 0x38d   :  { %2893 = vlog2.f32 %v5317_v55  ;;  %v2135_v21 = vadd.f32 %v2088_v29, %v6238_v36  ;;  %vm2174_vm9 = vcmp.gt.f32.partialorder %v6239_v15, 20.0  ;;  %v5442_v50 = vsel %vm2165_vm0, %v6221_v48, %v2133_v16  ;;  %v2878_v57 = vpop.eup %2877  ;;  %v6244_v29 = vld [vmem:[#allocation127_spill] sm:$0xff]  ;;  %v6245_v16 = vld [vmem:[#allocation84_spill] sm:$0xff] }
 0x38e   :  { %v2094_v5 = vmul.f32 0.6931472, %v2874_v47  ;;  %2895 = vlog2.f32 %v5320_v20  ;;  %v2136_v23 = vadd.f32 %v2090_v4, %v6240_v59  ;;  %vm2175_vm10 = vcmp.gt.f32.partialorder %v6241_v33, 20.0  ;;  %v2880_v24 = vpop.eup %2879  ;;  %v6248_v47 = vld [vmem:[#allocation85_spill] sm:$0xff]  ;;  %v6249_v36 = vld [vmem:[#allocation116_spill] sm:$0xff] }
 0x38f   :  { %v5450_v55 = vsel %vm2166_vm1, %v6223_v43, %v2134_v35  ;;  %v2096_v26 = vmul.f32 0.6931472, %v2876_v11  ;;  %2897 = vlog2.f32 %v5324_v40  ;;  %v2137_v48 = vadd.f32 %v2092_v49, %v6242_v6  ;;  %v6246_v40 = vld [vmem:[#allocation36_spill] sm:$0xff]  ;;  %v2882_v4 = vpop.eup %2881 }
 0x390   :  { %vm2176_vm11 = vcmp.gt.f32.partialorder %v6243_v62, 20.0  ;;  %v5458_v20 = vsel %vm2167_vm2, %v6225_v1, %v2135_v21  ;;  %v2098_v7 = vmul.f32 0.6931472, %v2878_v57  ;;  %v2138_v0 = vadd.f32 %v2094_v5, %v6244_v29  ;;  %v6247_v35 = vld [vmem:[#allocation128_spill] sm:$0xff]  ;;  %v6250_v5 = vld [vmem:[#allocation90_spill] sm:$0xff] }
 0x391   :  { %vm2177_vm12 = vcmp.gt.f32.partialorder %v6245_v16, 20.0  ;;  %v5465_v43 = vsel %vm2168_vm3, %v6227_v27, %v2136_v23  ;;  %v5469_v8 = vmul.f32 %v5333_v37, %v6246_v40  ;;  %v2100_v25 = vmul.f32 0.6931472, %v2880_v24  ;;  %v2884_v27 = vpop.eup %2883  ;;  %v6251_v23 = vld [vmem:[#allocation30_spill] sm:$0xff]  ;;  %v6252_v6 = vld [vmem:[#allocation68_spill] sm:$0xff] }
 0x392   :  { %v2139_v1 = vadd.f32 %v2096_v26, %v6247_v35  ;;  %vm2178_vm13 = vcmp.gt.f32.partialorder %v6248_v47, 20.0  ;;  %v5476_v49 = vsel %vm2169_vm4, %v6229_v54, %v2137_v48  ;;  %v5480_v21 = vmul.f32 %v5340_v10, %v6249_v36  ;;  %v2886_v54 = vpop.eup %2885  ;;  %v6253_v10 = vld [vmem:[#allocation45_spill] sm:$0xff]  ;;  %v6257_v35 = vld [vmem:[#allocation122_spill] sm:$0xff] }
 0x393   :  { %v2102_v11 = vmul.f32 0.6931472, %v2882_v4  ;;  %v2140_v37 = vadd.f32 %v2098_v7, %v6250_v5  ;;  %vm2179_vm14 = vcmp.gt.f32.partialorder %v6158_v18, 20.0  ;;  %v2202_v59 = vsel %vm2170_vm5, %v6231_v58, %v2138_v0  ;;  %v6254_v7 = vld [vmem:[#allocation120_spill] sm:$0xff]  ;;  %v2888_v40 = vpop.eup %2887  ;;  %v6255_v0 = vld [vmem:[#allocation129_spill] sm:$0xff] }
 0x394   :  { %v5489_v57 = vmul.f32 %v5347_v28, %v6251_v23  ;;  %v2104_v26 = vmul.f32 0.6931472, %v2884_v27  ;;  %v2141_v48 = vadd.f32 %v2100_v25, %v6252_v6  ;;  %vm2180_vm15 = vcmp.gt.f32.partialorder %v6253_v10, 20.0  ;;  %v6256_v28 = vld [vmem:[#allocation43_spill] sm:$0xff]  ;;  %v2890_v27 = vpop.eup %2889 }
 0x395   :  { %v2203_v24 = vsel %vm2171_vm6, %v6233_v39, %v2139_v1  ;;  %v5498_v29 = vmul.f32 %v5354_v60, %v6254_v7  ;;  %v2106_v58 = vmul.f32 0.6931472, %v2886_v54  ;;  %v2142_v4 = vadd.f32 %v2102_v11, %v6255_v0  ;;  %v6258_v39 = vld [vmem:[#allocation91_spill] sm:$0xff]  ;;  %v2892_v54 = vpop.eup %2891  ;;  %v6260_v7 = vld [vmem:[#allocation92_spill] sm:$0xff] }
 0x396   :  { %vm2181_vm0 = vcmp.gt.f32.partialorder %v6256_v28, 20.0  ;;  %v2204_v25 = vsel %vm2172_vm7, %v6235_v31, %v2140_v37  ;;  %v2219_v36 = vmul.f32 %v5362_v12, %v6257_v35  ;;  %v2108_v5 = vmul.f32 0.6931472, %v2888_v40  ;;  %v6259_v11 = vld [vmem:[#allocation123_spill] sm:$0xff]  ;;  %v6261_v37 = vld [vmem:[#allocation86_spill] sm:$0xff]  ;;  %v6262_v35 = vld [vmem:[#allocation93_spill] sm:$0xff] }
 0x397   :  { %v2143_v1 = vadd.f32 %v2104_v26, %v6258_v39  ;;  %vm2182_vm1 = vcmp.gt.f32.partialorder %v6166_v46, 20.0  ;;  %v2205_v60 = vsel %vm2173_vm8, %v6237_v63, %v2141_v48  ;;  %v2220_v23 = vmul.f32 %v5370_v9, %v6259_v11  ;;  %v2894_v40 = vpop.eup %2893  ;;  %v6263_v9 = vld [vmem:[#allocation103_spill] sm:$0xff]  ;;  %v6264_v11 = vld [vmem:[#allocation94_spill] sm:$0xff] }
 0x398   :  { %v2110_v6 = vmul.f32 0.6931472, %v2890_v27  ;;  %v2144_v31 = vadd.f32 %v2106_v58, %v6260_v7  ;;  %v2206_v12 = vsel %vm2174_vm9, %v6239_v15, %v2142_v4  ;;  %v2221_v26 = vmul.f32 %v5378_v22, %v6261_v37  ;;  %v2896_v27 = vpop.eup %2895  ;;  %v6265_v22 = vld [vmem:[#allocation105_spill] sm:$0xff]  ;;  %v6266_v37 = vld [vmem:[#allocation70_spill] sm:$0xff] }
 0x399   :  { %v2112_v0 = vmul.f32 0.6931472, %v2892_v54  ;;  %v2145_v39 = vadd.f32 %v2108_v5, %v6262_v35  ;;  %v2207_v63 = vsel %vm2175_vm10, %v6241_v33, %v2143_v1  ;;  %v2222_v48 = vmul.f32 %v5386_v2, %v6263_v9  ;;  %v2898_v54 = vpop.eup %2897  ;;  %v6267_v2 = vld [vmem:[#allocation88_spill] sm:$0xff] }
 0x39a   :  { %v2114_v58 = vmul.f32 0.6931472, %v2894_v40  ;;  %v2146_v7 = vadd.f32 %v2110_v6, %v6264_v11  ;;  %v2208_v15 = vsel %vm2176_vm11, %v6243_v62, %v2144_v31  ;;  %v2223_v4 = vmul.f32 %v5394_v30, %v6265_v22  ;;  %v6268_v6 = vld [vmem:[#allocation50_spill] sm:$0xff] }
 0x39b   :  { %v2116_v5 = vmul.f32 0.6931472, %v2896_v27  ;;  %v2147_v35 = vadd.f32 %v2112_v0, %v6266_v37  ;;  %v2209_v33 = vsel %vm2177_vm12, %v6245_v16, %v2145_v39  ;;  %v2224_v1 = vmul.f32 %v5402_v61, %v6267_v2  ;;  %v6269_v31 = vld [vmem:[#allocation126_spill] sm:$0xff]  ;;  %v6271_v16 = vld [vmem:[#allocation89_spill] sm:$0xff] }
 0x39c   :  { %v2118_v40 = vmul.f32 0.6931472, %v2898_v54  ;;  %v2148_v9 = vadd.f32 %v2114_v58, %v6268_v6  ;;  %v2210_v62 = vsel %vm2178_vm13, %v6248_v47, %v2146_v7  ;;  %v2225_v30 = vmul.f32 %v5410_v34, %v6269_v31  ;;  %v6270_v27 = vld [vmem:[#allocation74_spill] sm:$0xff]  ;;  %v6272_v61 = vld [vmem:[#allocation109_spill] sm:$0xff] }
 0x39d   :  { %v2149_v11 = vadd.f32 %v2116_v5, %v6270_v27  ;;  %v2211_v0 = vsel %vm2179_vm14, %v6158_v18, %v2147_v35  ;;  %v2226_v39 = vmul.f32 %v5418_v53, %v6271_v16  ;;  %v2227_v22 = vmul.f32 %v5426_v3, %v6272_v61  ;;  %v6273_v7 = vld [vmem:[#allocation110_spill] sm:$0xff]  ;;  %v6274_v54 = vld [vmem:[#allocation53_spill] sm:$0xff]  ;;  %v6275_v53 = vld [vmem:[#allocation51_spill] sm:$0xff] }
 0x39e   :  { %v2150_v58 = vadd.f32 %v2118_v40, %v5196_v51  ;;  %v2212_v47 = vsel %vm2180_vm15, %v6253_v10, %v2148_v9  ;;  %v2228_v34 = vmul.f32 %v5434_v13, %v6273_v7  ;;  %v2229_v5 = vmul.f32 %v5442_v50, %v6274_v54  ;;  %v6276_v3 = vld [vmem:[#allocation49_spill] sm:$0xff]  ;;  %v6277_v35 = vld [vmem:[#allocation55_spill] sm:$0xff]  ;;  %v6279_v40 = vld [vmem:[#allocation72_spill] sm:$0xff] }
 0x39f   :  { %v2213_v18 = vsel %vm2181_vm0, %v6256_v28, %v2149_v11  ;;  %v2230_v37 = vmul.f32 %v5450_v55, %v6275_v53  ;;  %v2231_v51 = vmul.f32 %v5458_v20, %v6276_v3  ;;  %v2232_v2 = vmul.f32 %v5465_v43, %v6277_v35  ;;  %v6278_v10 = vld [vmem:[#allocation113_spill] sm:$0xff]  ;;  %v6280_v9 = vld [vmem:[#allocation76_spill] sm:$0xff] }
 0x3a0   :  { %v2214_v13 = vsel %vm2182_vm1, %v6166_v46, %v2150_v58  ;;  %v2233_v50 = vmul.f32 %v5476_v49, %v6278_v10  ;;  %v2234_v6 = vmul.f32 %v2202_v59, %v6279_v40  ;;  %v2235_v28 = vmul.f32 %v2203_v24, %v6280_v9 }
 0x3a1   :  { %v2236_v31 = vmul.f32 %v2204_v25, %v5206_v38  ;;  %v2237_v55 = vmul.f32 %v2205_v60, %v5214_v45  ;;  %v2238_v20 = vmul.f32 %v2206_v12, %v5222_v41  ;;  %v2239_v27 = vmul.f32 %v2207_v63, %v5240_v42 }
 0x3a2   :  { %v2240_v43 = vmul.f32 %v2208_v15, %v5246_v56  ;;  %v2241_v11 = vmul.f32 %v2209_v33, %v5251_v19  ;;  %v2242_v46 = vmul.f32 %v2210_v62, %v5257_v14  ;;  %v2243_v49 = vmul.f32 %v2211_v0, %v5262_v44 }
 0x3a3   :  { %v2244_v59 = vmul.f32 %v2212_v47, %v5268_v52  ;;  %v2245_v24 = vmul.f32 %v2213_v18, %v5273_v17  ;;  %v2246_v38 = vmul.f32 %v2214_v13, %v5279_v32  ;;  %v2247_v45 = vadd.f32 %v2219_v36, %v5469_v8 }
 0x3a4   :  { %v2254_v41 = vadd.f32 %v2220_v23, %v5480_v21  ;;  %v2261_v42 = vadd.f32 %v2221_v26, %v5489_v57  ;;  %v2268_v56 = vadd.f32 %v2222_v48, %v5498_v29 }
 0x3a5   :  { %v2248_v25 = vadd.f32 %v2247_v45, %v2223_v4 }
 0x3a6   :  { %v2255_v19 = vadd.f32 %v2254_v41, %v2224_v1  ;;  %v2262_v60 = vadd.f32 %v2261_v42, %v2225_v30  ;;  %v2269_v14 = vadd.f32 %v2268_v56, %v2226_v39  ;;  %v6281_v42 = vld [vmem:[#allocation37_spill] sm:$0xff] }
 0x3a7   :  { %v2249_v12 = vadd.f32 %v2248_v25, %v2227_v22 }
 0x3a8   :  { %v2256_v44 = vadd.f32 %v2255_v19, %v2228_v34  ;;  %v2263_v63 = vadd.f32 %v2262_v60, %v2229_v5  ;;  %v2270_v52 = vadd.f32 %v2269_v14, %v2230_v37 }
 0x3a9   :  { %v2250_v15 = vadd.f32 %v2249_v12, %v2231_v51 }
 0x3aa   :  { %v2257_v17 = vadd.f32 %v2256_v44, %v2232_v2  ;;  %v2264_v33 = vadd.f32 %v2263_v63, %v2233_v50  ;;  %v2271_v32 = vadd.f32 %v2270_v52, %v2234_v6 }
 0x3ab   :  { %v2251_v62 = vadd.f32 %v2250_v15, %v2235_v28 }
 0x3ac   :  { %v2258_v8 = vadd.f32 %v2257_v17, %v2236_v31  ;;  %v2265_v36 = vadd.f32 %v2264_v33, %v2237_v55  ;;  %v2272_v21 = vadd.f32 %v2271_v32, %v2238_v20 }
 0x3ad   :  { %v2252_v23 = vadd.f32 %v2251_v62, %v2239_v27  ;;  %v2297_v27 = vld [vmem:[#allocation16] sm:$0x1] }
 0x3ae   :  { %v2259_v57 = vadd.f32 %v2258_v8, %v2240_v43  ;;  %v2266_v26 = vadd.f32 %v2265_v36, %v2241_v11  ;;  %v2273_v29 = vadd.f32 %v2272_v21, %v2242_v46  ;;  %v2490_v43 = vld [vmem:[#allocation2] sm:$0xff]   ;;  %v2507_v46 = vld [vmem:[#allocation2 + $0x8] sm:$0xff]  }
 0x3af   :  { %v2253_v48 = vadd.f32 %v2252_v23, %v2243_v49  ;;  %v2492_v45 = vunpack.c.h.bf16 %v2490_v43  ;;  %v2495_v41 = vunpack.c.l.bf16 %v2507_v46  ;;  %v2496_v25 = vunpack.c.h.bf16 %v2507_v46 }
 0x3b0   :  { %v2260_v4 = vadd.f32 %v2259_v57, %v2244_v59  ;;  %v2267_v1 = vadd.f32 %v2266_v26, %v2245_v24  ;;  %v2274_v30 = vadd.f32 %v2273_v29, %v2246_v38  ;;  %v2298_v59 = vld [vmem:[#allocation17] sm:$0x1]  ;;  %v2491_v24 = vunpack.c.l.bf16 %v2490_v43 }
 0x3b1   :  { %v2284_v0 = vmul.f32 %v2253_v48, %v2253_v48 }
 0x3b2   :  { %v2275_v16 = vadd.f32 %v2260_v4, %v2253_v48  ;;  %v2285_v39 = vmul.f32 %v2260_v4, %v2260_v4  ;;  %v2286_v22 = vmul.f32 %v2267_v1, %v2267_v1  ;;  %v2287_v7 = vmul.f32 %v2274_v30, %v2274_v30 }
 0x3b4   :  { %v2276_v61 = vadd.f32 %v2275_v16, %v2267_v1  ;;  %v2288_v58 = vadd.f32 %v2285_v39, %v2284_v0 }
 0x3b6   :  { %v2277_v47 = vadd.f32 %v2276_v61, %v2274_v30  ;;  %v2289_v34 = vadd.f32 %v2288_v58, %v2286_v22 }
 0x3b8   :  { %v2278_v54 = vrot.slane %v2277_v47, 4  ;;  %v2290_v5 = vadd.f32 %v2289_v34, %v2287_v7 }
 0x3ba   :  { %v2279_v18 = vadd.f32 %v2278_v54, %v2277_v47  ;;  %v2291_v53 = vrot.slane %v2290_v5, 4 }
 0x3bc   :  { %v2280_v37 = vrot.slane %v2279_v18, 2  ;;  %v2292_v3 = vadd.f32 %v2291_v53, %v2290_v5 }
 0x3be   :  { %v2281_v51 = vadd.f32 %v2280_v37, %v2279_v18  ;;  %v2293_v35 = vrot.slane %v2292_v3, 2 }
 0x3c0   :  { %v2282_v2 = vrot.slane %v2281_v51, 1  ;;  %v2294_v13 = vadd.f32 %v2293_v35, %v2292_v3 }
 0x3c2   :  { %v2295_v10 = vrot.slane %v2294_v13, 1  ;;  %v2283_v50 = vadd.f32 %v2282_v2, %v2281_v51 }
 0x3c4   :  { %v2296_v40 = vadd.f32 %v2295_v10, %v2294_v13  ;;  %v2299_v6 = vmul.f32 0.03125, %v2283_v50 }
 0x3c6   :  { %v2300_v9 = vmul.f32 0.03125, %v2296_v40  ;;  %v2301_v28 = vmul.f32 %v2299_v6, %v2299_v6 }
 0x3c8   :  { %v2302_v31 = vsub.f32 %v2300_v9, %v2301_v28 }
 0x3ca   :  { %v2303_v55 = vmax.f32 %v2302_v31, 0.0 }
 0x3cc   :  { %v2304_v20 = vadd.f32 1e-05, %v2303_v55 }
 0x3ce   :  { %2899 = vrsqrt.f32 %v2304_v20 }
 0x3d8   :  { %v2900_v11 = vpop.eup %2899 }
 0x3d9   :  { %v2306_v49 = vmul.f32 %v2900_v11, %v2297_v27 }
 0x3db   :  { %v2307_v38 = vmul.f32 %v2306_v49, %v2299_v6  ;;  %v2320_v56 = vrot.slane %v2306_v49, %v6281_v42 }
 0x3dd   :  { %v2308_v19 = vsub.f32 %v2298_v59, %v2307_v38  ;;  %v2321_v60 = vmul.f32 %v2320_v56, %v2253_v48  ;;  %v2322_v14 = vmul.f32 %v2320_v56, %v2260_v4  ;;  %v2323_v12 = vmul.f32 %v2320_v56, %v2267_v1 }
 0x3de   :  { %v2324_v44 = vmul.f32 %v2320_v56, %v2274_v30 }
 0x3df   :  { %v2325_v63 = vadd.f32 %v2491_v24, %v2321_v60  ;;  %v2326_v52 = vadd.f32 %v2492_v45, %v2322_v14  ;;  %v2327_v15 = vadd.f32 %v2495_v41, %v2323_v12  ;;  %v2333_v17 = vrot.slane %v2308_v19, %v6281_v42 }
 0x3e0   :  { %v2328_v33 = vadd.f32 %v2496_v25, %v2324_v44 }
 0x3e1   :  { %v2335_v32 = vadd.f32 %v2333_v17, %v2325_v63  ;;  %v2336_v62 = vadd.f32 %v2333_v17, %v2326_v52  ;;  %v2337_v8 = vadd.f32 %v2333_v17, %v2327_v15 }
 0x3e2   :  { %v2338_v36 = vadd.f32 %v2333_v17, %v2328_v33 }
 0x3e3   :  { %v2339_v21 = vmin.f32 %v2335_v32, 20.0  ;;  %v2340_v23 = vmin.f32 %v2336_v62, 20.0  ;;  %v2341_v57 = vmin.f32 %v2337_v8, 20.0  ;;  %vm2379_vm2 = vcmp.gt.f32.partialorder %v2335_v32, 20.0 }
 0x3e4   :  { %v2342_v26 = vmin.f32 %v2338_v36, 20.0  ;;  %vm2380_vm3 = vcmp.gt.f32.partialorder %v2336_v62, 20.0  ;;  %vm2381_vm4 = vcmp.gt.f32.partialorder %v2337_v8, 20.0  ;;  %vm2382_vm5 = vcmp.gt.f32.partialorder %v2338_v36, 20.0 }
 0x3e5   :  { %v2347_v29 = vand.u32 2147483647, %v2339_v21  ;;  %v2348_v0 = vand.u32 2147483647, %v2340_v23  ;;  %v2349_v48 = vand.u32 2147483647, %v2341_v57 }
 0x3e6   :  { %v2350_v4 = vand.u32 2147483647, %v2342_v26  ;;  %v2343_v2 = vmax.f32 %v2339_v21, 0.0  ;;  %v2344_v50 = vmax.f32 %v2340_v23, 0.0  ;;  %v2345_v9 = vmax.f32 %v2341_v57, 0.0 }
 0x3e7   :  { %v2351_v1 = vsub.f32 0.0, %v2347_v29  ;;  %v2352_v30 = vsub.f32 0.0, %v2348_v0  ;;  %v2353_v16 = vsub.f32 0.0, %v2349_v48  ;;  %v2346_v55 = vmax.f32 %v2342_v26, 0.0 }
 0x3e8   :  { %v2354_v39 = vsub.f32 0.0, %v2350_v4 }
 0x3e9   :  { %v2355_v61 = vmul.f32 1.442695, %v2351_v1  ;;  %v2357_v22 = vmul.f32 1.442695, %v2352_v30  ;;  %v2359_v58 = vmul.f32 1.442695, %v2353_v16 }
 0x3ea   :  { %v2361_v47 = vmul.f32 1.442695, %v2354_v39 }
 0x3eb   :  { %2901 = vpow2.f32 %v2355_v61 }
 0x3ec   :  { %2903 = vpow2.f32 %v2357_v22 }
 0x3ed   :  { %2905 = vpow2.f32 %v2359_v58 }
 0x3ee   :  { %2907 = vpow2.f32 %v2361_v47 }
 0x3f5   :  { %v2902_v7 = vpop.eup %2901 }
 0x3f6   :  { %v2904_v34 = vpop.eup %2903  ;;  %v2363_v54 = vadd.f32 1.0, %v2902_v7 }
 0x3f7   :  { %v2906_v5 = vpop.eup %2905  ;;  %v2364_v18 = vadd.f32 1.0, %v2904_v34 }
 0x3f8   :  { %v2908_v53 = vpop.eup %2907  ;;  %v2365_v37 = vadd.f32 1.0, %v2906_v5  ;;  %2909 = vlog2.f32 %v2363_v54 }
 0x3f9   :  { %v2366_v3 = vadd.f32 1.0, %v2908_v53  ;;  %2911 = vlog2.f32 %v2364_v18 }
 0x3fa   :  { %2913 = vlog2.f32 %v2365_v37 }
 0x3fb   :  { %2915 = vlog2.f32 %v2366_v3 }
 0x402   :  { %v2910_v51 = vpop.eup %2909 }
 0x403   :  { %v2912_v35 = vpop.eup %2911  ;;  %v2368_v13 = vmul.f32 0.6931472, %v2910_v51 }
 0x404   :  { %v2914_v10 = vpop.eup %2913  ;;  %v2370_v40 = vmul.f32 0.6931472, %v2912_v35 }
 0x405   :  { %v2916_v6 = vpop.eup %2915  ;;  %v2372_v28 = vmul.f32 0.6931472, %v2914_v10  ;;  %v2375_v31 = vadd.f32 %v2368_v13, %v2343_v2 }
 0x406   :  { %v2374_v20 = vmul.f32 0.6931472, %v2916_v6  ;;  %v2376_v27 = vadd.f32 %v2370_v40, %v2344_v50 }
 0x407   :  { %v2377_v43 = vadd.f32 %v2372_v28, %v2345_v9  ;;  %v2383_v11 = vsel %vm2379_vm2, %v2335_v32, %v2375_v31 }
 0x408   :  { %v2378_v46 = vadd.f32 %v2374_v20, %v2346_v55  ;;  %v2384_v49 = vsel %vm2380_vm3, %v2336_v62, %v2376_v27 }
 0x409   :  { %v2385_v59 = vsel %vm2381_vm4, %v2337_v8, %v2377_v43  ;;  %v2500_v24 = vpack.c.bf16 %v2384_v49, %v2383_v11 }
 0x40a   :  { %v2386_v38 = vsel %vm2382_vm5, %v2338_v36, %v2378_v46 }
 0x40b   :  { %2501 = vst [vmem:[#allocation19] sm:$0xff] %v2500_v24   ;;  %v2505_v45 = vpack.c.bf16 %v2386_v38, %v2385_v59 }
 0x40d   :  { %2508 = vst [vmem:[#allocation19 + $0x8] sm:$0xff] %v2505_v45  }
 0x40e   :  { %3148 = shalt.err (!%p3145_p0)
}
 0x40f   :  { %s3149_s29 = scalar_lea.hbm %s5618_s10, 256 }
 0x410   :  { %p3150_p1 = scmp.ne.s32.totalorder %s5618_s10, %s3149_s29  ;;  %p3153_p2 = scmp.lt.u32.totalorder %s3149_s29, %s5618_s10 }
 0x412   :  { %p3155_p3 = pnand %p3153_p2, %p3150_p1 }
 0x414   :  { %3158 = shalt.err (!%p3155_p3)
}
 0x415   :  { %2418 = dma.vmem_to_hbm [thread:$0]  %s2413_s4, 256, %s5618_s10, [#allocation4], %s3180_s7, %s3180_s7, %s3181_s13  }
 0x416   :  { %3171 = dma.done.wait [#allocation4], 256  }
 0x417   :  { %3172 = vsyncadd [#allocation4], 4294967040 }
 0x418   :  { %2422 = vsyncpa [#allocation3], 1 }
 0x419   :  { %2423 = vsyncpa [#allocation6], 1 }
 0x41a   :  { %2424 = vsyncpa [#allocation9], 1 }
 0x41b   :  { %2425 = vsyncpa [#allocation12], 1 }
 0x41c   :  { %2426 = vsyncpa [#allocation15], 1 }
 0x41d   :  { %2427 = vsyncpa [#allocation18], 1 }
 0x41e   :  { %2428 = vsyncpa [#allocation4], 1 }

// kernel: crystal_graph_conv_net.5
= control target key start
LH: loop header
LB: loop body
LE: loop exit
PB: predicated region body
PF: predicated region fallthrough
CT: control target
= control target key end

     0   :  { %20 = vsyncpa [#allocation3], 0  ;;  %s6377_s0 = inlined_call_operand.hbm [shape: bf16[32,128], index: 0, kind: input, shape index: {}]   ;;  %s6378_s1 = inlined_call_operand.hbm [shape: bf16[32,256], index: 1, kind: input, shape index: {}]   ;;  %s6379_s2 = inlined_call_operand.hbm [shape: bf16[32,256], index: 2, kind: input, shape index: {}]   ;;  %s6380_s3 = inlined_call_operand.hbm [shape: s32[256,1], index: 3, kind: input, shape index: {}]   ;;  %s6381_s4 = inlined_call_operand.hbm [shape: bf16[256,128], index: 4, kind: input, shape index: {}]   ;;  %s6382_s5 = inlined_call_operand.hbm [shape: bf16[128,256], index: 5, kind: input, shape index: {}]   ;;  %s6383_s6 = inlined_call_operand.hbm [shape: f32[1,256], index: 6, kind: input, shape index: {}]   ;;  %s6384_s7 = inlined_call_operand.hbm [shape: f32[1,256], index: 7, kind: input, shape index: {}]   ;;  %s6385_s8 = inlined_call_operand.hbm [shape: f32[1,128], index: 8, kind: input, shape index: {}]   ;;  %s6386_s9 = inlined_call_operand.hbm [shape: f32[1,128], index: 9, kind: input, shape index: {}]   ;;  %s6387_s10 = inlined_call_operand.hbm [shape: bf16[128,512], index: 10, kind: input, shape index: {}]   ;;  %s6388_s11 = inlined_call_operand.hbm [shape: f32[1,512], index: 11, kind: input, shape index: {}]   ;;  %s6389_s12 = inlined_call_operand.hbm [shape: bf16[32,128], index: 12, kind: output, shape index: {0}]   ;;  %s6390_s13 = inlined_call_operand.hbm [shape: bf16[32,256], index: 13, kind: output, shape index: {1}]   ;;  %s6391_s14 = inlined_call_operand.hbm [shape: bf16[32,256], index: 14, kind: output, shape index: {2}]  }
   0x1   :  { %21 = vsyncpa [#allocation6], 0 }
   0x2   :  { %22 = vsyncpa [#allocation9], 0 }
   0x3   :  { %23 = vsyncpa [#allocation12], 0 }
   0x4   :  { %24 = vsyncpa [#allocation15], 0 }
   0x5   :  { %25 = vsyncpa [#allocation18], 0 }
   0x6   :  { %26 = vsyncpa [#allocation21], 0 }
   0x7   :  { %27 = vsyncpa [#allocation4], 0 }
   0x8   :  { %28 = vsyncpa [#allocation24], 0  ;;  %s3814_s29 = smov [#allocation5]   ;;  %s3466_s17 = scalar_lea.hbm %s6378_s1, 512 }
   0x9   :  { %s46_s30 = sshll.u32 %s3814_s29, 4  ;;  %p3467_p0 = scmp.ne.s32.totalorder %s6378_s1, %s3466_s17  ;;  %s47_s30 = int_to_ptr.vmem [resolvable:$true] %s46_s30 }
   0xa   :  { %p3470_p1 = scmp.lt.u32.totalorder %s3466_s17, %s6378_s1 }
   0xc   :  { %p3472_p2 = pnand %p3470_p1, %p3467_p0 }
   0xe   :  { %3475 = shalt.err (!%p3472_p2)
}
   0xf   :  { %s3476_s22 = scalar_lea.vmem %s47_s30, 512  ;;  %p3481_p4 = scmp.lt.s32.totalorder %s47_s30, %s47_s30 }
  0x10   :  { %p3477_p3 = scmp.ne.s32.totalorder %s47_s30, %s3476_s22  ;;  %p3482_p5 = scmp.lt.s32.totalorder %s3476_s22, %s3476_s22 }
  0x12   :  { %p3483_p6 = por %p3482_p5, %p3481_p4 }
  0x14   :  { %p3484_p7 = pnand %p3483_p6, %p3477_p3 }
  0x16   :  { %3487 = shalt.err (!%p3484_p7)
}
  0x17   :  { %s3815_s23 = smov 128   ;;  %s3816_s24 = smov 8  }
  0x18   :  { %52 = dma.hbm_to_vmem [thread:$0]  %s6378_s1, 512, %s47_s30, [#allocation6], %s3815_s23, %s3815_s23, %s3816_s24  }
  0x19   :  { %s3817_s27 = smov [#allocation8]   ;;  %s3818_s29 = smov [#allocation11]  }
  0x1a   :  { %s70_s28 = sshll.u32 %s3817_s27, 4  ;;  %s94_s15 = sshll.u32 %s3818_s29, 4  ;;  %s71_s28 = int_to_ptr.vmem [resolvable:$true] %s70_s28  ;;  %s95_s15 = int_to_ptr.vmem [resolvable:$true] %s94_s15 }
  0x1b   :  { %s3488_s18 = scalar_lea.hbm %s6380_s3, 4096 }
  0x1c   :  { %p3489_p8 = scmp.ne.s32.totalorder %s6380_s3, %s3488_s18  ;;  %p3492_p9 = scmp.lt.u32.totalorder %s3488_s18, %s6380_s3 }
  0x1e   :  { %p3494_p10 = pnand %p3492_p9, %p3489_p8 }
  0x20   :  { %3497 = shalt.err (!%p3494_p10)
}
  0x21   :  { %s3498_s1 = scalar_lea.vmem %s71_s28, 4096  ;;  %p3503_p12 = scmp.lt.s32.totalorder %s71_s28, %s71_s28 }
  0x22   :  { %p3499_p11 = scmp.ne.s32.totalorder %s71_s28, %s3498_s1  ;;  %p3504_p13 = scmp.lt.s32.totalorder %s3498_s1, %s3498_s1 }
  0x24   :  { %p3505_p0 = por %p3504_p13, %p3503_p12 }
  0x26   :  { %p3506_p1 = pnand %p3505_p0, %p3499_p11 }
  0x28   :  { %3509 = shalt.err (!%p3506_p1)
}
  0x29   :  { %76 = dma.hbm_to_vmem [thread:$0]  %s6380_s3, 4096, %s71_s28, [#allocation9], %s3815_s23, %s3815_s23, %s3816_s24  }
  0x2a   :  { %s3510_s29 = scalar_lea.hbm %s6382_s5, 2048 }
  0x2b   :  { %p3511_p2 = scmp.ne.s32.totalorder %s6382_s5, %s3510_s29  ;;  %p3514_p3 = scmp.lt.u32.totalorder %s3510_s29, %s6382_s5 }
  0x2d   :  { %p3516_p4 = pnand %p3514_p3, %p3511_p2 }
  0x2f   :  { %3519 = shalt.err (!%p3516_p4)
}
  0x30   :  { %s3520_s20 = scalar_lea.vmem %s95_s15, 2048  ;;  %p3525_p6 = scmp.lt.s32.totalorder %s95_s15, %s95_s15 }
  0x31   :  { %p3521_p5 = scmp.ne.s32.totalorder %s95_s15, %s3520_s20  ;;  %p3526_p7 = scmp.lt.s32.totalorder %s3520_s20, %s3520_s20 }
  0x33   :  { %p3527_p8 = por %p3526_p7, %p3525_p6 }
  0x35   :  { %p3528_p9 = pnand %p3527_p8, %p3521_p5 }
  0x37   :  { %3531 = shalt.err (!%p3528_p9)
}
  0x38   :  { %100 = dma.hbm_to_vmem [thread:$0]  %s6382_s5, 2048, %s95_s15, [#allocation12], %s3815_s23, %s3815_s23, %s3816_s24  }
  0x39   :  { %s3819_s21 = smov [#allocation14]   ;;  %s3820_s1 = smov [#allocation17]  }
  0x3a   :  { %s117_s22 = sshll.u32 %s3819_s21, 4  ;;  %s137_s30 = sshll.u32 %s3820_s1, 4  ;;  %s118_s22 = int_to_ptr.vmem [resolvable:$true] %s117_s22  ;;  %s138_s30 = int_to_ptr.vmem [resolvable:$true] %s137_s30 }
  0x3b   :  { %s3532_s27 = scalar_lea.hbm %s6384_s7, 32 }
  0x3c   :  { %p3533_p10 = scmp.ne.s32.totalorder %s6384_s7, %s3532_s27  ;;  %p3536_p11 = scmp.lt.u32.totalorder %s3532_s27, %s6384_s7 }
  0x3e   :  { %p3538_p12 = pnand %p3536_p11, %p3533_p10 }
  0x40   :  { %3541 = shalt.err (!%p3538_p12)
}
  0x41   :  { %s3542_s5 = scalar_lea.vmem %s118_s22, 32  ;;  %p3547_p0 = scmp.lt.s32.totalorder %s118_s22, %s118_s22 }
  0x42   :  { %p3543_p13 = scmp.ne.s32.totalorder %s118_s22, %s3542_s5  ;;  %p3548_p1 = scmp.lt.s32.totalorder %s3542_s5, %s3542_s5 }
  0x44   :  { %p3549_p2 = por %p3548_p1, %p3547_p0 }
  0x46   :  { %p3550_p3 = pnand %p3549_p2, %p3543_p13 }
  0x48   :  { %3553 = shalt.err (!%p3550_p3)
}
  0x49   :  { %120 = dma.hbm_to_vmem [thread:$0]  %s6384_s7, 32, %s118_s22, [#allocation15]  }
  0x4a   :  { %s3554_s28 = scalar_lea.hbm %s6386_s9, 16 }
  0x4b   :  { %p3555_p4 = scmp.ne.s32.totalorder %s6386_s9, %s3554_s28  ;;  %p3558_p5 = scmp.lt.u32.totalorder %s3554_s28, %s6386_s9 }
  0x4d   :  { %p3560_p6 = pnand %p3558_p5, %p3555_p4 }
  0x4f   :  { %3563 = shalt.err (!%p3560_p6)
}
  0x50   :  { %s3564_s27 = scalar_lea.vmem %s138_s30, 16  ;;  %s3568_s29 = scalar_lea.vmem %s138_s30, 32 }
  0x51   :  { %p3565_p7 = scmp.ne.s32.totalorder %s138_s30, %s3564_s27  ;;  %p3569_p8 = scmp.lt.s32.totalorder %s138_s30, %s138_s30 }
  0x52   :  { %p3570_p9 = scmp.lt.s32.totalorder %s3568_s29, %s3564_s27 }
  0x54   :  { %p3571_p10 = por %p3570_p9, %p3569_p8 }
  0x56   :  { %p3572_p11 = pnand %p3571_p10, %p3565_p7 }
  0x58   :  { %3575 = shalt.err (!%p3572_p11)
}
  0x59   :  { %140 = dma.hbm_to_vmem [thread:$0]  %s6386_s9, 16, %s138_s30, [#allocation18]  }
  0x5a   :  { %s3821_s16 = smov [#allocation2]   ;;  %s3576_s15 = scalar_lea.hbm %s6377_s0, 256 }
  0x5b   :  { %s34_s17 = sshll.u32 %s3821_s16, 4  ;;  %p3577_p12 = scmp.ne.s32.totalorder %s6377_s0, %s3576_s15  ;;  %s35_s17 = int_to_ptr.vmem [resolvable:$true] %s34_s17 }
  0x5c   :  { %p3580_p13 = scmp.lt.u32.totalorder %s3576_s15, %s6377_s0 }
  0x5e   :  { %p3582_p0 = pnand %p3580_p13, %p3577_p12 }
  0x60   :  { %3585 = shalt.err (!%p3582_p0)
}
  0x61   :  { %s3586_s21 = scalar_lea.vmem %s35_s17, 256  ;;  %p3591_p2 = scmp.lt.s32.totalorder %s35_s17, %s35_s17 }
  0x62   :  { %p3587_p1 = scmp.ne.s32.totalorder %s35_s17, %s3586_s21  ;;  %p3592_p3 = scmp.lt.s32.totalorder %s3586_s21, %s3586_s21 }
  0x64   :  { %p3593_p4 = por %p3592_p3, %p3591_p2 }
  0x66   :  { %p3594_p5 = pnand %p3593_p4, %p3587_p1 }
  0x68   :  { %3597 = shalt.err (!%p3594_p5)
}
  0x69   :  { %s3822_s9 = smov 64   ;;  %s3823_s30 = smov 4  }
  0x6a   :  { %40 = dma.hbm_to_vmem [thread:$0]  %s6377_s0, 256, %s35_s17, [#allocation3], %s3822_s9, %s3822_s9, %s3823_s30  }
  0x6b   :  { %s3824_s26 = smov [#allocation7]   ;;  %s3825_s29 = smov [#allocation10]  }
  0x6c   :  { %s58_s27 = sshll.u32 %s3824_s26, 4  ;;  %s82_s7 = sshll.u32 %s3825_s29, 4  ;;  %s59_s27 = int_to_ptr.vmem [resolvable:$true] %s58_s27  ;;  %s3997_s7 = int_to_ptr.vmem [resolvable:$true] %s82_s7 }
  0x6d   :  { %s3598_s18 = scalar_lea.hbm %s6379_s2, 512 }
  0x6e   :  { %p3599_p6 = scmp.ne.s32.totalorder %s6379_s2, %s3598_s18  ;;  %p3602_p7 = scmp.lt.u32.totalorder %s3598_s18, %s6379_s2 }
  0x70   :  { %p3604_p8 = pnand %p3602_p7, %p3599_p6 }
  0x72   :  { %3607 = shalt.err (!%p3604_p8)
}
  0x73   :  { %s3608_s0 = scalar_lea.vmem %s59_s27, 512  ;;  %p3613_p10 = scmp.lt.s32.totalorder %s59_s27, %s59_s27 }
  0x74   :  { %p3609_p9 = scmp.ne.s32.totalorder %s59_s27, %s3608_s0  ;;  %p3614_p11 = scmp.lt.s32.totalorder %s3608_s0, %s3608_s0 }
  0x76   :  { %p3615_p12 = por %p3614_p11, %p3613_p10 }
  0x78   :  { %p3616_p13 = pnand %p3615_p12, %p3609_p9 }
  0x7a   :  { %3619 = shalt.err (!%p3616_p13)
}
  0x7b   :  { %64 = dma.hbm_to_vmem [thread:$0]  %s6379_s2, 512, %s59_s27, [#allocation6], %s3815_s23, %s3815_s23, %s3816_s24  }
  0x7c   :  { %s3620_s1 = scalar_lea.hbm %s6381_s4, 2048 }
  0x7d   :  { %p3621_p0 = scmp.ne.s32.totalorder %s6381_s4, %s3620_s1  ;;  %p3624_p1 = scmp.lt.u32.totalorder %s3620_s1, %s6381_s4 }
  0x7f   :  { %p3626_p2 = pnand %p3624_p1, %p3621_p0 }
  0x81   :  { %3629 = shalt.err (!%p3626_p2)
}
  0x82   :  { %s3630_s16 = scalar_lea.vmem %s3997_s7, 2048  ;;  %p3635_p4 = scmp.lt.s32.totalorder %s3997_s7, %s3997_s7 }
  0x83   :  { %p3631_p3 = scmp.ne.s32.totalorder %s3997_s7, %s3630_s16  ;;  %p3636_p5 = scmp.lt.s32.totalorder %s3630_s16, %s3630_s16 }
  0x85   :  { %p3637_p6 = por %p3636_p5, %p3635_p4 }
  0x87   :  { %p3638_p7 = pnand %p3637_p6, %p3631_p3 }
  0x89   :  { %3641 = shalt.err (!%p3638_p7)
}
  0x8a   :  { %88 = dma.hbm_to_vmem [thread:$0]  %s6381_s4, 2048, %s3997_s7, [#allocation9], %s3822_s9, %s3822_s9, %s3823_s30  }
  0x8b   :  { %s3826_s18 = smov [#allocation13]   ;;  %s3827_s15 = smov [#allocation16]  }
  0x8c   :  { %s107_s5 = sshll.u32 %s3826_s18, 4  ;;  %s127_s19 = sshll.u32 %s3827_s15, 4  ;;  %s108_s5 = int_to_ptr.vmem [resolvable:$true] %s107_s5  ;;  %s128_s19 = int_to_ptr.vmem [resolvable:$true] %s127_s19 }
  0x8d   :  { %s3642_s17 = scalar_lea.hbm %s6383_s6, 32 }
  0x8e   :  { %p3643_p8 = scmp.ne.s32.totalorder %s6383_s6, %s3642_s17  ;;  %p3646_p9 = scmp.lt.u32.totalorder %s3642_s17, %s6383_s6 }
  0x90   :  { %p3648_p10 = pnand %p3646_p9, %p3643_p8 }
  0x92   :  { %3651 = shalt.err (!%p3648_p10)
}
  0x93   :  { %s3652_s4 = scalar_lea.vmem %s108_s5, 32  ;;  %p3657_p12 = scmp.lt.s32.totalorder %s108_s5, %s108_s5 }
  0x94   :  { %p3653_p11 = scmp.ne.s32.totalorder %s108_s5, %s3652_s4  ;;  %p3658_p13 = scmp.lt.s32.totalorder %s3652_s4, %s3652_s4 }
  0x96   :  { %p3659_p0 = por %p3658_p13, %p3657_p12 }
  0x98   :  { %p3660_p1 = pnand %p3659_p0, %p3653_p11 }
  0x9a   :  { %3663 = shalt.err (!%p3660_p1)
}
  0x9b   :  { %110 = dma.hbm_to_vmem [thread:$0]  %s6383_s6, 32, %s108_s5, [#allocation12]  }
  0x9c   :  { %s3664_s22 = scalar_lea.hbm %s6385_s8, 16 }
  0x9d   :  { %p3665_p2 = scmp.ne.s32.totalorder %s6385_s8, %s3664_s22  ;;  %p3668_p3 = scmp.lt.u32.totalorder %s3664_s22, %s6385_s8 }
  0x9f   :  { %p3670_p4 = pnand %p3668_p3, %p3665_p2 }
  0xa1   :  { %3673 = shalt.err (!%p3670_p4)
}
  0xa2   :  { %s3674_s15 = scalar_lea.vmem %s128_s19, 16  ;;  %s3678_s20 = scalar_lea.vmem %s128_s19, 32 }
  0xa3   :  { %p3675_p5 = scmp.ne.s32.totalorder %s128_s19, %s3674_s15  ;;  %p3679_p6 = scmp.lt.s32.totalorder %s128_s19, %s128_s19 }
  0xa4   :  { %p3680_p7 = scmp.lt.s32.totalorder %s3678_s20, %s3674_s15 }
  0xa6   :  { %p3681_p8 = por %p3680_p7, %p3679_p6 }
  0xa8   :  { %p3682_p9 = pnand %p3681_p8, %p3675_p5 }
  0xaa   :  { %3685 = shalt.err (!%p3682_p9)
}
  0xab   :  { %130 = dma.hbm_to_vmem [thread:$0]  %s6385_s8, 16, %s128_s19, [#allocation15]  }
  0xac   :  { %s3828_s0 = smov [#allocation19]   ;;  %s3686_s21 = scalar_lea.hbm %s6387_s10, 4096 }
  0xad   :  { %s146_s17 = sshll.u32 %s3828_s0, 4  ;;  %p3687_p10 = scmp.ne.s32.totalorder %s6387_s10, %s3686_s21  ;;  %s147_s17 = int_to_ptr.vmem [resolvable:$true] %s146_s17 }
  0xae   :  { %p3690_p11 = scmp.lt.u32.totalorder %s3686_s21, %s6387_s10 }
  0xb0   :  { %p3692_p12 = pnand %p3690_p11, %p3687_p10 }
  0xb2   :  { %3695 = shalt.err (!%p3692_p12)
}
  0xb3   :  { %s3696_s26 = scalar_lea.vmem %s147_s17, 4096  ;;  %p3701_p0 = scmp.lt.s32.totalorder %s147_s17, %s147_s17 }
  0xb4   :  { %p3697_p13 = scmp.ne.s32.totalorder %s147_s17, %s3696_s26  ;;  %p3702_p1 = scmp.lt.s32.totalorder %s3696_s26, %s3696_s26 }
  0xb6   :  { %p3703_p2 = por %p3702_p1, %p3701_p0 }
  0xb8   :  { %p3704_p3 = pnand %p3703_p2, %p3697_p13 }
  0xba   :  { %3707 = shalt.err (!%p3704_p3)
}
  0xbb   :  { %s3829_s8 = smov 256   ;;  %s3830_s19 = smov 16  }
  0xbc   :  { %152 = dma.hbm_to_vmem [thread:$0]  %s6387_s10, 4096, %s147_s17, [#allocation18], %s3829_s8, %s3829_s8, %s3830_s19  }
  0xbd   :  { %s3831_s16 = smov [#allocation20]   ;;  %s3708_s15 = scalar_lea.hbm %s6388_s11, 64 }
  0xbe   :  { %s159_s2 = sshll.u32 %s3831_s16, 4  ;;  %p3709_p4 = scmp.ne.s32.totalorder %s6388_s11, %s3708_s15  ;;  %s160_s2 = int_to_ptr.vmem [resolvable:$true] %s159_s2 }
  0xbf   :  { %p3712_p5 = scmp.lt.u32.totalorder %s3708_s15, %s6388_s11 }
  0xc1   :  { %p3714_p6 = pnand %p3712_p5, %p3709_p4 }
  0xc3   :  { %3717 = shalt.err (!%p3714_p6)
}
  0xc4   :  { %s3718_s3 = scalar_lea.vmem %s160_s2, 64  ;;  %p3723_p8 = scmp.lt.s32.totalorder %s160_s2, %s160_s2 }
  0xc5   :  { %p3719_p7 = scmp.ne.s32.totalorder %s160_s2, %s3718_s3  ;;  %p3724_p9 = scmp.lt.s32.totalorder %s3718_s3, %s3718_s3 }
  0xc7   :  { %p3725_p10 = por %p3724_p9, %p3723_p8 }
  0xc9   :  { %p3726_p11 = pnand %p3725_p10, %p3719_p7 }
  0xcb   :  { %3729 = shalt.err (!%p3726_p11)
}
  0xcc   :  { %162 = dma.hbm_to_vmem [thread:$0]  %s6388_s11, 64, %s160_s2, [#allocation21]  }
  0xcd   :  { %3796 = dma.done.wait [#allocation3], 256  }
  0xce   :  { %3797 = vsyncadd [#allocation3], 4294967040 }
  0xcf   :  { %3798 = dma.done.wait [#allocation6], 1024  }
  0xd0   :  { %3799 = vsyncadd [#allocation6], 4294966272 }
  0xd1   :  { %3800 = dma.done.wait [#allocation9], 6144  }
  0xd2   :  { %3801 = vsyncadd [#allocation9], 4294961152 }
  0xd3   :  { %3802 = dma.done.wait [#allocation12], 2080  }
  0xd4   :  { %3803 = vsyncadd [#allocation12], 4294965216 }
  0xd5   :  { %3804 = dma.done.wait [#allocation15], 48  }
  0xd6   :  { %3805 = vsyncadd [#allocation15], 4294967248 }
  0xd7   :  { %3806 = dma.done.wait [#allocation18], 4112  }
  0xd8   :  { %3807 = vsyncadd [#allocation18], 4294963184 }
  0xd9   :  { %3808 = dma.done.wait [#allocation21], 64  }
  0xda   :  { %3809 = vsyncadd [#allocation21], 4294967232  ;;  %v6392_v0 = vmov 0   ;;  %v206_v1 = vld [vmem:[#allocation8 + $0x20] sm:$0xff]  ;;  %v204_v2 = vld [vmem:[#allocation8 + $0x10] sm:$0xff]  ;;  %vm863_vm2 = vcmask 261120  }
  0xdb   :  { %3093 = vset.pattern.permute.xlu1 %v6392_v0  ;;  %3092 = vset.pattern.permute.xlu0 %v6392_v0  ;;  %v3094_v3 = vld [vmem:[#allocation11 + $0x4] ss:$8 sps:$4 sm:$0xff]   ;;  %v3096_v4 = vld [vmem:[#allocation11] ss:$8 sps:$4 sm:$0xff]   ;;  %v205_v6 = vld [vmem:[#allocation8 + $0x18] sm:$0xff]  ;;  %s3835_s11 = smov [#allocation22]  }
  0xdc   :  { %670 = vmatprep.mubr.bf16.mxu0 %v6392_v0  ;;  %954 = vmatprep.mubr.bf16.mxu1 %v6392_v0  ;;  %v207_v5 = vld [vmem:[#allocation8 + $0x28] sm:$0xff]  ;;  %v3097_v7 = vld [vmem:[#allocation11 + $0x14] ss:$8 sps:$4 sm:$0xff]   ;;  %v3099_v8 = vld [vmem:[#allocation11 + $0x10] ss:$8 sps:$4 sm:$0xff]   ;;  %s2823_s28 = sshll.u32 %s3835_s11, 4  ;;  %s2824_s28 = int_to_ptr.vmem [resolvable:$true] %s2823_s28 }
  0xdd   :  { %247 = vperm.xlu1 %3093, %v206_v1   ;;  %241 = vperm.xlu0 %3092, %v204_v2   ;;  %v209_v9 = vld [vmem:[#allocation8 + $0x38] sm:$0xff]  ;;  %v208_v10 = vld [vmem:[#allocation8 + $0x30] sm:$0xff]  ;;  %v3100_v11 = vld [vmem:[#allocation11 + $0x24] ss:$8 sps:$4 sm:$0xff]   ;;  %v6394_v2 = vlaneseq  ;;  %s3730_s21 = scalar_lea.vmem %s2824_s28, 256  ;;  %p3735_p13 = scmp.lt.s32.totalorder %s2824_s28, %s2824_s28 }
  0xde   :  { %638 = vmatprep.subr.bf16.mxu0 %v3094_v3  ;;  %v3102_v12 = vld [vmem:[#allocation11 + $0x20] ss:$8 sps:$4 sm:$0xff]   ;;  %v3103_v15 = vld [vmem:[#allocation11 + $0x34] ss:$8 sps:$4 sm:$0xff]   ;;  %v3105_v16 = vld [vmem:[#allocation11 + $0x30] ss:$8 sps:$4 sm:$0xff]   ;;  %p3731_p12 = scmp.ne.s32.totalorder %s2824_s28, %s3730_s21  ;;  %p3736_p0 = scmp.lt.s32.totalorder %s3730_s21, %s3730_s21 }
  0xdf   :  { %639 = vmatpush1.bf16.msra.mxu0 %v3096_v4  ;;  %v211_v13 = vld [vmem:[#allocation8 + $0x48] sm:$0xff]  ;;  %v210_v14 = vld [vmem:[#allocation8 + $0x40] sm:$0xff]  ;;  %v213_v17 = vld [vmem:[#allocation8 + $0x58] sm:$0xff]  ;;  %v4099_v3 = vand.u32 127, %v6394_v2 }
  0xe0   :  { %640 = vmatprep.subr.bf16.mxu0 %v3097_v7  ;;  %v212_v18 = vld [vmem:[#allocation8 + $0x50] sm:$0xff]  ;;  %v3106_v19 = vld [vmem:[#allocation11 + $0x44] ss:$8 sps:$4 sm:$0xff]   ;;  %v3108_v20 = vld [vmem:[#allocation11 + $0x40] ss:$8 sps:$4 sm:$0xff]   ;;  %p3737_p1 = por %p3736_p0, %p3735_p13 }
  0xe1   :  { %250 = vperm.xlu1 %3093, %v207_v5   ;;  %244 = vperm.xlu0 %3092, %v205_v6   ;;  %v215_v21 = vld [vmem:[#allocation8 + $0x68] sm:$0xff]  ;;  %v214_v22 = vld [vmem:[#allocation8 + $0x60] sm:$0xff]  ;;  %v3109_v23 = vld [vmem:[#allocation11 + $0x54] ss:$8 sps:$4 sm:$0xff]  }
  0xe2   :  { %v3111_v24 = vld [vmem:[#allocation11 + $0x50] ss:$8 sps:$4 sm:$0xff]   ;;  %v3112_v27 = vld [vmem:[#allocation11 + $0x64] ss:$8 sps:$4 sm:$0xff]   ;;  %v3114_v28 = vld [vmem:[#allocation11 + $0x60] ss:$8 sps:$4 sm:$0xff]   ;;  %p3738_p2 = pnand %p3737_p1, %p3731_p12 }
  0xe3   :  { %641 = vmatpush1.bf16.msra.mxu0 %v3099_v8  ;;  %v217_v25 = vld [vmem:[#allocation8 + $0x78] sm:$0xff]  ;;  %v216_v26 = vld [vmem:[#allocation8 + $0x70] sm:$0xff]  ;;  %v203_v29 = vld [vmem:[#allocation8 + $0x8] sm:$0xff] }
  0xe4   :  { %642 = vmatprep.subr.bf16.mxu0 %v3100_v11  ;;  %v202_v30 = vld [vmem:[#allocation8] sm:$0xff]  ;;  %v3115_v31 = vld [vmem:[#allocation11 + $0x74] ss:$8 sps:$4 sm:$0xff]   ;;  %v3117_v34 = vld [vmem:[#allocation11 + $0x70] ss:$8 sps:$4 sm:$0xff]  }
  0xe5   :  { %256 = vperm.xlu1 %3093, %v209_v9   ;;  %253 = vperm.xlu0 %3092, %v208_v10   ;;  %v3122_v32 = vld [vmem:[#allocation7] ss:$8 sps:$4 sm:$0xff]   ;;  %v3124_v33 = vld [vmem:[#allocation7 + $0x4] ss:$8 sps:$4 sm:$0xff]   ;;  %v221_v38 = vld [vmem:[#allocation8 + $0x98] sm:$0xff]  ;;  %v3833_v9 = vmov 0.0  }
  0xe6   :  { %3000 = vmatprep.subr.bf16.mxu1 %v3124_v33  ;;  %v219_v35 = vld [vmem:[#allocation8 + $0x88] sm:$0xff]  ;;  %v218_v36 = vld [vmem:[#allocation8 + $0x80] sm:$0xff]  ;;  %v220_v39 = vld [vmem:[#allocation8 + $0x90] sm:$0xff] }
  0xe7   :  { %643 = vmatpush1.bf16.msra.mxu0 %v3102_v12  ;;  %3002 = vmatpush1.bf16.msra.mxu1 %v3122_v32  ;;  %v3118_v37 = vld [vmem:[#allocation10] sm:$0xff]   ;;  %v3133_v40 = vld [vmem:[#allocation7 + $0x10] ss:$8 sps:$4 sm:$0xff]   ;;  %v3135_v41 = vld [vmem:[#allocation7 + $0x14] ss:$8 sps:$4 sm:$0xff]  }
  0xe8   :  { %644 = vmatprep.subr.bf16.mxu0 %v3103_v15  ;;  %v223_v42 = vld [vmem:[#allocation8 + $0xa8] sm:$0xff]  ;;  %v222_v43 = vld [vmem:[#allocation8 + $0xa0] sm:$0xff]  ;;  %3001 = vmatprep.subr.bf16.mxu1 %v3135_v41  ;;  %v225_v45 = vld [vmem:[#allocation8 + $0xb8] sm:$0xff] }
  0xe9   :  { %262 = vperm.xlu1 %3093, %v211_v13   ;;  %259 = vperm.xlu0 %3092, %v210_v14   ;;  %v3119_v44 = vld [vmem:[#allocation10 + $0x8] sm:$0xff]   ;;  %v224_v46 = vld [vmem:[#allocation8 + $0xb0] sm:$0xff]  ;;  %v226_v48 = vld [vmem:[#allocation8 + $0xc0] sm:$0xff] }
  0xea   :  { %v227_v47 = vld [vmem:[#allocation8 + $0xc8] sm:$0xff]  ;;  %v3120_v49 = vld [vmem:[#allocation10 + $0x10] sm:$0xff]   ;;  %v229_v50 = vld [vmem:[#allocation8 + $0xd8] sm:$0xff] }
  0xeb   :  { %645 = vmatpush1.bf16.msra.mxu0 %v3105_v16  ;;  %3003 = vmatpush1.bf16.msra.mxu1 %v3133_v40  ;;  %v228_v51 = vld [vmem:[#allocation8 + $0xd0] sm:$0xff]  ;;  %v231_v52 = vld [vmem:[#allocation8 + $0xe8] sm:$0xff]  ;;  %v230_v53 = vld [vmem:[#allocation8 + $0xe0] sm:$0xff] }
  0xec   :  { %646 = vmatprep.subr.bf16.mxu0 %v3106_v19  ;;  %v3121_v54 = vld [vmem:[#allocation10 + $0x18] sm:$0xff]   ;;  %v232_v56 = vld [vmem:[#allocation8 + $0xf0] sm:$0xff]  ;;  %v3125_v57 = vld [vmem:[#allocation10 + $0x20] sm:$0xff]  }
  0xed   :  { %268 = vperm.xlu1 %3093, %v213_v17   ;;  %265 = vperm.xlu0 %3092, %v212_v18   ;;  %v233_v55 = vld [vmem:[#allocation8 + $0xf8] sm:$0xff]  ;;  %v3126_v58 = vld [vmem:[#allocation10 + $0x28] sm:$0xff]   ;;  %v3127_v59 = vld [vmem:[#allocation10 + $0x30] sm:$0xff]  }
  0xee   :  { %v3128_v60 = vld [vmem:[#allocation10 + $0x38] sm:$0xff]   ;;  %v3129_v61 = vld [vmem:[#allocation10 + $0x40] sm:$0xff]   ;;  %v3130_v62 = vld [vmem:[#allocation10 + $0x48] sm:$0xff]  }
  0xef   :  { %647 = vmatpush1.bf16.msra.mxu0 %v3108_v20  ;;  %v3131_v63 = vld [vmem:[#allocation10 + $0x50] sm:$0xff]   ;;  %v3132_v1 = vld [vmem:[#allocation10 + $0x58] sm:$0xff]   ;;  %v3136_v4 = vld [vmem:[#allocation10 + $0x60] sm:$0xff]  }
  0xf0   :  { %648 = vmatprep.subr.bf16.mxu0 %v3109_v23  ;;  %v3137_v13 = vld [vmem:[#allocation10 + $0x68] sm:$0xff]  }
  0xf1   :  { %274 = vperm.xlu1 %3093, %v215_v21   ;;  %271 = vperm.xlu0 %3092, %v214_v22   ;;  %v3138_v21 = vld [vmem:[#allocation10 + $0x70] sm:$0xff]  }
  0xf3   :  { %649 = vmatpush1.bf16.msra.mxu0 %v3111_v24 }
  0xf4   :  { %650 = vmatprep.subr.bf16.mxu0 %v3112_v27 }
  0xf5   :  { %280 = vperm.xlu1 %3093, %v217_v25   ;;  %277 = vperm.xlu0 %3092, %v216_v26  }
  0xf7   :  { %651 = vmatpush1.bf16.msra.mxu0 %v3114_v28 }
  0xf8   :  { %652 = vmatprep.subr.bf16.mxu0 %v3115_v31 }
  0xf9   :  { %238 = vperm.xlu1 %3093, %v203_v29   ;;  %235 = vperm.xlu0 %3092, %v202_v30   ;;  %v3139_v29 = vld [vmem:[#allocation10 + $0x78] sm:$0xff]  }
  0xfb   :  { %653 = vmatpush1.bf16.msra.mxu0 %v3117_v34 }
  0xfc   :  { %912 = vmatprep.subr.bf16.mxu0 %v3124_v33 }
  0xfd   :  { %286 = vperm.xlu1 %3093, %v219_v35   ;;  %283 = vperm.xlu0 %3092, %v218_v36  }
  0xfe   :  { %671 = vmatmul.mubr.bf16.vlgmr.msra.gmra.mrb[0].mxu0 %v3118_v37 }
  0xff   :  { %680 = vmatprep.mubr.bf16.mxu0 %v6392_v0  ;;  %913 = vmatpush1.bf16.msra.mxu0 %v3122_v32 }
 0x100   :  { %914 = vmatprep.subr.bf16.mxu0 %v3135_v41 }
 0x101   :  { %292 = vperm.xlu1 %3093, %v221_v38   ;;  %289 = vperm.xlu0 %3092, %v220_v39  }
 0x103   :  { %915 = vmatpush1.bf16.msra.mxu0 %v3133_v40 }
 0x105   :  { %298 = vperm.xlu1 %3093, %v223_v42   ;;  %295 = vperm.xlu0 %3092, %v222_v43  }
 0x106   :  { %681 = vmatmul.mubr.bf16.gmra.mrb[4].mxu0 %v3119_v44 }
 0x107   :  { %690 = vmatprep.mubr.bf16.mxu0 %v6392_v0 }
 0x109   :  { %304 = vperm.xlu1 %3093, %v225_v45   ;;  %301 = vperm.xlu0 %3092, %v224_v46  }
 0x10d   :  { %310 = vperm.xlu1 %3093, %v227_v47   ;;  %307 = vperm.xlu0 %3092, %v226_v48  }
 0x10e   :  { %691 = vmatmul.mubr.bf16.gmra.mrb[8].mxu0 %v3120_v49 }
 0x10f   :  { %700 = vmatprep.mubr.bf16.mxu0 %v6392_v0 }
 0x111   :  { %316 = vperm.xlu1 %3093, %v229_v50   ;;  %313 = vperm.xlu0 %3092, %v228_v51  }
 0x115   :  { %322 = vperm.xlu1 %3093, %v231_v52   ;;  %319 = vperm.xlu0 %3092, %v230_v53  }
 0x116   :  { %701 = vmatmul.mubr.bf16.gmra.mrb[12].mxu0 %v3121_v54 }
 0x117   :  { %710 = vmatprep.mubr.bf16.mxu0 %v6392_v0 }
 0x119   :  { %328 = vperm.xlu1 %3093, %v233_v55   ;;  %325 = vperm.xlu0 %3092, %v232_v56  }
 0x11e   :  { %711 = vmatmul.mubr.bf16.gmra.mrb[16].mxu0 %v3125_v57 }
 0x11f   :  { %720 = vmatprep.mubr.bf16.mxu0 %v6392_v0 }
 0x126   :  { %721 = vmatmul.mubr.bf16.gmra.mrb[20].mxu0 %v3126_v58 }
 0x127   :  { %730 = vmatprep.mubr.bf16.mxu0 %v6392_v0 }
 0x12e   :  { %731 = vmatmul.mubr.bf16.gmra.mrb[24].mxu0 %v3127_v59 }
 0x12f   :  { %740 = vmatprep.mubr.bf16.mxu0 %v6392_v0 }
 0x136   :  { %741 = vmatmul.mubr.bf16.gmra.mrb[28].mxu0 %v3128_v60 }
 0x137   :  { %750 = vmatprep.mubr.bf16.mxu0 %v6392_v0 }
 0x13e   :  { %751 = vmatmul.mubr.bf16.gmra.mrb[32].mxu0 %v3129_v61 }
 0x13f   :  { %760 = vmatprep.mubr.bf16.mxu0 %v6392_v0 }
 0x146   :  { %761 = vmatmul.mubr.bf16.gmra.mrb[36].mxu0 %v3130_v62 }
 0x147   :  { %770 = vmatprep.mubr.bf16.mxu0 %v6392_v0 }
 0x14e   :  { %771 = vmatmul.mubr.bf16.gmra.mrb[40].mxu0 %v3131_v63 }
 0x14f   :  { %780 = vmatprep.mubr.bf16.mxu0 %v6392_v0 }
 0x156   :  { %781 = vmatmul.mubr.bf16.gmra.mrb[44].mxu0 %v3132_v1 }
 0x157   :  { %790 = vmatprep.mubr.bf16.mxu0 %v6392_v0 }
 0x15c   :  { %v248_v5 = vpop.permute.xlu1 %247  ;;  %v242_v6 = vpop.permute.xlu0 %241 }
 0x15d   :  { %vm332_vm0 = vcmp.eq.s32.totalorder %v4099_v3, %v242_v6  ;;  %vm334_vm3 = vcmp.eq.s32.totalorder %v4099_v3, %v248_v5 }
 0x15e   :  { %791 = vmatmul.mubr.bf16.gmra.mrb[48].mxu0 %v3136_v4  ;;  %v364_v10 = vsel %vm332_vm0, 1.0, %v3833_v9  ;;  %v366_v16 = vsel %vm334_vm3, 1.0, %v3833_v9 }
 0x15f   :  { %800 = vmatprep.mubr.bf16.mxu0 %v6392_v0 }
 0x160   :  { %v251_v7 = vpop.permute.xlu1 %250  ;;  %v245_v8 = vpop.permute.xlu0 %244 }
 0x161   :  { %vm333_vm1 = vcmp.eq.s32.totalorder %v4099_v3, %v245_v8  ;;  %vm335_vm4 = vcmp.eq.s32.totalorder %v4099_v3, %v251_v7 }
 0x162   :  { %v365_v11 = vsel %vm333_vm1, 1.0, %v3833_v9  ;;  %v367_v17 = vsel %vm335_vm4, 1.0, %v3833_v9 }
 0x163   :  { %v395_v12 = vpack.c.bf16 %v365_v11, %v364_v10  ;;  %v396_v20 = vpack.c.bf16 %v367_v17, %v366_v16 }
 0x164   :  { %v257_v14 = vpop.permute.xlu1 %256  ;;  %v254_v15 = vpop.permute.xlu0 %253 }
 0x165   :  { %2909 = vmatmul.mubr.msk.bf16.vlgmr.msra.gmra.mrb[0].mxu1 %vm863_vm2, %v395_v12  ;;  %vm337_vm5 = vcmp.eq.s32.totalorder %v4099_v3, %v257_v14  ;;  %vm336_vm6 = vcmp.eq.s32.totalorder %v4099_v3, %v254_v15 }
 0x166   :  { %964 = vmatprep.mubr.bf16.mxu1 %v6392_v0  ;;  %801 = vmatmul.mubr.bf16.gmra.mrb[52].mxu0 %v3137_v13  ;;  %v369_v24 = vsel %vm337_vm5, 1.0, %v3833_v9  ;;  %v368_v25 = vsel %vm336_vm6, 1.0, %v3833_v9 }
 0x167   :  { %810 = vmatprep.mubr.bf16.mxu0 %v6392_v0  ;;  %v397_v28 = vpack.c.bf16 %v369_v24, %v368_v25 }
 0x168   :  { %v263_v18 = vpop.permute.xlu1 %262  ;;  %v260_v19 = vpop.permute.xlu0 %259 }
 0x169   :  { %vm339_vm7 = vcmp.eq.s32.totalorder %v4099_v3, %v263_v18  ;;  %vm338_vm8 = vcmp.eq.s32.totalorder %v4099_v3, %v260_v19 }
 0x16a   :  { %v371_v32 = vsel %vm339_vm7, 1.0, %v3833_v9  ;;  %v370_v33 = vsel %vm338_vm8, 1.0, %v3833_v9 }
 0x16b   :  { %v398_v38 = vpack.c.bf16 %v371_v32, %v370_v33 }
 0x16c   :  { %v269_v22 = vpop.permute.xlu1 %268  ;;  %v266_v23 = vpop.permute.xlu0 %265 }
 0x16d   :  { %2910 = vmatmul.mubr.msk.bf16.gmra.mrb[4].mxu1 %vm863_vm2, %v396_v20  ;;  %vm341_vm11 = vcmp.eq.s32.totalorder %v4099_v3, %v269_v22  ;;  %vm340_vm12 = vcmp.eq.s32.totalorder %v4099_v3, %v266_v23 }
 0x16e   :  { %974 = vmatprep.mubr.bf16.mxu1 %v6392_v0  ;;  %811 = vmatmul.mubr.bf16.gmra.mrb[56].mxu0 %v3138_v21  ;;  %v373_v42 = vsel %vm341_vm11, 1.0, %v3833_v9  ;;  %v372_v43 = vsel %vm340_vm12, 1.0, %v3833_v9 }
 0x16f   :  { %820 = vmatprep.mubr.bf16.mxu0 %v6392_v0  ;;  %v399_v48 = vpack.c.bf16 %v373_v42, %v372_v43 }
 0x170   :  { %v275_v26 = vpop.permute.xlu1 %274  ;;  %v272_v27 = vpop.permute.xlu0 %271 }
 0x171   :  { %vm343_vm15 = vcmp.eq.s32.totalorder %v4099_v3, %v275_v26  ;;  %vm342_vm0 = vcmp.eq.s32.totalorder %v4099_v3, %v272_v27 }
 0x172   :  { %v375_v55 = vsel %vm343_vm15, 1.0, %v3833_v9  ;;  %v374_v56 = vsel %vm342_vm0, 1.0, %v3833_v9 }
 0x173   :  { %v400_v61 = vpack.c.bf16 %v375_v55, %v374_v56 }
 0x174   :  { %v4120_v30 = vpop.permute.xlu1 %280  ;;  %v4122_v31 = vpop.permute.xlu0 %277 }
 0x175   :  { %2911 = vmatmul.mubr.msk.bf16.gmra.mrb[8].mxu1 %vm863_vm2, %v397_v28  ;;  %vm345_vm6 = vcmp.eq.s32.totalorder %v4099_v3, %v4120_v30  ;;  %vm344_vm7 = vcmp.eq.s32.totalorder %v4099_v3, %v4122_v31 }
 0x176   :  { %984 = vmatprep.mubr.bf16.mxu1 %v6392_v0  ;;  %821 = vmatmul.mubr.bf16.gmra.mrb[60].mxu0 %v3139_v29  ;;  %v377_v7 = vsel %vm345_vm6, 1.0, %v3833_v9  ;;  %v376_v8 = vsel %vm344_vm7, 1.0, %v3833_v9 }
 0x177   :  { %944 = vmatprep.mubr.bf16.mxu0 %v6392_v0  ;;  %v401_v14 = vpack.c.bf16 %v377_v7, %v376_v8 }
 0x178   :  { %v239_v34 = vpop.permute.xlu1 %238  ;;  %v236_v35 = vpop.permute.xlu0 %235 }
 0x179   :  { %vm331_vm9 = vcmp.eq.s32.totalorder %v4099_v3, %v239_v34  ;;  %vm330_vm10 = vcmp.eq.s32.totalorder %v4099_v3, %v236_v35 }
 0x17a   :  { %v363_v36 = vsel %vm331_vm9, 1.0, %v3833_v9  ;;  %v362_v37 = vsel %vm330_vm10, 1.0, %v3833_v9 }
 0x17b   :  { %v394_v39 = vpack.c.bf16 %v363_v36, %v362_v37 }
 0x17c   :  { %v4135_v40 = vpop.permute.xlu1 %286  ;;  %v4137_v41 = vpop.permute.xlu0 %283 }
 0x17d   :  { %2912 = vmatmul.mubr.msk.bf16.gmra.mrb[12].mxu1 %vm863_vm2, %v398_v38  ;;  %vm347_vm12 = vcmp.eq.s32.totalorder %v4099_v3, %v4135_v40 }
 0x17e   :  { %994 = vmatprep.mubr.bf16.mxu1 %v6392_v0  ;;  %2908 = vmatmul.mubr.msk.bf16.vlgmr.msra.gmra.mrb[0].mxu0 %vm863_vm2, %v394_v39  ;;  %v379_v21 = vsel %vm347_vm12, 1.0, %v3833_v9 }
 0x180   :  { %v293_v44 = vpop.permute.xlu1 %292  ;;  %v290_v45 = vpop.permute.xlu0 %289 }
 0x181   :  { %vm349_vm13 = vcmp.eq.s32.totalorder %v4099_v3, %v293_v44  ;;  %vm348_vm14 = vcmp.eq.s32.totalorder %v4099_v3, %v290_v45 }
 0x182   :  { %v4149_v46 = vsel %vm349_vm13, 1.0, %v3833_v9  ;;  %v4152_v47 = vsel %vm348_vm14, 1.0, %v3833_v9  ;;  %vm346_vm13 = vcmp.eq.s32.totalorder %v4099_v3, %v4137_v41 }
 0x183   :  { %v403_v49 = vpack.c.bf16 %v4149_v46, %v4152_v47  ;;  %v378_v22 = vsel %vm346_vm13, 1.0, %v3833_v9 }
 0x184   :  { %v299_v50 = vpop.permute.xlu1 %298  ;;  %v296_v51 = vpop.permute.xlu0 %295  ;;  %v402_v27 = vpack.c.bf16 %v379_v21, %v378_v22 }
 0x185   :  { %vm351_vm1 = vcmp.eq.s32.totalorder %v4099_v3, %v299_v50  ;;  %vm350_vm3 = vcmp.eq.s32.totalorder %v4099_v3, %v296_v51  ;;  %2913 = vmatmul.mubr.msk.bf16.gmra.mrb[16].mxu1 %vm863_vm2, %v399_v48 }
 0x186   :  { %v383_v52 = vsel %vm351_vm1, 1.0, %v3833_v9  ;;  %v382_v53 = vsel %vm350_vm3, 1.0, %v3833_v9  ;;  %1004 = vmatprep.mubr.bf16.mxu1 %v6392_v0 }
 0x187   :  { %v404_v54 = vpack.c.bf16 %v383_v52, %v382_v53 }
 0x188   :  { %v305_v57 = vpop.permute.xlu1 %304  ;;  %v302_v58 = vpop.permute.xlu0 %301 }
 0x189   :  { %vm353_vm4 = vcmp.eq.s32.totalorder %v4099_v3, %v305_v57  ;;  %vm352_vm5 = vcmp.eq.s32.totalorder %v4099_v3, %v302_v58 }
 0x18a   :  { %v385_v59 = vsel %vm353_vm4, 1.0, %v3833_v9  ;;  %v384_v60 = vsel %vm352_vm5, 1.0, %v3833_v9 }
 0x18b   :  { %v405_v62 = vpack.c.bf16 %v385_v59, %v384_v60 }
 0x18c   :  { %v311_v63 = vpop.permute.xlu1 %310  ;;  %v308_v1 = vpop.permute.xlu0 %307 }
 0x18d   :  { %vm355_vm8 = vcmp.eq.s32.totalorder %v4099_v3, %v311_v63  ;;  %vm354_vm9 = vcmp.eq.s32.totalorder %v4099_v3, %v308_v1  ;;  %2914 = vmatmul.mubr.msk.bf16.gmra.mrb[20].mxu1 %vm863_vm2, %v400_v61 }
 0x18e   :  { %v387_v4 = vsel %vm355_vm8, 1.0, %v3833_v9  ;;  %v386_v5 = vsel %vm354_vm9, 1.0, %v3833_v9  ;;  %1014 = vmatprep.mubr.bf16.mxu1 %v6392_v0 }
 0x18f   :  { %v406_v6 = vpack.c.bf16 %v387_v4, %v386_v5 }
 0x190   :  { %v317_v10 = vpop.permute.xlu1 %316  ;;  %v314_v11 = vpop.permute.xlu0 %313 }
 0x191   :  { %vm357_vm10 = vcmp.eq.s32.totalorder %v4099_v3, %v317_v10  ;;  %vm356_vm11 = vcmp.eq.s32.totalorder %v4099_v3, %v314_v11 }
 0x192   :  { %v389_v12 = vsel %vm357_vm10, 1.0, %v3833_v9  ;;  %v388_v13 = vsel %vm356_vm11, 1.0, %v3833_v9 }
 0x193   :  { %v407_v15 = vpack.c.bf16 %v389_v12, %v388_v13 }
 0x194   :  { %v323_v16 = vpop.permute.xlu1 %322  ;;  %v320_v17 = vpop.permute.xlu0 %319 }
 0x195   :  { %vm359_vm14 = vcmp.eq.s32.totalorder %v4099_v3, %v323_v16  ;;  %vm358_vm15 = vcmp.eq.s32.totalorder %v4099_v3, %v320_v17  ;;  %2915 = vmatmul.mubr.msk.bf16.gmra.mrb[24].mxu1 %vm863_vm2, %v401_v14 }
 0x196   :  { %v391_v18 = vsel %vm359_vm14, 1.0, %v3833_v9  ;;  %v390_v19 = vsel %vm358_vm15, 1.0, %v3833_v9  ;;  %1024 = vmatprep.mubr.bf16.mxu1 %v6392_v0 }
 0x197   :  { %v408_v20 = vpack.c.bf16 %v391_v18, %v390_v19 }
 0x198   :  { %v329_v23 = vpop.permute.xlu1 %328  ;;  %v326_v24 = vpop.permute.xlu0 %325 }
 0x199   :  { %vm361_vm0 = vcmp.eq.s32.totalorder %v4099_v3, %v329_v23  ;;  %vm360_vm1 = vcmp.eq.s32.totalorder %v4099_v3, %v326_v24 }
 0x19a   :  { %v393_v25 = vsel %vm361_vm0, 1.0, %v3833_v9  ;;  %v392_v26 = vsel %vm360_vm1, 1.0, %v3833_v9 }
 0x19b   :  { %v409_v28 = vpack.c.bf16 %v393_v25, %v392_v26 }
 0x19d   :  { %2916 = vmatmul.mubr.msk.bf16.gmra.mrb[28].mxu1 %vm863_vm2, %v402_v27 }
 0x19e   :  { %1034 = vmatprep.mubr.bf16.mxu1 %v6392_v0 }
 0x1a5   :  { %2917 = vmatmul.mubr.msk.bf16.gmra.mrb[32].mxu1 %vm863_vm2, %v403_v49 }
 0x1a6   :  { %1044 = vmatprep.mubr.bf16.mxu1 %v6392_v0 }
 0x1ad   :  { %2918 = vmatmul.mubr.msk.bf16.gmra.mrb[36].mxu1 %vm863_vm2, %v404_v54 }
 0x1ae   :  { %1054 = vmatprep.mubr.bf16.mxu1 %v6392_v0 }
 0x1b5   :  { %2919 = vmatmul.mubr.msk.bf16.gmra.mrb[40].mxu1 %vm863_vm2, %v405_v62 }
 0x1b6   :  { %1064 = vmatprep.mubr.bf16.mxu1 %v6392_v0 }
 0x1bd   :  { %2920 = vmatmul.mubr.msk.bf16.gmra.mrb[44].mxu1 %vm863_vm2, %v406_v6 }
 0x1be   :  { %1074 = vmatprep.mubr.bf16.mxu1 %v6392_v0 }
 0x1c5   :  { %2921 = vmatmul.mubr.msk.bf16.gmra.mrb[48].mxu1 %vm863_vm2, %v407_v15 }
 0x1c6   :  { %1084 = vmatprep.mubr.bf16.mxu1 %v6392_v0 }
 0x1cd   :  { %2922 = vmatmul.mubr.msk.bf16.gmra.mrb[52].mxu1 %vm863_vm2, %v408_v20 }
 0x1ce   :  { %1094 = vmatprep.mubr.bf16.mxu1 %v6392_v0 }
 0x1d5   :  { %2923 = vmatmul.mubr.msk.bf16.gmra.mrb[56].mxu1 %vm863_vm2, %v409_v28 }
 0x1d6   :  { %2688 = vmatprep.mubr.bf16.mxu1 %v6392_v0 }
 0x1d9   :  { %v682_v3 = vpop.f32.mrb[4].mxu0 }
 0x1da   :  { %v684_v9 = vpop.f32.mrb[5].mxu0 }
 0x1db   :  { %v686_v29 = vpop.f32.mrb[6].mxu0 }
 0x1dc   :  { %v688_v30 = vpop.f32.mrb[7].mxu0 }
 0x1e1   :  { %v692_v31 = vpop.f32.mrb[8].mxu0 }
 0x1e2   :  { %v694_v32 = vpop.f32.mrb[9].mxu0 }
 0x1e3   :  { %v696_v33 = vpop.f32.mrb[10].mxu0 }
 0x1e4   :  { %v698_v34 = vpop.f32.mrb[11].mxu0 }
 0x1e9   :  { %v4221_v35 = vpop.f32.mrb[12].mxu0 }
 0x1ea   :  { %v4223_v36 = vpop.f32.mrb[13].mxu0 }
 0x1eb   :  { %v4225_v37 = vpop.f32.mrb[14].mxu0 }
 0x1ec   :  { %v4227_v38 = vpop.f32.mrb[15].mxu0 }
 0x1f1   :  { %v4229_v39 = vpop.f32.mrb[16].mxu0 }
 0x1f2   :  { %v4231_v40 = vpop.f32.mrb[17].mxu0 }
 0x1f3   :  { %v4233_v41 = vpop.f32.mrb[18].mxu0 }
 0x1f4   :  { %v4235_v42 = vpop.f32.mrb[19].mxu0 }
 0x1f9   :  { %v4237_v43 = vpop.f32.mrb[20].mxu0 }
 0x1fa   :  { %v4239_v44 = vpop.f32.mrb[21].mxu0 }
 0x1fb   :  { %v4241_v45 = vpop.f32.mrb[22].mxu0 }
 0x1fc   :  { %v4243_v46 = vpop.f32.mrb[23].mxu0 }
 0x201   :  { %v4245_v47 = vpop.f32.mrb[24].mxu0 }
 0x202   :  { %v4247_v48 = vpop.f32.mrb[25].mxu0 }
 0x203   :  { %v4249_v49 = vpop.f32.mrb[26].mxu0 }
 0x204   :  { %v4251_v50 = vpop.f32.mrb[27].mxu0 }
 0x209   :  { %v4253_v51 = vpop.f32.mrb[28].mxu0 }
 0x20a   :  { %v4255_v52 = vpop.f32.mrb[29].mxu0 }
 0x20b   :  { %v4257_v53 = vpop.f32.mrb[30].mxu0 }
 0x20c   :  { %v4259_v54 = vpop.f32.mrb[31].mxu0 }
 0x211   :  { %v4261_v55 = vpop.f32.mrb[32].mxu0 }
 0x212   :  { %v4263_v56 = vpop.f32.mrb[33].mxu0 }
 0x213   :  { %v4265_v57 = vpop.f32.mrb[34].mxu0 }
 0x214   :  { %v4267_v58 = vpop.f32.mrb[35].mxu0 }
 0x219   :  { %v4269_v59 = vpop.f32.mrb[36].mxu0 }
 0x21a   :  { %6567 = vst [vmem:[#allocation35_spill] sm:$0xff] %v4269_v59  ;;  %v4271_v60 = vpop.f32.mrb[37].mxu0 }
 0x21b   :  { %6568 = vst [vmem:[#allocation36_spill] sm:$0xff] %v4271_v60  ;;  %v4273_v61 = vpop.f32.mrb[38].mxu0 }
 0x21c   :  { %6569 = vst [vmem:[#allocation37_spill] sm:$0xff] %v4273_v61  ;;  %v4275_v62 = vpop.f32.mrb[39].mxu0 }
 0x21d   :  { %6570 = vst [vmem:[#allocation38_spill] sm:$0xff] %v4275_v62 }
 0x221   :  { %v4277_v63 = vpop.f32.mrb[40].mxu0 }
 0x222   :  { %6571 = vst [vmem:[#allocation39_spill] sm:$0xff] %v4277_v63  ;;  %v4279_v1 = vpop.f32.mrb[41].mxu0 }
 0x223   :  { %6572 = vst [vmem:[#allocation40_spill] sm:$0xff] %v4279_v1  ;;  %v4281_v4 = vpop.f32.mrb[42].mxu0 }
 0x224   :  { %6573 = vst [vmem:[#allocation41_spill] sm:$0xff] %v4281_v4  ;;  %v4283_v5 = vpop.f32.mrb[43].mxu0 }
 0x225   :  { %6574 = vst [vmem:[#allocation42_spill] sm:$0xff] %v4283_v5 }
 0x229   :  { %v4285_v6 = vpop.f32.mrb[44].mxu0 }
 0x22a   :  { %6575 = vst [vmem:[#allocation43_spill] sm:$0xff] %v4285_v6  ;;  %v4287_v7 = vpop.f32.mrb[45].mxu0 }
 0x22b   :  { %6576 = vst [vmem:[#allocation44_spill] sm:$0xff] %v4287_v7  ;;  %v4289_v8 = vpop.f32.mrb[46].mxu0 }
 0x22c   :  { %6577 = vst [vmem:[#allocation45_spill] sm:$0xff] %v4289_v8  ;;  %v4291_v10 = vpop.f32.mrb[47].mxu0 }
 0x22d   :  { %6578 = vst [vmem:[#allocation46_spill] sm:$0xff] %v4291_v10 }
 0x231   :  { %v4293_v11 = vpop.f32.mrb[48].mxu0 }
 0x232   :  { %6579 = vst [vmem:[#allocation47_spill] sm:$0xff] %v4293_v11  ;;  %v4295_v12 = vpop.f32.mrb[49].mxu0 }
 0x233   :  { %6580 = vst [vmem:[#allocation48_spill] sm:$0xff] %v4295_v12  ;;  %v4297_v13 = vpop.f32.mrb[50].mxu0 }
 0x234   :  { %6581 = vst [vmem:[#allocation49_spill] sm:$0xff] %v4297_v13  ;;  %v4299_v14 = vpop.f32.mrb[51].mxu0 }
 0x235   :  { %6582 = vst [vmem:[#allocation50_spill] sm:$0xff] %v4299_v14 }
 0x238   :  { %v956_v15 = vpop.f32.mrb[0].mxu1 }
 0x239   :  { %v957_v16 = vadd.f32 %v956_v15, %v682_v3  ;;  %v958_v17 = vpop.f32.mrb[1].mxu1  ;;  %v4301_v20 = vpop.f32.mrb[52].mxu0 }
 0x23a   :  { %v959_v18 = vadd.f32 %v958_v17, %v684_v9  ;;  %v960_v19 = vpop.f32.mrb[2].mxu1  ;;  %6583 = vst [vmem:[#allocation51_spill] sm:$0xff] %v4301_v20  ;;  %v4303_v23 = vpop.f32.mrb[53].mxu0 }
 0x23b   :  { %v961_v21 = vadd.f32 %v960_v19, %v686_v29  ;;  %v962_v22 = vpop.f32.mrb[3].mxu1  ;;  %6584 = vst [vmem:[#allocation52_spill] sm:$0xff] %v4303_v23  ;;  %v4305_v25 = vpop.f32.mrb[54].mxu0 }
 0x23c   :  { %v963_v24 = vadd.f32 %v962_v22, %v688_v30  ;;  %6585 = vst [vmem:[#allocation53_spill] sm:$0xff] %v4305_v25  ;;  %v4307_v26 = vpop.f32.mrb[55].mxu0  ;;  %v833_v22 = vld [vmem:[#allocation5 + $0x10] sm:$0xff] }
 0x23d   :  { %6586 = vst [vmem:[#allocation54_spill] sm:$0xff] %v4307_v26 }
 0x240   :  { %v966_v27 = vpop.f32.mrb[4].mxu1 }
 0x241   :  { %v967_v28 = vadd.f32 %v966_v27, %v692_v31  ;;  %v968_v0 = vpop.f32.mrb[5].mxu1  ;;  %v4309_v3 = vpop.f32.mrb[56].mxu0  ;;  %v834_v31 = vld [vmem:[#allocation5 + $0x18] sm:$0xff] }
 0x242   :  { %v969_v2 = vadd.f32 %v968_v0, %v694_v32  ;;  %v970_v14 = vpop.f32.mrb[6].mxu1  ;;  %6587 = vst [vmem:[#allocation55_spill] sm:$0xff] %v4309_v3  ;;  %v4311_v17 = vpop.f32.mrb[57].mxu0 }
 0x243   :  { %v971_v9 = vadd.f32 %v970_v14, %v696_v33  ;;  %v972_v15 = vpop.f32.mrb[7].mxu1  ;;  %6588 = vst [vmem:[#allocation56_spill] sm:$0xff] %v4311_v17  ;;  %v4313_v19 = vpop.f32.mrb[58].mxu0  ;;  %v831_v33 = vld [vmem:[#allocation5] sm:$0xff] }
 0x244   :  { %v973_v29 = vadd.f32 %v972_v15, %v698_v34  ;;  %6589 = vst [vmem:[#allocation57_spill] sm:$0xff] %v4313_v19  ;;  %v4315_v23 = vpop.f32.mrb[59].mxu0  ;;  %v4324_v15 = vunpack.c.l.bf16 %v833_v22 }
 0x245   :  { %6590 = vst [vmem:[#allocation58_spill] sm:$0xff] %v4315_v23 }
 0x248   :  { %v976_v30 = vpop.f32.mrb[8].mxu1 }
 0x249   :  { %v977_v26 = vadd.f32 %v976_v30, %v4221_v35  ;;  %v978_v25 = vpop.f32.mrb[9].mxu1  ;;  %v4319_v27 = vpop.f32.mrb[60].mxu0  ;;  %v4329_v35 = vunpack.c.h.bf16 %v833_v22  ;;  %v4331_v30 = vunpack.c.l.bf16 %v834_v31 }
 0x24a   :  { %v979_v0 = vadd.f32 %v978_v25, %v4223_v36  ;;  %v980_v32 = vpop.f32.mrb[10].mxu1  ;;  %6591 = vst [vmem:[#allocation59_spill] sm:$0xff] %v4319_v27  ;;  %v4322_v34 = vpop.f32.mrb[61].mxu0  ;;  %v4333_v36 = vunpack.c.h.bf16 %v834_v31  ;;  %v4337_v27 = vunpack.c.l.bf16 %v831_v33 }
 0x24b   :  { %v981_v14 = vadd.f32 %v980_v32, %v4225_v37  ;;  %v982_v17 = vpop.f32.mrb[11].mxu1  ;;  %6592 = vst [vmem:[#allocation60_spill] sm:$0xff] %v4322_v34  ;;  %v4327_v19 = vpop.f32.mrb[62].mxu0  ;;  %v832_v37 = vld [vmem:[#allocation5 + $0x8] sm:$0xff]  ;;  %v4340_v32 = vadd.f32 %v957_v16, %v4324_v15  ;;  %v4343_v3 = vadd.f32 %v959_v18, %v4329_v35 }
 0x24c   :  { %v983_v23 = vadd.f32 %v982_v17, %v4227_v38  ;;  %6593 = vst [vmem:[#allocation61_spill] sm:$0xff] %v4327_v19  ;;  %v4335_v25 = vpop.f32.mrb[63].mxu0  ;;  %v4346_v38 = vadd.f32 %v961_v21, %v4331_v30  ;;  %v4349_v17 = vadd.f32 %v963_v24, %v4333_v36  ;;  %v4357_v19 = vunpack.c.h.bf16 %v831_v33 }
 0x24d   :  { %6594 = vst [vmem:[#allocation62_spill] sm:$0xff] %v4335_v25  ;;  %v4355_v25 = vadd.f32 %v967_v28, %v4337_v27  ;;  %v4359_v16 = vunpack.c.l.bf16 %v832_v37  ;;  %v4362_v21 = vunpack.c.h.bf16 %v832_v37  ;;  %v1247_v28 = vmul.f32 %v4340_v32, %v4340_v32 }
 0x24e   :  { %v1248_v37 = vmul.f32 %v4343_v3, %v4343_v3  ;;  %v4386_v10 = vadd.f32 %v969_v2, %v4357_v19  ;;  %v4404_v2 = vadd.f32 %v977_v26, %v4324_v15  ;;  %v4413_v4 = vadd.f32 %v979_v0, %v4329_v35 }
 0x24f   :  { %v4395_v8 = vadd.f32 %v973_v29, %v4362_v21  ;;  %v4418_v63 = vadd.f32 %v981_v14, %v4331_v30 }
 0x250   :  { %v986_v34 = vpop.f32.mrb[12].mxu1 }
 0x251   :  { %v4352_v22 = vadd.f32 %v986_v34, %v4229_v39  ;;  %v988_v31 = vpop.f32.mrb[13].mxu1  ;;  %v946_v20 = vpop.f32.mrb[0].mxu0 }
 0x252   :  { %v989_v18 = vadd.f32 %v988_v31, %v4231_v40  ;;  %v990_v13 = vpop.f32.mrb[14].mxu1  ;;  %v4365_v24 = vadd.f32 %v946_v20, %v4337_v27  ;;  %v948_v34 = vpop.f32.mrb[1].mxu0  ;;  %v1249_v20 = vmul.f32 %v4346_v38, %v4346_v38 }
 0x253   :  { %v991_v39 = vadd.f32 %v990_v13, %v4233_v41  ;;  %v992_v12 = vpop.f32.mrb[15].mxu1  ;;  %v4371_v33 = vadd.f32 %v948_v34, %v4357_v19  ;;  %v950_v40 = vpop.f32.mrb[2].mxu0  ;;  %v1250_v41 = vmul.f32 %v4349_v17, %v4349_v17  ;;  %v1251_v34 = vmul.f32 %v4355_v25, %v4355_v25 }
 0x254   :  { %6595 = vst [vmem:[#allocation63_spill] sm:$0xff] %v4365_v24  ;;  %v993_v11 = vadd.f32 %v992_v12, %v4235_v42  ;;  %v4381_v13 = vadd.f32 %v950_v40, %v4359_v16  ;;  %v952_v31 = vpop.f32.mrb[3].mxu0  ;;  %v4389_v42 = vadd.f32 %v971_v9, %v4359_v16  ;;  %v1243_v40 = vmul.f32 %v4365_v24, %v4365_v24 }
 0x255   :  { %6596 = vst [vmem:[#allocation64_spill] sm:$0xff] %v4371_v33  ;;  %v4392_v12 = vadd.f32 %v952_v31, %v4362_v21  ;;  %v1244_v9 = vmul.f32 %v4371_v33, %v4371_v33 }
 0x256   :  { %6597 = vst [vmem:[#allocation65_spill] sm:$0xff] %v4381_v13  ;;  %v1169_v7 = vadd.f32 %v4381_v13, %v4365_v24  ;;  %v1245_v6 = vmul.f32 %v4381_v13, %v4381_v13 }
 0x257   :  { %6598 = vst [vmem:[#allocation66_spill] sm:$0xff] %v4392_v12  ;;  %v1206_v31 = vadd.f32 %v4392_v12, %v4371_v33  ;;  %v1246_v29 = vmul.f32 %v4392_v12, %v4392_v12  ;;  %v4423_v12 = vadd.f32 %v983_v23, %v4333_v36  ;;  %v1254_v23 = vmul.f32 %v4395_v8, %v4395_v8 }
 0x258   :  { %v996_v5 = vpop.f32.mrb[16].mxu1  ;;  %v1170_v24 = vadd.f32 %v1169_v7, %v4340_v32  ;;  %v1307_v1 = vadd.f32 %v1245_v6, %v1243_v40 }
 0x259   :  { %v997_v13 = vadd.f32 %v996_v5, %v4237_v43  ;;  %v998_v26 = vpop.f32.mrb[17].mxu1  ;;  %v1207_v62 = vadd.f32 %v1206_v31, %v4343_v3  ;;  %v1344_v61 = vadd.f32 %v1246_v29, %v1244_v9  ;;  %v1252_v43 = vmul.f32 %v4386_v10, %v4386_v10 }
 0x25a   :  { %v999_v33 = vadd.f32 %v998_v26, %v4239_v44  ;;  %v1000_v60 = vpop.f32.mrb[18].mxu1  ;;  %v1171_v0 = vadd.f32 %v1170_v24, %v4346_v38  ;;  %v1308_v59 = vadd.f32 %v1307_v1, %v1247_v28  ;;  %v1253_v44 = vmul.f32 %v4389_v42, %v4389_v42 }
 0x25b   :  { %v1001_v6 = vadd.f32 %v1000_v60, %v4241_v45  ;;  %v1002_v7 = vpop.f32.mrb[19].mxu1  ;;  %v1208_v5 = vadd.f32 %v1207_v62, %v4349_v17  ;;  %v1345_v14 = vadd.f32 %v1344_v61, %v1248_v37  ;;  %v1255_v45 = vmul.f32 %v4404_v2, %v4404_v2 }
 0x25c   :  { %v1003_v40 = vadd.f32 %v1002_v7, %v4243_v46  ;;  %v1172_v24 = vadd.f32 %v1171_v0, %v4355_v25  ;;  %v1309_v1 = vadd.f32 %v1308_v59, %v1249_v20  ;;  %v1256_v60 = vmul.f32 %v4413_v4, %v4413_v4 }
 0x25d   :  { %v1209_v62 = vadd.f32 %v1208_v5, %v4386_v10  ;;  %v1346_v61 = vadd.f32 %v1345_v14, %v1250_v41  ;;  %v1257_v46 = vmul.f32 %v4418_v63, %v4418_v63  ;;  %v1258_v28 = vmul.f32 %v4423_v12, %v4423_v12 }
 0x25e   :  { %v1173_v37 = vadd.f32 %v1172_v24, %v4389_v42  ;;  %v1310_v9 = vadd.f32 %v1309_v1, %v1251_v34  ;;  %v4448_v59 = vadd.f32 %v4352_v22, %v4337_v27  ;;  %v4451_v20 = vadd.f32 %v989_v18, %v4357_v19 }
 0x25f   :  { %v1210_v31 = vadd.f32 %v1209_v62, %v4395_v8  ;;  %v1347_v29 = vadd.f32 %v1346_v61, %v1252_v43  ;;  %v4455_v26 = vadd.f32 %v991_v39, %v4359_v16  ;;  %v4460_v14 = vadd.f32 %v993_v11, %v4362_v21 }
 0x260   :  { %6599 = vst [vmem:[#allocation67_spill] sm:$0xff] %v4451_v20  ;;  %v1006_v41 = vpop.f32.mrb[20].mxu1  ;;  %v1311_v0 = vadd.f32 %v1310_v9, %v1253_v44  ;;  %v1174_v7 = vadd.f32 %v1173_v37, %v4404_v2  ;;  %v4465_v43 = vadd.f32 %v997_v13, %v4324_v15 }
 0x261   :  { %v1007_v5 = vadd.f32 %v1006_v41, %v4245_v47  ;;  %v1008_v34 = vpop.f32.mrb[21].mxu1  ;;  %6600 = vst [vmem:[#allocation68_spill] sm:$0xff] %v4460_v14  ;;  %v1348_v22 = vadd.f32 %v1347_v29, %v1254_v23  ;;  %v1211_v18 = vadd.f32 %v1210_v31, %v4413_v4  ;;  %v4470_v47 = vadd.f32 %v999_v33, %v4329_v35 }
 0x262   :  { %v1009_v24 = vadd.f32 %v1008_v34, %v4247_v48  ;;  %v1010_v1 = vpop.f32.mrb[22].mxu1  ;;  %v1175_v39 = vadd.f32 %v1174_v7, %v4418_v63  ;;  %v1312_v44 = vadd.f32 %v1311_v0, %v1255_v45  ;;  %v1259_v48 = vmul.f32 %v4448_v59, %v4448_v59 }
 0x263   :  { %v1011_v62 = vadd.f32 %v1010_v1, %v4249_v49  ;;  %v1012_v61 = vpop.f32.mrb[23].mxu1  ;;  %6601 = vst [vmem:[#allocation69_spill] sm:$0xff] %v4470_v47  ;;  %v1212_v11 = vadd.f32 %v1211_v18, %v4423_v12  ;;  %v1349_v23 = vadd.f32 %v1348_v22, %v1256_v60  ;;  %v1260_v45 = vmul.f32 %v4451_v20, %v4451_v20 }
 0x264   :  { %v1013_v37 = vadd.f32 %v1012_v61, %v4251_v50  ;;  %v1176_v13 = vadd.f32 %v1175_v39, %v4448_v59  ;;  %v1313_v9 = vadd.f32 %v1312_v44, %v1257_v46  ;;  %v4481_v33 = vadd.f32 %v1001_v6, %v4331_v30 }
 0x265   :  { %v1213_v49 = vadd.f32 %v1212_v11, %v4451_v20  ;;  %v1350_v31 = vadd.f32 %v1349_v23, %v1258_v28  ;;  %v1261_v60 = vmul.f32 %v4455_v26, %v4455_v26  ;;  %v1262_v50 = vmul.f32 %v4460_v14, %v4460_v14 }
 0x266   :  { %v1177_v29 = vadd.f32 %v1176_v13, %v4455_v26  ;;  %v1314_v41 = vadd.f32 %v1313_v9, %v1259_v48  ;;  %v1263_v46 = vmul.f32 %v4465_v43, %v4465_v43  ;;  %v1264_v28 = vmul.f32 %v4470_v47, %v4470_v47 }
 0x267   :  { %v1214_v0 = vadd.f32 %v1213_v49, %v4460_v14  ;;  %v1351_v7 = vadd.f32 %v1350_v31, %v1260_v45  ;;  %v4495_v18 = vadd.f32 %v1003_v40, %v4333_v36  ;;  %v1265_v11 = vmul.f32 %v4481_v33, %v4481_v33 }
 0x268   :  { %v1016_v6 = vpop.f32.mrb[24].mxu1  ;;  %v1178_v34 = vadd.f32 %v1177_v29, %v4465_v43  ;;  %v1315_v22 = vadd.f32 %v1314_v41, %v1261_v60  ;;  %v4504_v45 = vadd.f32 %v1007_v5, %v4337_v27 }
 0x269   :  { %6602 = vst [vmem:[#allocation70_spill] sm:$0xff] %v4495_v18  ;;  %v1017_v1 = vadd.f32 %v1016_v6, %v4253_v51  ;;  %v1018_v39 = vpop.f32.mrb[25].mxu1  ;;  %v1215_v44 = vadd.f32 %v1214_v0, %v4470_v47  ;;  %v1352_v61 = vadd.f32 %v1351_v7, %v1262_v50  ;;  %v1266_v29 = vmul.f32 %v4495_v18, %v4495_v18 }
 0x26a   :  { %v1019_v23 = vadd.f32 %v1018_v39, %v4255_v52  ;;  %v1020_v48 = vpop.f32.mrb[26].mxu1  ;;  %v1316_v13 = vadd.f32 %v1315_v22, %v1263_v46  ;;  %v1179_v9 = vadd.f32 %v1178_v34, %v4481_v33  ;;  %v4512_v52 = vadd.f32 %v1009_v24, %v4357_v19 }
 0x26b   :  { %v1021_v40 = vadd.f32 %v1020_v48, %v4257_v53  ;;  %v1022_v49 = vpop.f32.mrb[27].mxu1  ;;  %v1353_v51 = vadd.f32 %v1352_v61, %v1264_v28  ;;  %v1216_v50 = vadd.f32 %v1215_v44, %v4495_v18  ;;  %v1267_v5 = vmul.f32 %v4504_v45, %v4504_v45 }
 0x26c   :  { %v1023_v31 = vadd.f32 %v1022_v49, %v4259_v54  ;;  %v1317_v60 = vadd.f32 %v1316_v13, %v1265_v11  ;;  %6603 = vst [vmem:[#allocation71_spill] sm:$0xff] %v4512_v52  ;;  %v1180_v41 = vadd.f32 %v1179_v9, %v4504_v45  ;;  %v4518_v53 = vadd.f32 %v1011_v62, %v4359_v16 }
 0x26d   :  { %v1354_v46 = vadd.f32 %v1353_v51, %v1266_v29  ;;  %v1217_v6 = vadd.f32 %v1216_v50, %v4512_v52  ;;  %v1268_v24 = vmul.f32 %v4512_v52, %v4512_v52  ;;  %v4525_v34 = vadd.f32 %v1013_v37, %v4362_v21 }
 0x26e   :  { %v1318_v54 = vadd.f32 %v1317_v60, %v1267_v5  ;;  %v1181_v62 = vadd.f32 %v1180_v41, %v4518_v53  ;;  %v1269_v44 = vmul.f32 %v4518_v53, %v4518_v53  ;;  %v4532_v61 = vadd.f32 %v1017_v1, %v4324_v15  ;;  %v6606_v41 = vld [vmem:[#allocation35_spill] sm:$0xff] }
 0x26f   :  { %6604 = vst [vmem:[#allocation72_spill] sm:$0xff] %v4525_v34  ;;  %v1355_v48 = vadd.f32 %v1354_v46, %v1268_v24  ;;  %v1218_v37 = vadd.f32 %v1217_v6, %v4525_v34  ;;  %v4540_v49 = vadd.f32 %v1019_v23, %v4329_v35 }
 0x270   :  { %v1026_v0 = vpop.f32.mrb[28].mxu1  ;;  %v1319_v9 = vadd.f32 %v1318_v54, %v1269_v44  ;;  %v1182_v51 = vadd.f32 %v1181_v62, %v4532_v61  ;;  %v1271_v1 = vmul.f32 %v4532_v61, %v4532_v61  ;;  %v4556_v54 = vadd.f32 %v1023_v31, %v4333_v36 }
 0x271   :  { %v1027_v28 = vadd.f32 %v1026_v0, %v4261_v55  ;;  %v1028_v7 = vpop.f32.mrb[29].mxu1  ;;  %6605 = vst [vmem:[#allocation73_spill] sm:$0xff] %v4540_v49  ;;  %v1219_v23 = vadd.f32 %v1218_v37, %v4540_v49  ;;  %v1272_v0 = vmul.f32 %v4540_v49, %v4540_v49  ;;  %v6622_v49 = vld [vmem:[#allocation45_spill] sm:$0xff] }
 0x272   :  { %v1029_v22 = vadd.f32 %v1028_v7, %v4263_v56  ;;  %v1030_v39 = vpop.f32.mrb[30].mxu1  ;;  %v1270_v56 = vmul.f32 %v4525_v34, %v4525_v34  ;;  %6607 = vst [vmem:[#allocation35_spill] sm:$0xff] %v4556_v54  ;;  %v6608_v7 = vld [vmem:[#allocation36_spill] sm:$0xff] }
 0x273   :  { %v1031_v55 = vadd.f32 %v1030_v39, %v4265_v57  ;;  %v1032_v11 = vpop.f32.mrb[31].mxu1  ;;  %v4546_v57 = vadd.f32 %v1021_v40, %v4331_v30  ;;  %v4549_v29 = vadd.f32 %v1027_v28, %v4337_v27  ;;  %v6609_v39 = vld [vmem:[#allocation37_spill] sm:$0xff] }
 0x274   :  { %v1033_v13 = vadd.f32 %v1032_v11, %v4267_v58  ;;  %v1356_v60 = vadd.f32 %v1355_v48, %v1270_v56  ;;  %v1320_v58 = vadd.f32 %v1319_v9, %v1271_v1  ;;  %v4564_v48 = vadd.f32 %v1029_v22, %v4357_v19  ;;  %v6611_v9 = vld [vmem:[#allocation38_spill] sm:$0xff] }
 0x275   :  { %v1183_v24 = vadd.f32 %v1182_v51, %v4546_v57  ;;  %v1273_v28 = vmul.f32 %v4546_v57, %v4546_v57  ;;  %v1275_v31 = vmul.f32 %v4549_v29, %v4549_v29  ;;  %v4570_v1 = vadd.f32 %v1031_v55, %v4359_v16 }
 0x276   :  { %v1357_v11 = vadd.f32 %v1356_v60, %v1272_v0  ;;  %6610 = vst [vmem:[#allocation36_spill] sm:$0xff] %v4564_v48  ;;  %v1220_v51 = vadd.f32 %v1219_v23, %v4556_v54 }
 0x277   :  { %v1321_v56 = vadd.f32 %v1320_v58, %v1273_v28  ;;  %v1276_v58 = vmul.f32 %v4564_v48, %v4564_v48  ;;  %v1277_v23 = vmul.f32 %v4570_v1, %v4570_v1 }
 0x278   :  { %v1036_v50 = vpop.f32.mrb[32].mxu1 }
 0x279   :  { %v1037_v5 = vadd.f32 %v1036_v50, %v6606_v41  ;;  %v1038_v46 = vpop.f32.mrb[33].mxu1  ;;  %v1274_v50 = vmul.f32 %v4556_v54, %v4556_v54  ;;  %v1184_v41 = vadd.f32 %v1183_v24, %v4549_v29  ;;  %v1322_v55 = vadd.f32 %v1321_v56, %v1275_v31  ;;  %v6616_v31 = vld [vmem:[#allocation41_spill] sm:$0xff] }
 0x27a   :  { %v1039_v40 = vadd.f32 %v1038_v46, %v6608_v7  ;;  %v1040_v6 = vpop.f32.mrb[34].mxu1  ;;  %v4582_v46 = vadd.f32 %v1033_v13, %v4362_v21  ;;  %v6613_v7 = vld [vmem:[#allocation39_spill] sm:$0xff]  ;;  %v1221_v24 = vadd.f32 %v1220_v51, %v4564_v48 }
 0x27b   :  { %v1041_v62 = vadd.f32 %v1040_v6, %v6609_v39  ;;  %v1042_v44 = vpop.f32.mrb[35].mxu1  ;;  %v4577_v60 = vadd.f32 %v1037_v5, %v4324_v15  ;;  %v1358_v22 = vadd.f32 %v1357_v11, %v1274_v50  ;;  %v6615_v39 = vld [vmem:[#allocation40_spill] sm:$0xff]  ;;  %v1323_v54 = vadd.f32 %v1322_v55, %v1277_v23 }
 0x27c   :  { %v1043_v37 = vadd.f32 %v1042_v44, %v6611_v9  ;;  %6612 = vst [vmem:[#allocation37_spill] sm:$0xff] %v4582_v46  ;;  %v4589_v5 = vadd.f32 %v1039_v40, %v4329_v35  ;;  %v1185_v9 = vadd.f32 %v1184_v41, %v4570_v1  ;;  %v1278_v51 = vmul.f32 %v4582_v46, %v4582_v46  ;;  %v6617_v40 = vld [vmem:[#allocation42_spill] sm:$0xff] }
 0x27d   :  { %v1279_v13 = vmul.f32 %v4577_v60, %v4577_v60  ;;  %v4596_v56 = vadd.f32 %v1041_v62, %v4331_v30 }
 0x27e   :  { %6614 = vst [vmem:[#allocation38_spill] sm:$0xff] %v4589_v5  ;;  %v1280_v62 = vmul.f32 %v4589_v5, %v4589_v5 }
 0x280   :  { %v1046_v0 = vpop.f32.mrb[36].mxu1 }
 0x281   :  { %v1047_v6 = vadd.f32 %v1046_v0, %v6613_v7  ;;  %v1048_v28 = vpop.f32.mrb[37].mxu1  ;;  %v1359_v7 = vadd.f32 %v1358_v22, %v1276_v58  ;;  %v1324_v22 = vadd.f32 %v1323_v54, %v1279_v13  ;;  %v1281_v58 = vmul.f32 %v4596_v56, %v4596_v56 }
 0x282   :  { %v1049_v44 = vadd.f32 %v1048_v28, %v6615_v39  ;;  %v1050_v11 = vpop.f32.mrb[38].mxu1  ;;  %v1186_v28 = vadd.f32 %v1185_v9, %v4577_v60  ;;  %v1222_v39 = vadd.f32 %v1221_v24, %v4582_v46 }
 0x283   :  { %v1051_v50 = vadd.f32 %v1050_v11, %v6616_v31  ;;  %v1052_v0 = vpop.f32.mrb[39].mxu1  ;;  %v4604_v41 = vadd.f32 %v1047_v6, %v4337_v27  ;;  %v4610_v11 = vadd.f32 %v1043_v37, %v4333_v36  ;;  %v1360_v31 = vadd.f32 %v1359_v7, %v1278_v51  ;;  %v6620_v37 = vld [vmem:[#allocation43_spill] sm:$0xff]  ;;  %v6621_v51 = vld [vmem:[#allocation44_spill] sm:$0xff] }
 0x284   :  { %v1053_v48 = vadd.f32 %v1052_v0, %v6617_v40  ;;  %v1223_v55 = vadd.f32 %v1222_v39, %v4589_v5  ;;  %v4616_v23 = vadd.f32 %v1049_v44, %v4357_v19  ;;  %v1187_v9 = vadd.f32 %v1186_v28, %v4596_v56 }
 0x285   :  { %6618 = vst [vmem:[#allocation39_spill] sm:$0xff] %v4610_v11  ;;  %v1283_v24 = vmul.f32 %v4604_v41, %v4604_v41  ;;  %v4622_v0 = vadd.f32 %v1051_v50, %v4359_v16  ;;  %v1361_v40 = vadd.f32 %v1360_v31, %v1280_v62  ;;  %v1282_v7 = vmul.f32 %v4610_v11, %v4610_v11 }
 0x286   :  { %6619 = vst [vmem:[#allocation40_spill] sm:$0xff] %v4616_v23  ;;  %v1325_v5 = vadd.f32 %v1324_v22, %v1281_v58  ;;  %v1188_v46 = vadd.f32 %v1187_v9, %v4604_v41  ;;  %v1224_v52 = vadd.f32 %v1223_v55, %v4610_v11  ;;  %v1284_v62 = vmul.f32 %v4616_v23, %v4616_v23 }
 0x287   :  { %v4637_v31 = vadd.f32 %v1053_v48, %v4362_v21  ;;  %v1285_v22 = vmul.f32 %v4622_v0, %v4622_v0  ;;  %v1362_v58 = vadd.f32 %v1361_v40, %v1282_v7 }
 0x288   :  { %v1056_v6 = vpop.f32.mrb[40].mxu1  ;;  %v1225_v9 = vadd.f32 %v1224_v52, %v4616_v23  ;;  %v1189_v55 = vadd.f32 %v1188_v46, %v4622_v0  ;;  %v6626_v52 = vld [vmem:[#allocation47_spill] sm:$0xff] }
 0x289   :  { %v1057_v54 = vadd.f32 %v1056_v6, %v6620_v37  ;;  %v1058_v13 = vpop.f32.mrb[41].mxu1  ;;  %6623 = vst [vmem:[#allocation41_spill] sm:$0xff] %v4637_v31  ;;  %v6624_v6 = vld [vmem:[#allocation46_spill] sm:$0xff] }
 0x28a   :  { %v1059_v39 = vadd.f32 %v1058_v13, %v6621_v51  ;;  %v1060_v44 = vpop.f32.mrb[42].mxu1  ;;  %v1326_v13 = vadd.f32 %v1325_v5, %v1283_v24  ;;  %v1363_v51 = vadd.f32 %v1362_v58, %v1284_v62  ;;  %v1286_v5 = vmul.f32 %v4637_v31, %v4637_v31 }
 0x28b   :  { %v4630_v28 = vadd.f32 %v1057_v54, %v4324_v15  ;;  %v1061_v34 = vadd.f32 %v1060_v44, %v6622_v49  ;;  %v1062_v50 = vpop.f32.mrb[43].mxu1 }
 0x28c   :  { %v1063_v37 = vadd.f32 %v1062_v50, %v6624_v6  ;;  %v4644_v49 = vadd.f32 %v1059_v39, %v4329_v35  ;;  %v1327_v44 = vadd.f32 %v1326_v13, %v1285_v22  ;;  %v1226_v50 = vadd.f32 %v1225_v9, %v4637_v31 }
 0x28d   :  { %v1287_v54 = vmul.f32 %v4630_v28, %v4630_v28  ;;  %v4650_v48 = vadd.f32 %v1061_v34, %v4331_v30  ;;  %v1190_v40 = vadd.f32 %v1189_v55, %v4630_v28  ;;  %v6628_v34 = vld [vmem:[#allocation48_spill] sm:$0xff]  ;;  %v6629_v55 = vld [vmem:[#allocation49_spill] sm:$0xff]  ;;  %v1364_v9 = vadd.f32 %v1363_v51, %v1286_v5 }
 0x28e   :  { %6625 = vst [vmem:[#allocation42_spill] sm:$0xff] %v4644_v49  ;;  %v1288_v46 = vmul.f32 %v4644_v49, %v4644_v49  ;;  %v4660_v6 = vadd.f32 %v1063_v37, %v4333_v36  ;;  %v1227_v31 = vadd.f32 %v1226_v50, %v4644_v49  ;;  %v6631_v37 = vld [vmem:[#allocation50_spill] sm:$0xff] }
 0x28f   :  { %v1328_v23 = vadd.f32 %v1327_v44, %v1287_v54  ;;  %v1289_v13 = vmul.f32 %v4650_v48, %v4650_v48 }
 0x290   :  { %v1066_v24 = vpop.f32.mrb[44].mxu1  ;;  %6627 = vst [vmem:[#allocation43_spill] sm:$0xff] %v4660_v6  ;;  %v1228_v50 = vadd.f32 %v1227_v31, %v4660_v6 }
 0x291   :  { %v1067_v7 = vadd.f32 %v1066_v24, %v6626_v52  ;;  %v1068_v39 = vpop.f32.mrb[45].mxu1  ;;  %v1329_v51 = vadd.f32 %v1328_v23, %v1289_v13  ;;  %v6634_v13 = vld [vmem:[#allocation52_spill] sm:$0xff] }
 0x292   :  { %v1069_v62 = vadd.f32 %v1068_v39, %v6628_v34  ;;  %v1070_v58 = vpop.f32.mrb[46].mxu1  ;;  %v1191_v39 = vadd.f32 %v1190_v40, %v4650_v48  ;;  %v1290_v34 = vmul.f32 %v4660_v6, %v4660_v6 }
 0x293   :  { %v4666_v22 = vadd.f32 %v1067_v7, %v4337_v27  ;;  %v1071_v24 = vadd.f32 %v1070_v58, %v6629_v55  ;;  %v1072_v52 = vpop.f32.mrb[47].mxu1  ;;  %v1365_v7 = vadd.f32 %v1364_v9, %v1288_v46  ;;  %v6633_v46 = vld [vmem:[#allocation51_spill] sm:$0xff] }
 0x294   :  { %v4671_v11 = vadd.f32 %v1069_v62, %v4357_v19  ;;  %v1073_v18 = vadd.f32 %v1072_v52, %v6631_v37 }
 0x295   :  { %v1291_v54 = vmul.f32 %v4666_v22, %v4666_v22  ;;  %v4678_v44 = vadd.f32 %v1071_v24, %v4359_v16  ;;  %v1192_v5 = vadd.f32 %v1191_v39, %v4666_v22  ;;  %v1366_v37 = vadd.f32 %v1365_v7, %v1290_v34  ;;  %v6637_v7 = vld [vmem:[#allocation54_spill] sm:$0xff] }
 0x296   :  { %6630 = vst [vmem:[#allocation44_spill] sm:$0xff] %v4671_v11  ;;  %v1292_v62 = vmul.f32 %v4671_v11, %v4671_v11  ;;  %v4687_v40 = vadd.f32 %v1073_v18, %v4362_v21  ;;  %v1229_v23 = vadd.f32 %v1228_v50, %v4671_v11  ;;  %v6635_v18 = vld [vmem:[#allocation53_spill] sm:$0xff] }
 0x297   :  { %v1330_v55 = vadd.f32 %v1329_v51, %v1291_v54  ;;  %v1293_v24 = vmul.f32 %v4678_v44, %v4678_v44  ;;  %v1193_v6 = vadd.f32 %v1192_v5, %v4678_v44 }
 0x298   :  { %6632 = vst [vmem:[#allocation45_spill] sm:$0xff] %v4687_v40  ;;  %v1076_v58 = vpop.f32.mrb[48].mxu1  ;;  %v1367_v51 = vadd.f32 %v1366_v37, %v1292_v62  ;;  %v1294_v14 = vmul.f32 %v4687_v40, %v4687_v40 }
 0x299   :  { %v1077_v52 = vadd.f32 %v1076_v58, %v6633_v46  ;;  %v1078_v9 = vpop.f32.mrb[49].mxu1  ;;  %v1331_v50 = vadd.f32 %v1330_v55, %v1293_v24 }
 0x29a   :  { %v1079_v39 = vadd.f32 %v1078_v9, %v6634_v13  ;;  %v1080_v31 = vpop.f32.mrb[50].mxu1  ;;  %v1230_v9 = vadd.f32 %v1229_v23, %v4687_v40  ;;  %v1368_v55 = vadd.f32 %v1367_v51, %v1294_v14 }
 0x29b   :  { %v4696_v49 = vadd.f32 %v1077_v52, %v4324_v15  ;;  %v1081_v47 = vadd.f32 %v1080_v31, %v6635_v18  ;;  %v1082_v54 = vpop.f32.mrb[51].mxu1  ;;  %v6639_v18 = vld [vmem:[#allocation55_spill] sm:$0xff] }
 0x29c   :  { %v4702_v58 = vadd.f32 %v1079_v39, %v4329_v35  ;;  %v1083_v34 = vadd.f32 %v1082_v54, %v6637_v7 }
 0x29d   :  { %v1194_v46 = vadd.f32 %v1193_v6, %v4696_v49  ;;  %v1295_v5 = vmul.f32 %v4696_v49, %v4696_v49  ;;  %v4709_v52 = vadd.f32 %v1081_v47, %v4331_v30 }
 0x29e   :  { %6636 = vst [vmem:[#allocation46_spill] sm:$0xff] %v4702_v58  ;;  %v1296_v62 = vmul.f32 %v4702_v58, %v4702_v58  ;;  %v4715_v37 = vadd.f32 %v1083_v34, %v4333_v36  ;;  %v1231_v24 = vadd.f32 %v1230_v9, %v4702_v58  ;;  %v6640_v34 = vld [vmem:[#allocation56_spill] sm:$0xff] }
 0x29f   :  { %v1332_v13 = vadd.f32 %v1331_v50, %v1295_v5  ;;  %v1195_v39 = vadd.f32 %v1194_v46, %v4709_v52  ;;  %v1297_v6 = vmul.f32 %v4709_v52, %v4709_v52  ;;  %v6641_v5 = vld [vmem:[#allocation57_spill] sm:$0xff] }
 0x2a0   :  { %6638 = vst [vmem:[#allocation47_spill] sm:$0xff] %v4715_v37  ;;  %v1086_v31 = vpop.f32.mrb[52].mxu1  ;;  %v1369_v7 = vadd.f32 %v1368_v55, %v1296_v62  ;;  %v1298_v40 = vmul.f32 %v4715_v37, %v4715_v37  ;;  %v1232_v51 = vadd.f32 %v1231_v24, %v4715_v37 }
 0x2a1   :  { %v1333_v47 = vadd.f32 %v1332_v13, %v1297_v6  ;;  %v1087_v54 = vadd.f32 %v1086_v31, %v6639_v18  ;;  %v1088_v23 = vpop.f32.mrb[53].mxu1  ;;  %v6642_v13 = vld [vmem:[#allocation58_spill] sm:$0xff] }
 0x2a2   :  { %v1089_v11 = vadd.f32 %v1088_v23, %v6640_v34  ;;  %v1090_v50 = vpop.f32.mrb[54].mxu1 }
 0x2a3   :  { %v4726_v46 = vadd.f32 %v1087_v54, %v4337_v27  ;;  %v1091_v20 = vadd.f32 %v1090_v50, %v6641_v5  ;;  %v1092_v14 = vpop.f32.mrb[55].mxu1  ;;  %v1370_v27 = vadd.f32 %v1369_v7, %v1298_v40  ;;  %v6644_v7 = vld [vmem:[#allocation59_spill] sm:$0xff] }
 0x2a4   :  { %v4731_v9 = vadd.f32 %v1089_v11, %v4357_v19  ;;  %v1093_v6 = vadd.f32 %v1092_v14, %v6642_v13 }
 0x2a5   :  { %v1196_v62 = vadd.f32 %v1195_v39, %v4726_v46  ;;  %v1299_v55 = vmul.f32 %v4726_v46, %v4726_v46  ;;  %v4738_v31 = vadd.f32 %v1091_v20, %v4359_v16 }
 0x2a6   :  { %v1233_v18 = vadd.f32 %v1232_v51, %v4731_v9  ;;  %v1300_v54 = vmul.f32 %v4731_v9, %v4731_v9  ;;  %v4744_v24 = vadd.f32 %v1093_v6, %v4362_v21  ;;  %v6645_v21 = vld [vmem:[#allocation60_spill] sm:$0xff]  ;;  %v6646_v6 = vld [vmem:[#allocation61_spill] sm:$0xff] }
 0x2a7   :  { %v1334_v19 = vadd.f32 %v1333_v47, %v1299_v55  ;;  %v1197_v11 = vadd.f32 %v1196_v62, %v4738_v31  ;;  %v1301_v39 = vmul.f32 %v4738_v31, %v4738_v31 }
 0x2a8   :  { %6643 = vst [vmem:[#allocation48_spill] sm:$0xff] %v4744_v24  ;;  %v1371_v23 = vadd.f32 %v1370_v27, %v1300_v54  ;;  %v1234_v34 = vadd.f32 %v1233_v18, %v4744_v24  ;;  %v1302_v16 = vmul.f32 %v4744_v24, %v4744_v24  ;;  %v1096_v20 = vpop.f32.mrb[56].mxu1  ;;  %v6648_v18 = vld [vmem:[#allocation62_spill] sm:$0xff] }
 0x2a9   :  { %v1335_v40 = vadd.f32 %v1334_v19, %v1301_v39  ;;  %v1097_v50 = vadd.f32 %v1096_v20, %v6644_v7  ;;  %v1098_v5 = vpop.f32.mrb[57].mxu1 }
 0x2aa   :  { %v1372_v14 = vadd.f32 %v1371_v23, %v1302_v16  ;;  %v1099_v51 = vadd.f32 %v1098_v5, %v6645_v21  ;;  %v1100_v47 = vpop.f32.mrb[58].mxu1 }
 0x2ab   :  { %v4755_v13 = vadd.f32 %v1097_v50, %v4324_v15  ;;  %v1101_v62 = vadd.f32 %v1100_v47, %v6646_v6  ;;  %v1102_v55 = vpop.f32.mrb[59].mxu1 }
 0x2ac   :  { %v4759_v27 = vadd.f32 %v1099_v51, %v4329_v35  ;;  %v1103_v54 = vadd.f32 %v1102_v55, %v6648_v18 }
 0x2ad   :  { %v1198_v19 = vadd.f32 %v1197_v11, %v4755_v13  ;;  %v1303_v39 = vmul.f32 %v4755_v13, %v4755_v13  ;;  %v4766_v23 = vadd.f32 %v1101_v62, %v4331_v30 }
 0x2ae   :  { %6647 = vst [vmem:[#allocation49_spill] sm:$0xff] %v4759_v27  ;;  %v1235_v16 = vadd.f32 %v1234_v34, %v4759_v27  ;;  %v1304_v15 = vmul.f32 %v4759_v27, %v4759_v27  ;;  %v4772_v20 = vadd.f32 %v1103_v54, %v4333_v36 }
 0x2af   :  { %v1336_v35 = vadd.f32 %v1335_v40, %v1303_v39  ;;  %v1199_v7 = vadd.f32 %v1198_v19, %v4766_v23  ;;  %v1305_v11 = vmul.f32 %v4766_v23, %v4766_v23 }
 0x2b0   :  { %6649 = vst [vmem:[#allocation50_spill] sm:$0xff] %v4772_v20  ;;  %v1373_v50 = vadd.f32 %v1372_v14, %v1304_v15  ;;  %v1236_v5 = vadd.f32 %v1235_v16, %v4772_v20  ;;  %v1306_v30 = vmul.f32 %v4772_v20, %v4772_v20 }
 0x2b1   :  { %v1200_v21 = vrot.slane %v1199_v7, 4  ;;  %v1337_v34 = vadd.f32 %v1336_v35, %v1305_v11 }
 0x2b2   :  { %v1237_v51 = vrot.slane %v1236_v5, 4  ;;  %v1374_v47 = vadd.f32 %v1373_v50, %v1306_v30 }
 0x2b3   :  { %v1201_v6 = vadd.f32 %v1200_v21, %v1199_v7  ;;  %v1338_v62 = vrot.slane %v1337_v34, 4 }
 0x2b4   :  { %v1238_v36 = vadd.f32 %v1237_v51, %v1236_v5  ;;  %v1375_v55 = vrot.slane %v1374_v47, 4 }
 0x2b5   :  { %v1202_v40 = vrot.slane %v1201_v6, 2  ;;  %v1339_v18 = vadd.f32 %v1338_v62, %v1337_v34 }
 0x2b6   :  { %v1239_v54 = vrot.slane %v1238_v36, 2  ;;  %v1376_v19 = vadd.f32 %v1375_v55, %v1374_v47 }
 0x2b7   :  { %v1203_v39 = vadd.f32 %v1202_v40, %v1201_v6  ;;  %v1340_v37 = vrot.slane %v1339_v18, 2 }
 0x2b8   :  { %v1240_v14 = vadd.f32 %v1239_v54, %v1238_v36  ;;  %v1377_v15 = vrot.slane %v1376_v19, 2 }
 0x2b9   :  { %v1204_v16 = vrot.slane %v1203_v39, 1  ;;  %v1341_v58 = vadd.f32 %v1340_v37, %v1339_v18  ;;  %v6650_v37 = vlaneseq }
 0x2ba   :  { %v1241_v27 = vrot.slane %v1240_v14, 1  ;;  %v1378_v20 = vadd.f32 %v1377_v15, %v1376_v19 }
 0x2bb   :  { %v1205_v24 = vadd.f32 %v1204_v16, %v1203_v39  ;;  %v1342_v35 = vrot.slane %v1341_v58, 1  ;;  %v4781_v18 = vshrl.u32 %v6650_v37, 7 }
 0x2bc   :  { %v1242_v11 = vadd.f32 %v1241_v27, %v1240_v14  ;;  %v1379_v50 = vrot.slane %v1378_v20, 1  ;;  %v3834_v14 = vmov 1966171168  }
 0x2bd   :  { %v1343_v7 = vadd.f32 %v1342_v35, %v1341_v58  ;;  %v1383_v30 = vmul.f32 0.00390625, %v1205_v24  ;;  %6651 = vst [vmem:[#allocation51_spill] sm:$0xff] %v4781_v18  ;;  %v4784_v58 = vsub.s32 0, %v4781_v18  ;;  %v1381_v24 = vld [vmem:[#allocation13] sm:$0x3]  ;;  %v4787_v27 = vsub.s32 1, %v4781_v18 }
 0x2be   :  { %v1380_v5 = vadd.f32 %v1379_v50, %v1378_v20  ;;  %v1384_v21 = vmul.f32 0.00390625, %v1242_v11  ;;  %v1416_v15 = vunpack.c.l.s4 %v3834_v14 }
 0x2bf   :  { %v1385_v51 = vmul.f32 0.00390625, %v1343_v7  ;;  %v1387_v34 = vmul.f32 %v1383_v30, %v1383_v30  ;;  %6652 = vst [vmem:[#allocation52_spill] sm:$0xff] %v4784_v58  ;;  %6653 = vst [vmem:[#allocation53_spill] sm:$0xff] %v4787_v27  ;;  %v1401_v20 = vrot.slane %v1381_v24, %v4784_v58  ;;  %v1405_v39 = vrot.slane %v1381_v24, %v4787_v27 }
 0x2c0   :  { %v1386_v62 = vmul.f32 0.00390625, %v1380_v5  ;;  %v1388_v47 = vmul.f32 %v1384_v21, %v1384_v21  ;;  %v1417_v7 = vunpack.c.0.s8 %v1416_v15  ;;  %v6664_v15 = vld [vmem:[#allocation66_spill] sm:$0xff] }
 0x2c1   :  { %v1389_v6 = vsub.f32 %v1385_v51, %v1387_v34 }
 0x2c2   :  { %v1390_v55 = vsub.f32 %v1386_v62, %v1388_v47  ;;  %v6655_v47 = vld [vmem:[#allocation63_spill] sm:$0xff] }
 0x2c3   :  { %v1391_v36 = vmax.f32 %v1389_v6, 0.0 }
 0x2c4   :  { %v1392_v40 = vmax.f32 %v1390_v55, 0.0  ;;  %v1420_v55 = vsub.s32 %v1417_v7, %v4781_v18  ;;  %v6665_v7 = vld [vmem:[#allocation67_spill] sm:$0xff] }
 0x2c5   :  { %v1393_v54 = vadd.f32 1e-05, %v1391_v36 }
 0x2c6   :  { %v1394_v19 = vadd.f32 1e-05, %v1392_v40  ;;  %v6656_v40 = vld [vmem:[#allocation65_spill] sm:$0xff] }
 0x2c7   :  { %3188 = vrsqrt.f32 %v1393_v54 }
 0x2c8   :  { %3190 = vrsqrt.f32 %v1394_v19 }
 0x2d1   :  { %v3189_v16 = vpop.eup %3188 }
 0x2d2   :  { %v3191_v35 = vpop.eup %3190  ;;  %v1408_v11 = vmul.f32 %v3189_v16, %v1401_v20  ;;  %v1382_v16 = vld [vmem:[#allocation14] sm:$0x3] }
 0x2d3   :  { %v1409_v50 = vmul.f32 %v3191_v35, %v1405_v39 }
 0x2d4   :  { %v1410_v5 = vmul.f32 %v1408_v11, %v1383_v30  ;;  %v1434_v51 = vrot.slane %v1408_v11, %v4784_v58 }
 0x2d5   :  { %v1411_v34 = vmul.f32 %v1409_v50, %v1384_v21  ;;  %v4800_v36 = vrot.slane %v1409_v50, %v4784_v58 }
 0x2d6   :  { %v4793_v62 = vmul.f32 %v1434_v51, %v4766_v23  ;;  %v4796_v6 = vmul.f32 %v1434_v51, %v6655_v47  ;;  %v4803_v54 = vmul.f32 %v1434_v51, %v6656_v40  ;;  %v4806_v37 = vmul.f32 %v1434_v51, %v4340_v32 }
 0x2d7   :  { %v4809_v30 = vmul.f32 %v1434_v51, %v4346_v38  ;;  %v4812_v23 = vmul.f32 %v1434_v51, %v4355_v25  ;;  %v4815_v21 = vmul.f32 %v1434_v51, %v4389_v42  ;;  %v4818_v19 = vmul.f32 %v1434_v51, %v4404_v2 }
 0x2d8   :  { %6654 = vst [vmem:[#allocation54_spill] sm:$0xff] %v4793_v62  ;;  %v4821_v24 = vmul.f32 %v1434_v51, %v4418_v63  ;;  %v4824_v20 = vmul.f32 %v1434_v51, %v4448_v59  ;;  %v4827_v32 = vmul.f32 %v1434_v51, %v4455_v26  ;;  %v4830_v38 = vmul.f32 %v1434_v51, %v4465_v43 }
 0x2d9   :  { %v4833_v25 = vmul.f32 %v1434_v51, %v4481_v33  ;;  %v4836_v42 = vmul.f32 %v1434_v51, %v4504_v45  ;;  %v4839_v2 = vmul.f32 %v1434_v51, %v4518_v53  ;;  %v4842_v63 = vmul.f32 %v1434_v51, %v4532_v61 }
 0x2da   :  { %v4845_v59 = vmul.f32 %v1434_v51, %v4546_v57  ;;  %v4848_v26 = vmul.f32 %v1434_v51, %v4549_v29  ;;  %v4851_v43 = vmul.f32 %v1434_v51, %v4570_v1  ;;  %v4854_v33 = vmul.f32 %v1434_v51, %v4577_v60 }
 0x2db   :  { %v4857_v45 = vmul.f32 %v1434_v51, %v4596_v56  ;;  %v4860_v53 = vmul.f32 %v1434_v51, %v4696_v49  ;;  %v4863_v61 = vmul.f32 %v1434_v51, %v4709_v52  ;;  %v4866_v57 = vmul.f32 %v1434_v51, %v4726_v46 }
 0x2dc   :  { %v4869_v29 = vmul.f32 %v1434_v51, %v4738_v31  ;;  %v4872_v1 = vmul.f32 %v1434_v51, %v4755_v13  ;;  %v4875_v60 = vmul.f32 %v1434_v51, %v4604_v41  ;;  %v4878_v56 = vmul.f32 %v1434_v51, %v4622_v0  ;;  %v6663_v13 = vld [vmem:[#allocation64_spill] sm:$0xff] }
 0x2dd   :  { %6657 = vst [vmem:[#allocation55_spill] sm:$0xff] %v4860_v53  ;;  %6658 = vst [vmem:[#allocation56_spill] sm:$0xff] %v4863_v61  ;;  %v4881_v49 = vmul.f32 %v1434_v51, %v4630_v28  ;;  %v1414_v52 = vcombine.low %v1410_v5, %v1411_v34  ;;  %v4884_v39 = vmul.f32 %v1434_v51, %v4650_v48  ;;  %v6666_v5 = vld [vmem:[#allocation68_spill] sm:$0xff] }
 0x2de   :  { %6659 = vst [vmem:[#allocation57_spill] sm:$0xff] %v4866_v57  ;;  %6660 = vst [vmem:[#allocation58_spill] sm:$0xff] %v4869_v29  ;;  %v4887_v46 = vmul.f32 %v1434_v51, %v4666_v22  ;;  %v4890_v31 = vmul.f32 %v1434_v51, %v4678_v44  ;;  %v1440_v41 = vmul.f32 %v4800_v36, %v6663_v13  ;;  %v6667_v51 = vld [vmem:[#allocation69_spill] sm:$0xff]  ;;  %v6684_v57 = vld [vmem:[#allocation50_spill] sm:$0xff] }
 0x2df   :  { %6661 = vst [vmem:[#allocation59_spill] sm:$0xff] %v4872_v1  ;;  %v1421_v14 = vrot.slane %v1414_v52, %v1420_v55  ;;  %v1442_v0 = vmul.f32 %v4800_v36, %v6664_v15  ;;  %v1444_v28 = vmul.f32 %v4800_v36, %v4343_v3  ;;  %v1446_v48 = vmul.f32 %v4800_v36, %v4349_v17 }
 0x2e0   :  { %6662 = vst [vmem:[#allocation60_spill] sm:$0xff] %v4890_v31  ;;  %v1448_v22 = vmul.f32 %v4800_v36, %v4386_v10  ;;  %v1450_v44 = vmul.f32 %v4800_v36, %v4395_v8  ;;  %v1452_v35 = vmul.f32 %v4800_v36, %v4413_v4  ;;  %v1454_v11 = vmul.f32 %v4800_v36, %v4423_v12  ;;  %v6668_v10 = vld [vmem:[#allocation70_spill] sm:$0xff]  ;;  %v6669_v8 = vld [vmem:[#allocation71_spill] sm:$0xff]  ;;  %v6670_v4 = vld [vmem:[#allocation72_spill] sm:$0xff] }
 0x2e1   :  { %v1428_v50 = vrot.slane %v1421_v14, %v1420_v55  ;;  %v1456_v3 = vmul.f32 %v4800_v36, %v6665_v7  ;;  %v1458_v17 = vmul.f32 %v4800_v36, %v6666_v5  ;;  %v1460_v34 = vmul.f32 %v4800_v36, %v6667_v51  ;;  %v6671_v12 = vld [vmem:[#allocation73_spill] sm:$0xff]  ;;  %v6672_v14 = vld [vmem:[#allocation35_spill] sm:$0xff]  ;;  %v6673_v7 = vld [vmem:[#allocation36_spill] sm:$0xff] }
 0x2e2   :  { %v1462_v47 = vmul.f32 %v4800_v36, %v6668_v10  ;;  %v1464_v40 = vmul.f32 %v4800_v36, %v6669_v8  ;;  %v1466_v52 = vmul.f32 %v4800_v36, %v6670_v4  ;;  %v1468_v55 = vmul.f32 %v4800_v36, %v6671_v12  ;;  %v6674_v51 = vld [vmem:[#allocation37_spill] sm:$0xff]  ;;  %v6675_v10 = vld [vmem:[#allocation38_spill] sm:$0xff]  ;;  %v6676_v8 = vld [vmem:[#allocation39_spill] sm:$0xff] }
 0x2e3   :  { %v1430_v13 = vsub.f32 %v1382_v16, %v1428_v50  ;;  %v1470_v15 = vmul.f32 %v4800_v36, %v6672_v14  ;;  %v1472_v5 = vmul.f32 %v4800_v36, %v6673_v7  ;;  %v1474_v18 = vmul.f32 %v4800_v36, %v6674_v51  ;;  %v6677_v4 = vld [vmem:[#allocation40_spill] sm:$0xff]  ;;  %v6678_v12 = vld [vmem:[#allocation41_spill] sm:$0xff]  ;;  %v6691_v31 = vld [vmem:[#allocation47_spill] sm:$0xff] }
 0x2e4   :  { %v1476_v62 = vmul.f32 %v4800_v36, %v6675_v10  ;;  %v1478_v1 = vmul.f32 %v4800_v36, %v6676_v8  ;;  %v1480_v29 = vmul.f32 %v4800_v36, %v6677_v4  ;;  %v1482_v16 = vmul.f32 %v4800_v36, %v6678_v12  ;;  %v6680_v14 = vld [vmem:[#allocation48_spill] sm:$0xff]  ;;  %v6682_v51 = vld [vmem:[#allocation49_spill] sm:$0xff]  ;;  %v6686_v4 = vld [vmem:[#allocation42_spill] sm:$0xff] }
 0x2e5   :  { %v4938_v50 = vmul.f32 %v4800_v36, %v4731_v9  ;;  %v4942_v7 = vmul.f32 %v4800_v36, %v6680_v14  ;;  %v4946_v10 = vmul.f32 %v4800_v36, %v6682_v51  ;;  %v4950_v8 = vmul.f32 %v4800_v36, %v6684_v57  ;;  %v6687_v12 = vld [vmem:[#allocation43_spill] sm:$0xff]  ;;  %v6690_v57 = vld [vmem:[#allocation46_spill] sm:$0xff] }
 0x2e6   :  { %v1484_v61 = vmul.f32 %v4800_v36, %v6686_v4  ;;  %v1486_v53 = vmul.f32 %v4800_v36, %v6687_v12  ;;  %v4957_v9 = vrot.slane %v1430_v13, %v4784_v58  ;;  %v4960_v14 = vrot.slane %v1430_v13, %v4787_v27  ;;  %v6744_v27 = vld [vmem:[#allocation56_spill] sm:$0xff] }
 0x2e7   :  { %6679 = vst [vmem:[#allocation61_spill] sm:$0xff] %v4938_v50  ;;  %6681 = vst [vmem:[#allocation62_spill] sm:$0xff] %v4942_v7  ;;  %v6688_v7 = vld [vmem:[#allocation44_spill] sm:$0xff]  ;;  %v1494_v4 = vmul.f32 %v4800_v36, %v6691_v31 }
 0x2e8   :  { %6683 = vst [vmem:[#allocation63_spill] sm:$0xff] %v4946_v10  ;;  %6685 = vst [vmem:[#allocation65_spill] sm:$0xff] %v4950_v8  ;;  %v1488_v51 = vmul.f32 %v4800_v36, %v6688_v7  ;;  %v6689_v10 = vld [vmem:[#allocation45_spill] sm:$0xff]  ;;  %v1492_v8 = vmul.f32 %v4800_v36, %v6690_v57  ;;  %v4972_v12 = vadd.f32 %v4957_v9, %v4796_v6  ;;  %v6741_v57 = vld [vmem:[#allocation55_spill] sm:$0xff] }
 0x2e9   :  { %v1490_v50 = vmul.f32 %v4800_v36, %v6689_v10  ;;  %v4975_v58 = vadd.f32 %v4960_v14, %v1440_v41  ;;  %v4979_v13 = vadd.f32 %v4957_v9, %v4803_v54  ;;  %v4982_v7 = vadd.f32 %v4960_v14, %v1442_v0 }
 0x2ea   :  { %6692 = vst [vmem:[#allocation64_spill] sm:$0xff] %v4972_v12  ;;  %v4986_v10 = vadd.f32 %v4957_v9, %v4806_v37  ;;  %v4989_v36 = vadd.f32 %v4960_v14, %v1444_v28  ;;  %v4993_v6 = vadd.f32 %v4957_v9, %v4809_v30  ;;  %v4996_v31 = vadd.f32 %v4960_v14, %v1446_v48 }
 0x2eb   :  { %6693 = vst [vmem:[#allocation66_spill] sm:$0xff] %v4979_v13  ;;  %v5000_v54 = vadd.f32 %v4957_v9, %v4812_v23  ;;  %v5003_v41 = vadd.f32 %v4960_v14, %v1448_v22  ;;  %v5007_v37 = vadd.f32 %v4957_v9, %v4815_v21  ;;  %v5010_v0 = vadd.f32 %v4960_v14, %v1450_v44 }
 0x2ec   :  { %6694 = vst [vmem:[#allocation67_spill] sm:$0xff] %v4986_v10  ;;  %6695 = vst [vmem:[#allocation68_spill] sm:$0xff] %v4989_v36  ;;  %v5014_v30 = vadd.f32 %v4957_v9, %v4818_v19  ;;  %v5017_v28 = vadd.f32 %v4960_v14, %v1452_v35  ;;  %v5021_v23 = vadd.f32 %v4957_v9, %v4821_v24 }
 0x2ed   :  { %6696 = vst [vmem:[#allocation69_spill] sm:$0xff] %v4993_v6  ;;  %6697 = vst [vmem:[#allocation70_spill] sm:$0xff] %v4996_v31  ;;  %v5024_v48 = vadd.f32 %v4960_v14, %v1454_v11  ;;  %v5028_v21 = vadd.f32 %v4957_v9, %v4824_v20  ;;  %v5031_v22 = vadd.f32 %v4960_v14, %v1456_v3 }
 0x2ee   :  { %6698 = vst [vmem:[#allocation71_spill] sm:$0xff] %v5000_v54  ;;  %6699 = vst [vmem:[#allocation72_spill] sm:$0xff] %v5003_v41  ;;  %v5035_v19 = vadd.f32 %v4957_v9, %v4827_v32  ;;  %v5038_v44 = vadd.f32 %v4960_v14, %v1458_v17  ;;  %v5042_v24 = vadd.f32 %v4957_v9, %v4830_v38 }
 0x2ef   :  { %6700 = vst [vmem:[#allocation73_spill] sm:$0xff] %v5007_v37  ;;  %6701 = vst [vmem:[#allocation35_spill] sm:$0xff] %v5010_v0  ;;  %v5045_v35 = vadd.f32 %v4960_v14, %v1460_v34  ;;  %v5049_v20 = vadd.f32 %v4957_v9, %v4833_v25  ;;  %v5052_v11 = vadd.f32 %v4960_v14, %v1462_v47 }
 0x2f0   :  { %6702 = vst [vmem:[#allocation36_spill] sm:$0xff] %v5014_v30  ;;  %6703 = vst [vmem:[#allocation37_spill] sm:$0xff] %v5017_v28  ;;  %v5056_v32 = vadd.f32 %v4957_v9, %v4836_v42  ;;  %v5059_v3 = vadd.f32 %v4960_v14, %v1464_v40  ;;  %v5063_v38 = vadd.f32 %v4957_v9, %v4839_v2 }
 0x2f1   :  { %6704 = vst [vmem:[#allocation38_spill] sm:$0xff] %v5021_v23  ;;  %6705 = vst [vmem:[#allocation39_spill] sm:$0xff] %v5024_v48  ;;  %v5066_v17 = vadd.f32 %v4960_v14, %v1466_v52  ;;  %v5070_v25 = vadd.f32 %v4957_v9, %v4842_v63  ;;  %v5073_v34 = vadd.f32 %v4960_v14, %v1468_v55  ;;  %vm1781_vm13 = vcmp.ge.f32.partialorder %v5049_v20, 0.0 }
 0x2f2   :  { %6706 = vst [vmem:[#allocation40_spill] sm:$0xff] %v5028_v21  ;;  %6707 = vst [vmem:[#allocation41_spill] sm:$0xff] %v5031_v22  ;;  %v5077_v42 = vadd.f32 %v4957_v9, %v4845_v59  ;;  %v5080_v47 = vadd.f32 %v4960_v14, %v1470_v15  ;;  %v5084_v2 = vadd.f32 %v4957_v9, %v4848_v26  ;;  %vm1783_vm15 = vcmp.ge.f32.partialorder %v5063_v38, 0.0 }
 0x2f3   :  { %6708 = vst [vmem:[#allocation48_spill] sm:$0xff] %v5035_v19  ;;  %6709 = vst [vmem:[#allocation49_spill] sm:$0xff] %v5038_v44  ;;  %v5087_v40 = vadd.f32 %v4960_v14, %v1472_v5  ;;  %v5091_v63 = vadd.f32 %v4957_v9, %v4851_v43  ;;  %v5094_v52 = vadd.f32 %v4960_v14, %v1474_v18 }
 0x2f4   :  { %6710 = vst [vmem:[#allocation50_spill] sm:$0xff] %v5042_v24  ;;  %6711 = vst [vmem:[#allocation42_spill] sm:$0xff] %v5045_v35  ;;  %v5098_v59 = vadd.f32 %v4957_v9, %v4854_v33  ;;  %v5101_v55 = vadd.f32 %v4960_v14, %v1476_v62  ;;  %v5105_v26 = vadd.f32 %v4957_v9, %v4857_v45 }
 0x2f5   :  { %6712 = vst [vmem:[#allocation43_spill] sm:$0xff] %v5052_v11  ;;  %6713 = vst [vmem:[#allocation44_spill] sm:$0xff] %v5056_v32  ;;  %v5108_v15 = vadd.f32 %v4960_v14, %v1478_v1  ;;  %v5112_v43 = vadd.f32 %v4957_v9, %v4875_v60  ;;  %v5115_v18 = vadd.f32 %v4960_v14, %v1480_v29 }
 0x2f6   :  { %6714 = vst [vmem:[#allocation45_spill] sm:$0xff] %v5059_v3  ;;  %6715 = vst [vmem:[#allocation46_spill] sm:$0xff] %v5066_v17  ;;  %v5119_v33 = vadd.f32 %v4957_v9, %v4878_v56  ;;  %v5122_v62 = vadd.f32 %v4960_v14, %v1482_v16  ;;  %v5126_v45 = vadd.f32 %v4957_v9, %v4881_v49  ;;  %v6738_v16 = vld [vmem:[#allocation60_spill] sm:$0xff] }
 0x2f7   :  { %6716 = vst [vmem:[#allocation47_spill] sm:$0xff] %v5070_v25  ;;  %6717 = vst [vmem:[#allocation74_spill] sm:$0xff] %v5073_v34  ;;  %v5129_v1 = vadd.f32 %v4960_v14, %v1484_v61  ;;  %v5133_v60 = vadd.f32 %v4957_v9, %v4884_v39  ;;  %v5136_v29 = vadd.f32 %v4960_v14, %v1486_v53 }
 0x2f8   :  { %6718 = vst [vmem:[#allocation75_spill] sm:$0xff] %v5077_v42  ;;  %6719 = vst [vmem:[#allocation76_spill] sm:$0xff] %v5080_v47  ;;  %v5140_v56 = vadd.f32 %v4957_v9, %v4887_v46  ;;  %v5143_v5 = vadd.f32 %v4960_v14, %v1488_v51  ;;  %v5147_v49 = vadd.f32 %v4957_v9, %v6738_v16 }
 0x2f9   :  { %6720 = vst [vmem:[#allocation77_spill] sm:$0xff] %v5084_v2  ;;  %6721 = vst [vmem:[#allocation78_spill] sm:$0xff] %v5087_v40  ;;  %v5150_v61 = vadd.f32 %v4960_v14, %v1490_v50  ;;  %v5154_v39 = vadd.f32 %v4957_v9, %v6741_v57  ;;  %v5157_v53 = vadd.f32 %v4960_v14, %v1492_v8  ;;  %v6749_v50 = vld [vmem:[#allocation61_spill] sm:$0xff]  ;;  %v6751_v57 = vld [vmem:[#allocation58_spill] sm:$0xff] }
 0x2fa   :  { %6722 = vst [vmem:[#allocation79_spill] sm:$0xff] %v5091_v63  ;;  %6723 = vst [vmem:[#allocation80_spill] sm:$0xff] %v5094_v52  ;;  %v5161_v46 = vadd.f32 %v4957_v9, %v6744_v27  ;;  %v5164_v51 = vadd.f32 %v4960_v14, %v1494_v4  ;;  %v6753_v8 = vld [vmem:[#allocation62_spill] sm:$0xff]  ;;  %v6755_v27 = vld [vmem:[#allocation59_spill] sm:$0xff] }
 0x2fb   :  { %6724 = vst [vmem:[#allocation81_spill] sm:$0xff] %v5098_v59  ;;  %6725 = vst [vmem:[#allocation82_spill] sm:$0xff] %v5101_v55  ;;  %v5184_v4 = vadd.f32 %v4957_v9, %v6755_v27  ;;  %v1581_v27 = vand.u32 2147483647, %v4993_v6  ;;  %v1589_v6 = vand.u32 2147483647, %v5049_v20 }
 0x2fc   :  { %6726 = vst [vmem:[#allocation83_spill] sm:$0xff] %v5105_v26  ;;  %6727 = vst [vmem:[#allocation84_spill] sm:$0xff] %v5108_v15  ;;  %v1585_v15 = vand.u32 2147483647, %v5021_v23 }
 0x2fd   :  { %6728 = vst [vmem:[#allocation85_spill] sm:$0xff] %v5112_v43  ;;  %6729 = vst [vmem:[#allocation86_spill] sm:$0xff] %v5115_v18  ;;  %v1582_v18 = vand.u32 2147483647, %v5000_v54 }
 0x2fe   :  { %6730 = vst [vmem:[#allocation87_spill] sm:$0xff] %v5119_v33  ;;  %6731 = vst [vmem:[#allocation88_spill] sm:$0xff] %v5122_v62  ;;  %v1578_v62 = vand.u32 2147483647, %v4972_v12 }
 0x2ff   :  { %6732 = vst [vmem:[#allocation89_spill] sm:$0xff] %v5126_v45  ;;  %6733 = vst [vmem:[#allocation90_spill] sm:$0xff] %v5129_v1  ;;  %v6759_v1 = vld [vmem:[#allocation54_spill] sm:$0xff]  ;;  %v1614_v12 = vsub.f32 0.0, %v1582_v18  ;;  %v1594_v18 = vand.u32 2147483647, %v5084_v2 }
 0x300   :  { %6734 = vst [vmem:[#allocation91_spill] sm:$0xff] %v5133_v60  ;;  %6735 = vst [vmem:[#allocation92_spill] sm:$0xff] %v5136_v29  ;;  %v5176_v29 = vadd.f32 %v4957_v9, %v6751_v57 }
 0x301   :  { %6736 = vst [vmem:[#allocation93_spill] sm:$0xff] %v5140_v56  ;;  %6737 = vst [vmem:[#allocation94_spill] sm:$0xff] %v5143_v5  ;;  %v6747_v5 = vld [vmem:[#allocation57_spill] sm:$0xff] }
 0x302   :  { %6739 = vst [vmem:[#allocation60_spill] sm:$0xff] %v5147_v49  ;;  %6740 = vst [vmem:[#allocation95_spill] sm:$0xff] %v5150_v61  ;;  %v5168_v16 = vadd.f32 %v4957_v9, %v6747_v5  ;;  %v5172_v61 = vadd.f32 %v4960_v14, %v6749_v50  ;;  %v5192_v50 = vadd.f32 %v4957_v9, %v6759_v1  ;;  %v1584_v9 = vand.u32 2147483647, %v5014_v30 }
 0x303   :  { %6742 = vst [vmem:[#allocation55_spill] sm:$0xff] %v5154_v39  ;;  %6743 = vst [vmem:[#allocation96_spill] sm:$0xff] %v5157_v53  ;;  %v5180_v53 = vadd.f32 %v4960_v14, %v6753_v8  ;;  %v1579_v8 = vand.u32 2147483647, %v4979_v13  ;;  %v1588_v13 = vand.u32 2147483647, %v5042_v24 }
 0x304   :  { %6745 = vst [vmem:[#allocation56_spill] sm:$0xff] %v5161_v46  ;;  %6746 = vst [vmem:[#allocation97_spill] sm:$0xff] %v5164_v51  ;;  %v6757_v51 = vld [vmem:[#allocation63_spill] sm:$0xff]  ;;  %v1616_v30 = vsub.f32 0.0, %v1584_v9 }
 0x305   :  { %6748 = vst [vmem:[#allocation57_spill] sm:$0xff] %v5168_v16  ;;  %6750 = vst [vmem:[#allocation61_spill] sm:$0xff] %v5172_v61  ;;  %v5188_v5 = vadd.f32 %v4960_v14, %v6757_v51  ;;  %v6761_v61 = vld [vmem:[#allocation65_spill] sm:$0xff]  ;;  %v1610_v51 = vsub.f32 0.0, %v1578_v62  ;;  %v1611_v1 = vsub.f32 0.0, %v1579_v8 }
 0x306   :  { %6752 = vst [vmem:[#allocation58_spill] sm:$0xff] %v5176_v29  ;;  %6754 = vst [vmem:[#allocation62_spill] sm:$0xff] %v5180_v53  ;;  %v5196_v57 = vadd.f32 %v4960_v14, %v6761_v61  ;;  %v1580_v53 = vand.u32 2147483647, %v4986_v10  ;;  %v1586_v14 = vand.u32 2147483647, %v5028_v21 }
 0x307   :  { %6756 = vst [vmem:[#allocation59_spill] sm:$0xff] %v5184_v4  ;;  %6758 = vst [vmem:[#allocation63_spill] sm:$0xff] %v5188_v5  ;;  %v1583_v5 = vand.u32 2147483647, %v5007_v37  ;;  %v1613_v10 = vsub.f32 0.0, %v1581_v27 }
 0x308   :  { %6760 = vst [vmem:[#allocation54_spill] sm:$0xff] %v5192_v50  ;;  %6762 = vst [vmem:[#allocation65_spill] sm:$0xff] %v5196_v57  ;;  %v1612_v61 = vsub.f32 0.0, %v1580_v53  ;;  %v1587_v57 = vand.u32 2147483647, %v5035_v19  ;;  %v1617_v53 = vsub.f32 0.0, %v1585_v15 }
 0x309   :  { %v1642_v54 = vmul.f32 1.442695, %v1610_v51  ;;  %v1590_v62 = vand.u32 2147483647, %v5056_v32  ;;  %v1615_v37 = vsub.f32 0.0, %v1583_v5  ;;  %v1618_v24 = vsub.f32 0.0, %v1586_v14 }
 0x30a   :  { %v1644_v55 = vmul.f32 1.442695, %v1611_v1  ;;  %v1591_v8 = vand.u32 2147483647, %v5063_v38  ;;  %v1646_v23 = vmul.f32 1.442695, %v1612_v61 }
 0x30b   :  { %v1592_v21 = vand.u32 2147483647, %v5070_v25  ;;  %v1648_v52 = vmul.f32 1.442695, %v1613_v10  ;;  %v1593_v19 = vand.u32 2147483647, %v5077_v42  ;;  %3192 = vpow2.f32 %v1642_v54 }
 0x30c   :  { %v1650_v27 = vmul.f32 1.442695, %v1614_v12  ;;  %v1619_v51 = vsub.f32 0.0, %v1587_v57  ;;  %3194 = vpow2.f32 %v1644_v55  ;;  %v1652_v32 = vmul.f32 1.442695, %v1615_v37 }
 0x30d   :  { %v1595_v5 = vand.u32 2147483647, %v5091_v63  ;;  %v1620_v1 = vsub.f32 0.0, %v1588_v13  ;;  %3196 = vpow2.f32 %v1646_v23  ;;  %v1654_v9 = vmul.f32 1.442695, %v1616_v30 }
 0x30e   :  { %v1596_v61 = vand.u32 2147483647, %v5098_v59  ;;  %v1621_v25 = vsub.f32 0.0, %v1589_v6  ;;  %3198 = vpow2.f32 %v1648_v52  ;;  %v1656_v10 = vmul.f32 1.442695, %v1617_v53  ;;  %v6798_v59 = vld [vmem:[#allocation66_spill] sm:$0xff] }
 0x30f   :  { %v1597_v15 = vand.u32 2147483647, %v5105_v26  ;;  %v1622_v14 = vsub.f32 0.0, %v1590_v62  ;;  %3200 = vpow2.f32 %v1650_v27  ;;  %v1658_v12 = vmul.f32 1.442695, %v1618_v24 }
 0x310   :  { %v1598_v54 = vand.u32 2147483647, %v5112_v43  ;;  %v1623_v57 = vsub.f32 0.0, %v1591_v8  ;;  %3202 = vpow2.f32 %v1652_v32  ;;  %v1660_v37 = vmul.f32 1.442695, %v1619_v51 }
 0x311   :  { %v1599_v55 = vand.u32 2147483647, %v5119_v33  ;;  %v1624_v13 = vsub.f32 0.0, %v1592_v21  ;;  %3204 = vpow2.f32 %v1654_v9  ;;  %v1662_v30 = vmul.f32 1.442695, %v1620_v1 }
 0x312   :  { %v1600_v23 = vand.u32 2147483647, %v5126_v45  ;;  %v1625_v6 = vsub.f32 0.0, %v1593_v19  ;;  %3206 = vpow2.f32 %v1656_v10  ;;  %v1664_v52 = vmul.f32 1.442695, %v1621_v25 }
 0x313   :  { %v1601_v53 = vand.u32 2147483647, %v5133_v60  ;;  %v1626_v62 = vsub.f32 0.0, %v1594_v18  ;;  %3208 = vpow2.f32 %v1658_v12  ;;  %v1666_v24 = vmul.f32 1.442695, %v1622_v14 }
 0x314   :  { %v1602_v27 = vand.u32 2147483647, %v5140_v56  ;;  %v1627_v8 = vsub.f32 0.0, %v1595_v5  ;;  %3210 = vpow2.f32 %v1660_v37  ;;  %v1668_v32 = vmul.f32 1.442695, %v1623_v57 }
 0x315   :  { %v5223_v51 = vpop.eup %3192  ;;  %v1603_v21 = vand.u32 2147483647, %v5147_v49  ;;  %v1628_v1 = vsub.f32 0.0, %v1596_v61  ;;  %3212 = vpow2.f32 %v1662_v30  ;;  %v1670_v9 = vmul.f32 1.442695, %v1624_v13 }
 0x316   :  { %v5226_v19 = vpop.eup %3194  ;;  %v1604_v25 = vand.u32 2147483647, %v5154_v39  ;;  %v1629_v10 = vsub.f32 0.0, %v1597_v15  ;;  %3214 = vpow2.f32 %v1664_v52  ;;  %v1672_v18 = vmul.f32 1.442695, %v1625_v6 }
 0x317   :  { %v5229_v14 = vpop.eup %3196  ;;  %v1605_v5 = vand.u32 2147483647, %v5161_v46  ;;  %v1630_v12 = vsub.f32 0.0, %v1598_v54  ;;  %3216 = vpow2.f32 %v1666_v24  ;;  %v1674_v57 = vmul.f32 1.442695, %v1626_v62 }
 0x318   :  { %v5232_v37 = vpop.eup %3198  ;;  %v1606_v61 = vand.u32 2147483647, %v5168_v16  ;;  %v1631_v30 = vsub.f32 0.0, %v1599_v55  ;;  %3218 = vpow2.f32 %v1668_v32  ;;  %v1676_v13 = vmul.f32 1.442695, %v1627_v8 }
 0x319   :  { %v5235_v49 = vpop.eup %3200  ;;  %v1607_v15 = vand.u32 2147483647, %v5176_v29  ;;  %v1632_v52 = vsub.f32 0.0, %v1600_v23  ;;  %3220 = vpow2.f32 %v1670_v9  ;;  %v1678_v6 = vmul.f32 1.442695, %v1628_v1 }
 0x31a   :  { %v5238_v39 = vpop.eup %3202  ;;  %v1608_v54 = vand.u32 2147483647, %v5184_v4  ;;  %v1633_v24 = vsub.f32 0.0, %v1601_v53  ;;  %3222 = vpow2.f32 %v1672_v18  ;;  %v1680_v62 = vmul.f32 1.442695, %v1629_v10 }
 0x31b   :  { %v5241_v46 = vpop.eup %3204  ;;  %v1609_v55 = vand.u32 2147483647, %v5192_v50  ;;  %v1634_v32 = vsub.f32 0.0, %v1602_v27  ;;  %3224 = vpow2.f32 %v1674_v57  ;;  %v1682_v8 = vmul.f32 1.442695, %v1630_v12 }
 0x31c   :  { %v5244_v16 = vpop.eup %3206  ;;  %v1635_v29 = vsub.f32 0.0, %v1603_v21  ;;  %3226 = vpow2.f32 %v1676_v13  ;;  %v1684_v23 = vmul.f32 1.442695, %v1631_v30  ;;  %v1636_v9 = vsub.f32 0.0, %v1604_v25 }
 0x31d   :  { %v5246_v1 = vpop.eup %3208  ;;  %v1637_v56 = vsub.f32 0.0, %v1605_v5  ;;  %3228 = vpow2.f32 %v1678_v6  ;;  %v1686_v53 = vmul.f32 1.442695, %v1632_v52  ;;  %v1638_v10 = vsub.f32 0.0, %v1606_v61 }
 0x31e   :  { %v5248_v18 = vpop.eup %3210  ;;  %v1639_v4 = vsub.f32 0.0, %v1607_v15  ;;  %3230 = vpow2.f32 %v1680_v62  ;;  %v1688_v50 = vmul.f32 1.442695, %v1633_v24  ;;  %v1640_v12 = vsub.f32 0.0, %v1608_v54 }
 0x31f   :  { %v5250_v27 = vpop.eup %3212  ;;  %v1641_v57 = vsub.f32 0.0, %v1609_v55  ;;  %3232 = vpow2.f32 %v1682_v8  ;;  %v1690_v21 = vmul.f32 1.442695, %v1634_v32  ;;  %v1692_v30 = vmul.f32 1.442695, %v1635_v29 }
 0x320   :  { %v5252_v13 = vpop.eup %3214  ;;  %3234 = vpow2.f32 %v1684_v23  ;;  %v1694_v5 = vmul.f32 1.442695, %v1636_v9  ;;  %v1696_v61 = vmul.f32 1.442695, %v1637_v56  ;;  %v1698_v15 = vmul.f32 1.442695, %v1638_v10 }
 0x321   :  { %v5254_v25 = vpop.eup %3216  ;;  %3236 = vpow2.f32 %v1686_v53  ;;  %v1700_v54 = vmul.f32 1.442695, %v1639_v4  ;;  %v1702_v24 = vmul.f32 1.442695, %v1640_v12  ;;  %v1704_v62 = vmul.f32 1.442695, %v1641_v57 }
 0x322   :  { %6763 = vst [vmem:[#allocation98_spill] sm:$0xff] %v5254_v25  ;;  %v5256_v52 = vpop.eup %3218  ;;  %3238 = vpow2.f32 %v1688_v50  ;;  %v1706_v29 = vadd.f32 1.0, %v5223_v51  ;;  %v1707_v32 = vadd.f32 1.0, %v5226_v19  ;;  %v1708_v8 = vadd.f32 1.0, %v5229_v14 }
 0x323   :  { %6764 = vst [vmem:[#allocation99_spill] sm:$0xff] %v5256_v52  ;;  %v5258_v6 = vpop.eup %3220  ;;  %3240 = vpow2.f32 %v1690_v21  ;;  %v1709_v56 = vadd.f32 1.0, %v5232_v37  ;;  %v1710_v50 = vadd.f32 1.0, %v5235_v49  ;;  %v1711_v4 = vadd.f32 1.0, %v5238_v39 }
 0x324   :  { %6765 = vst [vmem:[#allocation100_spill] sm:$0xff] %v5258_v6  ;;  %v5260_v55 = vpop.eup %3222  ;;  %3242 = vpow2.f32 %v1692_v30  ;;  %v1712_v53 = vadd.f32 1.0, %v5241_v46  ;;  %v1713_v10 = vadd.f32 1.0, %v5244_v16  ;;  %v1714_v12 = vadd.f32 1.0, %v5246_v1 }
 0x325   :  { %6766 = vst [vmem:[#allocation101_spill] sm:$0xff] %v5260_v55  ;;  %v5265_v23 = vpop.eup %3224  ;;  %3244 = vpow2.f32 %v1694_v5  ;;  %v5278_v21 = vadd.f32 1.0, %v5248_v18  ;;  %v5281_v30 = vadd.f32 1.0, %v5250_v27  ;;  %v5284_v5 = vadd.f32 1.0, %v5252_v13 }
 0x326   :  { %6767 = vst [vmem:[#allocation102_spill] sm:$0xff] %v5265_v23  ;;  %v5270_v9 = vpop.eup %3226  ;;  %3246 = vpow2.f32 %v1696_v61  ;;  %v5289_v61 = vadd.f32 1.0, %v5254_v25  ;;  %v5292_v45 = vadd.f32 1.0, %v5256_v52  ;;  %v5298_v43 = vadd.f32 1.0, %v5258_v6 }
 0x327   :  { %6768 = vst [vmem:[#allocation103_spill] sm:$0xff] %v5270_v9  ;;  %v5275_v57 = vpop.eup %3228  ;;  %3248 = vpow2.f32 %v1698_v15  ;;  %vm1771_vm3 = vcmp.ge.f32.partialorder %v6798_v59, 0.0  ;;  %v6907_v38 = vmin.f32 %v5010_v0, 20.0 }
 0x328   :  { %6769 = vst [vmem:[#allocation104_spill] sm:$0xff] %v5275_v57  ;;  %v5286_v60 = vpop.eup %3230  ;;  %3250 = vpow2.f32 %v1700_v54  ;;  %v5305_v54 = vadd.f32 1.0, %v5260_v55 }
 0x329   :  { %6770 = vst [vmem:[#allocation105_spill] sm:$0xff] %v5286_v60  ;;  %v5295_v33 = vpop.eup %3232  ;;  %3252 = vpow2.f32 %v1702_v24  ;;  %v5312_v24 = vadd.f32 1.0, %v5265_v23  ;;  %v5326_v23 = vadd.f32 1.0, %v5275_v57 }
 0x32a   :  { %6771 = vst [vmem:[#allocation106_spill] sm:$0xff] %v5295_v33  ;;  %v5302_v63 = vpop.eup %3234  ;;  %3254 = vpow2.f32 %v1704_v62  ;;  %v5319_v62 = vadd.f32 1.0, %v5270_v9  ;;  %v5333_v9 = vadd.f32 1.0, %v5286_v60  ;;  %v5340_v57 = vadd.f32 1.0, %v5295_v33 }
 0x32b   :  { %6772 = vst [vmem:[#allocation107_spill] sm:$0xff] %v5302_v63  ;;  %v5309_v42 = vpop.eup %3236  ;;  %3256 = vrcp.f32 %v1706_v29  ;;  %v5347_v60 = vadd.f32 1.0, %v5302_v63 }
 0x32c   :  { %6773 = vst [vmem:[#allocation108_spill] sm:$0xff] %v5309_v42  ;;  %v5316_v6 = vpop.eup %3238  ;;  %3258 = vrcp.f32 %v1707_v32  ;;  %v5354_v33 = vadd.f32 1.0, %v5309_v42 }
 0x32d   :  { %6774 = vst [vmem:[#allocation109_spill] sm:$0xff] %v5316_v6  ;;  %v5323_v55 = vpop.eup %3240  ;;  %3260 = vrcp.f32 %v1708_v8  ;;  %6779 = vst [vmem:[#allocation114_spill] sm:$0xff] %v5347_v60  ;;  %v5361_v63 = vadd.f32 1.0, %v5316_v6  ;;  %v6799_v8 = vld [vmem:[#allocation67_spill] sm:$0xff] }
 0x32e   :  { %6775 = vst [vmem:[#allocation110_spill] sm:$0xff] %v5323_v55  ;;  %v5330_v26 = vpop.eup %3242  ;;  %3262 = vrcp.f32 %v1709_v56  ;;  %6781 = vst [vmem:[#allocation116_spill] sm:$0xff] %v5354_v33  ;;  %v5368_v42 = vadd.f32 1.0, %v5323_v55  ;;  %vm1772_vm4 = vcmp.ge.f32.partialorder %v6799_v8, 0.0  ;;  %v6807_v33 = vld [vmem:[#allocation71_spill] sm:$0xff] }
 0x32f   :  { %6776 = vst [vmem:[#allocation111_spill] sm:$0xff] %v5330_v26  ;;  %v5337_v2 = vpop.eup %3244  ;;  %3264 = vrcp.f32 %v1710_v50  ;;  %v6782_v50 = vld [vmem:[#allocation80_spill] sm:$0xff]  ;;  %6785 = vst [vmem:[#allocation118_spill] sm:$0xff] %v5361_v63  ;;  %v5375_v6 = vadd.f32 1.0, %v5330_v26  ;;  %vm1774_vm6 = vcmp.ge.f32.partialorder %v6807_v33, 0.0  ;;  %v6817_v26 = vld [vmem:[#allocation73_spill] sm:$0xff] }
 0x330   :  { %6777 = vst [vmem:[#allocation112_spill] sm:$0xff] %v5337_v2  ;;  %v5344_v29 = vpop.eup %3246  ;;  %3266 = vrcp.f32 %v1711_v4  ;;  %6789 = vst [vmem:[#allocation120_spill] sm:$0xff] %v5368_v42  ;;  %v6803_v4 = vld [vmem:[#allocation69_spill] sm:$0xff]  ;;  %vm1775_vm7 = vcmp.ge.f32.partialorder %v6817_v26, 0.0 }
 0x331   :  { %6778 = vst [vmem:[#allocation113_spill] sm:$0xff] %v5344_v29  ;;  %v5351_v32 = vpop.eup %3248  ;;  %3268 = vrcp.f32 %v1712_v53  ;;  %6793 = vst [vmem:[#allocation122_spill] sm:$0xff] %v5375_v6  ;;  %v5390_v42 = vadd.f32 1.0, %v5344_v29  ;;  %vm1773_vm5 = vcmp.ge.f32.partialorder %v6803_v4, 0.0 }
 0x332   :  { %6780 = vst [vmem:[#allocation115_spill] sm:$0xff] %v5351_v32  ;;  %v5358_v25 = vpop.eup %3250  ;;  %3270 = vrcp.f32 %v1713_v10  ;;  %v6794_v10 = vld [vmem:[#allocation64_spill] sm:$0xff] }
 0x333   :  { %6784 = vst [vmem:[#allocation117_spill] sm:$0xff] %v5358_v25  ;;  %v5365_v40 = vpop.eup %3252  ;;  %3272 = vrcp.f32 %v1714_v12  ;;  %vm1770_vm2 = vcmp.ge.f32.partialorder %v6794_v10, 0.0  ;;  %v5382_v12 = vadd.f32 1.0, %v5337_v2  ;;  %6802 = vst [vmem:[#allocation66_spill] sm:$0xff] %v5390_v42  ;;  %v6818_v2 = vmin.f32 %v4989_v36, 20.0 }
 0x334   :  { %6788 = vst [vmem:[#allocation119_spill] sm:$0xff] %v5365_v40  ;;  %v5372_v52 = vpop.eup %3254  ;;  %3274 = vrcp.f32 %v5278_v21  ;;  %v6827_v21 = vmin.f32 %v5010_v0, 20.0  ;;  %v6845_v10 = vmin.f32 %v5052_v11, 20.0  ;;  %v6863_v26 = vld [vmem:[#allocation114_spill] sm:$0xff]  ;;  %v6963_v0 = vld [vmem:[#allocation85_spill] sm:$0xff] }
 0x335   :  { %6792 = vst [vmem:[#allocation121_spill] sm:$0xff] %v5372_v52  ;;  %v3257_v55 = vpop.eup %3256  ;;  %6797 = vst [vmem:[#allocation64_spill] sm:$0xff] %v5382_v12  ;;  %3276 = vrcp.f32 %v5281_v30  ;;  %v5397_v12 = vadd.f32 1.0, %v5351_v32  ;;  %v6812_v30 = vmin.f32 %v4975_v58, 20.0  ;;  %v6814_v32 = vmin.f32 %v4982_v7, 20.0 }
 0x336   :  { %v3259_v53 = vpop.eup %3258  ;;  %3278 = vrcp.f32 %v5284_v5  ;;  %v5404_v5 = vadd.f32 1.0, %v5358_v25  ;;  %v1802_v6 = vmul.f32 %v3257_v55, %v5223_v51  ;;  %v5423_v25 = vmax.f32 %v6818_v2, 0.0  ;;  %v6824_v51 = vld [vmem:[#allocation38_spill] sm:$0xff] }
 0x337   :  { %v3261_v15 = vpop.eup %3260  ;;  %6806 = vst [vmem:[#allocation67_spill] sm:$0xff] %v5397_v12  ;;  %3280 = vrcp.f32 %v5289_v61  ;;  %v5409_v60 = vmax.f32 %v6812_v30, 0.0  ;;  %v5413_v56 = vmax.f32 %v6814_v32, 0.0  ;;  %v5416_v12 = vadd.f32 1.0, %v5365_v40  ;;  %v6821_v32 = vld [vmem:[#allocation36_spill] sm:$0xff] }
 0x338   :  { %v3263_v42 = vpop.eup %3262  ;;  %6810 = vst [vmem:[#allocation69_spill] sm:$0xff] %v5404_v5  ;;  %3282 = vrcp.f32 %v5292_v45  ;;  %6819 = vst [vmem:[#allocation73_spill] sm:$0xff] %v5423_v25  ;;  %vm1776_vm8 = vcmp.ge.f32.partialorder %v6821_v32, 0.0  ;;  %v1804_v40 = vmul.f32 %v3261_v15, %v5229_v14  ;;  %v6822_v45 = vmin.f32 %v4996_v31, 20.0  ;;  %v6869_v32 = vld [vmem:[#allocation116_spill] sm:$0xff] }
 0x339   :  { %6813 = vst [vmem:[#allocation71_spill] sm:$0xff] %v5409_v60  ;;  %6815 = vst [vmem:[#allocation123_spill] sm:$0xff] %v5413_v56  ;;  %v3265_v61 = vpop.eup %3264  ;;  %v5426_v60 = vadd.f32 1.0, %v5372_v52  ;;  %v1803_v56 = vmul.f32 %v3259_v53, %v5226_v19  ;;  %3284 = vrcp.f32 %v5298_v43  ;;  %vm1777_vm9 = vcmp.ge.f32.partialorder %v6824_v51, 0.0 }
 0x33a   :  { %6816 = vst [vmem:[#allocation124_spill] sm:$0xff] %v5416_v12  ;;  %v3267_v30 = vpop.eup %3266  ;;  %v5433_v63 = vmax.f32 %v6822_v45, 0.0  ;;  %v1805_v2 = vmul.f32 %v3263_v42, %v5232_v37  ;;  %v6825_v25 = vmin.f32 %v5003_v41, 20.0  ;;  %v5444_v19 = vmax.f32 %v6827_v21, 0.0  ;;  %v6829_v45 = vld [vmem:[#allocation40_spill] sm:$0xff]  ;;  %v6835_v21 = vld [vmem:[#allocation50_spill] sm:$0xff] }
 0x33b   :  { %6820 = vst [vmem:[#allocation125_spill] sm:$0xff] %v5426_v60  ;;  %v3269_v29 = vpop.eup %3268  ;;  %3286 = vrcp.f32 %v5305_v54  ;;  %vm1778_vm10 = vcmp.ge.f32.partialorder %v6829_v45, 0.0  ;;  %v1806_v43 = vmul.f32 %v3265_v61, %v5235_v49  ;;  %v6831_v60 = vmin.f32 %v5017_v28, 20.0 }
 0x33c   :  { %6823 = vst [vmem:[#allocation36_spill] sm:$0xff] %v5433_v63  ;;  %v5440_v52 = vmax.f32 %v6825_v25, 0.0  ;;  %6828 = vst [vmem:[#allocation126_spill] sm:$0xff] %v5444_v19  ;;  %v3271_v14 = vpop.eup %3270  ;;  %v6830_v63 = vld [vmem:[#allocation48_spill] sm:$0xff]  ;;  %v6833_v25 = vmin.f32 %v5024_v48, 20.0  ;;  %vm1780_vm12 = vcmp.ge.f32.partialorder %v6835_v21, 0.0  ;;  %v5461_v54 = vsel %vm1770_vm2, %v3257_v55, %v1802_v6 }
 0x33d   :  { %vm1779_vm11 = vcmp.ge.f32.partialorder %v6830_v63, 0.0  ;;  %v5452_v37 = vmax.f32 %v6831_v60, 0.0  ;;  %v3273_v12 = vpop.eup %3272  ;;  %6836 = vst [vmem:[#allocation50_spill] sm:$0xff] %v5461_v54  ;;  %v6837_v19 = vmin.f32 %v5031_v22, 20.0  ;;  %v6839_v49 = vmin.f32 %v5038_v44, 20.0  ;;  %v6881_v63 = vld [vmem:[#allocation120_spill] sm:$0xff] }
 0x33e   :  { %6826 = vst [vmem:[#allocation38_spill] sm:$0xff] %v5440_v52  ;;  %v5456_v52 = vmax.f32 %v6833_v25, 0.0  ;;  %v6841_v60 = vmin.f32 %v5045_v35, 20.0  ;;  %v3275_v25 = vpop.eup %3274  ;;  %v5479_v6 = vsel %vm1771_vm3, %v3259_v53, %v1803_v56  ;;  %v5483_v55 = vsel %vm1772_vm4, %v3261_v15, %v1804_v40  ;;  %v6889_v21 = vld [vmem:[#allocation122_spill] sm:$0xff] }
 0x33f   :  { %6832 = vst [vmem:[#allocation40_spill] sm:$0xff] %v5452_v37  ;;  %v5465_v5 = vmax.f32 %v6837_v19, 0.0  ;;  %v5469_v28 = vmax.f32 %v6839_v49, 0.0  ;;  %6843 = vst [vmem:[#allocation130_spill] sm:$0xff] %v5479_v6  ;;  %v5487_v19 = vmax.f32 %v6845_v10, 0.0  ;;  %v3277_v49 = vpop.eup %3276  ;;  %3288 = vrcp.f32 %v5312_v24 }
 0x340   :  { %6834 = vst [vmem:[#allocation48_spill] sm:$0xff] %v5456_v52  ;;  %v5473_v37 = vmax.f32 %v6841_v60, 0.0  ;;  %v1807_v52 = vmul.f32 %v3267_v30, %v5238_v39  ;;  %6844 = vst [vmem:[#allocation131_spill] sm:$0xff] %v5483_v55  ;;  %v6847_v60 = vld [vmem:[#allocation44_spill] sm:$0xff]  ;;  %v1808_v54 = vmul.f32 %v3269_v29, %v5241_v46  ;;  %v5494_v59 = vsel %vm1773_vm5, %v3263_v42, %v1805_v2  ;;  %v3279_v40 = vpop.eup %3278 }
 0x341   :  { %6838 = vst [vmem:[#allocation127_spill] sm:$0xff] %v5465_v5  ;;  %6840 = vst [vmem:[#allocation128_spill] sm:$0xff] %v5469_v28  ;;  %vm1782_vm14 = vcmp.ge.f32.partialorder %v6847_v60, 0.0  ;;  %v6849_v39 = vmin.f32 %v5059_v3, 20.0  ;;  %3290 = vrcp.f32 %v5319_v62  ;;  %v1809_v15 = vmul.f32 %v3271_v14, %v5244_v16  ;;  %v3281_v4 = vpop.eup %3280  ;;  %v3140_v28 = vld [vmem:[#allocation19] ss:$16 sps:$4 sm:$0xff]  }
 0x342   :  { %6842 = vst [vmem:[#allocation129_spill] sm:$0xff] %v5473_v37  ;;  %6846 = vst [vmem:[#allocation132_spill] sm:$0xff] %v5487_v19  ;;  %v5504_v24 = vsel %vm1774_vm6, %v3265_v61, %v1806_v43  ;;  %v6852_v56 = vmin.f32 %v5066_v17, 20.0  ;;  %3292 = vrcp.f32 %v5326_v23  ;;  %v1810_v42 = vmul.f32 %v3273_v12, %v5246_v1  ;;  %v3283_v43 = vpop.eup %3282 }
 0x343   :  { %6848 = vst [vmem:[#allocation44_spill] sm:$0xff] %v5494_v59  ;;  %v5498_v8 = vmax.f32 %v6849_v39, 0.0  ;;  %6851 = vst [vmem:[#allocation134_spill] sm:$0xff] %v5504_v24  ;;  %v1811_v53 = vmul.f32 %v3275_v25, %v5248_v18  ;;  %v6854_v62 = vmin.f32 %v5073_v34, 20.0  ;;  %3294 = vrcp.f32 %v5333_v9  ;;  %v6860_v9 = vld [vmem:[#allocation78_spill] sm:$0xff] }
 0x344   :  { %v5508_v46 = vmax.f32 %v6852_v56, 0.0  ;;  %v1812_v33 = vmul.f32 %v3277_v49, %v5250_v27  ;;  %v5522_v61 = vsel %vm1775_vm7, %v3267_v30, %v1807_v52  ;;  %v6857_v23 = vmin.f32 %v5080_v47, 20.0  ;;  %v6864_v52 = vld [vmem:[#allocation47_spill] sm:$0xff]  ;;  %v6865_v30 = vld [vmem:[#allocation98_spill] sm:$0xff] }
 0x345   :  { %6850 = vst [vmem:[#allocation133_spill] sm:$0xff] %v5498_v8  ;;  %v5516_v16 = vmax.f32 %v6854_v62, 0.0  ;;  %6856 = vst [vmem:[#allocation137_spill] sm:$0xff] %v5522_v61  ;;  %3296 = vrcp.f32 %v5340_v57  ;;  %v1813_v1 = vmul.f32 %v3279_v40, %v5252_v13  ;;  %v5532_v18 = vsel %vm1776_vm8, %v3269_v29, %v1808_v54  ;;  %v3285_v29 = vpop.eup %3284  ;;  %v6905_v61 = vld [vmem:[#allocation66_spill] sm:$0xff]  ;;  %v6922_v8 = vld [vmem:[#allocation67_spill] sm:$0xff] }
 0x346   :  { %6853 = vst [vmem:[#allocation135_spill] sm:$0xff] %v5508_v46  ;;  %v5526_v2 = vmax.f32 %v6857_v23, 0.0  ;;  %6859 = vst [vmem:[#allocation139_spill] sm:$0xff] %v5532_v18  ;;  %v6861_v10 = vmin.f32 %v6860_v9, 20.0  ;;  %3298 = vrcp.f32 %v6863_v26  ;;  %vm1784_vm0 = vcmp.ge.f32.partialorder %v6864_v52, 0.0  ;;  %v6872_v23 = vld [vmem:[#allocation82_spill] sm:$0xff] }
 0x347   :  { %6855 = vst [vmem:[#allocation136_spill] sm:$0xff] %v5516_v16  ;;  %v1814_v39 = vmul.f32 %v3281_v4, %v6865_v30  ;;  %v5543_v56 = vsel %vm1777_vm9, %v3271_v14, %v1809_v15  ;;  %v6867_v13 = vmin.f32 %v6782_v50, 20.0  ;;  %3300 = vrcp.f32 %v6869_v32  ;;  %v5562_v14 = vpop.eup %3286  ;;  %v6875_v15 = vld [vmem:[#allocation118_spill] sm:$0xff]  ;;  %v6876_v26 = vld [vmem:[#allocation99_spill] sm:$0xff] }
 0x348   :  { %6858 = vst [vmem:[#allocation138_spill] sm:$0xff] %v5526_v2  ;;  %v5536_v27 = vmax.f32 %v6861_v10, 0.0  ;;  %6866 = vst [vmem:[#allocation114_spill] sm:$0xff] %v5543_v56  ;;  %v5552_v54 = vsel %vm1778_vm10, %v3273_v12, %v1810_v42  ;;  %v5556_v62 = vsel %vm1779_vm11, %v3275_v25, %v1811_v53  ;;  %v6873_v10 = vmin.f32 %v6872_v23, 20.0  ;;  %v6878_v12 = vld [vmem:[#allocation84_spill] sm:$0xff]  ;;  %v6883_v53 = vld [vmem:[#allocation86_spill] sm:$0xff] }
 0x349   :  { %v5547_v57 = vmax.f32 %v6867_v13, 0.0  ;;  %6870 = vst [vmem:[#allocation98_spill] sm:$0xff] %v5552_v54  ;;  %6871 = vst [vmem:[#allocation116_spill] sm:$0xff] %v5556_v62  ;;  %3302 = vrcp.f32 %v6875_v15  ;;  %v1815_v30 = vmul.f32 %v3283_v43, %v6876_v26  ;;  %v5568_v13 = vsel %vm1780_vm12, %v3277_v49, %v1812_v33  ;;  %v6886_v15 = vld [vmem:[#allocation88_spill] sm:$0xff]  ;;  %v6910_v59 = vld [vmem:[#allocation102_spill] sm:$0xff] }
 0x34a   :  { %6862 = vst [vmem:[#allocation140_spill] sm:$0xff] %v5536_v27  ;;  %v5560_v51 = vmax.f32 %v6873_v10, 0.0  ;;  %6877 = vst [vmem:[#allocation118_spill] sm:$0xff] %v5568_v13  ;;  %v6879_v45 = vmin.f32 %v6878_v12, 20.0  ;;  %3304 = vrcp.f32 %v6881_v63  ;;  %v5577_v25 = vsel %vm1781_vm13, %v3279_v40, %v1813_v1  ;;  %v6890_v49 = vld [vmem:[#allocation100_spill] sm:$0xff]  ;;  %v6892_v63 = vld [vmem:[#allocation90_spill] sm:$0xff]  ;;  %v5597_v1 = vpop.eup %3288 }
 0x34b   :  { %6868 = vst [vmem:[#allocation47_spill] sm:$0xff] %v5547_v57  ;;  %6882 = vst [vmem:[#allocation120_spill] sm:$0xff] %v5577_v25  ;;  %v6884_v32 = vmin.f32 %v6883_v53, 20.0  ;;  %v6887_v26 = vmin.f32 %v6886_v15, 20.0  ;;  %3306 = vrcp.f32 %v6889_v21  ;;  %v1816_v33 = vmul.f32 %v3285_v29, %v6890_v49  ;;  %v6896_v25 = vld [vmem:[#allocation101_spill] sm:$0xff]  ;;  %v6897_v13 = vld [vmem:[#allocation92_spill] sm:$0xff] }
 0x34c   :  { %6874 = vst [vmem:[#allocation141_spill] sm:$0xff] %v5560_v51  ;;  %v5572_v42 = vmax.f32 %v6879_v45, 0.0  ;;  %v5591_v45 = vsel %vm1782_vm14, %v3281_v4, %v1814_v39  ;;  %v6893_v20 = vmin.f32 %v6892_v63, 20.0  ;;  %v6898_v21 = vmin.f32 %v6897_v13, 20.0  ;;  %v5610_v39 = vpop.eup %3290 }
 0x34d   :  { %v5581_v10 = vmax.f32 %v6884_v32, 0.0  ;;  %v5585_v62 = vmax.f32 %v6887_v26, 0.0  ;;  %6891 = vst [vmem:[#allocation122_spill] sm:$0xff] %v5591_v45  ;;  %v6895_v32 = vld [vmem:[#allocation64_spill] sm:$0xff]  ;;  %v5602_v26 = vmul.f32 %v5562_v14, %v6896_v25  ;;  %v6900_v60 = vmin.f32 %v4975_v58, 20.0 }
 0x34e   :  { %6880 = vst [vmem:[#allocation99_spill] sm:$0xff] %v5572_v42  ;;  %v5595_v40 = vmax.f32 %v6893_v20, 0.0  ;;  %3308 = vrcp.f32 %v6895_v32  ;;  %v5606_v54 = vmax.f32 %v6898_v21, 0.0  ;;  %v5614_v49 = vsel %vm1783_vm15, %v3283_v43, %v1815_v30  ;;  %v5622_v21 = vpop.eup %3292  ;;  %v6908_v30 = vld [vmem:[#allocation37_spill] sm:$0xff] }
 0x34f   :  { %6885 = vst [vmem:[#allocation142_spill] sm:$0xff] %v5581_v10  ;;  %6888 = vst [vmem:[#allocation143_spill] sm:$0xff] %v5585_v62  ;;  %v1930_v4 = vand.u32 2147483647, %v6900_v60  ;;  %v6902_v20 = vmin.f32 %v4982_v7, 20.0  ;;  %v6903_v45 = vmin.f32 %v4989_v36, 20.0  ;;  %3310 = vrcp.f32 %v6905_v61 }
 0x350   :  { %6894 = vst [vmem:[#allocation100_spill] sm:$0xff] %v5595_v40  ;;  %6899 = vst [vmem:[#allocation64_spill] sm:$0xff] %v5606_v54  ;;  %v6904_v56 = vmin.f32 %v4996_v31, 20.0  ;;  %v6906_v60 = vmin.f32 %v5003_v41, 20.0  ;;  %v1935_v43 = vand.u32 2147483647, %v6907_v38  ;;  %3312 = vrcp.f32 %v6922_v8 }
 0x351   :  { %6901 = vst [vmem:[#allocation101_spill] sm:$0xff] %v5614_v49  ;;  %v1931_v32 = vand.u32 2147483647, %v6902_v20  ;;  %v1932_v25 = vand.u32 2147483647, %v6903_v45  ;;  %v6909_v49 = vmin.f32 %v6908_v30, 20.0  ;;  %v5631_v20 = vpop.eup %3294  ;;  %v5635_v45 = vmul.f32 %v5597_v1, %v6910_v59 }
 0x352   :  { %v1933_v18 = vand.u32 2147483647, %v6904_v56  ;;  %v1934_v24 = vand.u32 2147483647, %v6906_v60  ;;  %v6911_v56 = vmin.f32 %v5024_v48, 20.0  ;;  %v6912_v61 = vmin.f32 %v5031_v22, 20.0  ;;  %v5647_v38 = vpop.eup %3296 }
 0x353   :  { %v1936_v54 = vand.u32 2147483647, %v6909_v49  ;;  %v6913_v60 = vmin.f32 %v5038_v44, 20.0  ;;  %v5651_v49 = vsel %vm1784_vm0, %v3285_v29, %v1816_v33  ;;  %v6915_v59 = vmin.f32 %v5045_v35, 20.0  ;;  %v3145_v44 = vld [vmem:[#allocation19 + $0x24] ss:$16 sps:$4 sm:$0xff]  }
 0x354   :  { %v1937_v40 = vand.u32 2147483647, %v6911_v56  ;;  %v5641_v55 = vand.u32 2147483647, %v6912_v61  ;;  %6914 = vst [vmem:[#allocation66_spill] sm:$0xff] %v5651_v49  ;;  %v6916_v56 = vmin.f32 %v5052_v11, 20.0 }
 0x355   :  { %v5645_v62 = vand.u32 2147483647, %v6913_v60  ;;  %v5655_v6 = vand.u32 2147483647, %v6915_v59  ;;  %v6917_v61 = vmin.f32 %v5059_v3, 20.0  ;;  %v5665_v60 = vpop.eup %3298  ;;  %v6918_v51 = vmin.f32 %v5066_v17, 20.0 }
 0x356   :  { %v5659_v10 = vand.u32 2147483647, %v6916_v56  ;;  %v6919_v52 = vmin.f32 %v5073_v34, 20.0  ;;  %v1962_v33 = vsub.f32 0.0, %v1930_v4  ;;  %v1963_v59 = vsub.f32 0.0, %v1931_v32  ;;  %v5675_v49 = vpop.eup %3300  ;;  %v6962_v48 = vld [vmem:[#allocation105_spill] sm:$0xff] }
 0x357   :  { %v5663_v42 = vand.u32 2147483647, %v6917_v61  ;;  %v5669_v57 = vand.u32 2147483647, %v6918_v51  ;;  %v6920_v56 = vmin.f32 %v5080_v47, 20.0  ;;  %v6921_v61 = vmin.f32 %v6860_v9, 20.0  ;;  %v5685_v51 = vpop.eup %3302 }
 0x358   :  { %v5673_v29 = vand.u32 2147483647, %v6919_v52  ;;  %v1964_v16 = vsub.f32 0.0, %v1932_v25  ;;  %v1965_v46 = vsub.f32 0.0, %v1933_v18  ;;  %v6923_v52 = vld [vmem:[#allocation94_spill] sm:$0xff]  ;;  %v6926_v32 = vmin.f32 %v6782_v50, 20.0  ;;  %v5696_v47 = vpop.eup %3304 }
 0x359   :  { %v5679_v27 = vand.u32 2147483647, %v6920_v56  ;;  %v5683_v2 = vand.u32 2147483647, %v6921_v61  ;;  %v6924_v19 = vmin.f32 %v6923_v52, 20.0  ;;  %v1966_v56 = vsub.f32 0.0, %v1934_v24  ;;  %v5707_v5 = vpop.eup %3306 }
 0x35a   :  { %v5694_v37 = vand.u32 2147483647, %v6926_v32  ;;  %v6927_v61 = vld [vmem:[#allocation69_spill] sm:$0xff]  ;;  %v6928_v25 = vld [vmem:[#allocation103_spill] sm:$0xff]  ;;  %v6929_v8 = vmin.f32 %v6872_v23, 20.0  ;;  %v6930_v32 = vld [vmem:[#allocation124_spill] sm:$0xff]  ;;  %v5710_v17 = vpop.eup %3308 }
 0x35b   :  { %v5690_v4 = vmax.f32 %v6924_v19, 0.0  ;;  %3314 = vrcp.f32 %v6927_v61  ;;  %v5701_v18 = vmul.f32 %v5610_v39, %v6928_v25  ;;  %v1967_v19 = vsub.f32 0.0, %v1935_v43  ;;  %v6931_v61 = vld [vmem:[#allocation125_spill] sm:$0xff]  ;;  %v6932_v23 = vld [vmem:[#allocation75_spill] sm:$0xff]  ;;  %v3152_v36 = vld [vmem:[#allocation19 + $0x80] ss:$16 sps:$4 sm:$0xff]  }
 0x35c   :  { %v5705_v9 = vand.u32 2147483647, %v6929_v8  ;;  %3316 = vrcp.f32 %v6930_v32  ;;  %v1968_v24 = vsub.f32 0.0, %v1936_v54  ;;  %v1994_v50 = vmul.f32 1.442695, %v1962_v33  ;;  %v5719_v33 = vpop.eup %3310 }
 0x35d   :  { %6925 = vst [vmem:[#allocation102_spill] sm:$0xff] %v5690_v4  ;;  %v3142_v4 = vld [vmem:[#allocation19 + $0x4] ss:$16 sps:$4 sm:$0xff]   ;;  %v1996_v34 = vmul.f32 1.442695, %v1963_v59  ;;  %3318 = vrcp.f32 %v6931_v61  ;;  %v1969_v3 = vsub.f32 0.0, %v1937_v40 }
 0x35e   :  { %v1998_v25 = vmul.f32 1.442695, %v1964_v16  ;;  %v2000_v11 = vmul.f32 1.442695, %v1965_v46  ;;  %2656 = vmatprep.subr.bf16.mxu1 %v3142_v4  ;;  %vm1785_vm1 = vcmp.ge.f32.partialorder %v6932_v23, 0.0  ;;  %v6933_v43 = vmin.f32 %v6878_v12, 20.0 }
 0x35f   :  { %v1970_v35 = vsub.f32 0.0, %v5641_v55  ;;  %3320 = vpow2.f32 %v1994_v50  ;;  %v2002_v54 = vmul.f32 1.442695, %v1966_v56  ;;  %2657 = vmatpush1.bf16.msra.mxu1 %v3140_v28  ;;  %v6934_v59 = vmin.f32 %v6883_v53, 20.0  ;;  %v6946_v53 = vld [vmem:[#allocation79_spill] sm:$0xff]  ;;  %v6950_v23 = vld [vmem:[#allocation61_spill] sm:$0xff] }
 0x360   :  { %v5716_v8 = vand.u32 2147483647, %v6933_v43  ;;  %v1971_v46 = vsub.f32 0.0, %v5645_v62  ;;  %3322 = vpow2.f32 %v1996_v34  ;;  %v2004_v16 = vmul.f32 1.442695, %v1967_v19  ;;  %2658 = vmatprep.subr.bf16.mxu1 %v3145_v44 }
 0x361   :  { %v5723_v32 = vand.u32 2147483647, %v6934_v59  ;;  %v6935_v40 = vmin.f32 %v6886_v15, 20.0  ;;  %v1972_v61 = vsub.f32 0.0, %v5655_v6  ;;  %3324 = vpow2.f32 %v1998_v25  ;;  %v6937_v59 = vld [vmem:[#allocation77_spill] sm:$0xff] }
 0x362   :  { %v2006_v50 = vmul.f32 1.442695, %v1968_v24  ;;  %v6936_v28 = vmin.f32 %v6892_v63, 20.0  ;;  %v1973_v56 = vsub.f32 0.0, %v5659_v10  ;;  %3326 = vpow2.f32 %v2000_v11  ;;  %v5747_v11 = vpop.eup %3312 }
 0x363   :  { %v5728_v4 = vand.u32 2147483647, %v6935_v40  ;;  %v2008_v43 = vmul.f32 1.442695, %v1969_v3  ;;  %vm1786_vm2 = vcmp.ge.f32.partialorder %v6937_v59, 0.0  ;;  %v6938_v34 = vmin.f32 %v6897_v13, 20.0 }
 0x364   :  { %v5733_v55 = vand.u32 2147483647, %v6936_v28  ;;  %v1974_v19 = vsub.f32 0.0, %v5663_v42  ;;  %3328 = vpow2.f32 %v2002_v54  ;;  %v2010_v6 = vmul.f32 1.442695, %v1970_v35  ;;  %v6940_v3 = vld [vmem:[#allocation95_spill] sm:$0xff] }
 0x365   :  { %v5739_v62 = vand.u32 2147483647, %v6938_v34  ;;  %v6939_v24 = vmin.f32 %v6923_v52, 20.0  ;;  %v1975_v40 = vsub.f32 0.0, %v5669_v57  ;;  %3330 = vpow2.f32 %v2004_v16  ;;  %v5754_v54 = vpop.eup %3314  ;;  %v6942_v35 = vld [vmem:[#allocation96_spill] sm:$0xff]  ;;  %v6944_v13 = vld [vmem:[#allocation97_spill] sm:$0xff] }
 0x366   :  { %v2012_v10 = vmul.f32 1.442695, %v1971_v46  ;;  %v6941_v28 = vmin.f32 %v6940_v3, 20.0  ;;  %v1976_v34 = vsub.f32 0.0, %v5673_v29  ;;  %3332 = vpow2.f32 %v2006_v50  ;;  %v5761_v16 = vpop.eup %3316  ;;  %v3151_v59 = vld [vmem:[#allocation19 + $0x64] ss:$16 sps:$4 sm:$0xff]  }
 0x367   :  { %v5744_v25 = vand.u32 2147483647, %v6939_v24  ;;  %v2014_v42 = vmul.f32 1.442695, %v1972_v61  ;;  %v6943_v52 = vmin.f32 %v6942_v35, 20.0  ;;  %v1977_v57 = vsub.f32 0.0, %v5679_v27  ;;  %v5768_v50 = vpop.eup %3318 }
 0x368   :  { %v5751_v63 = vand.u32 2147483647, %v6941_v28  ;;  %3334 = vpow2.f32 %v2008_v43  ;;  %v2016_v46 = vmul.f32 1.442695, %v1973_v56  ;;  %v6945_v15 = vmin.f32 %v6944_v13, 20.0 }
 0x369   :  { %v5758_v24 = vand.u32 2147483647, %v6943_v52  ;;  %v1978_v29 = vsub.f32 0.0, %v5683_v2  ;;  %3336 = vpow2.f32 %v2010_v6  ;;  %v2018_v61 = vmul.f32 1.442695, %v1974_v19  ;;  %v5778_v43 = vpop.eup %3320 }
 0x36a   :  { %v5765_v28 = vand.u32 2147483647, %v6945_v15  ;;  %vm1787_vm3 = vcmp.ge.f32.partialorder %v6946_v53, 0.0  ;;  %v5775_v27 = vsel %vm1785_vm1, %v5562_v14, %v5602_v26  ;;  %v1979_v52 = vsub.f32 0.0, %v5694_v37  ;;  %v3143_v15 = vld [vmem:[#allocation19 + $0x20] ss:$16 sps:$4 sm:$0xff]   ;;  %v5785_v22 = vpop.eup %3322 }
 0x36b   :  { %6947 = vst [vmem:[#allocation67_spill] sm:$0xff] %v5775_v27  ;;  %3338 = vpow2.f32 %v2012_v10  ;;  %v2020_v56 = vmul.f32 1.442695, %v1975_v40  ;;  %v6948_v2 = vmin.f32 %v6940_v3, 20.0  ;;  %v1980_v6 = vsub.f32 0.0, %v5705_v9  ;;  %v5792_v10 = vpop.eup %3324  ;;  %v6952_v27 = vld [vmem:[#allocation104_spill] sm:$0xff]  ;;  %2659 = vmatpush1.bf16.msra.mxu1 %v3143_v15 }
 0x36c   :  { %3340 = vpow2.f32 %v2014_v42  ;;  %v2022_v12 = vmul.f32 1.442695, %v1976_v34  ;;  %v6951_v14 = vmin.f32 %v6950_v23, 20.0  ;;  %v1981_v37 = vsub.f32 0.0, %v5716_v8  ;;  %v3148_v42 = vld [vmem:[#allocation19 + $0x44] ss:$16 sps:$4 sm:$0xff]  }
 0x36d   :  { %v5782_v19 = vmax.f32 %v6948_v2, 0.0  ;;  %3342 = vpow2.f32 %v2016_v46  ;;  %v2024_v40 = vmul.f32 1.442695, %v1977_v57  ;;  %v5796_v2 = vmul.f32 %v5622_v21, %v6952_v27  ;;  %2660 = vmatprep.subr.bf16.mxu1 %v3148_v42 }
 0x36e   :  { %v5789_v26 = vand.u32 2147483647, %v6951_v14  ;;  %v1982_v9 = vsub.f32 0.0, %v5723_v32  ;;  %3344 = vpow2.f32 %v2018_v61  ;;  %v2026_v34 = vmul.f32 1.442695, %v1978_v29  ;;  %v6953_v14 = vld [vmem:[#allocation81_spill] sm:$0xff] }
 0x36f   :  { %6949 = vst [vmem:[#allocation69_spill] sm:$0xff] %v5782_v19  ;;  %v5799_v19 = vpop.eup %3326  ;;  %vm1788_vm4 = vcmp.ge.f32.partialorder %v6953_v14, 0.0  ;;  %v5806_v8 = vsel %vm1786_vm2, %v5597_v1, %v5635_v45  ;;  %v1983_v57 = vsub.f32 0.0, %v5728_v4  ;;  %3346 = vpow2.f32 %v2020_v56  ;;  %v3146_v32 = vld [vmem:[#allocation19 + $0x40] ss:$16 sps:$4 sm:$0xff]   ;;  %v6957_v45 = vld [vmem:[#allocation83_spill] sm:$0xff] }
 0x370   :  { %6954 = vst [vmem:[#allocation103_spill] sm:$0xff] %v5806_v8  ;;  %v2028_v46 = vmul.f32 1.442695, %v1979_v52  ;;  %v5809_v61 = vpop.eup %3328  ;;  %v6955_v44 = vmin.f32 %v6942_v35, 20.0  ;;  %v1984_v27 = vsub.f32 0.0, %v5733_v55  ;;  %3348 = vpow2.f32 %v2022_v12  ;;  %v6958_v4 = vld [vmem:[#allocation62_spill] sm:$0xff]  ;;  %2661 = vmatpush1.bf16.msra.mxu1 %v3146_v32 }
 0x371   :  { %v2030_v3 = vmul.f32 1.442695, %v1980_v6  ;;  %v5816_v1 = vpop.eup %3330  ;;  %vm1789_vm5 = vcmp.ge.f32.partialorder %v6957_v45, 0.0  ;;  %v6959_v52 = vmin.f32 %v6958_v4, 20.0  ;;  %v1985_v15 = vsub.f32 0.0, %v5739_v62  ;;  %2662 = vmatprep.subr.bf16.mxu1 %v3151_v59  ;;  %v6976_v14 = vld [vmem:[#allocation93_spill] sm:$0xff] }
 0x372   :  { %v5813_v29 = vmax.f32 %v6955_v44, 0.0  ;;  %3350 = vpow2.f32 %v2024_v40  ;;  %v2032_v8 = vmul.f32 1.442695, %v1981_v37  ;;  %v5824_v44 = vpop.eup %3332  ;;  %v1986_v6 = vsub.f32 0.0, %v5744_v25  ;;  %v3149_v37 = vld [vmem:[#allocation19 + $0x60] ss:$16 sps:$4 sm:$0xff]  }
 0x373   :  { %v5821_v56 = vand.u32 2147483647, %v6959_v52  ;;  %3352 = vpow2.f32 %v2026_v34  ;;  %v2034_v42 = vmul.f32 1.442695, %v1982_v9  ;;  %v5831_v35 = vpop.eup %3334  ;;  %v1821_v52 = vmul.f32 %v5631_v20, %v6962_v48 }
 0x374   :  { %6956 = vst [vmem:[#allocation124_spill] sm:$0xff] %v5813_v29  ;;  %v6960_v29 = vld [vmem:[#allocation63_spill] sm:$0xff]  ;;  %v1987_v30 = vsub.f32 0.0, %v5751_v63  ;;  %3354 = vpow2.f32 %v2028_v46  ;;  %v2036_v62 = vmul.f32 1.442695, %v1983_v57  ;;  %v5836_v40 = vpop.eup %3336  ;;  %vm1790_vm6 = vcmp.ge.f32.partialorder %v6963_v0, 0.0  ;;  %2663 = vmatpush1.bf16.msra.mxu1 %v3149_v37 }
 0x375   :  { %v6961_v55 = vmin.f32 %v6960_v29, 20.0  ;;  %v5843_v25 = vsel %vm1787_vm3, %v5610_v39, %v5701_v18  ;;  %v1988_v9 = vsub.f32 0.0, %v5758_v24  ;;  %3356 = vpow2.f32 %v2030_v3  ;;  %v3154_v63 = vld [vmem:[#allocation19 + $0x84] ss:$16 sps:$4 sm:$0xff]   ;;  %v5846_v34 = vpop.eup %3338 }
 0x376   :  { %6964 = vst [vmem:[#allocation125_spill] sm:$0xff] %v5843_v25  ;;  %v2038_v48 = vmul.f32 1.442695, %v1984_v27  ;;  %v6965_v57 = vld [vmem:[#allocation87_spill] sm:$0xff]  ;;  %v6966_v46 = vld [vmem:[#allocation65_spill] sm:$0xff]  ;;  %v1989_v41 = vsub.f32 0.0, %v5765_v28  ;;  %3358 = vpow2.f32 %v2032_v8  ;;  %v5852_v53 = vpop.eup %3340  ;;  %2664 = vmatprep.subr.bf16.mxu1 %v3154_v63 }
 0x377   :  { %v5828_v12 = vand.u32 2147483647, %v6961_v55  ;;  %vm1791_vm7 = vcmp.ge.f32.partialorder %v6965_v57, 0.0  ;;  %v6967_v32 = vmin.f32 %v6966_v46, 20.0  ;;  %v2040_v31 = vmul.f32 1.442695, %v1985_v15  ;;  %v5860_v59 = vpop.eup %3342 }
 0x378   :  { %v6968_v39 = vld [vmem:[#allocation89_spill] sm:$0xff]  ;;  %v6969_v18 = vmin.f32 %v6944_v13, 20.0  ;;  %v1990_v24 = vsub.f32 0.0, %v5789_v26  ;;  %3360 = vpow2.f32 %v2034_v42  ;;  %v2042_v27 = vmul.f32 1.442695, %v1986_v6  ;;  %v6971_v25 = vld [vmem:[#allocation91_spill] sm:$0xff]  ;;  %v5866_v13 = vpop.eup %3344  ;;  %2665 = vmatpush1.bf16.msra.mxu1 %v3152_v36 }
 0x379   :  { %v1961_v55 = vand.u32 2147483647, %v6967_v32  ;;  %vm1792_vm8 = vcmp.ge.f32.partialorder %v6968_v39, 0.0  ;;  %vm1793_vm9 = vcmp.ge.f32.partialorder %v6971_v25, 0.0  ;;  %v6972_v32 = vld [vmem:[#allocation106_spill] sm:$0xff]  ;;  %v1991_v8 = vsub.f32 0.0, %v5821_v56 }
 0x37a   :  { %v5857_v3 = vmax.f32 %v6969_v18, 0.0  ;;  %v1822_v28 = vmul.f32 %v5647_v38, %v6972_v32  ;;  %3362 = vpow2.f32 %v2036_v62  ;;  %v2044_v15 = vmul.f32 1.442695, %v1987_v30  ;;  %v3157_v18 = vld [vmem:[#allocation19 + $0xa4] ss:$16 sps:$4 sm:$0xff]   ;;  %v5875_v32 = vpop.eup %3346  ;;  %v6979_v63 = vld [vmem:[#allocation60_spill] sm:$0xff] }
 0x37b   :  { %v5872_v26 = vsel %vm1788_vm4, %v5622_v21, %v5796_v2  ;;  %v1992_v6 = vsub.f32 0.0, %v5828_v12  ;;  %3364 = vpow2.f32 %v2038_v48  ;;  %v2046_v42 = vmul.f32 1.442695, %v1988_v9  ;;  %v6977_v21 = vld [vmem:[#allocation107_spill] sm:$0xff]  ;;  %2666 = vmatprep.subr.bf16.mxu1 %v3157_v18  ;;  %v6989_v36 = vld [vmem:[#allocation58_spill] sm:$0xff] }
 0x37c   :  { %6970 = vst [vmem:[#allocation75_spill] sm:$0xff] %v5857_v3  ;;  %6973 = vst [vmem:[#allocation77_spill] sm:$0xff] %v5872_v26  ;;  %v6974_v30 = vmin.f32 %v6950_v23, 20.0  ;;  %v1993_v62 = vsub.f32 0.0, %v1961_v55  ;;  %3366 = vpow2.f32 %v2040_v31  ;;  %v2048_v37 = vmul.f32 1.442695, %v1989_v41  ;;  %v5881_v3 = vpop.eup %3348 }
 0x37d   :  { %vm1794_vm10 = vcmp.ge.f32.partialorder %v6976_v14, 0.0  ;;  %v1823_v2 = vmul.f32 %v5665_v60, %v6977_v21  ;;  %v5889_v12 = vsel %vm1789_vm5, %v5631_v20, %v1821_v52  ;;  %3368 = vpow2.f32 %v2042_v27  ;;  %v5891_v48 = vpop.eup %3350  ;;  %v6980_v31 = vld [vmem:[#allocation55_spill] sm:$0xff]  ;;  %v6981_v41 = vld [vmem:[#allocation108_spill] sm:$0xff]  ;;  %v6986_v27 = vld [vmem:[#allocation109_spill] sm:$0xff] }
 0x37e   :  { %v5879_v56 = vmax.f32 %v6974_v30, 0.0  ;;  %6978 = vst [vmem:[#allocation104_spill] sm:$0xff] %v5889_v12  ;;  %v2050_v9 = vmul.f32 1.442695, %v1990_v24  ;;  %vm1795_vm11 = vcmp.ge.f32.partialorder %v6979_v63, 0.0  ;;  %vm1796_vm12 = vcmp.ge.f32.partialorder %v6980_v31, 0.0  ;;  %v5901_v45 = vpop.eup %3352 }
 0x37f   :  { %v1824_v55 = vmul.f32 %v5675_v49, %v6981_v41  ;;  %v6982_v30 = vmin.f32 %v6958_v4, 20.0  ;;  %3370 = vpow2.f32 %v2044_v15  ;;  %v2052_v21 = vmul.f32 1.442695, %v1991_v8  ;;  %v3155_v20 = vld [vmem:[#allocation19 + $0xa0] ss:$16 sps:$4 sm:$0xff]   ;;  %v6985_v24 = vld [vmem:[#allocation57_spill] sm:$0xff]  ;;  %v5911_v8 = vpop.eup %3354 }
 0x380   :  { %6975 = vst [vmem:[#allocation79_spill] sm:$0xff] %v5879_v56  ;;  %v6984_v52 = vld [vmem:[#allocation56_spill] sm:$0xff]  ;;  %vm1798_vm14 = vcmp.ge.f32.partialorder %v6985_v24, 0.0  ;;  %v1825_v12 = vmul.f32 %v5685_v51, %v6986_v27  ;;  %v6987_v56 = vmin.f32 %v6960_v29, 20.0  ;;  %3372 = vpow2.f32 %v2046_v42  ;;  %v3160_v15 = vld [vmem:[#allocation19 + $0xc4] ss:$16 sps:$4 sm:$0xff]   ;;  %2667 = vmatpush1.bf16.msra.mxu1 %v3155_v20 }
 0x381   :  { %v5899_v26 = vmax.f32 %v6982_v30, 0.0  ;;  %vm1797_vm13 = vcmp.ge.f32.partialorder %v6984_v52, 0.0  ;;  %v2054_v30 = vmul.f32 1.442695, %v1992_v6  ;;  %vm1799_vm15 = vcmp.ge.f32.partialorder %v6989_v36, 0.0  ;;  %v5924_v6 = vpop.eup %3356  ;;  %v6992_v18 = vld [vmem:[#allocation54_spill] sm:$0xff]  ;;  %2668 = vmatprep.subr.bf16.mxu1 %v3160_v15 }
 0x382   :  { %v5909_v41 = vmax.f32 %v6987_v56, 0.0  ;;  %v5918_v4 = vsel %vm1790_vm6, %v5647_v38, %v1822_v28  ;;  %v6991_v27 = vmin.f32 %v6966_v46, 20.0  ;;  %3374 = vpow2.f32 %v2048_v37  ;;  %v6993_v56 = vld [vmem:[#allocation110_spill] sm:$0xff]  ;;  %v5935_v38 = vpop.eup %3358  ;;  %v6994_v28 = vld [vmem:[#allocation111_spill] sm:$0xff]  ;;  %v7001_v15 = vld [vmem:[#allocation121_spill] sm:$0xff] }
 0x383   :  { %6983 = vst [vmem:[#allocation81_spill] sm:$0xff] %v5899_v26  ;;  %v6990_v26 = vld [vmem:[#allocation59_spill] sm:$0xff]  ;;  %v2056_v42 = vmul.f32 1.442695, %v1993_v62  ;;  %vm1801_vm1 = vcmp.ge.f32.partialorder %v6992_v18, 0.0  ;;  %v5932_v23 = vsel %vm1791_vm7, %v5665_v60, %v1823_v2  ;;  %3376 = vpow2.f32 %v2050_v9  ;;  %v5945_v60 = vpop.eup %3360  ;;  %v6996_v2 = vld [vmem:[#allocation112_spill] sm:$0xff] }
 0x384   :  { %6988 = vst [vmem:[#allocation83_spill] sm:$0xff] %v5909_v41  ;;  %vm1800_vm0 = vcmp.ge.f32.partialorder %v6990_v26, 0.0  ;;  %v5922_v29 = vmax.f32 %v6991_v27, 0.0  ;;  %v1826_v41 = vmul.f32 %v5696_v47, %v6993_v56  ;;  %v2058_v0 = vadd.f32 1.0, %v5778_v43  ;;  %v3158_v57 = vld [vmem:[#allocation19 + $0xc0] ss:$16 sps:$4 sm:$0xff]  }
 0x385   :  { %v1827_v62 = vmul.f32 %v5707_v5, %v6994_v28  ;;  %v5942_v37 = vsel %vm1792_vm8, %v5675_v49, %v1824_v55  ;;  %3378 = vpow2.f32 %v2052_v21  ;;  %v2059_v27 = vadd.f32 1.0, %v5785_v22  ;;  %v3163_v49 = vld [vmem:[#allocation19 + $0xe4] ss:$16 sps:$4 sm:$0xff]   ;;  %v3363_v55 = vpop.eup %3362  ;;  %2669 = vmatpush1.bf16.msra.mxu1 %v3158_v57  ;;  %v7003_v57 = vld [vmem:[#allocation70_spill] sm:$0xff] }
 0x386   :  { %6995 = vst [vmem:[#allocation105_spill] sm:$0xff] %v5942_v37  ;;  %v1828_v43 = vmul.f32 %v5710_v17, %v6996_v2  ;;  %v5952_v9 = vsel %vm1793_vm9, %v5685_v51, %v1825_v12  ;;  %3380 = vpow2.f32 %v2054_v30  ;;  %v2060_v39 = vadd.f32 1.0, %v5792_v10  ;;  %v6997_v21 = vld [vmem:[#allocation113_spill] sm:$0xff]  ;;  %v6998_v20 = vld [vmem:[#allocation115_spill] sm:$0xff]  ;;  %v3365_v2 = vpop.eup %3364  ;;  %2670 = vmatprep.subr.bf16.mxu1 %v3163_v49 }
 0x387   :  { %v1829_v22 = vmul.f32 %v5719_v33, %v6997_v21  ;;  %v1830_v56 = vmul.f32 %v5747_v11, %v6998_v20  ;;  %3382 = vpow2.f32 %v2056_v42  ;;  %v2061_v28 = vadd.f32 1.0, %v5799_v19  ;;  %v6999_v37 = vld [vmem:[#allocation117_spill] sm:$0xff]  ;;  %v7000_v25 = vld [vmem:[#allocation119_spill] sm:$0xff]  ;;  %v3367_v30 = vpop.eup %3366 }
 0x388   :  { %v1831_v51 = vmul.f32 %v5754_v54, %v6999_v37  ;;  %v1832_v12 = vmul.f32 %v5761_v16, %v7000_v25  ;;  %v2062_v10 = vadd.f32 1.0, %v5809_v61  ;;  %3384 = vlog2.f32 %v2058_v0  ;;  %v3161_v37 = vld [vmem:[#allocation19 + $0xe0] ss:$16 sps:$4 sm:$0xff]   ;;  %v3369_v20 = vpop.eup %3368 }
 0x389   :  { %v1833_v21 = vmul.f32 %v5768_v50, %v7001_v15  ;;  %v5970_v42 = vsel %vm1794_vm10, %v5696_v47, %v1826_v41  ;;  %v2063_v19 = vadd.f32 1.0, %v5816_v1  ;;  %3386 = vlog2.f32 %v2059_v27  ;;  %v3166_v47 = vld [vmem:[#allocation19 + $0xc] ss:$16 sps:$4 sm:$0xff]   ;;  %v3371_v1 = vpop.eup %3370  ;;  %2671 = vmatpush1.bf16.msra.mxu1 %v3161_v37  ;;  %v7008_v37 = vld [vmem:[#allocation39_spill] sm:$0xff] }
 0x38a   :  { %v5976_v61 = vsel %vm1795_vm11, %v5707_v5, %v1827_v62  ;;  %v5981_v0 = vsel %vm1796_vm12, %v5710_v17, %v1828_v43  ;;  %v2064_v14 = vadd.f32 1.0, %v5824_v44  ;;  %3388 = vlog2.f32 %v2060_v39  ;;  %v3373_v17 = vpop.eup %3372  ;;  %2709 = vmatprep.subr.bf16.mxu1 %v3166_v47  ;;  %v7002_v62 = vld [vmem:[#allocation68_spill] sm:$0xff] }
 0x38b   :  { %v5987_v41 = vsel %vm1797_vm13, %v5719_v33, %v1829_v22  ;;  %v5992_v5 = vsel %vm1798_vm14, %v5747_v11, %v1830_v56  ;;  %v2065_v63 = vadd.f32 1.0, %v5831_v35  ;;  %3390 = vlog2.f32 %v2061_v28  ;;  %v7004_v39 = vld [vmem:[#allocation72_spill] sm:$0xff]  ;;  %v7005_v56 = vld [vmem:[#allocation35_spill] sm:$0xff] }
 0x38c   :  { %v5998_v44 = vsel %vm1799_vm15, %v5754_v54, %v1831_v51  ;;  %v6003_v31 = vsel %vm1800_vm0, %v5761_v16, %v1832_v12  ;;  %v2066_v33 = vadd.f32 1.0, %v5836_v40  ;;  %3392 = vlog2.f32 %v2062_v10  ;;  %v3375_v52 = vpop.eup %3374  ;;  %v7006_v12 = vld [vmem:[#allocation37_spill] sm:$0xff] }
 0x38d   :  { %v6009_v11 = vsel %vm1801_vm1, %v5768_v50, %v1833_v21  ;;  %v2067_v35 = vadd.f32 1.0, %v5846_v34  ;;  %v2068_v24 = vadd.f32 1.0, %v5852_v53  ;;  %3394 = vlog2.f32 %v2063_v19  ;;  %v3377_v54 = vpop.eup %3376  ;;  %v7007_v21 = vld [vmem:[#allocation71_spill] sm:$0xff] }
 0x38e   :  { %v2069_v26 = vadd.f32 1.0, %v5860_v59  ;;  %v2070_v16 = vadd.f32 1.0, %v5866_v13  ;;  %v2071_v40 = vadd.f32 1.0, %v5875_v32  ;;  %3396 = vlog2.f32 %v2064_v14 }
 0x38f   :  { %vm2186_vm2 = vcmp.gt.f32.partialorder %v4975_v58, 20.0  ;;  %v3379_v36 = vpop.eup %3378  ;;  %v2072_v50 = vadd.f32 1.0, %v5881_v3  ;;  %v2073_v34 = vadd.f32 1.0, %v5891_v48  ;;  %v2074_v53 = vadd.f32 1.0, %v5901_v45 }
 0x390   :  { %3398 = vlog2.f32 %v2065_v63  ;;  %vm2187_vm3 = vcmp.gt.f32.partialorder %v4982_v7, 20.0  ;;  %v3381_v18 = vpop.eup %3380  ;;  %v2075_v59 = vadd.f32 1.0, %v5911_v8  ;;  %v2076_v13 = vadd.f32 1.0, %v5924_v6 }
 0x391   :  { %v6024_v32 = vadd.f32 1.0, %v5935_v38  ;;  %3400 = vlog2.f32 %v2066_v33  ;;  %vm2188_vm4 = vcmp.gt.f32.partialorder %v7002_v62, 20.0  ;;  %v3383_v27 = vpop.eup %3382  ;;  %v6028_v3 = vadd.f32 1.0, %v5945_v60 }
 0x392   :  { %v6030_v48 = vadd.f32 1.0, %v3363_v55  ;;  %v6032_v45 = vadd.f32 1.0, %v3365_v2  ;;  %3402 = vlog2.f32 %v2067_v35  ;;  %vm2189_vm5 = vcmp.gt.f32.partialorder %v7003_v57, 20.0  ;;  %v3385_v8 = vpop.eup %3384  ;;  %v7011_v35 = vld [vmem:[#allocation73_spill] sm:$0xff] }
 0x393   :  { %v6035_v43 = vadd.f32 1.0, %v3367_v30  ;;  %v6037_v6 = vadd.f32 1.0, %v3369_v20  ;;  %v6039_v38 = vadd.f32 1.0, %v3371_v1  ;;  %3404 = vlog2.f32 %v2068_v24  ;;  %v3387_v49 = vpop.eup %3386  ;;  %v7009_v1 = vld [vmem:[#allocation123_spill] sm:$0xff] }
 0x394   :  { %vm2190_vm6 = vcmp.gt.f32.partialorder %v7004_v39, 20.0  ;;  %v6042_v60 = vadd.f32 1.0, %v3373_v17  ;;  %v6044_v55 = vadd.f32 1.0, %v3375_v52  ;;  %v2091_v22 = vmul.f32 0.6931472, %v3385_v8  ;;  %v3389_v28 = vpop.eup %3388  ;;  %v7010_v17 = vld [vmem:[#allocation41_spill] sm:$0xff] }
 0x395   :  { %3406 = vlog2.f32 %v2069_v26  ;;  %vm2191_vm7 = vcmp.gt.f32.partialorder %v7005_v56, 20.0  ;;  %v6047_v2 = vadd.f32 1.0, %v3377_v54  ;;  %v6049_v51 = vadd.f32 1.0, %v3379_v36  ;;  %v3391_v10 = vpop.eup %3390  ;;  %v7012_v54 = vld [vmem:[#allocation49_spill] sm:$0xff]  ;;  %v7013_v36 = vld [vmem:[#allocation36_spill] sm:$0xff] }
 0x396   :  { %v2093_v25 = vmul.f32 0.6931472, %v3387_v49  ;;  %3408 = vlog2.f32 %v2070_v16  ;;  %vm2192_vm8 = vcmp.gt.f32.partialorder %v7006_v12, 20.0  ;;  %v6052_v30 = vadd.f32 1.0, %v3381_v18  ;;  %v3393_v20 = vpop.eup %3392  ;;  %v7014_v18 = vld [vmem:[#allocation42_spill] sm:$0xff] }
 0x397   :  { %v2095_v15 = vmul.f32 0.6931472, %v3389_v28  ;;  %3410 = vlog2.f32 %v2071_v40  ;;  %v2154_v19 = vadd.f32 %v2091_v22, %v7007_v21  ;;  %vm2193_vm9 = vcmp.gt.f32.partialorder %v7008_v37, 20.0  ;;  %v3395_v33 = vpop.eup %3394  ;;  %v7015_v49 = vld [vmem:[#allocation38_spill] sm:$0xff]  ;;  %v7016_v28 = vld [vmem:[#allocation43_spill] sm:$0xff]  ;;  %v7018_v21 = vld [vmem:[#allocation45_spill] sm:$0xff] }
 0x398   :  { %v6056_v14 = vadd.f32 1.0, %v3383_v27  ;;  %v2097_v47 = vmul.f32 0.6931472, %v3391_v10  ;;  %3412 = vlog2.f32 %v2072_v50  ;;  %v2155_v63 = vadd.f32 %v2093_v25, %v7009_v1  ;;  %v3397_v16 = vpop.eup %3396  ;;  %v7017_v10 = vld [vmem:[#allocation126_spill] sm:$0xff] }
 0x399   :  { %vm2194_vm10 = vcmp.gt.f32.partialorder %v7010_v17, 20.0  ;;  %v2099_v52 = vmul.f32 0.6931472, %v3393_v20  ;;  %3414 = vlog2.f32 %v2073_v34  ;;  %v2156_v24 = vadd.f32 %v2095_v15, %v7011_v35  ;;  %v7019_v20 = vld [vmem:[#allocation40_spill] sm:$0xff] }
 0x39a   :  { %vm2195_vm11 = vcmp.gt.f32.partialorder %v7012_v54, 20.0  ;;  %v6065_v26 = vsel %vm2186_vm2, %v4975_v58, %v2154_v19  ;;  %v2101_v40 = vmul.f32 0.6931472, %v3395_v33  ;;  %3416 = vlog2.f32 %v2074_v53  ;;  %v3399_v27 = vpop.eup %3398  ;;  %v7021_v33 = vld [vmem:[#allocation48_spill] sm:$0xff] }
 0x39b   :  { %v2157_v50 = vadd.f32 %v2097_v47, %v7013_v36  ;;  %vm2196_vm12 = vcmp.gt.f32.partialorder %v7014_v18, 20.0  ;;  %v6072_v34 = vsel %vm2187_vm3, %v4982_v7, %v2155_v63  ;;  %v2103_v8 = vmul.f32 0.6931472, %v3397_v16  ;;  %v3401_v53 = vpop.eup %3400  ;;  %v7023_v16 = vld [vmem:[#allocation127_spill] sm:$0xff] }
 0x39c   :  { %3418 = vlog2.f32 %v2075_v59  ;;  %v2158_v22 = vadd.f32 %v2099_v52, %v7015_v49  ;;  %vm2197_vm13 = vcmp.gt.f32.partialorder %v7016_v28, 20.0  ;;  %v6079_v58 = vsel %vm2188_vm4, %v7002_v62, %v2156_v24  ;;  %v3403_v59 = vpop.eup %3402  ;;  %v7020_v62 = vld [vmem:[#allocation46_spill] sm:$0xff] }
 0x39d   :  { %v2105_v25 = vmul.f32 0.6931472, %v3399_v27  ;;  %3420 = vlog2.f32 %v2076_v13  ;;  %v2159_v15 = vadd.f32 %v2101_v40, %v7017_v10  ;;  %vm2198_vm14 = vcmp.gt.f32.partialorder %v7018_v21, 20.0  ;;  %v3405_v1 = vpop.eup %3404  ;;  %v7022_v52 = vld [vmem:[#allocation74_spill] sm:$0xff]  ;;  %v7024_v40 = vld [vmem:[#allocation76_spill] sm:$0xff] }
 0x39e   :  { %v6086_v7 = vsel %vm2189_vm5, %v7003_v57, %v2157_v50  ;;  %v2107_v19 = vmul.f32 0.6931472, %v3401_v53  ;;  %3422 = vlog2.f32 %v6024_v32  ;;  %v2160_v47 = vadd.f32 %v2103_v8, %v7019_v20  ;;  %v7025_v27 = vld [vmem:[#allocation128_spill] sm:$0xff]  ;;  %v7026_v8 = vld [vmem:[#allocation78_spill] sm:$0xff]  ;;  %v7027_v53 = vld [vmem:[#allocation129_spill] sm:$0xff] }
 0x39f   :  { %vm2199_vm15 = vcmp.gt.f32.partialorder %v7020_v62, 20.0  ;;  %v6094_v13 = vsel %vm2190_vm6, %v7004_v39, %v2158_v22  ;;  %v2109_v63 = vmul.f32 0.6931472, %v3403_v59  ;;  %3424 = vlog2.f32 %v6028_v3  ;;  %v3407_v35 = vpop.eup %3406  ;;  %v7029_v59 = vld [vmem:[#allocation132_spill] sm:$0xff] }
 0x3a0   :  { %v2161_v57 = vadd.f32 %v2105_v25, %v7021_v33  ;;  %vm2200_vm0 = vcmp.gt.f32.partialorder %v7022_v52, 20.0  ;;  %v6102_v32 = vsel %vm2191_vm7, %v7005_v56, %v2159_v15  ;;  %v2111_v24 = vmul.f32 0.6931472, %v3405_v1  ;;  %v3409_v36 = vpop.eup %3408  ;;  %v7028_v25 = vld [vmem:[#allocation80_spill] sm:$0xff]  ;;  %v7031_v1 = vld [vmem:[#allocation133_spill] sm:$0xff] }
 0x3a1   :  { %3426 = vlog2.f32 %v6030_v48  ;;  %v2162_v39 = vadd.f32 %v2107_v19, %v7023_v16  ;;  %vm2201_vm1 = vcmp.gt.f32.partialorder %v7024_v40, 20.0  ;;  %v6110_v3 = vsel %vm2192_vm8, %v7006_v12, %v2160_v47  ;;  %v3411_v49 = vpop.eup %3410  ;;  %v7030_v19 = vld [vmem:[#allocation82_spill] sm:$0xff] }
 0x3a2   :  { %v2113_v50 = vmul.f32 0.6931472, %v3407_v35  ;;  %3428 = vlog2.f32 %v6032_v45  ;;  %v2163_v56 = vadd.f32 %v2109_v63, %v7025_v27  ;;  %vm2202_vm2 = vcmp.gt.f32.partialorder %v7026_v8, 20.0  ;;  %v3413_v10 = vpop.eup %3412  ;;  %v7032_v63 = vld [vmem:[#allocation84_spill] sm:$0xff]  ;;  %v7033_v35 = vld [vmem:[#allocation135_spill] sm:$0xff] }
 0x3a3   :  { %v6118_v48 = vsel %vm2193_vm9, %v7008_v37, %v2161_v57  ;;  %v2115_v22 = vmul.f32 0.6931472, %v3409_v36  ;;  %3430 = vlog2.f32 %v6035_v43  ;;  %v2164_v12 = vadd.f32 %v2111_v24, %v7027_v53  ;;  %v3415_v20 = vpop.eup %3414  ;;  %v7034_v24 = vld [vmem:[#allocation86_spill] sm:$0xff]  ;;  %v7035_v36 = vld [vmem:[#allocation136_spill] sm:$0xff] }
 0x3a4   :  { %vm2203_vm3 = vcmp.gt.f32.partialorder %v7028_v25, 20.0  ;;  %v6126_v45 = vsel %vm2194_vm10, %v7010_v17, %v2162_v39  ;;  %v2117_v15 = vmul.f32 0.6931472, %v3411_v49  ;;  %3432 = vlog2.f32 %v6037_v6  ;;  %v3417_v33 = vpop.eup %3416  ;;  %v7037_v49 = vld [vmem:[#allocation138_spill] sm:$0xff] }
 0x3a5   :  { %v2165_v37 = vadd.f32 %v2113_v50, %v7029_v59  ;;  %vm2204_vm4 = vcmp.gt.f32.partialorder %v7030_v19, 20.0  ;;  %v6134_v43 = vsel %vm2195_vm11, %v7012_v54, %v2163_v56  ;;  %v2119_v47 = vmul.f32 0.6931472, %v3413_v10  ;;  %v7036_v50 = vld [vmem:[#allocation88_spill] sm:$0xff] }
 0x3a6   :  { %3434 = vlog2.f32 %v6039_v38  ;;  %v2166_v17 = vadd.f32 %v2115_v22, %v7031_v1  ;;  %vm2205_vm5 = vcmp.gt.f32.partialorder %v7032_v63, 20.0  ;;  %v6142_v6 = vsel %vm2196_vm12, %v7014_v18, %v2164_v12  ;;  %v3419_v16 = vpop.eup %3418  ;;  %v7038_v22 = vld [vmem:[#allocation90_spill] sm:$0xff]  ;;  %v7039_v10 = vld [vmem:[#allocation140_spill] sm:$0xff] }
 0x3a7   :  { %v2121_v57 = vmul.f32 0.6931472, %v3415_v20  ;;  %3436 = vlog2.f32 %v6042_v60  ;;  %v2167_v54 = vadd.f32 %v2117_v15, %v7033_v35  ;;  %vm2206_vm6 = vcmp.gt.f32.partialorder %v7034_v24, 20.0  ;;  %v3421_v27 = vpop.eup %3420  ;;  %v7040_v15 = vld [vmem:[#allocation92_spill] sm:$0xff]  ;;  %v7041_v20 = vld [vmem:[#allocation47_spill] sm:$0xff] }
 0x3a8   :  { %v6150_v38 = vsel %vm2197_vm13, %v7016_v28, %v2165_v37  ;;  %v2123_v39 = vmul.f32 0.6931472, %v3417_v33  ;;  %3438 = vlog2.f32 %v6044_v55  ;;  %v2168_v18 = vadd.f32 %v2119_v47, %v7035_v36  ;;  %v3423_v53 = vpop.eup %3422  ;;  %v7042_v47 = vld [vmem:[#allocation94_spill] sm:$0xff]  ;;  %v7043_v33 = vld [vmem:[#allocation141_spill] sm:$0xff]  ;;  %v7046_v36 = vld [vmem:[#allocation96_spill] sm:$0xff] }
 0x3a9   :  { %vm2207_vm7 = vcmp.gt.f32.partialorder %v7036_v50, 20.0  ;;  %v6158_v60 = vsel %vm2198_vm14, %v7018_v21, %v2166_v17  ;;  %v2125_v56 = vmul.f32 0.6931472, %v3419_v16  ;;  %3440 = vlog2.f32 %v6047_v2  ;;  %v3425_v59 = vpop.eup %3424  ;;  %v7045_v16 = vld [vmem:[#allocation99_spill] sm:$0xff] }
 0x3aa   :  { %v2169_v28 = vadd.f32 %v2121_v57, %v7037_v49  ;;  %vm2208_vm8 = vcmp.gt.f32.partialorder %v7038_v22, 20.0  ;;  %v6166_v55 = vsel %vm2199_vm15, %v7020_v62, %v2167_v54  ;;  %v2127_v12 = vmul.f32 0.6931472, %v3421_v27  ;;  %v7044_v57 = vld [vmem:[#allocation95_spill] sm:$0xff]  ;;  %v7048_v49 = vld [vmem:[#allocation142_spill] sm:$0xff] }
 0x3ab   :  { %3442 = vlog2.f32 %v6049_v51  ;;  %v2170_v21 = vadd.f32 %v2123_v39, %v7039_v10  ;;  %vm2209_vm9 = vcmp.gt.f32.partialorder %v7040_v15, 20.0  ;;  %v6174_v2 = vsel %vm2200_vm0, %v7022_v52, %v2168_v18  ;;  %v3427_v1 = vpop.eup %3426 }
 0x3ac   :  { %v2129_v37 = vmul.f32 0.6931472, %v3423_v53  ;;  %3444 = vlog2.f32 %v6052_v30  ;;  %v2171_v62 = vadd.f32 %v2125_v56, %v7041_v20  ;;  %vm2210_vm10 = vcmp.gt.f32.partialorder %v7042_v47, 20.0  ;;  %v3429_v35 = vpop.eup %3428 }
 0x3ad   :  { %v6182_v51 = vsel %vm2201_vm1, %v7024_v40, %v2169_v28  ;;  %v2131_v17 = vmul.f32 0.6931472, %v3425_v59  ;;  %3446 = vlog2.f32 %v6056_v14  ;;  %v2172_v52 = vadd.f32 %v2127_v12, %v7043_v33  ;;  %v7047_v14 = vld [vmem:[#allocation50_spill] sm:$0xff]  ;;  %v3431_v27 = vpop.eup %3430  ;;  %v7049_v28 = vld [vmem:[#allocation97_spill] sm:$0xff]  ;;  %v7051_v59 = vld [vmem:[#allocation143_spill] sm:$0xff] }
 0x3ae   :  { %vm2211_vm11 = vcmp.gt.f32.partialorder %v7044_v57, 20.0  ;;  %v6190_v30 = vsel %vm2202_vm2, %v7026_v8, %v2170_v21  ;;  %v2133_v54 = vmul.f32 0.6931472, %v3427_v1  ;;  %v2173_v39 = vadd.f32 %v2129_v37, %v7045_v16  ;;  %v7050_v12 = vld [vmem:[#allocation130_spill] sm:$0xff]  ;;  %v7052_v37 = vld [vmem:[#allocation61_spill] sm:$0xff]  ;;  %v7054_v33 = vld [vmem:[#allocation100_spill] sm:$0xff] }
 0x3af   :  { %vm2212_vm12 = vcmp.gt.f32.partialorder %v7046_v36, 20.0  ;;  %v6197_v40 = vsel %vm2203_vm3, %v7028_v25, %v2171_v62  ;;  %v6201_v18 = vmul.f32 %v6065_v26, %v7047_v14  ;;  %v2135_v56 = vmul.f32 0.6931472, %v3429_v35  ;;  %v3433_v25 = vpop.eup %3432  ;;  %v7053_v62 = vld [vmem:[#allocation131_spill] sm:$0xff] }
 0x3b0   :  { %v2174_v8 = vadd.f32 %v2131_v17, %v7048_v49  ;;  %vm2213_vm13 = vcmp.gt.f32.partialorder %v7049_v28, 20.0  ;;  %v6208_v53 = vsel %vm2204_vm4, %v7030_v19, %v2172_v52  ;;  %v6212_v10 = vmul.f32 %v6072_v34, %v7050_v12  ;;  %v3435_v19 = vpop.eup %3434  ;;  %v7055_v34 = vld [vmem:[#allocation62_spill] sm:$0xff] }
 0x3b1   :  { %v2137_v21 = vmul.f32 0.6931472, %v3431_v27  ;;  %v2175_v26 = vadd.f32 %v2133_v54, %v7051_v59  ;;  %vm2214_vm14 = vcmp.gt.f32.partialorder %v7052_v37, 20.0  ;;  %v2237_v20 = vsel %vm2205_vm5, %v7032_v63, %v2173_v39  ;;  %v7056_v54 = vld [vmem:[#allocation44_spill] sm:$0xff]  ;;  %v3437_v14 = vpop.eup %3436  ;;  %v7059_v49 = vld [vmem:[#allocation134_spill] sm:$0xff] }
 0x3b2   :  { %v6221_v1 = vmul.f32 %v6079_v58, %v7053_v62  ;;  %v2139_v17 = vmul.f32 0.6931472, %v3433_v25  ;;  %v2176_v52 = vadd.f32 %v2135_v56, %v7054_v33  ;;  %vm2215_vm15 = vcmp.gt.f32.partialorder %v7055_v34, 20.0  ;;  %v7057_v39 = vld [vmem:[#allocation64_spill] sm:$0xff]  ;;  %v7058_v58 = vld [vmem:[#allocation63_spill] sm:$0xff]  ;;  %v3439_v25 = vpop.eup %3438 }
 0x3b3   :  { %v2238_v35 = vsel %vm2206_vm6, %v7034_v24, %v2174_v8  ;;  %v6230_v16 = vmul.f32 %v6086_v7, %v7056_v54  ;;  %v2141_v63 = vmul.f32 0.6931472, %v3435_v19  ;;  %v2177_v27 = vadd.f32 %v2137_v21, %v7057_v39  ;;  %v7060_v24 = vld [vmem:[#allocation102_spill] sm:$0xff]  ;;  %v7061_v21 = vld [vmem:[#allocation137_spill] sm:$0xff]  ;;  %v3441_v19 = vpop.eup %3440 }
 0x3b4   :  { %vm2216_vm0 = vcmp.gt.f32.partialorder %v7058_v58, 20.0  ;;  %v2239_v56 = vsel %vm2207_vm7, %v7036_v50, %v2175_v26  ;;  %v2254_v12 = vmul.f32 %v6094_v13, %v7059_v49  ;;  %v2143_v59 = vmul.f32 0.6931472, %v3437_v14  ;;  %v7062_v54 = vld [vmem:[#allocation69_spill] sm:$0xff]  ;;  %v7063_v26 = vld [vmem:[#allocation139_spill] sm:$0xff]  ;;  %v7064_v49 = vld [vmem:[#allocation124_spill] sm:$0xff] }
 0x3b5   :  { %v2178_v8 = vadd.f32 %v2139_v17, %v7060_v24  ;;  %vm2217_vm1 = vcmp.gt.f32.partialorder %v6966_v46, 20.0  ;;  %v2240_v7 = vsel %vm2208_vm8, %v7038_v22, %v2176_v52  ;;  %v2255_v62 = vmul.f32 %v6102_v32, %v7061_v21  ;;  %v3443_v14 = vpop.eup %3442  ;;  %v7065_v32 = vld [vmem:[#allocation114_spill] sm:$0xff]  ;;  %v7066_v21 = vld [vmem:[#allocation75_spill] sm:$0xff] }
 0x3b6   :  { %v2145_v33 = vmul.f32 0.6931472, %v3439_v25  ;;  %v2179_v50 = vadd.f32 %v2141_v63, %v7062_v54  ;;  %v2241_v13 = vsel %vm2209_vm9, %v7040_v15, %v2177_v27  ;;  %v2256_v17 = vmul.f32 %v6110_v3, %v7063_v26  ;;  %v3445_v25 = vpop.eup %3444  ;;  %v7067_v3 = vld [vmem:[#allocation98_spill] sm:$0xff]  ;;  %v7068_v26 = vld [vmem:[#allocation79_spill] sm:$0xff] }
 0x3b7   :  { %v2147_v39 = vmul.f32 0.6931472, %v3441_v19  ;;  %v2180_v24 = vadd.f32 %v2143_v59, %v7064_v49  ;;  %v2242_v22 = vsel %vm2210_vm10, %v7042_v47, %v2178_v8  ;;  %v2257_v52 = vmul.f32 %v6118_v48, %v7065_v32  ;;  %v3447_v19 = vpop.eup %3446  ;;  %v7069_v48 = vld [vmem:[#allocation116_spill] sm:$0xff] }
 0x3b8   :  { %v2149_v63 = vmul.f32 0.6931472, %v3443_v14  ;;  %v2181_v54 = vadd.f32 %v2145_v33, %v7066_v21  ;;  %v2243_v15 = vsel %vm2211_vm11, %v7044_v57, %v2179_v50  ;;  %v2258_v27 = vmul.f32 %v6126_v45, %v7067_v3  ;;  %v7070_v33 = vld [vmem:[#allocation81_spill] sm:$0xff]  ;;  %v7071_v50 = vld [vmem:[#allocation118_spill] sm:$0xff] }
 0x3b9   :  { %v2151_v59 = vmul.f32 0.6931472, %v3445_v25  ;;  %v2182_v49 = vadd.f32 %v2147_v39, %v7068_v26  ;;  %v2244_v47 = vsel %vm2212_vm12, %v7046_v36, %v2180_v24  ;;  %v2259_v8 = vmul.f32 %v6134_v43, %v7069_v48  ;;  %v7072_v25 = vld [vmem:[#allocation83_spill] sm:$0xff]  ;;  %v7073_v36 = vld [vmem:[#allocation120_spill] sm:$0xff]  ;;  %v7074_v43 = vld [vmem:[#allocation122_spill] sm:$0xff] }
 0x3ba   :  { %v2153_v14 = vmul.f32 0.6931472, %v3447_v19  ;;  %v2183_v32 = vadd.f32 %v2149_v63, %v7070_v33  ;;  %v2245_v57 = vsel %vm2213_vm13, %v7049_v28, %v2181_v54  ;;  %v2260_v45 = vmul.f32 %v6142_v6, %v7071_v50  ;;  %v7075_v54 = vld [vmem:[#allocation101_spill] sm:$0xff]  ;;  %v7076_v19 = vld [vmem:[#allocation66_spill] sm:$0xff] }
 0x3bb   :  { %v2184_v21 = vadd.f32 %v2151_v59, %v7072_v25  ;;  %v2246_v39 = vsel %vm2214_vm14, %v7052_v37, %v2182_v49  ;;  %v2261_v24 = vmul.f32 %v6150_v38, %v7073_v36  ;;  %v2262_v3 = vmul.f32 %v6158_v60, %v7074_v43  ;;  %v7077_v38 = vld [vmem:[#allocation67_spill] sm:$0xff]  ;;  %v7079_v49 = vld [vmem:[#allocation125_spill] sm:$0xff] }
 0x3bc   :  { %v2185_v63 = vadd.f32 %v2153_v14, %v5922_v29  ;;  %v2247_v28 = vsel %vm2215_vm15, %v7055_v34, %v2183_v32  ;;  %v2263_v6 = vmul.f32 %v6166_v55, %v7075_v54  ;;  %v2264_v59 = vmul.f32 %v6174_v2, %v7076_v19  ;;  %v7078_v60 = vld [vmem:[#allocation103_spill] sm:$0xff]  ;;  %v7080_v34 = vld [vmem:[#allocation77_spill] sm:$0xff]  ;;  %v7081_v14 = vld [vmem:[#allocation104_spill] sm:$0xff] }
 0x3bd   :  { %v2248_v37 = vsel %vm2216_vm0, %v7058_v58, %v2184_v21  ;;  %v2265_v26 = vmul.f32 %v6182_v51, %v7077_v38  ;;  %v2266_v29 = vmul.f32 %v6190_v30, %v7078_v60  ;;  %v2267_v48 = vmul.f32 %v6197_v40, %v7079_v49  ;;  %v7082_v51 = vld [vmem:[#allocation105_spill] sm:$0xff] }
 0x3be   :  { %v2249_v55 = vsel %vm2217_vm1, %v6966_v46, %v2185_v63  ;;  %v2268_v2 = vmul.f32 %v6208_v53, %v7080_v34  ;;  %v2269_v33 = vmul.f32 %v2237_v20, %v7081_v14  ;;  %v2270_v58 = vmul.f32 %v2238_v35, %v5918_v4 }
 0x3bf   :  { %v2271_v32 = vmul.f32 %v2239_v56, %v5932_v23  ;;  %v2272_v50 = vmul.f32 %v2240_v7, %v7082_v51  ;;  %v2273_v30 = vmul.f32 %v2241_v13, %v5952_v9  ;;  %v2274_v25 = vmul.f32 %v2242_v22, %v5970_v42 }
 0x3c0   :  { %v2275_v40 = vmul.f32 %v2243_v15, %v5976_v61  ;;  %v2276_v21 = vmul.f32 %v2244_v47, %v5981_v0  ;;  %v2277_v46 = vmul.f32 %v2245_v57, %v5987_v41  ;;  %v2278_v53 = vmul.f32 %v2246_v39, %v5992_v5 }
 0x3c1   :  { %v2279_v20 = vmul.f32 %v2247_v28, %v5998_v44  ;;  %v2280_v4 = vmul.f32 %v2248_v37, %v6003_v31  ;;  %v2281_v23 = vmul.f32 %v2249_v55, %v6009_v11  ;;  %v2282_v35 = vadd.f32 %v2254_v12, %v6201_v18 }
 0x3c2   :  { %v2289_v9 = vadd.f32 %v2255_v62, %v6212_v10  ;;  %v2296_v42 = vadd.f32 %v2256_v17, %v6221_v1  ;;  %v2303_v61 = vadd.f32 %v2257_v52, %v6230_v16 }
 0x3c3   :  { %v2283_v56 = vadd.f32 %v2282_v35, %v2258_v27 }
 0x3c4   :  { %v2290_v0 = vadd.f32 %v2289_v9, %v2259_v8  ;;  %v2297_v7 = vadd.f32 %v2296_v42, %v2260_v45  ;;  %v2304_v41 = vadd.f32 %v2303_v61, %v2261_v24  ;;  %v7083_v9 = vld [vmem:[#allocation52_spill] sm:$0xff] }
 0x3c5   :  { %v2284_v13 = vadd.f32 %v2283_v56, %v2262_v3 }
 0x3c6   :  { %v2291_v5 = vadd.f32 %v2290_v0, %v2263_v6  ;;  %v2298_v22 = vadd.f32 %v2297_v7, %v2264_v59  ;;  %v2305_v44 = vadd.f32 %v2304_v41, %v2265_v26 }
 0x3c7   :  { %v2285_v15 = vadd.f32 %v2284_v13, %v2266_v29 }
 0x3c8   :  { %v2292_v31 = vadd.f32 %v2291_v5, %v2267_v48  ;;  %v2299_v47 = vadd.f32 %v2298_v22, %v2268_v2  ;;  %v2306_v11 = vadd.f32 %v2305_v44, %v2269_v33 }
 0x3c9   :  { %v2286_v57 = vadd.f32 %v2285_v15, %v2270_v58 }
 0x3ca   :  { %v2293_v18 = vadd.f32 %v2292_v31, %v2271_v32  ;;  %v2300_v12 = vadd.f32 %v2299_v47, %v2272_v50  ;;  %v2307_v10 = vadd.f32 %v2306_v11, %v2273_v30 }
 0x3cb   :  { %v2287_v62 = vadd.f32 %v2286_v57, %v2274_v25  ;;  %v2332_v25 = vld [vmem:[#allocation16] sm:$0x1] }
 0x3cc   :  { %v2294_v1 = vadd.f32 %v2293_v18, %v2275_v40  ;;  %v2301_v17 = vadd.f32 %v2300_v12, %v2276_v21  ;;  %v2308_v16 = vadd.f32 %v2307_v10, %v2277_v46  ;;  %v2981_v40 = vld [vmem:[#allocation2] sm:$0xff]   ;;  %v2998_v46 = vld [vmem:[#allocation2 + $0x8] sm:$0xff]  }
 0x3cd   :  { %v2288_v52 = vadd.f32 %v2287_v62, %v2278_v53  ;;  %v2983_v35 = vunpack.c.h.bf16 %v2981_v40  ;;  %v2986_v61 = vunpack.c.l.bf16 %v2998_v46  ;;  %v2987_v56 = vunpack.c.h.bf16 %v2998_v46  ;;  %v3164_v46 = vld [vmem:[#allocation19 + $0x8] ss:$16 sps:$4 sm:$0xff]  }
 0x3ce   :  { %v2295_v27 = vadd.f32 %v2294_v1, %v2279_v20  ;;  %v2302_v8 = vadd.f32 %v2301_v17, %v2280_v4  ;;  %v2309_v45 = vadd.f32 %v2308_v16, %v2281_v23  ;;  %v2333_v20 = vld [vmem:[#allocation17] sm:$0x1]  ;;  %v2982_v4 = vunpack.c.l.bf16 %v2981_v40 }
 0x3cf   :  { %v2319_v39 = vmul.f32 %v2288_v52, %v2288_v52 }
 0x3d0   :  { %v2310_v36 = vadd.f32 %v2295_v27, %v2288_v52  ;;  %v2320_v24 = vmul.f32 %v2295_v27, %v2295_v27  ;;  %v2321_v3 = vmul.f32 %v2302_v8, %v2302_v8  ;;  %v2322_v54 = vmul.f32 %v2309_v45, %v2309_v45 }
 0x3d2   :  { %v2311_v43 = vadd.f32 %v2310_v36, %v2302_v8  ;;  %v2323_v63 = vadd.f32 %v2320_v24, %v2319_v39 }
 0x3d4   :  { %v2312_v28 = vadd.f32 %v2311_v43, %v2309_v45  ;;  %v2324_v6 = vadd.f32 %v2323_v63, %v2321_v3 }
 0x3d6   :  { %v2313_v19 = vrot.slane %v2312_v28, 4  ;;  %v2325_v59 = vadd.f32 %v2324_v6, %v2322_v54 }
 0x3d8   :  { %v2314_v37 = vadd.f32 %v2313_v19, %v2312_v28  ;;  %v2326_v38 = vrot.slane %v2325_v59, 4 }
 0x3da   :  { %v2315_v26 = vrot.slane %v2314_v37, 2  ;;  %v2327_v60 = vadd.f32 %v2326_v38, %v2325_v59 }
 0x3dc   :  { %v2316_v29 = vadd.f32 %v2315_v26, %v2314_v37  ;;  %v2328_v49 = vrot.slane %v2327_v60, 2 }
 0x3de   :  { %v2317_v48 = vrot.slane %v2316_v29, 1  ;;  %v2329_v55 = vadd.f32 %v2328_v49, %v2327_v60 }
 0x3e0   :  { %v2318_v34 = vadd.f32 %v2317_v48, %v2316_v29  ;;  %v2330_v2 = vrot.slane %v2329_v55, 1 }
 0x3e2   :  { %v2331_v14 = vadd.f32 %v2330_v2, %v2329_v55  ;;  %v2334_v33 = vmul.f32 0.03125, %v2318_v34 }
 0x3e4   :  { %v2335_v58 = vmul.f32 0.03125, %v2331_v14  ;;  %v2336_v32 = vmul.f32 %v2334_v33, %v2334_v33 }
 0x3e6   :  { %v2337_v51 = vsub.f32 %v2335_v58, %v2336_v32 }
 0x3e8   :  { %v2338_v50 = vmax.f32 %v2337_v51, 0.0 }
 0x3ea   :  { %v2339_v30 = vadd.f32 1e-05, %v2338_v50 }
 0x3ec   :  { %3448 = vrsqrt.f32 %v2339_v30 }
 0x3f6   :  { %v3449_v21 = vpop.eup %3448 }
 0x3f7   :  { %v2341_v53 = vmul.f32 %v3449_v21, %v2332_v25 }
 0x3f9   :  { %v2342_v23 = vmul.f32 %v2341_v53, %v2334_v33  ;;  %v2355_v42 = vrot.slane %v2341_v53, %v7083_v9 }
 0x3fb   :  { %v2343_v0 = vsub.f32 %v2333_v20, %v2342_v23  ;;  %v2356_v7 = vmul.f32 %v2355_v42, %v2288_v52  ;;  %v2357_v41 = vmul.f32 %v2355_v42, %v2295_v27  ;;  %v2358_v13 = vmul.f32 %v2355_v42, %v2302_v8  ;;  %v3169_v23 = vld [vmem:[#allocation19 + $0x2c] ss:$16 sps:$4 sm:$0xff]  }
 0x3fc   :  { %v2359_v5 = vmul.f32 %v2355_v42, %v2309_v45 }
 0x3fd   :  { %v2360_v22 = vadd.f32 %v2982_v4, %v2356_v7  ;;  %v2361_v44 = vadd.f32 %v2983_v35, %v2357_v41  ;;  %v2368_v15 = vrot.slane %v2343_v0, %v7083_v9  ;;  %v2362_v31 = vadd.f32 %v2986_v61, %v2358_v13  ;;  %v3172_v7 = vld [vmem:[#allocation19 + $0x4c] ss:$16 sps:$4 sm:$0xff]   ;;  %v3170_v41 = vld [vmem:[#allocation19 + $0x48] ss:$16 sps:$4 sm:$0xff]  }
 0x3fe   :  { %v2363_v47 = vadd.f32 %v2987_v56, %v2359_v5  ;;  %v3167_v56 = vld [vmem:[#allocation19 + $0x28] ss:$16 sps:$4 sm:$0xff]   ;;  %v7084_v0 = vmov 0   ;;  %v3175_v13 = vld [vmem:[#allocation19 + $0x6c] ss:$16 sps:$4 sm:$0xff]  }
 0x3ff   :  { %v2370_v11 = vadd.f32 %v2368_v15, %v2360_v22  ;;  %v2371_v57 = vadd.f32 %v2368_v15, %v2361_v44  ;;  %v2372_v18 = vadd.f32 %v2368_v15, %v2362_v31  ;;  %v3173_v5 = vld [vmem:[#allocation19 + $0x68] ss:$16 sps:$4 sm:$0xff]   ;;  %v3178_v22 = vld [vmem:[#allocation19 + $0x8c] ss:$16 sps:$4 sm:$0xff]  }
 0x400   :  { %v2373_v12 = vadd.f32 %v2368_v15, %v2363_v47  ;;  %v3176_v44 = vld [vmem:[#allocation19 + $0x88] ss:$16 sps:$4 sm:$0xff]   ;;  %v3181_v15 = vld [vmem:[#allocation19 + $0xac] ss:$16 sps:$4 sm:$0xff]  }
 0x401   :  { %v2374_v10 = vmin.f32 %v2370_v11, 20.0  ;;  %v2375_v62 = vmin.f32 %v2371_v57, 20.0  ;;  %v2376_v1 = vmin.f32 %v2372_v18, 20.0  ;;  %vm2414_vm2 = vcmp.gt.f32.partialorder %v2370_v11, 20.0  ;;  %v3179_v31 = vld [vmem:[#allocation19 + $0xa8] ss:$16 sps:$4 sm:$0xff]  }
 0x402   :  { %v2377_v17 = vmin.f32 %v2373_v12, 20.0  ;;  %vm2415_vm3 = vcmp.gt.f32.partialorder %v2371_v57, 20.0  ;;  %vm2416_vm4 = vcmp.gt.f32.partialorder %v2372_v18, 20.0  ;;  %vm2417_vm5 = vcmp.gt.f32.partialorder %v2373_v12, 20.0  ;;  %v3184_v47 = vld [vmem:[#allocation19 + $0xcc] ss:$16 sps:$4 sm:$0xff]  }
 0x403   :  { %v2382_v16 = vand.u32 2147483647, %v2374_v10  ;;  %v2383_v39 = vand.u32 2147483647, %v2375_v62  ;;  %v2384_v52 = vand.u32 2147483647, %v2376_v1 }
 0x404   :  { %v2385_v27 = vand.u32 2147483647, %v2377_v17  ;;  %v2378_v48 = vmax.f32 %v2374_v10, 0.0  ;;  %v2379_v2 = vmax.f32 %v2375_v62, 0.0  ;;  %v2380_v32 = vmax.f32 %v2376_v1, 0.0 }
 0x405   :  { %v2386_v8 = vsub.f32 0.0, %v2382_v16  ;;  %v2387_v45 = vsub.f32 0.0, %v2383_v39  ;;  %v2388_v36 = vsub.f32 0.0, %v2384_v52  ;;  %v2381_v30 = vmax.f32 %v2377_v17, 0.0 }
 0x406   :  { %v2389_v24 = vsub.f32 0.0, %v2385_v27 }
 0x407   :  { %v2390_v43 = vmul.f32 1.442695, %v2386_v8  ;;  %v2392_v3 = vmul.f32 1.442695, %v2387_v45  ;;  %v2394_v63 = vmul.f32 1.442695, %v2388_v36 }
 0x408   :  { %v2396_v28 = vmul.f32 1.442695, %v2389_v24 }
 0x409   :  { %3450 = vpow2.f32 %v2390_v43 }
 0x40a   :  { %3452 = vpow2.f32 %v2392_v3 }
 0x40b   :  { %3454 = vpow2.f32 %v2394_v63 }
 0x40c   :  { %3456 = vpow2.f32 %v2396_v28 }
 0x413   :  { %v3451_v54 = vpop.eup %3450 }
 0x414   :  { %v3453_v6 = vpop.eup %3452  ;;  %v2398_v19 = vadd.f32 1.0, %v3451_v54 }
 0x415   :  { %v3455_v59 = vpop.eup %3454  ;;  %v2399_v37 = vadd.f32 1.0, %v3453_v6 }
 0x416   :  { %v3457_v38 = vpop.eup %3456  ;;  %3458 = vlog2.f32 %v2398_v19  ;;  %v2400_v26 = vadd.f32 1.0, %v3455_v59 }
 0x417   :  { %3460 = vlog2.f32 %v2399_v37  ;;  %v2401_v60 = vadd.f32 1.0, %v3457_v38 }
 0x418   :  { %3462 = vlog2.f32 %v2400_v26 }
 0x419   :  { %3464 = vlog2.f32 %v2401_v60 }
 0x420   :  { %v3459_v29 = vpop.eup %3458 }
 0x421   :  { %v3461_v49 = vpop.eup %3460  ;;  %v2403_v55 = vmul.f32 0.6931472, %v3459_v29 }
 0x422   :  { %v3463_v34 = vpop.eup %3462  ;;  %v2405_v14 = vmul.f32 0.6931472, %v3461_v49 }
 0x423   :  { %v3465_v33 = vpop.eup %3464  ;;  %v2410_v58 = vadd.f32 %v2403_v55, %v2378_v48  ;;  %v2407_v51 = vmul.f32 0.6931472, %v3463_v34 }
 0x424   :  { %v2411_v50 = vadd.f32 %v2405_v14, %v2379_v2  ;;  %v2409_v25 = vmul.f32 0.6931472, %v3465_v33 }
 0x425   :  { %v2418_v40 = vsel %vm2414_vm2, %v2370_v11, %v2410_v58  ;;  %v2412_v21 = vadd.f32 %v2407_v51, %v2380_v32  ;;  %v3182_v11 = vld [vmem:[#allocation19 + $0xc8] ss:$16 sps:$4 sm:$0xff]  }
 0x426   :  { %v2419_v53 = vsel %vm2415_vm3, %v2371_v57, %v2411_v50  ;;  %v2413_v20 = vadd.f32 %v2409_v25, %v2381_v30  ;;  %v3187_v57 = vld [vmem:[#allocation19 + $0xec] ss:$16 sps:$4 sm:$0xff]  }
 0x427   :  { %v2422_v4 = vpack.c.bf16 %v2419_v53, %v2418_v40  ;;  %v2420_v35 = vsel %vm2416_vm4, %v2372_v18, %v2412_v21  ;;  %v3185_v18 = vld [vmem:[#allocation19 + $0xe8] ss:$16 sps:$4 sm:$0xff]  }
 0x428   :  { %v2421_v42 = vsel %vm2417_vm5, %v2373_v12, %v2413_v20 }
 0x429   :  { %2689 = vmatmul.mubr.bf16.vlgmr.msra.gmra.mrb[60].mxu1 %v2422_v4  ;;  %2992 = vst [vmem:[#allocation22] sm:$0xff] %v2422_v4   ;;  %v2423_v61 = vpack.c.bf16 %v2421_v42, %v2420_v35 }
 0x42a   :  { %2710 = vmatpush1.bf16.msra.mxu1 %v3164_v46  ;;  %2698 = vmatprep.mubr.bf16.mxu1 %v7084_v0 }
 0x42b   :  { %2711 = vmatprep.subr.bf16.mxu1 %v3169_v23  ;;  %2999 = vst [vmem:[#allocation22 + $0x8] sm:$0xff] %v2423_v61  }
 0x42e   :  { %2712 = vmatpush1.bf16.msra.mxu1 %v3167_v56 }
 0x42f   :  { %2713 = vmatprep.subr.bf16.mxu1 %v3172_v7 }
 0x431   :  { %2699 = vmatmul.mubr.bf16.gmra.mrb[64].mxu1 %v2423_v61 }
 0x432   :  { %2714 = vmatpush1.bf16.msra.mxu1 %v3170_v41  ;;  %2741 = vmatprep.mubr.bf16.mxu1 %v7084_v0 }
 0x433   :  { %2715 = vmatprep.subr.bf16.mxu1 %v3175_v13 }
 0x436   :  { %2716 = vmatpush1.bf16.msra.mxu1 %v3173_v5 }
 0x437   :  { %2717 = vmatprep.subr.bf16.mxu1 %v3178_v22 }
 0x43a   :  { %2718 = vmatpush1.bf16.msra.mxu1 %v3176_v44 }
 0x43b   :  { %2719 = vmatprep.subr.bf16.mxu1 %v3181_v15 }
 0x43e   :  { %2720 = vmatpush1.bf16.msra.mxu1 %v3179_v31 }
 0x43f   :  { %2721 = vmatprep.subr.bf16.mxu1 %v3184_v47 }
 0x442   :  { %2722 = vmatpush1.bf16.msra.mxu1 %v3182_v11 }
 0x443   :  { %2723 = vmatprep.subr.bf16.mxu1 %v3187_v57 }
 0x446   :  { %2724 = vmatpush1.bf16.msra.mxu1 %v3185_v18 }
 0x449   :  { %2742 = vmatmul.mubr.bf16.vlgmr.msra.gmra.mrb[68].mxu1 %v2422_v4 }
 0x44a   :  { %2751 = vmatprep.mubr.bf16.mxu1 %v7084_v0 }
 0x451   :  { %2752 = vmatmul.mubr.bf16.gmra.mrb[72].mxu1 %v2423_v61 }
 0x452   :  { %3741 = shalt.err (!%p3738_p2)
}
 0x453   :  { %s3742_s7 = scalar_lea.hbm %s6389_s12, 256 }
 0x454   :  { %p3743_p3 = scmp.ne.s32.totalorder %s6389_s12, %s3742_s7  ;;  %p3746_p4 = scmp.lt.u32.totalorder %s3742_s7, %s6389_s12 }
 0x456   :  { %p3748_p5 = pnand %p3746_p4, %p3743_p3 }
 0x458   :  { %3751 = shalt.err (!%p3748_p5)
}
 0x459   :  { %2829 = dma.vmem_to_hbm [thread:$0]  %s2824_s28, 256, %s6389_s12, [#allocation4], %s3822_s9, %s3822_s9, %s3823_s30   ;;  %v2474_v12 = vld [vmem:[#allocation20] sm:$0xf]  ;;  %v7085_v62 = vld [vmem:[#allocation53_spill] sm:$0xff] }
 0x45a   :  { %v2479_v10 = vrot.slane %v2474_v12, %v7083_v9  ;;  %v2483_v1 = vrot.slane %v2474_v12, %v7085_v62  ;;  %s3836_s12 = smov [#allocation23]  }
 0x45b   :  { %s2835_s9 = sshll.u32 %s3836_s12, 4  ;;  %s2836_s9 = int_to_ptr.vmem [resolvable:$true] %s2835_s9 }
 0x45c   :  { %s3752_s30 = scalar_lea.vmem %s2836_s9, 512  ;;  %p3757_p7 = scmp.lt.s32.totalorder %s2836_s9, %s2836_s9 }
 0x45d   :  { %p3753_p6 = scmp.ne.s32.totalorder %s2836_s9, %s3752_s30  ;;  %p3758_p8 = scmp.lt.s32.totalorder %s3752_s30, %s3752_s30 }
 0x45f   :  { %p3759_p9 = por %p3758_p8, %p3757_p7 }
 0x461   :  { %p3760_p10 = pnand %p3759_p9, %p3753_p6 }
 0x4fc   :  { %v2690_v17 = vpop.f32.mrb[60].mxu1 }
 0x4fd   :  { %v2691_v16 = vadd.f32 %v2690_v17, %v2479_v10  ;;  %v2692_v39 = vpop.f32.mrb[61].mxu1 }
 0x4fe   :  { %v2693_v52 = vadd.f32 %v2692_v39, %v2483_v1  ;;  %v2694_v27 = vpop.f32.mrb[62].mxu1 }
 0x4ff   :  { %v2695_v8 = vadd.f32 %v2694_v27, %v2479_v10  ;;  %v2696_v45 = vpop.f32.mrb[63].mxu1 }
 0x500   :  { %v2972_v36 = vpack.c.bf16 %v2693_v52, %v2691_v16  ;;  %v2697_v24 = vadd.f32 %v2696_v45, %v2483_v1 }
 0x502   :  { %2786 = vst [vmem:[#allocation23] sm:$0xff] %v2972_v36  ;;  %v2973_v43 = vpack.c.bf16 %v2697_v24, %v2695_v8 }
 0x504   :  { %2787 = vst [vmem:[#allocation23 + $0x8] sm:$0xff] %v2973_v43  ;;  %v2700_v3 = vpop.f32.mrb[64].mxu1 }
 0x505   :  { %v2701_v63 = vadd.f32 %v2700_v3, %v2479_v10  ;;  %v2702_v28 = vpop.f32.mrb[65].mxu1 }
 0x506   :  { %v2703_v54 = vadd.f32 %v2702_v28, %v2483_v1  ;;  %v2704_v6 = vpop.f32.mrb[66].mxu1 }
 0x507   :  { %v2705_v9 = vadd.f32 %v2704_v6, %v2479_v10  ;;  %v2706_v19 = vpop.f32.mrb[67].mxu1 }
 0x508   :  { %v2974_v59 = vpack.c.bf16 %v2703_v54, %v2701_v63  ;;  %v2707_v37 = vadd.f32 %v2706_v19, %v2483_v1 }
 0x50a   :  { %2788 = vst [vmem:[#allocation23 + $0x10] sm:$0xff] %v2974_v59  ;;  %v2975_v38 = vpack.c.bf16 %v2707_v37, %v2705_v9 }
 0x50c   :  { %2789 = vst [vmem:[#allocation23 + $0x18] sm:$0xff] %v2975_v38 }
 0x50d   :  { %3763 = shalt.err (!%p3760_p10)
}
 0x50e   :  { %s3764_s27 = scalar_lea.hbm %s6390_s13, 512 }
 0x50f   :  { %p3765_p11 = scmp.ne.s32.totalorder %s6390_s13, %s3764_s27  ;;  %p3768_p12 = scmp.lt.u32.totalorder %s3764_s27, %s6390_s13 }
 0x511   :  { %p3770_p13 = pnand %p3768_p12, %p3765_p11 }
 0x513   :  { %3773 = shalt.err (!%p3770_p13)
}
 0x514   :  { %2841 = dma.vmem_to_hbm [thread:$0]  %s2836_s9, 512, %s6390_s13, [#allocation24], %s3815_s23, %s3815_s23, %s3816_s24   ;;  %v7086_v26 = vld [vmem:[#allocation51_spill] sm:$0xff] }
 0x515   :  { %v2486_v60 = vsub.s32 2, %v7086_v26  ;;  %v2490_v29 = vsub.s32 3, %v7086_v26  ;;  %s3837_s13 = smov [#allocation25]  }
 0x516   :  { %s2847_s3 = sshll.u32 %s3837_s13, 4  ;;  %s2848_s3 = int_to_ptr.vmem [resolvable:$true] %s2847_s3 }
 0x517   :  { %v2487_v49 = vrot.slane %v2474_v12, %v2486_v60  ;;  %v2491_v48 = vrot.slane %v2474_v12, %v2490_v29  ;;  %s3774_s10 = scalar_lea.vmem %s2848_s3, 512  ;;  %p3779_p1 = scmp.lt.s32.totalorder %s2848_s3, %s2848_s3 }
 0x518   :  { %p3775_p0 = scmp.ne.s32.totalorder %s2848_s3, %s3774_s10  ;;  %p3780_p2 = scmp.lt.s32.totalorder %s3774_s10, %s3774_s10 }
 0x51a   :  { %p3781_p3 = por %p3780_p2, %p3779_p1 }
 0x51c   :  { %v2743_v55 = vpop.f32.mrb[68].mxu1  ;;  %p3782_p4 = pnand %p3781_p3, %p3775_p0 }
 0x51d   :  { %v2744_v34 = vadd.f32 %v2743_v55, %v2487_v49  ;;  %v2745_v2 = vpop.f32.mrb[69].mxu1 }
 0x51e   :  { %v2746_v14 = vadd.f32 %v2745_v2, %v2491_v48  ;;  %v2747_v33 = vpop.f32.mrb[70].mxu1 }
 0x51f   :  { %v2748_v58 = vadd.f32 %v2747_v33, %v2487_v49  ;;  %v2749_v32 = vpop.f32.mrb[71].mxu1 }
 0x520   :  { %v2976_v51 = vpack.c.bf16 %v2746_v14, %v2744_v34  ;;  %v2750_v50 = vadd.f32 %v2749_v32, %v2491_v48 }
 0x522   :  { %2814 = vst [vmem:[#allocation25] sm:$0xff] %v2976_v51  ;;  %v2977_v30 = vpack.c.bf16 %v2750_v50, %v2748_v58 }
 0x524   :  { %2815 = vst [vmem:[#allocation25 + $0x8] sm:$0xff] %v2977_v30  ;;  %v2753_v25 = vpop.f32.mrb[72].mxu1 }
 0x525   :  { %v2754_v40 = vadd.f32 %v2753_v25, %v2487_v49  ;;  %v2755_v21 = vpop.f32.mrb[73].mxu1 }
 0x526   :  { %v2756_v46 = vadd.f32 %v2755_v21, %v2491_v48  ;;  %v2757_v53 = vpop.f32.mrb[74].mxu1 }
 0x527   :  { %v2758_v20 = vadd.f32 %v2757_v53, %v2487_v49  ;;  %v2759_v4 = vpop.f32.mrb[75].mxu1 }
 0x528   :  { %v2978_v23 = vpack.c.bf16 %v2756_v46, %v2754_v40  ;;  %v2760_v35 = vadd.f32 %v2759_v4, %v2491_v48 }
 0x52a   :  { %2816 = vst [vmem:[#allocation25 + $0x10] sm:$0xff] %v2978_v23  ;;  %v2979_v42 = vpack.c.bf16 %v2760_v35, %v2758_v20 }
 0x52c   :  { %2817 = vst [vmem:[#allocation25 + $0x18] sm:$0xff] %v2979_v42 }
 0x52d   :  { %3785 = shalt.err (!%p3782_p4)
}
 0x52e   :  { %s3786_s28 = scalar_lea.hbm %s6391_s14, 512 }
 0x52f   :  { %p3787_p5 = scmp.ne.s32.totalorder %s6391_s14, %s3786_s28  ;;  %p3790_p6 = scmp.lt.u32.totalorder %s3786_s28, %s6391_s14 }
 0x531   :  { %p3792_p7 = pnand %p3790_p6, %p3787_p5 }
 0x533   :  { %3795 = shalt.err (!%p3792_p7)
}
 0x534   :  { %2853 = dma.vmem_to_hbm [thread:$0]  %s2848_s3, 512, %s6391_s14, [#allocation24], %s3815_s23, %s3815_s23, %s3816_s24  }
 0x535   :  { %3810 = dma.done.wait [#allocation4], 256  }
 0x536   :  { %3811 = vsyncadd [#allocation4], 4294967040 }
 0x537   :  { %3812 = dma.done.wait [#allocation24], 1024  }
 0x538   :  { %3813 = vsyncadd [#allocation24], 4294966272 }
 0x539   :  { %2863 = vsyncpa [#allocation3], 1 }
 0x53a   :  { %2864 = vsyncpa [#allocation6], 1 }
 0x53b   :  { %2865 = vsyncpa [#allocation9], 1 }
 0x53c   :  { %2866 = vsyncpa [#allocation12], 1 }
 0x53d   :  { %2867 = vsyncpa [#allocation15], 1 }
 0x53e   :  { %2868 = vsyncpa [#allocation18], 1 }
 0x53f   :  { %2869 = vsyncpa [#allocation21], 1 }
 0x540   :  { %2870 = vsyncpa [#allocation4], 1 }
 0x541   :  { %2871 = vsyncpa [#allocation24], 1 }

</bundles_post_ra>
